<compile_context>
chip_gen: v7x
topology: tpu7x:2x2x1
jax: 0.10.0
libtpu: 0.0.40
codegen_flags: <defaults>
</compile_context>

<pallas_src>
import functools

import jax
import jax.numpy as jnp
import numpy as np
from jax import lax
from jax.experimental import pallas as pl
from jax.experimental.pallas import tpu as pltpu


# ----------------------------------------------------------------------------
# Static geometry helpers (plain Python / numpy, evaluated at trace time)
# ----------------------------------------------------------------------------
def _geom(h, w):
    """Padded-flat geometry for an HxW feature map.

    Activations live per batch element as (C, Lb), Lb = (H+2)*(W+2): the
    zero-padded spatial grid flattened row-major onto the lane axis.
    G = Wp+1 is the first column whose 3x3 neighborhood is fully in-bounds;
    Mc = Lb - 2*G is the width of the "center window" [G, Lb-G).
    """
    hp, wp = h + 2, w + 2
    lb = hp * wp
    g = wp + 1
    return {"H": h, "W": w, "Hp": hp, "Wp": wp, "Lb": lb, "G": g, "Mc": lb - 2 * g}


def _half(n):  # output size of a k=3/s=2/p=1 (or k=1/s=2/p=0) conv
    return (n - 1) // 2 + 1


def _interior_mask(gm):
    """(1, Mc) 0/1 mask: 1 at interior (non-pad) columns of the center window."""
    m = np.zeros((1, gm["Mc"]), np.float32)
    for h in range(gm["H"]):
        for w in range(gm["W"]):
            col = (h + 1) * gm["Wp"] + (w + 1)
            m[0, col - gm["G"]] = 1.0
    return jnp.asarray(m)


def _stride2_select(gi, go):
    """(Mc_in, Mc_out) 0/1 matrix: stride-2 spatial downsample from the input
    center window into the output center window (output pad columns -> 0)."""
    s = np.zeros((gi["Mc"], go["Mc"]), np.float32)
    for ho in range(go["H"]):
        for wo in range(go["W"]):
            ci = (2 * ho + 1) * gi["Wp"] + (2 * wo + 1)
            co = (ho + 1) * go["Wp"] + (wo + 1)
            s[ci - gi["G"], co - go["G"]] = 1.0
    return jnp.asarray(s, jnp.bfloat16)


def _bcast_spec(arr):
    """Full-array block that is identical for every grid step."""
    zeros = (0,) * arr.ndim
    return pl.BlockSpec(tuple(arr.shape), lambda n, _z=zeros: _z)


# ----------------------------------------------------------------------------
# In-kernel building blocks
# ----------------------------------------------------------------------------
def _conv3x3(buf_ref, cin, g, w_flat):
    """3x3 conv as ONE deep-K MXU matmul (im2col built in VMEM).

    buf_ref holds the activation in padded-flat layout (rows [:cin] valid,
    pad-ring columns exactly zero).  Returns (Cout, Mc) f32 conv values at
    every center-window column (pad-ring centers hold garbage; caller masks).
    """
    G, Wp, Mc = g["G"], g["Wp"], g["Mc"]
    slabs = []
    for dh in (-1, 0, 1):
        for dw in (-1, 0, 1):
            off = dh * Wp + dw
            slabs.append(buf_ref[:cin, G + off:G + off + Mc].astype(jnp.bfloat16))
    patches = jnp.concatenate(slabs, axis=0)              # (9*cin, Mc) bf16
    return jnp.dot(w_flat, patches, preferred_element_type=jnp.float32)


def _stem(x_img, g, w, b, mask, act_ref):
    """conv1(1->16, 3x3, s1, p1) + folded BN + ReLU (Cin == 1 -> VPU path)."""
    G, Wp, Mc = g["G"], g["Wp"], g["Mc"]
    cout = w.shape[0]
    acc = None
    k = 0
    for dh in (-1, 0, 1):
        for dw in (-1, 0, 1):
            off = dh * Wp + dw
            xs = x_img[:, G + off:G + off + Mc]            # (1, Mc) f32
            t = w[:, k:k + 1] * xs                         # (cout, Mc) f32
            acc = t if acc is None else acc + t
            k += 1
    h = jnp.maximum(acc + b, 0.0) * mask
    act_ref[...] = jnp.zeros_like(act_ref)
    act_ref[:cout, G:G + Mc] = h


def _identity_stack(n_blocks, c, g, mask, act_ref, tmp_ref,
                    w1_ref, b1_ref, w2_ref, b2_ref):
    """n_blocks identity BasicBlocks (stride 1, Cin == Cout), fully fused,
    weights indexed dynamically from the stacked (n_blocks, ...) refs."""
    G, Mc = g["G"], g["Mc"]

    def body(i, carry):
        a1 = _conv3x3(act_ref, c, g, w1_ref[i])
        h = jnp.maximum(a1 + b1_ref[i], 0.0) * mask
        tmp_ref[:c, G:G + Mc] = h                          # ring stays zero
        a2 = _conv3x3(tmp_ref, c, g, w2_ref[i])
        y = a2 + b2_ref[i] + act_ref[:c, G:G + Mc]         # f32 residual
        act_ref[:c, G:G + Mc] = jnp.maximum(y, 0.0) * mask
        return carry

    lax.fori_loop(0, n_blocks, body, 0)


def _proj_block(cin, cout, gi, go, sel, mask_o, act_ref, tmp_ref,
                w1, b1, w2, b2, wsc, bsc):
    """Downsampling BasicBlock (stride 2, 1x1 projection shortcut), fused."""
    Gi, Mci = gi["G"], gi["Mc"]
    Go, Mco = go["G"], go["Mc"]

    # conv1 (3x3, stride 2) + bn1 + relu; stride-select into output geometry.
    a1 = _conv3x3(act_ref, cin, gi, w1)                    # (cout, Mci) f32
    h = jnp.maximum(a1 + b1, 0.0)
    h_sel = jnp.dot(h.astype(jnp.bfloat16), sel,
                    preferred_element_type=jnp.float32)    # (cout, Mco) f32

    # projection shortcut: strided 1x1 conv + bn (same spatial selection).
    x_sel = jnp.dot(act_ref[:cin, Gi:Gi + Mci].astype(jnp.bfloat16), sel,
                    preferred_element_type=jnp.float32)    # (cin, Mco) f32
    sc = jnp.dot(wsc, x_sel.astype(jnp.bfloat16),
                 preferred_element_type=jnp.float32) + bsc  # (cout, Mco) f32

    # conv2 (3x3, stride 1) on the downsampled geometry.
    tmp_ref[...] = jnp.zeros_like(tmp_ref)
    tmp_ref[:cout, Go:Go + Mco] = h_sel
    a2 = _conv3x3(tmp_ref, cout, go, w2)                   # (cout, Mco) f32

    out = jnp.maximum(a2 + b2 + sc, 0.0) * mask_o
    act_ref[...] = jnp.zeros_like(act_ref)
    act_ref[:cout, Go:Go + Mco] = out


# ----------------------------------------------------------------------------
# The fused whole-network kernel
# ----------------------------------------------------------------------------
def _resnet_kernel(g1, g2, g3,
                   x_ref,
                   stem_w_ref, stem_b_ref,
                   l1_w1_ref, l1_b1_ref, l1_w2_ref, l1_b2_ref,
                   p2_w1_ref, p2_b1_ref, p2_w2_ref, p2_b2_ref,
                   p2_wsc_ref, p2_bsc_ref,
                   l2_w1_ref, l2_b1_ref, l2_w2_ref, l2_b2_ref,
                   p3_w1_ref, p3_b1_ref, p3_w2_ref, p3_b2_ref,
                   p3_wsc_ref, p3_bsc_ref,
                   l3_w1_ref, l3_b1_ref, l3_w2_ref, l3_b2_ref,
                   fc_w_ref, fc_b_ref,
                   mask1_ref, mask2_ref, mask3_ref, sel12_ref, sel23_ref,
                   o_ref,
                   act_ref, tmp_ref):
    mask1 = mask1_ref[...]
    mask2 = mask2_ref[...]
    mask3 = mask3_ref[...]

    c1 = stem_w_ref.shape[0]       # 16
    c2 = p2_w1_ref.shape[0]        # 32
    c3 = p3_w1_ref.shape[0]        # 64

    # ---- stem: conv(1->16, 3x3, s1, p1) + bn + relu ----
    _stem(x_ref[0], g1, stem_w_ref[...], stem_b_ref[...], mask1, act_ref)
    tmp_ref[...] = jnp.zeros_like(tmp_ref)

    # ---- layer1: 9 identity blocks @ 16 channels ----
    _identity_stack(l1_w1_ref.shape[0], c1, g1, mask1, act_ref, tmp_ref,
                    l1_w1_ref, l1_b1_ref, l1_w2_ref, l1_b2_ref)

    # ---- layer2: downsampling block (16->32, s2) + 8 identity blocks ----
    _proj_block(c1, c2, g1, g2, sel12_ref[...], mask2, act_ref, tmp_ref,
                p2_w1_ref[...], p2_b1_ref[...], p2_w2_ref[...], p2_b2_ref[...],
                p2_wsc_ref[...], p2_bsc_ref[...])
    _identity_stack(l2_w1_ref.shape[0], c2, g2, mask2, act_ref, tmp_ref,
                    l2_w1_ref, l2_b1_ref, l2_w2_ref, l2_b2_ref)

    # ---- layer3: downsampling block (32->64, s2) + 8 identity blocks ----
    _proj_block(c2, c3, g2, g3, sel23_ref[...], mask3, act_ref, tmp_ref,
                p3_w1_ref[...], p3_b1_ref[...], p3_w2_ref[...], p3_b2_ref[...],
                p3_wsc_ref[...], p3_bsc_ref[...])
    _identity_stack(l3_w1_ref.shape[0], c3, g3, mask3, act_ref, tmp_ref,
                    l3_w1_ref, l3_b1_ref, l3_w2_ref, l3_b2_ref)

    # ---- head: global average pool + fc (fused, no extra launch) ----
    x3 = act_ref[:c3, :g3["Lb"]]                           # pad columns are 0
    pooled = jnp.sum(x3, axis=1, keepdims=True) / float(g3["H"] * g3["W"])
    logit = jnp.sum(fc_w_ref[...] * pooled, axis=0, keepdims=True) + fc_b_ref[...]
    o_ref[...] = logit.reshape(1, 1, 1)


# ----------------------------------------------------------------------------
# pallas_call wrapper / forward pass
# ----------------------------------------------------------------------------
_PARAM_ORDER = (
    "stem_w", "stem_b",
    "l1_w1", "l1_b1", "l1_w2", "l1_b2",
    "p2_w1", "p2_b1", "p2_w2", "p2_b2", "p2_wsc", "p2_bsc",
    "l2_w1", "l2_b1", "l2_w2", "l2_b2",
    "p3_w1", "p3_b1", "p3_w2", "p3_b2", "p3_wsc", "p3_bsc",
    "l3_w1", "l3_b1", "l3_w2", "l3_b2",
    "fc_w", "fc_b",
)


def resnet56_emnist_forward(params, x):
    """x: NCHW with C=1, or NHW (unsqueezed like the PyTorch module)."""
    if x.ndim == 3:
        x = x[:, None, :, :]
    elif not (x.ndim == 4 and x.shape[1] == 1):
        raise ValueError(f"Unexpected input shape: {x.shape}")
    x = x.astype(jnp.float32)
    n_batch, _, h, w = x.shape

    g1 = _geom(h, w)
    g2 = _geom(_half(h), _half(w))
    g3 = _geom(_half(g2["H"]), _half(g2["W"]))

    mask1 = _interior_mask(g1)
    mask2 = _interior_mask(g2)
    mask3 = _interior_mask(g3)
    sel12 = _stride2_select(g1, g2)
    sel23 = _stride2_select(g2, g3)

    # Internal layout: (N, 1, Lb1) zero-padded ring, spatial flattened on lanes.
    xi = jnp.pad(x, ((0, 0), (0, 0), (1, 1), (1, 1))).reshape(n_batch, 1, g1["Lb"])

    inputs = ([xi] + [params[k] for k in _PARAM_ORDER]
              + [mask1, mask2, mask3, sel12, sel23])
    in_specs = ([pl.BlockSpec((1, 1, g1["Lb"]), lambda n: (n, 0, 0))]
                + [_bcast_spec(a) for a in inputs[1:]])

    c_max = params["p3_w1"].shape[0]          # 64 channels in layer3
    kern = functools.partial(_resnet_kernel, g1, g2, g3)

    out = pl.pallas_call(
        kern,
        out_shape=jax.ShapeDtypeStruct((n_batch, 1, 1), jnp.float32),
        grid=(n_batch,),
        in_specs=in_specs,
        out_specs=pl.BlockSpec((1, 1, 1), lambda n: (n, 0, 0)),
        scratch_shapes=[pltpu.VMEM((c_max, g1["Lb"]), jnp.float32),   # activation
                        pltpu.VMEM((c_max, g1["Lb"]), jnp.float32)],  # block temp
        compiler_params=pltpu.CompilerParams(
            dimension_semantics=("parallel",)),
    )(*inputs)
    return out.reshape(n_batch, 1)


# ----------------------------------------------------------------------------
# Parameter initialization (deterministic, synthetic; BN pre-folded, eval mode)
# ----------------------------------------------------------------------------
class KeyGen:
    def __init__(self, key):
        self.key = key

    def __call__(self):
        self.key, sub = jax.random.split(self.key)
        return sub


def _fold_bn(kg, c, eps=1e-5):
    gamma = 1.0 + 0.1 * jax.random.normal(kg(), (c,), jnp.float32)
    beta = 0.1 * jax.random.normal(kg(), (c,), jnp.float32)
    mean = 0.1 * jax.random.normal(kg(), (c,), jnp.float32)
    var = 1.0 + 0.1 * jnp.abs(jax.random.normal(kg(), (c,), jnp.float32))
    scale = gamma / jnp.sqrt(var + eps)
    bias = beta - mean * scale
    return scale, bias


def _conv3x3_folded(kg, cin, cout, dtype=jnp.bfloat16):
    """3x3 conv weight with BN scale folded in, flattened to (cout, 9*cin)
    with tap-major ordering that matches the kernel's patch construction."""
    w = jax.random.normal(kg(), (cout, cin, 3, 3), jnp.float32) / np.sqrt(9.0 * cin)
    scale, bias = _fold_bn(kg, cout)
    wf = w * scale[:, None, None, None]
    w_flat = jnp.transpose(wf, (0, 2, 3, 1)).reshape(cout, 9 * cin)
    return w_flat.astype(dtype), bias.reshape(cout, 1)


def _conv1x1_folded(kg, cin, cout):
    w = jax.random.normal(kg(), (cout, cin), jnp.float32) / np.sqrt(float(cin))
    scale, bias = _fold_bn(kg, cout)
    return (w * scale[:, None]).astype(jnp.bfloat16), bias.reshape(cout, 1)


def init_resnet56_emnist(seed=42):
    kg = KeyGen(jax.random.PRNGKey(seed))
    p = {}
    p["stem_w"], p["stem_b"] = _conv3x3_folded(kg, 1, 16, dtype=jnp.float32)

    def identity_stack(n_blocks, c):
        w1s, b1s, w2s, b2s = [], [], [], []
        for _ in range(n_blocks):
            w1, b1 = _conv3x3_folded(kg, c, c)
            w2, b2 = _conv3x3_folded(kg, c, c)
            w1s.append(w1)
            b1s.append(b1)
            w2s.append(w2)
            b2s.append(b2)
        return jnp.stack(w1s), jnp.stack(b1s), jnp.stack(w2s), jnp.stack(b2s)

    def proj_block(cin, cout):
        w1, b1 = _conv3x3_folded(kg, cin, cout)
        w2, b2 = _conv3x3_folded(kg, cout, cout)
        wsc, bsc = _conv1x1_folded(kg, cin, cout)
        return w1, b1, w2, b2, wsc, bsc

    (p["l1_w1"], p["l1_b1"], p["l1_w2"], p["l1_b2"]) = identity_stack(9, 16)
    (p["p2_w1"], p["p2_b1"], p["p2_w2"], p["p2_b2"],
     p["p2_wsc"], p["p2_bsc"]) = proj_block(16, 32)
    (p["l2_w1"], p["l2_b1"], p["l2_w2"], p["l2_b2"]) = identity_stack(8, 32)
    (p["p3_w1"], p["p3_b1"], p["p3_w2"], p["p3_b2"],
     p["p3_wsc"], p["p3_bsc"]) = proj_block(32, 64)
    (p["l3_w1"], p["l3_b1"], p["l3_w2"], p["l3_b2"]) = identity_stack(8, 64)
    p["fc_w"] = jax.random.normal(kg(), (64, 1), jnp.float32) / np.sqrt(64.0)
    p["fc_b"] = 0.01 * jax.random.normal(kg(), (1, 1), jnp.float32)
    return p


# ----------------------------------------------------------------------------
# Demo
# ----------------------------------------------------------------------------
if __name__ == "__main__":
    params = init_resnet56_emnist(seed=42)

    # Small EMNIST-like input: batch=2, 1 channel, 16x16 spatial (NCHW).
    x = jax.random.normal(jax.random.PRNGKey(0), (2, 1, 16, 16), jnp.float32)

    apply_fn = jax.jit(lambda inp: resnet56_emnist_forward(params, inp))
    y = apply_fn(x)
    jax.block_until_ready(y)

    assert y.shape == (2, 1), y.shape
    assert bool(jnp.all(jnp.isfinite(y)))
    print("KERNEL_OK")
</pallas_src>

<mosaic_0001>
module attributes {stable_mosaic.version = 11 : i64} {
  func.func @_resnet_kernel(%arg0: i32, %arg1: memref<1x1x324xf32, #tpu.memory_space<vmem>>, %arg2: memref<16x9xf32, #tpu.memory_space<vmem>>, %arg3: memref<16x1xf32, #tpu.memory_space<vmem>>, %arg4: memref<9x16x144xbf16, #tpu.memory_space<vmem>>, %arg5: memref<9x16x1xf32, #tpu.memory_space<vmem>>, %arg6: memref<9x16x144xbf16, #tpu.memory_space<vmem>>, %arg7: memref<9x16x1xf32, #tpu.memory_space<vmem>>, %arg8: memref<32x144xbf16, #tpu.memory_space<vmem>>, %arg9: memref<32x1xf32, #tpu.memory_space<vmem>>, %arg10: memref<32x288xbf16, #tpu.memory_space<vmem>>, %arg11: memref<32x1xf32, #tpu.memory_space<vmem>>, %arg12: memref<32x16xbf16, #tpu.memory_space<vmem>>, %arg13: memref<32x1xf32, #tpu.memory_space<vmem>>, %arg14: memref<8x32x288xbf16, #tpu.memory_space<vmem>>, %arg15: memref<8x32x1xf32, #tpu.memory_space<vmem>>, %arg16: memref<8x32x288xbf16, #tpu.memory_space<vmem>>, %arg17: memref<8x32x1xf32, #tpu.memory_space<vmem>>, %arg18: memref<64x288xbf16, #tpu.memory_space<vmem>>, %arg19: memref<64x1xf32, #tpu.memory_space<vmem>>, %arg20: memref<64x576xbf16, #tpu.memory_space<vmem>>, %arg21: memref<64x1xf32, #tpu.memory_space<vmem>>, %arg22: memref<64x32xbf16, #tpu.memory_space<vmem>>, %arg23: memref<64x1xf32, #tpu.memory_space<vmem>>, %arg24: memref<8x64x576xbf16, #tpu.memory_space<vmem>>, %arg25: memref<8x64x1xf32, #tpu.memory_space<vmem>>, %arg26: memref<8x64x576xbf16, #tpu.memory_space<vmem>>, %arg27: memref<8x64x1xf32, #tpu.memory_space<vmem>>, %arg28: memref<64x1xf32, #tpu.memory_space<vmem>>, %arg29: memref<1x1xf32, #tpu.memory_space<vmem>>, %arg30: memref<1x286xf32, #tpu.memory_space<vmem>>, %arg31: memref<1x78xf32, #tpu.memory_space<vmem>>, %arg32: memref<1x22xf32, #tpu.memory_space<vmem>>, %arg33: memref<286x78xbf16, #tpu.memory_space<vmem>>, %arg34: memref<78x22xbf16, #tpu.memory_space<vmem>>, %arg35: memref<1x1x1xf32, #tpu.memory_space<vmem>>, %arg36: memref<64x324xf32, #tpu.memory_space<vmem>>, %arg37: memref<64x324xf32, #tpu.memory_space<vmem>>) attributes {dimension_semantics = [#tpu.dimension_semantics<parallel>], iteration_bounds = array<i64: 2>, scalar_prefetch = 0 : i64, scratch_operands = 2 : i64, tpu.core_type = #tpu.core_type<tc>, window_params = [{transform_indices = @transform_0, window_bounds = array<i64: 1, 1, 324>}, {pipeline_mode = #tpu.pipeline_mode<synchronous>, transform_indices = @transform_1, window_bounds = array<i64: 16, 9>}, {pipeline_mode = #tpu.pipeline_mode<synchronous>, transform_indices = @transform_2, window_bounds = array<i64: 16, 1>}, {pipeline_mode = #tpu.pipeline_mode<synchronous>, transform_indices = @transform_3, window_bounds = array<i64: 9, 16, 144>}, {pipeline_mode = #tpu.pipeline_mode<synchronous>, transform_indices = @transform_4, window_bounds = array<i64: 9, 16, 1>}, {pipeline_mode = #tpu.pipeline_mode<synchronous>, transform_indices = @transform_5, window_bounds = array<i64: 9, 16, 144>}, {pipeline_mode = #tpu.pipeline_mode<synchronous>, transform_indices = @transform_6, window_bounds = array<i64: 9, 16, 1>}, {pipeline_mode = #tpu.pipeline_mode<synchronous>, transform_indices = @transform_7, window_bounds = array<i64: 32, 144>}, {pipeline_mode = #tpu.pipeline_mode<synchronous>, transform_indices = @transform_8, window_bounds = array<i64: 32, 1>}, {pipeline_mode = #tpu.pipeline_mode<synchronous>, transform_indices = @transform_9, window_bounds = array<i64: 32, 288>}, {pipeline_mode = #tpu.pipeline_mode<synchronous>, transform_indices = @transform_10, window_bounds = array<i64: 32, 1>}, {pipeline_mode = #tpu.pipeline_mode<synchronous>, transform_indices = @transform_11, window_bounds = array<i64: 32, 16>}, {pipeline_mode = #tpu.pipeline_mode<synchronous>, transform_indices = @transform_12, window_bounds = array<i64: 32, 1>}, {pipeline_mode = #tpu.pipeline_mode<synchronous>, transform_indices = @transform_13, window_bounds = array<i64: 8, 32, 288>}, {pipeline_mode = #tpu.pipeline_mode<synchronous>, transform_indices = @transform_14, window_bounds = array<i64: 8, 32, 1>}, {pipeline_mode = #tpu.pipeline_mode<synchronous>, transform_indices = @transform_15, window_bounds = array<i64: 8, 32, 288>}, {pipeline_mode = #tpu.pipeline_mode<synchronous>, transform_indices = @transform_16, window_bounds = array<i64: 8, 32, 1>}, {pipeline_mode = #tpu.pipeline_mode<synchronous>, transform_indices = @transform_17, window_bounds = array<i64: 64, 288>}, {pipeline_mode = #tpu.pipeline_mode<synchronous>, transform_indices = @transform_18, window_bounds = array<i64: 64, 1>}, {pipeline_mode = #tpu.pipeline_mode<synchronous>, transform_indices = @transform_19, window_bounds = array<i64: 64, 576>}, {pipeline_mode = #tpu.pipeline_mode<synchronous>, transform_indices = @transform_20, window_bounds = array<i64: 64, 1>}, {pipeline_mode = #tpu.pipeline_mode<synchronous>, transform_indices = @transform_21, window_bounds = array<i64: 64, 32>}, {pipeline_mode = #tpu.pipeline_mode<synchronous>, transform_indices = @transform_22, window_bounds = array<i64: 64, 1>}, {pipeline_mode = #tpu.pipeline_mode<synchronous>, transform_indices = @transform_23, window_bounds = array<i64: 8, 64, 576>}, {pipeline_mode = #tpu.pipeline_mode<synchronous>, transform_indices = @transform_24, window_bounds = array<i64: 8, 64, 1>}, {pipeline_mode = #tpu.pipeline_mode<synchronous>, transform_indices = @transform_25, window_bounds = array<i64: 8, 64, 576>}, {pipeline_mode = #tpu.pipeline_mode<synchronous>, transform_indices = @transform_26, window_bounds = array<i64: 8, 64, 1>}, {pipeline_mode = #tpu.pipeline_mode<synchronous>, transform_indices = @transform_27, window_bounds = array<i64: 64, 1>}, {pipeline_mode = #tpu.pipeline_mode<synchronous>, transform_indices = @transform_28, window_bounds = array<i64: 1, 1>}, {pipeline_mode = #tpu.pipeline_mode<synchronous>, transform_indices = @transform_29, window_bounds = array<i64: 1, 286>}, {pipeline_mode = #tpu.pipeline_mode<synchronous>, transform_indices = @transform_30, window_bounds = array<i64: 1, 78>}, {pipeline_mode = #tpu.pipeline_mode<synchronous>, transform_indices = @transform_31, window_bounds = array<i64: 1, 22>}, {pipeline_mode = #tpu.pipeline_mode<synchronous>, transform_indices = @transform_32, window_bounds = array<i64: 286, 78>}, {pipeline_mode = #tpu.pipeline_mode<synchronous>, transform_indices = @transform_33, window_bounds = array<i64: 78, 22>}, {transform_indices = @transform_34, window_bounds = array<i64: 1, 1, 1>}]} {
    %c0 = arith.constant 0 : index
    %c0_0 = arith.constant 0 : index
    %0 = vector.load %arg30[%c0, %c0_0] : memref<1x286xf32, #tpu.memory_space<vmem>>, vector<1x286xf32>
    %c0_1 = arith.constant 0 : index
    %c0_2 = arith.constant 0 : index
    %1 = vector.load %arg31[%c0_1, %c0_2] : memref<1x78xf32, #tpu.memory_space<vmem>>, vector<1x78xf32>
    %c0_3 = arith.constant 0 : index
    %c0_4 = arith.constant 0 : index
    %2 = vector.load %arg32[%c0_3, %c0_4] : memref<1x22xf32, #tpu.memory_space<vmem>>, vector<1x22xf32>
    %c0_5 = arith.constant 0 : index
    %c0_6 = arith.constant 0 : index
    %c0_7 = arith.constant 0 : index
    %3 = vector.load %arg1[%c0_5, %c0_6, %c0_7] : memref<1x1x324xf32, #tpu.memory_space<vmem>>, vector<1x1x324xf32>
    %4 = vector.shape_cast %3 : vector<1x1x324xf32> to vector<1x324xf32>
    %c0_8 = arith.constant 0 : index
    %c0_9 = arith.constant 0 : index
    %5 = vector.load %arg2[%c0_8, %c0_9] : memref<16x9xf32, #tpu.memory_space<vmem>>, vector<16x9xf32>
    %c0_10 = arith.constant 0 : index
    %c0_11 = arith.constant 0 : index
    %6 = vector.load %arg3[%c0_10, %c0_11] : memref<16x1xf32, #tpu.memory_space<vmem>>, vector<16x1xf32>
    %7 = vector.extract_strided_slice %4 {offsets = [0, 0], sizes = [1, 286], strides = [1, 1]} : vector<1x324xf32> to vector<1x286xf32>
    %8 = vector.extract_strided_slice %5 {offsets = [0, 0], sizes = [16, 1], strides = [1, 1]} : vector<16x9xf32> to vector<16x1xf32>
    %9 = vector.broadcast %8 : vector<16x1xf32> to vector<16x286xf32>
    %10 = vector.broadcast %7 : vector<1x286xf32> to vector<16x286xf32>
    %11 = arith.mulf %9, %10 : vector<16x286xf32>
    %12 = vector.extract_strided_slice %4 {offsets = [0, 1], sizes = [1, 286], strides = [1, 1]} : vector<1x324xf32> to vector<1x286xf32>
    %13 = vector.extract_strided_slice %5 {offsets = [0, 1], sizes = [16, 1], strides = [1, 1]} : vector<16x9xf32> to vector<16x1xf32>
    %14 = vector.broadcast %13 : vector<16x1xf32> to vector<16x286xf32>
    %15 = vector.broadcast %12 : vector<1x286xf32> to vector<16x286xf32>
    %16 = arith.mulf %14, %15 : vector<16x286xf32>
    %17 = arith.addf %11, %16 : vector<16x286xf32>
    %18 = vector.extract_strided_slice %4 {offsets = [0, 2], sizes = [1, 286], strides = [1, 1]} : vector<1x324xf32> to vector<1x286xf32>
    %19 = vector.extract_strided_slice %5 {offsets = [0, 2], sizes = [16, 1], strides = [1, 1]} : vector<16x9xf32> to vector<16x1xf32>
    %20 = vector.broadcast %19 : vector<16x1xf32> to vector<16x286xf32>
    %21 = vector.broadcast %18 : vector<1x286xf32> to vector<16x286xf32>
    %22 = arith.mulf %20, %21 : vector<16x286xf32>
    %23 = arith.addf %17, %22 : vector<16x286xf32>
    %24 = vector.extract_strided_slice %4 {offsets = [0, 18], sizes = [1, 286], strides = [1, 1]} : vector<1x324xf32> to vector<1x286xf32>
    %25 = vector.extract_strided_slice %5 {offsets = [0, 3], sizes = [16, 1], strides = [1, 1]} : vector<16x9xf32> to vector<16x1xf32>
    %26 = vector.broadcast %25 : vector<16x1xf32> to vector<16x286xf32>
    %27 = vector.broadcast %24 : vector<1x286xf32> to vector<16x286xf32>
    %28 = arith.mulf %26, %27 : vector<16x286xf32>
    %29 = arith.addf %23, %28 : vector<16x286xf32>
    %30 = vector.extract_strided_slice %4 {offsets = [0, 19], sizes = [1, 286], strides = [1, 1]} : vector<1x324xf32> to vector<1x286xf32>
    %31 = vector.extract_strided_slice %5 {offsets = [0, 4], sizes = [16, 1], strides = [1, 1]} : vector<16x9xf32> to vector<16x1xf32>
    %32 = vector.broadcast %31 : vector<16x1xf32> to vector<16x286xf32>
    %33 = vector.broadcast %30 : vector<1x286xf32> to vector<16x286xf32>
    %34 = arith.mulf %32, %33 : vector<16x286xf32>
    %35 = arith.addf %29, %34 : vector<16x286xf32>
    %36 = vector.extract_strided_slice %4 {offsets = [0, 20], sizes = [1, 286], strides = [1, 1]} : vector<1x324xf32> to vector<1x286xf32>
    %37 = vector.extract_strided_slice %5 {offsets = [0, 5], sizes = [16, 1], strides = [1, 1]} : vector<16x9xf32> to vector<16x1xf32>
    %38 = vector.broadcast %37 : vector<16x1xf32> to vector<16x286xf32>
    %39 = vector.broadcast %36 : vector<1x286xf32> to vector<16x286xf32>
    %40 = arith.mulf %38, %39 : vector<16x286xf32>
    %41 = arith.addf %35, %40 : vector<16x286xf32>
    %42 = vector.extract_strided_slice %4 {offsets = [0, 36], sizes = [1, 286], strides = [1, 1]} : vector<1x324xf32> to vector<1x286xf32>
    %43 = vector.extract_strided_slice %5 {offsets = [0, 6], sizes = [16, 1], strides = [1, 1]} : vector<16x9xf32> to vector<16x1xf32>
    %44 = vector.broadcast %43 : vector<16x1xf32> to vector<16x286xf32>
    %45 = vector.broadcast %42 : vector<1x286xf32> to vector<16x286xf32>
    %46 = arith.mulf %44, %45 : vector<16x286xf32>
    %47 = arith.addf %41, %46 : vector<16x286xf32>
    %48 = vector.extract_strided_slice %4 {offsets = [0, 37], sizes = [1, 286], strides = [1, 1]} : vector<1x324xf32> to vector<1x286xf32>
    %49 = vector.extract_strided_slice %5 {offsets = [0, 7], sizes = [16, 1], strides = [1, 1]} : vector<16x9xf32> to vector<16x1xf32>
    %50 = vector.broadcast %49 : vector<16x1xf32> to vector<16x286xf32>
    %51 = vector.broadcast %48 : vector<1x286xf32> to vector<16x286xf32>
    %52 = arith.mulf %50, %51 : vector<16x286xf32>
    %53 = arith.addf %47, %52 : vector<16x286xf32>
    %54 = vector.extract_strided_slice %4 {offsets = [0, 38], sizes = [1, 286], strides = [1, 1]} : vector<1x324xf32> to vector<1x286xf32>
    %55 = vector.extract_strided_slice %5 {offsets = [0, 8], sizes = [16, 1], strides = [1, 1]} : vector<16x9xf32> to vector<16x1xf32>
    %56 = vector.broadcast %55 : vector<16x1xf32> to vector<16x286xf32>
    %57 = vector.broadcast %54 : vector<1x286xf32> to vector<16x286xf32>
    %58 = arith.mulf %56, %57 : vector<16x286xf32>
    %59 = arith.addf %53, %58 : vector<16x286xf32>
    %60 = vector.broadcast %6 : vector<16x1xf32> to vector<16x286xf32>
    %61 = arith.addf %59, %60 : vector<16x286xf32>
    %cst = arith.constant 0.000000e+00 : f32
    %62 = vector.broadcast %cst : f32 to vector<16x286xf32>
    %63 = arith.maximumf %61, %62 : vector<16x286xf32>
    %64 = vector.broadcast %0 : vector<1x286xf32> to vector<16x286xf32>
    %65 = arith.mulf %63, %64 : vector<16x286xf32>
    %cst_12 = arith.constant 0.000000e+00 : f32
    %66 = vector.broadcast %cst_12 : f32 to vector<64x324xf32>
    %c0_13 = arith.constant 0 : index
    %c0_14 = arith.constant 0 : index
    %67 = vector.load %arg36[%c0_13, %c0_14] : memref<64x324xf32, #tpu.memory_space<vmem>>, vector<64x324xf32>
    tpu.vector_store %arg36[%c0_13, %c0_14], %66 {strides = array<i32>} : memref<64x324xf32, #tpu.memory_space<vmem>>, vector<64x324xf32>,
    %c0_15 = arith.constant 0 : index
    %c19 = arith.constant 19 : index
    %68 = vector.load %arg36[%c0_15, %c19] : memref<64x324xf32, #tpu.memory_space<vmem>>, vector<16x286xf32>
    tpu.vector_store %arg36[%c0_15, %c19], %65 {strides = array<i32>} : memref<64x324xf32, #tpu.memory_space<vmem>>, vector<16x286xf32>,
    %cst_16 = arith.constant 0.000000e+00 : f32
    %69 = vector.broadcast %cst_16 : f32 to vector<64x324xf32>
    %c0_17 = arith.constant 0 : index
    %c0_18 = arith.constant 0 : index
    %70 = vector.load %arg37[%c0_17, %c0_18] : memref<64x324xf32, #tpu.memory_space<vmem>>, vector<64x324xf32>
    tpu.vector_store %arg37[%c0_17, %c0_18], %69 {strides = array<i32>} : memref<64x324xf32, #tpu.memory_space<vmem>>, vector<64x324xf32>,
    %c0_i32 = arith.constant 0 : i32
    %c9_i32 = arith.constant 9 : i32
    %71 = arith.addi %c0_i32, %c9_i32 : i32
    %c1_i32 = arith.constant 1 : i32
    scf.for %arg38 = %c0_i32 to %71 step %c1_i32  : i32 {
      %233 = arith.index_cast %arg38 : i32 to index
      %c0_160 = arith.constant 0 : index
      %c0_161 = arith.constant 0 : index
      %234 = vector.load %arg4[%233, %c0_160, %c0_161] : memref<9x16x144xbf16, #tpu.memory_space<vmem>>, vector<1x16x144xbf16>
      %235 = vector.shape_cast %234 : vector<1x16x144xbf16> to vector<16x144xbf16>
      %c0_162 = arith.constant 0 : index
      %c0_163 = arith.constant 0 : index
      %236 = vector.load %arg36[%c0_162, %c0_163] : memref<64x324xf32, #tpu.memory_space<vmem>>, vector<16x286xf32>
      %237 = arith.truncf %236 : vector<16x286xf32> to vector<16x286xbf16>
      %c0_164 = arith.constant 0 : index
      %c1_165 = arith.constant 1 : index
      %238 = vector.load %arg36[%c0_164, %c1_165] : memref<64x324xf32, #tpu.memory_space<vmem>>, vector<16x286xf32>
      %239 = arith.truncf %238 : vector<16x286xf32> to vector<16x286xbf16>
      %c0_166 = arith.constant 0 : index
      %c2_167 = arith.constant 2 : index
      %240 = vector.load %arg36[%c0_166, %c2_167] : memref<64x324xf32, #tpu.memory_space<vmem>>, vector<16x286xf32>
      %241 = arith.truncf %240 : vector<16x286xf32> to vector<16x286xbf16>
      %c0_168 = arith.constant 0 : index
      %c18_169 = arith.constant 18 : index
      %242 = vector.load %arg36[%c0_168, %c18_169] : memref<64x324xf32, #tpu.memory_space<vmem>>, vector<16x286xf32>
      %243 = arith.truncf %242 : vector<16x286xf32> to vector<16x286xbf16>
      %c0_170 = arith.constant 0 : index
      %c19_171 = arith.constant 19 : index
      %244 = vector.load %arg36[%c0_170, %c19_171] : memref<64x324xf32, #tpu.memory_space<vmem>>, vector<16x286xf32>
      %245 = arith.truncf %244 : vector<16x286xf32> to vector<16x286xbf16>
      %c0_172 = arith.constant 0 : index
      %c20_173 = arith.constant 20 : index
      %246 = vector.load %arg36[%c0_172, %c20_173] : memref<64x324xf32, #tpu.memory_space<vmem>>, vector<16x286xf32>
      %247 = arith.truncf %246 : vector<16x286xf32> to vector<16x286xbf16>
      %c0_174 = arith.constant 0 : index
      %c36_175 = arith.constant 36 : index
      %248 = vector.load %arg36[%c0_174, %c36_175] : memref<64x324xf32, #tpu.memory_space<vmem>>, vector<16x286xf32>
      %249 = arith.truncf %248 : vector<16x286xf32> to vector<16x286xbf16>
      %c0_176 = arith.constant 0 : index
      %c37_177 = arith.constant 37 : index
      %250 = vector.load %arg36[%c0_176, %c37_177] : memref<64x324xf32, #tpu.memory_space<vmem>>, vector<16x286xf32>
      %251 = arith.truncf %250 : vector<16x286xf32> to vector<16x286xbf16>
      %c0_178 = arith.constant 0 : index
      %c38_179 = arith.constant 38 : index
      %252 = vector.load %arg36[%c0_178, %c38_179] : memref<64x324xf32, #tpu.memory_space<vmem>>, vector<16x286xf32>
      %253 = arith.truncf %252 : vector<16x286xf32> to vector<16x286xbf16>
      %254 = tpu.concatenate %237, %239, %241, %243, %245, %247, %249, %251, %253 in 0 : vector<16x286xbf16>, vector<16x286xbf16>, vector<16x286xbf16>, vector<16x286xbf16>, vector<16x286xbf16>, vector<16x286xbf16>, vector<16x286xbf16>, vector<16x286xbf16>, vector<16x286xbf16> -> vector<144x286xbf16>
      %cst_180 = arith.constant dense<0.000000e+00> : vector<16x286xf32>
      %255 = tpu.matmul %235, %254, %cst_180 {dimension_numbers = #tpu.dot_dimension_numbers<[1], [0], [0], [1], [0, 0, 1, 1], [], []>} : vector<16x144xbf16>, vector<144x286xbf16>, vector<16x286xf32> -> vector<16x286xf32>
      %256 = arith.index_cast %arg38 : i32 to index
      %c0_181 = arith.constant 0 : index
      %c0_182 = arith.constant 0 : index
      %257 = vector.load %arg5[%256, %c0_181, %c0_182] : memref<9x16x1xf32, #tpu.memory_space<vmem>>, vector<1x16x1xf32>
      %258 = vector.shape_cast %257 : vector<1x16x1xf32> to vector<16x1xf32>
      %259 = vector.broadcast %258 : vector<16x1xf32> to vector<16x286xf32>
      %260 = arith.addf %255, %259 : vector<16x286xf32>
      %cst_183 = arith.constant 0.000000e+00 : f32
      %261 = vector.broadcast %cst_183 : f32 to vector<16x286xf32>
      %262 = arith.maximumf %260, %261 : vector<16x286xf32>
      %263 = vector.broadcast %0 : vector<1x286xf32> to vector<16x286xf32>
      %264 = arith.mulf %262, %263 : vector<16x286xf32>
      %c0_184 = arith.constant 0 : index
      %c19_185 = arith.constant 19 : index
      %265 = vector.load %arg37[%c0_184, %c19_185] : memref<64x324xf32, #tpu.memory_space<vmem>>, vector<16x286xf32>
      tpu.vector_store %arg37[%c0_184, %c19_185], %264 {strides = array<i32>} : memref<64x324xf32, #tpu.memory_space<vmem>>, vector<16x286xf32>,
      %266 = arith.index_cast %arg38 : i32 to index
      %c0_186 = arith.constant 0 : index
      %c0_187 = arith.constant 0 : index
      %267 = vector.load %arg6[%266, %c0_186, %c0_187] : memref<9x16x144xbf16, #tpu.memory_space<vmem>>, vector<1x16x144xbf16>
      %268 = vector.shape_cast %267 : vector<1x16x144xbf16> to vector<16x144xbf16>
      %c0_188 = arith.constant 0 : index
      %c0_189 = arith.constant 0 : index
      %269 = vector.load %arg37[%c0_188, %c0_189] : memref<64x324xf32, #tpu.memory_space<vmem>>, vector<16x286xf32>
      %270 = arith.truncf %269 : vector<16x286xf32> to vector<16x286xbf16>
      %c0_190 = arith.constant 0 : index
      %c1_191 = arith.constant 1 : index
      %271 = vector.load %arg37[%c0_190, %c1_191] : memref<64x324xf32, #tpu.memory_space<vmem>>, vector<16x286xf32>
      %272 = arith.truncf %271 : vector<16x286xf32> to vector<16x286xbf16>
      %c0_192 = arith.constant 0 : index
      %c2_193 = arith.constant 2 : index
      %273 = vector.load %arg37[%c0_192, %c2_193] : memref<64x324xf32, #tpu.memory_space<vmem>>, vector<16x286xf32>
      %274 = arith.truncf %273 : vector<16x286xf32> to vector<16x286xbf16>
      %c0_194 = arith.constant 0 : index
      %c18_195 = arith.constant 18 : index
      %275 = vector.load %arg37[%c0_194, %c18_195] : memref<64x324xf32, #tpu.memory_space<vmem>>, vector<16x286xf32>
      %276 = arith.truncf %275 : vector<16x286xf32> to vector<16x286xbf16>
      %c0_196 = arith.constant 0 : index
      %c19_197 = arith.constant 19 : index
      %277 = vector.load %arg37[%c0_196, %c19_197] : memref<64x324xf32, #tpu.memory_space<vmem>>, vector<16x286xf32>
      %278 = arith.truncf %277 : vector<16x286xf32> to vector<16x286xbf16>
      %c0_198 = arith.constant 0 : index
      %c20_199 = arith.constant 20 : index
      %279 = vector.load %arg37[%c0_198, %c20_199] : memref<64x324xf32, #tpu.memory_space<vmem>>, vector<16x286xf32>
      %280 = arith.truncf %279 : vector<16x286xf32> to vector<16x286xbf16>
      %c0_200 = arith.constant 0 : index
      %c36_201 = arith.constant 36 : index
      %281 = vector.load %arg37[%c0_200, %c36_201] : memref<64x324xf32, #tpu.memory_space<vmem>>, vector<16x286xf32>
      %282 = arith.truncf %281 : vector<16x286xf32> to vector<16x286xbf16>
      %c0_202 = arith.constant 0 : index
      %c37_203 = arith.constant 37 : index
      %283 = vector.load %arg37[%c0_202, %c37_203] : memref<64x324xf32, #tpu.memory_space<vmem>>, vector<16x286xf32>
      %284 = arith.truncf %283 : vector<16x286xf32> to vector<16x286xbf16>
      %c0_204 = arith.constant 0 : index
      %c38_205 = arith.constant 38 : index
      %285 = vector.load %arg37[%c0_204, %c38_205] : memref<64x324xf32, #tpu.memory_space<vmem>>, vector<16x286xf32>
      %286 = arith.truncf %285 : vector<16x286xf32> to vector<16x286xbf16>
      %287 = tpu.concatenate %270, %272, %274, %276, %278, %280, %282, %284, %286 in 0 : vector<16x286xbf16>, vector<16x286xbf16>, vector<16x286xbf16>, vector<16x286xbf16>, vector<16x286xbf16>, vector<16x286xbf16>, vector<16x286xbf16>, vector<16x286xbf16>, vector<16x286xbf16> -> vector<144x286xbf16>
      %cst_206 = arith.constant dense<0.000000e+00> : vector<16x286xf32>
      %288 = tpu.matmul %268, %287, %cst_206 {dimension_numbers = #tpu.dot_dimension_numbers<[1], [0], [0], [1], [0, 0, 1, 1], [], []>} : vector<16x144xbf16>, vector<144x286xbf16>, vector<16x286xf32> -> vector<16x286xf32>
      %289 = arith.index_cast %arg38 : i32 to index
      %c0_207 = arith.constant 0 : index
      %c0_208 = arith.constant 0 : index
      %290 = vector.load %arg7[%289, %c0_207, %c0_208] : memref<9x16x1xf32, #tpu.memory_space<vmem>>, vector<1x16x1xf32>
      %291 = vector.shape_cast %290 : vector<1x16x1xf32> to vector<16x1xf32>
      %292 = vector.broadcast %291 : vector<16x1xf32> to vector<16x286xf32>
      %293 = arith.addf %288, %292 : vector<16x286xf32>
      %c0_209 = arith.constant 0 : index
      %c19_210 = arith.constant 19 : index
      %294 = vector.load %arg36[%c0_209, %c19_210] : memref<64x324xf32, #tpu.memory_space<vmem>>, vector<16x286xf32>
      %295 = arith.addf %293, %294 : vector<16x286xf32>
      %cst_211 = arith.constant 0.000000e+00 : f32
      %296 = vector.broadcast %cst_211 : f32 to vector<16x286xf32>
      %297 = arith.maximumf %295, %296 : vector<16x286xf32>
      %298 = vector.broadcast %0 : vector<1x286xf32> to vector<16x286xf32>
      %299 = arith.mulf %297, %298 : vector<16x286xf32>
      %c0_212 = arith.constant 0 : index
      %c19_213 = arith.constant 19 : index
      %300 = vector.load %arg36[%c0_212, %c19_213] : memref<64x324xf32, #tpu.memory_space<vmem>>, vector<16x286xf32>
      tpu.vector_store %arg36[%c0_212, %c19_213], %299 {strides = array<i32>} : memref<64x324xf32, #tpu.memory_space<vmem>>, vector<16x286xf32>,
    }
    %c9_i32_19 = arith.constant 9 : i32
    %c0_20 = arith.constant 0 : index
    %c0_21 = arith.constant 0 : index
    %72 = vector.load %arg33[%c0_20, %c0_21] : memref<286x78xbf16, #tpu.memory_space<vmem>>, vector<286x78xbf16>
    %c0_22 = arith.constant 0 : index
    %c0_23 = arith.constant 0 : index
    %73 = vector.load %arg8[%c0_22, %c0_23] : memref<32x144xbf16, #tpu.memory_space<vmem>>, vector<32x144xbf16>
    %c0_24 = arith.constant 0 : index
    %c0_25 = arith.constant 0 : index
    %74 = vector.load %arg9[%c0_24, %c0_25] : memref<32x1xf32, #tpu.memory_space<vmem>>, vector<32x1xf32>
    %c0_26 = arith.constant 0 : index
    %c0_27 = arith.constant 0 : index
    %75 = vector.load %arg10[%c0_26, %c0_27] : memref<32x288xbf16, #tpu.memory_space<vmem>>, vector<32x288xbf16>
    %c0_28 = arith.constant 0 : index
    %c0_29 = arith.constant 0 : index
    %76 = vector.load %arg11[%c0_28, %c0_29] : memref<32x1xf32, #tpu.memory_space<vmem>>, vector<32x1xf32>
    %c0_30 = arith.constant 0 : index
    %c0_31 = arith.constant 0 : index
    %77 = vector.load %arg12[%c0_30, %c0_31] : memref<32x16xbf16, #tpu.memory_space<vmem>>, vector<32x16xbf16>
    %c0_32 = arith.constant 0 : index
    %c0_33 = arith.constant 0 : index
    %78 = vector.load %arg13[%c0_32, %c0_33] : memref<32x1xf32, #tpu.memory_space<vmem>>, vector<32x1xf32>
    %c0_34 = arith.constant 0 : index
    %c0_35 = arith.constant 0 : index
    %79 = vector.load %arg36[%c0_34, %c0_35] : memref<64x324xf32, #tpu.memory_space<vmem>>, vector<16x286xf32>
    %80 = arith.truncf %79 : vector<16x286xf32> to vector<16x286xbf16>
    %c0_36 = arith.constant 0 : index
    %c1 = arith.constant 1 : index
    %81 = vector.load %arg36[%c0_36, %c1] : memref<64x324xf32, #tpu.memory_space<vmem>>, vector<16x286xf32>
    %82 = arith.truncf %81 : vector<16x286xf32> to vector<16x286xbf16>
    %c0_37 = arith.constant 0 : index
    %c2 = arith.constant 2 : index
    %83 = vector.load %arg36[%c0_37, %c2] : memref<64x324xf32, #tpu.memory_space<vmem>>, vector<16x286xf32>
    %84 = arith.truncf %83 : vector<16x286xf32> to vector<16x286xbf16>
    %c0_38 = arith.constant 0 : index
    %c18 = arith.constant 18 : index
    %85 = vector.load %arg36[%c0_38, %c18] : memref<64x324xf32, #tpu.memory_space<vmem>>, vector<16x286xf32>
    %86 = arith.truncf %85 : vector<16x286xf32> to vector<16x286xbf16>
    %c0_39 = arith.constant 0 : index
    %c19_40 = arith.constant 19 : index
    %87 = vector.load %arg36[%c0_39, %c19_40] : memref<64x324xf32, #tpu.memory_space<vmem>>, vector<16x286xf32>
    %88 = arith.truncf %87 : vector<16x286xf32> to vector<16x286xbf16>
    %c0_41 = arith.constant 0 : index
    %c20 = arith.constant 20 : index
    %89 = vector.load %arg36[%c0_41, %c20] : memref<64x324xf32, #tpu.memory_space<vmem>>, vector<16x286xf32>
    %90 = arith.truncf %89 : vector<16x286xf32> to vector<16x286xbf16>
    %c0_42 = arith.constant 0 : index
    %c36 = arith.constant 36 : index
    %91 = vector.load %arg36[%c0_42, %c36] : memref<64x324xf32, #tpu.memory_space<vmem>>, vector<16x286xf32>
    %92 = arith.truncf %91 : vector<16x286xf32> to vector<16x286xbf16>
    %c0_43 = arith.constant 0 : index
    %c37 = arith.constant 37 : index
    %93 = vector.load %arg36[%c0_43, %c37] : memref<64x324xf32, #tpu.memory_space<vmem>>, vector<16x286xf32>
    %94 = arith.truncf %93 : vector<16x286xf32> to vector<16x286xbf16>
    %c0_44 = arith.constant 0 : index
    %c38 = arith.constant 38 : index
    %95 = vector.load %arg36[%c0_44, %c38] : memref<64x324xf32, #tpu.memory_space<vmem>>, vector<16x286xf32>
    %96 = arith.truncf %95 : vector<16x286xf32> to vector<16x286xbf16>
    %97 = tpu.concatenate %80, %82, %84, %86, %88, %90, %92, %94, %96 in 0 : vector<16x286xbf16>, vector<16x286xbf16>, vector<16x286xbf16>, vector<16x286xbf16>, vector<16x286xbf16>, vector<16x286xbf16>, vector<16x286xbf16>, vector<16x286xbf16>, vector<16x286xbf16> -> vector<144x286xbf16>
    %cst_45 = arith.constant dense<0.000000e+00> : vector<32x286xf32>
    %98 = tpu.matmul %73, %97, %cst_45 {dimension_numbers = #tpu.dot_dimension_numbers<[1], [0], [0], [1], [0, 0, 1, 1], [], []>} : vector<32x144xbf16>, vector<144x286xbf16>, vector<32x286xf32> -> vector<32x286xf32>
    %99 = vector.broadcast %74 : vector<32x1xf32> to vector<32x286xf32>
    %100 = arith.addf %98, %99 : vector<32x286xf32>
    %cst_46 = arith.constant 0.000000e+00 : f32
    %101 = vector.broadcast %cst_46 : f32 to vector<32x286xf32>
    %102 = arith.maximumf %100, %101 : vector<32x286xf32>
    %103 = arith.truncf %102 : vector<32x286xf32> to vector<32x286xbf16>
    %cst_47 = arith.constant dense<0.000000e+00> : vector<32x78xf32>
    %104 = tpu.matmul %103, %72, %cst_47 {dimension_numbers = #tpu.dot_dimension_numbers<[1], [0], [0], [1], [0, 0, 1, 1], [], []>} : vector<32x286xbf16>, vector<286x78xbf16>, vector<32x78xf32> -> vector<32x78xf32>
    %c0_48 = arith.constant 0 : index
    %c19_49 = arith.constant 19 : index
    %105 = vector.load %arg36[%c0_48, %c19_49] : memref<64x324xf32, #tpu.memory_space<vmem>>, vector<16x286xf32>
    %106 = arith.truncf %105 : vector<16x286xf32> to vector<16x286xbf16>
    %cst_50 = arith.constant dense<0.000000e+00> : vector<16x78xf32>
    %107 = tpu.matmul %106, %72, %cst_50 {dimension_numbers = #tpu.dot_dimension_numbers<[1], [0], [0], [1], [0, 0, 1, 1], [], []>} : vector<16x286xbf16>, vector<286x78xbf16>, vector<16x78xf32> -> vector<16x78xf32>
    %108 = arith.truncf %107 : vector<16x78xf32> to vector<16x78xbf16>
    %cst_51 = arith.constant dense<0.000000e+00> : vector<32x78xf32>
    %109 = tpu.matmul %77, %108, %cst_51 {dimension_numbers = #tpu.dot_dimension_numbers<[1], [0], [0], [1], [0, 0, 1, 1], [], []>} : vector<32x16xbf16>, vector<16x78xbf16>, vector<32x78xf32> -> vector<32x78xf32>
    %110 = vector.broadcast %78 : vector<32x1xf32> to vector<32x78xf32>
    %111 = arith.addf %109, %110 : vector<32x78xf32>
    %cst_52 = arith.constant 0.000000e+00 : f32
    %112 = vector.broadcast %cst_52 : f32 to vector<64x324xf32>
    %c0_53 = arith.constant 0 : index
    %c0_54 = arith.constant 0 : index
    %113 = vector.load %arg37[%c0_53, %c0_54] : memref<64x324xf32, #tpu.memory_space<vmem>>, vector<64x324xf32>
    tpu.vector_store %arg37[%c0_53, %c0_54], %112 {strides = array<i32>} : memref<64x324xf32, #tpu.memory_space<vmem>>, vector<64x324xf32>,
    %c0_55 = arith.constant 0 : index
    %c11 = arith.constant 11 : index
    %114 = vector.load %arg37[%c0_55, %c11] : memref<64x324xf32, #tpu.memory_space<vmem>>, vector<32x78xf32>
    tpu.vector_store %arg37[%c0_55, %c11], %104 {strides = array<i32>} : memref<64x324xf32, #tpu.memory_space<vmem>>, vector<32x78xf32>,
    %c0_56 = arith.constant 0 : index
    %c0_57 = arith.constant 0 : index
    %115 = vector.load %arg37[%c0_56, %c0_57] : memref<64x324xf32, #tpu.memory_space<vmem>>, vector<32x78xf32>
    %116 = arith.truncf %115 : vector<32x78xf32> to vector<32x78xbf16>
    %c0_58 = arith.constant 0 : index
    %c1_59 = arith.constant 1 : index
    %117 = vector.load %arg37[%c0_58, %c1_59] : memref<64x324xf32, #tpu.memory_space<vmem>>, vector<32x78xf32>
    %118 = arith.truncf %117 : vector<32x78xf32> to vector<32x78xbf16>
    %c0_60 = arith.constant 0 : index
    %c2_61 = arith.constant 2 : index
    %119 = vector.load %arg37[%c0_60, %c2_61] : memref<64x324xf32, #tpu.memory_space<vmem>>, vector<32x78xf32>
    %120 = arith.truncf %119 : vector<32x78xf32> to vector<32x78xbf16>
    %c0_62 = arith.constant 0 : index
    %c10 = arith.constant 10 : index
    %121 = vector.load %arg37[%c0_62, %c10] : memref<64x324xf32, #tpu.memory_space<vmem>>, vector<32x78xf32>
    %122 = arith.truncf %121 : vector<32x78xf32> to vector<32x78xbf16>
    %c0_63 = arith.constant 0 : index
    %c11_64 = arith.constant 11 : index
    %123 = vector.load %arg37[%c0_63, %c11_64] : memref<64x324xf32, #tpu.memory_space<vmem>>, vector<32x78xf32>
    %124 = arith.truncf %123 : vector<32x78xf32> to vector<32x78xbf16>
    %c0_65 = arith.constant 0 : index
    %c12 = arith.constant 12 : index
    %125 = vector.load %arg37[%c0_65, %c12] : memref<64x324xf32, #tpu.memory_space<vmem>>, vector<32x78xf32>
    %126 = arith.truncf %125 : vector<32x78xf32> to vector<32x78xbf16>
    %c0_66 = arith.constant 0 : index
    %c20_67 = arith.constant 20 : index
    %127 = vector.load %arg37[%c0_66, %c20_67] : memref<64x324xf32, #tpu.memory_space<vmem>>, vector<32x78xf32>
    %128 = arith.truncf %127 : vector<32x78xf32> to vector<32x78xbf16>
    %c0_68 = arith.constant 0 : index
    %c21 = arith.constant 21 : index
    %129 = vector.load %arg37[%c0_68, %c21] : memref<64x324xf32, #tpu.memory_space<vmem>>, vector<32x78xf32>
    %130 = arith.truncf %129 : vector<32x78xf32> to vector<32x78xbf16>
    %c0_69 = arith.constant 0 : index
    %c22 = arith.constant 22 : index
    %131 = vector.load %arg37[%c0_69, %c22] : memref<64x324xf32, #tpu.memory_space<vmem>>, vector<32x78xf32>
    %132 = arith.truncf %131 : vector<32x78xf32> to vector<32x78xbf16>
    %133 = tpu.concatenate %116, %118, %120, %122, %124, %126, %128, %130, %132 in 0 : vector<32x78xbf16>, vector<32x78xbf16>, vector<32x78xbf16>, vector<32x78xbf16>, vector<32x78xbf16>, vector<32x78xbf16>, vector<32x78xbf16>, vector<32x78xbf16>, vector<32x78xbf16> -> vector<288x78xbf16>
    %cst_70 = arith.constant dense<0.000000e+00> : vector<32x78xf32>
    %134 = tpu.matmul %75, %133, %cst_70 {dimension_numbers = #tpu.dot_dimension_numbers<[1], [0], [0], [1], [0, 0, 1, 1], [], []>} : vector<32x288xbf16>, vector<288x78xbf16>, vector<32x78xf32> -> vector<32x78xf32>
    %135 = vector.broadcast %76 : vector<32x1xf32> to vector<32x78xf32>
    %136 = arith.addf %134, %135 : vector<32x78xf32>
    %137 = arith.addf %136, %111 : vector<32x78xf32>
    %cst_71 = arith.constant 0.000000e+00 : f32
    %138 = vector.broadcast %cst_71 : f32 to vector<32x78xf32>
    %139 = arith.maximumf %137, %138 : vector<32x78xf32>
    %140 = vector.broadcast %1 : vector<1x78xf32> to vector<32x78xf32>
    %141 = arith.mulf %139, %140 : vector<32x78xf32>
    %cst_72 = arith.constant 0.000000e+00 : f32
    %142 = vector.broadcast %cst_72 : f32 to vector<64x324xf32>
    %c0_73 = arith.constant 0 : index
    %c0_74 = arith.constant 0 : index
    %143 = vector.load %arg36[%c0_73, %c0_74] : memref<64x324xf32, #tpu.memory_space<vmem>>, vector<64x324xf32>
    tpu.vector_store %arg36[%c0_73, %c0_74], %142 {strides = array<i32>} : memref<64x324xf32, #tpu.memory_space<vmem>>, vector<64x324xf32>,
    %c0_75 = arith.constant 0 : index
    %c11_76 = arith.constant 11 : index
    %144 = vector.load %arg36[%c0_75, %c11_76] : memref<64x324xf32, #tpu.memory_space<vmem>>, vector<32x78xf32>
    tpu.vector_store %arg36[%c0_75, %c11_76], %141 {strides = array<i32>} : memref<64x324xf32, #tpu.memory_space<vmem>>, vector<32x78xf32>,
    %c0_i32_77 = arith.constant 0 : i32
    %c8_i32 = arith.constant 8 : i32
    %145 = arith.addi %c0_i32_77, %c8_i32 : i32
    %c1_i32_78 = arith.constant 1 : i32
    scf.for %arg38 = %c0_i32_77 to %145 step %c1_i32_78  : i32 {
      %233 = arith.index_cast %arg38 : i32 to index
      %c0_160 = arith.constant 0 : index
      %c0_161 = arith.constant 0 : index
      %234 = vector.load %arg14[%233, %c0_160, %c0_161] : memref<8x32x288xbf16, #tpu.memory_space<vmem>>, vector<1x32x288xbf16>
      %235 = vector.shape_cast %234 : vector<1x32x288xbf16> to vector<32x288xbf16>
      %c0_162 = arith.constant 0 : index
      %c0_163 = arith.constant 0 : index
      %236 = vector.load %arg36[%c0_162, %c0_163] : memref<64x324xf32, #tpu.memory_space<vmem>>, vector<32x78xf32>
      %237 = arith.truncf %236 : vector<32x78xf32> to vector<32x78xbf16>
      %c0_164 = arith.constant 0 : index
      %c1_165 = arith.constant 1 : index
      %238 = vector.load %arg36[%c0_164, %c1_165] : memref<64x324xf32, #tpu.memory_space<vmem>>, vector<32x78xf32>
      %239 = arith.truncf %238 : vector<32x78xf32> to vector<32x78xbf16>
      %c0_166 = arith.constant 0 : index
      %c2_167 = arith.constant 2 : index
      %240 = vector.load %arg36[%c0_166, %c2_167] : memref<64x324xf32, #tpu.memory_space<vmem>>, vector<32x78xf32>
      %241 = arith.truncf %240 : vector<32x78xf32> to vector<32x78xbf16>
      %c0_168 = arith.constant 0 : index
      %c10_169 = arith.constant 10 : index
      %242 = vector.load %arg36[%c0_168, %c10_169] : memref<64x324xf32, #tpu.memory_space<vmem>>, vector<32x78xf32>
      %243 = arith.truncf %242 : vector<32x78xf32> to vector<32x78xbf16>
      %c0_170 = arith.constant 0 : index
      %c11_171 = arith.constant 11 : index
      %244 = vector.load %arg36[%c0_170, %c11_171] : memref<64x324xf32, #tpu.memory_space<vmem>>, vector<32x78xf32>
      %245 = arith.truncf %244 : vector<32x78xf32> to vector<32x78xbf16>
      %c0_172 = arith.constant 0 : index
      %c12_173 = arith.constant 12 : index
      %246 = vector.load %arg36[%c0_172, %c12_173] : memref<64x324xf32, #tpu.memory_space<vmem>>, vector<32x78xf32>
      %247 = arith.truncf %246 : vector<32x78xf32> to vector<32x78xbf16>
      %c0_174 = arith.constant 0 : index
      %c20_175 = arith.constant 20 : index
      %248 = vector.load %arg36[%c0_174, %c20_175] : memref<64x324xf32, #tpu.memory_space<vmem>>, vector<32x78xf32>
      %249 = arith.truncf %248 : vector<32x78xf32> to vector<32x78xbf16>
      %c0_176 = arith.constant 0 : index
      %c21_177 = arith.constant 21 : index
      %250 = vector.load %arg36[%c0_176, %c21_177] : memref<64x324xf32, #tpu.memory_space<vmem>>, vector<32x78xf32>
      %251 = arith.truncf %250 : vector<32x78xf32> to vector<32x78xbf16>
      %c0_178 = arith.constant 0 : index
      %c22_179 = arith.constant 22 : index
      %252 = vector.load %arg36[%c0_178, %c22_179] : memref<64x324xf32, #tpu.memory_space<vmem>>, vector<32x78xf32>
      %253 = arith.truncf %252 : vector<32x78xf32> to vector<32x78xbf16>
      %254 = tpu.concatenate %237, %239, %241, %243, %245, %247, %249, %251, %253 in 0 : vector<32x78xbf16>, vector<32x78xbf16>, vector<32x78xbf16>, vector<32x78xbf16>, vector<32x78xbf16>, vector<32x78xbf16>, vector<32x78xbf16>, vector<32x78xbf16>, vector<32x78xbf16> -> vector<288x78xbf16>
      %cst_180 = arith.constant dense<0.000000e+00> : vector<32x78xf32>
      %255 = tpu.matmul %235, %254, %cst_180 {dimension_numbers = #tpu.dot_dimension_numbers<[1], [0], [0], [1], [0, 0, 1, 1], [], []>} : vector<32x288xbf16>, vector<288x78xbf16>, vector<32x78xf32> -> vector<32x78xf32>
      %256 = arith.index_cast %arg38 : i32 to index
      %c0_181 = arith.constant 0 : index
      %c0_182 = arith.constant 0 : index
      %257 = vector.load %arg15[%256, %c0_181, %c0_182] : memref<8x32x1xf32, #tpu.memory_space<vmem>>, vector<1x32x1xf32>
      %258 = vector.shape_cast %257 : vector<1x32x1xf32> to vector<32x1xf32>
      %259 = vector.broadcast %258 : vector<32x1xf32> to vector<32x78xf32>
      %260 = arith.addf %255, %259 : vector<32x78xf32>
      %cst_183 = arith.constant 0.000000e+00 : f32
      %261 = vector.broadcast %cst_183 : f32 to vector<32x78xf32>
      %262 = arith.maximumf %260, %261 : vector<32x78xf32>
      %263 = vector.broadcast %1 : vector<1x78xf32> to vector<32x78xf32>
      %264 = arith.mulf %262, %263 : vector<32x78xf32>
      %c0_184 = arith.constant 0 : index
      %c11_185 = arith.constant 11 : index
      %265 = vector.load %arg37[%c0_184, %c11_185] : memref<64x324xf32, #tpu.memory_space<vmem>>, vector<32x78xf32>
      tpu.vector_store %arg37[%c0_184, %c11_185], %264 {strides = array<i32>} : memref<64x324xf32, #tpu.memory_space<vmem>>, vector<32x78xf32>,
      %266 = arith.index_cast %arg38 : i32 to index
      %c0_186 = arith.constant 0 : index
      %c0_187 = arith.constant 0 : index
      %267 = vector.load %arg16[%266, %c0_186, %c0_187] : memref<8x32x288xbf16, #tpu.memory_space<vmem>>, vector<1x32x288xbf16>
      %268 = vector.shape_cast %267 : vector<1x32x288xbf16> to vector<32x288xbf16>
      %c0_188 = arith.constant 0 : index
      %c0_189 = arith.constant 0 : index
      %269 = vector.load %arg37[%c0_188, %c0_189] : memref<64x324xf32, #tpu.memory_space<vmem>>, vector<32x78xf32>
      %270 = arith.truncf %269 : vector<32x78xf32> to vector<32x78xbf16>
      %c0_190 = arith.constant 0 : index
      %c1_191 = arith.constant 1 : index
      %271 = vector.load %arg37[%c0_190, %c1_191] : memref<64x324xf32, #tpu.memory_space<vmem>>, vector<32x78xf32>
      %272 = arith.truncf %271 : vector<32x78xf32> to vector<32x78xbf16>
      %c0_192 = arith.constant 0 : index
      %c2_193 = arith.constant 2 : index
      %273 = vector.load %arg37[%c0_192, %c2_193] : memref<64x324xf32, #tpu.memory_space<vmem>>, vector<32x78xf32>
      %274 = arith.truncf %273 : vector<32x78xf32> to vector<32x78xbf16>
      %c0_194 = arith.constant 0 : index
      %c10_195 = arith.constant 10 : index
      %275 = vector.load %arg37[%c0_194, %c10_195] : memref<64x324xf32, #tpu.memory_space<vmem>>, vector<32x78xf32>
      %276 = arith.truncf %275 : vector<32x78xf32> to vector<32x78xbf16>
      %c0_196 = arith.constant 0 : index
      %c11_197 = arith.constant 11 : index
      %277 = vector.load %arg37[%c0_196, %c11_197] : memref<64x324xf32, #tpu.memory_space<vmem>>, vector<32x78xf32>
      %278 = arith.truncf %277 : vector<32x78xf32> to vector<32x78xbf16>
      %c0_198 = arith.constant 0 : index
      %c12_199 = arith.constant 12 : index
      %279 = vector.load %arg37[%c0_198, %c12_199] : memref<64x324xf32, #tpu.memory_space<vmem>>, vector<32x78xf32>
      %280 = arith.truncf %279 : vector<32x78xf32> to vector<32x78xbf16>
      %c0_200 = arith.constant 0 : index
      %c20_201 = arith.constant 20 : index
      %281 = vector.load %arg37[%c0_200, %c20_201] : memref<64x324xf32, #tpu.memory_space<vmem>>, vector<32x78xf32>
      %282 = arith.truncf %281 : vector<32x78xf32> to vector<32x78xbf16>
      %c0_202 = arith.constant 0 : index
      %c21_203 = arith.constant 21 : index
      %283 = vector.load %arg37[%c0_202, %c21_203] : memref<64x324xf32, #tpu.memory_space<vmem>>, vector<32x78xf32>
      %284 = arith.truncf %283 : vector<32x78xf32> to vector<32x78xbf16>
      %c0_204 = arith.constant 0 : index
      %c22_205 = arith.constant 22 : index
      %285 = vector.load %arg37[%c0_204, %c22_205] : memref<64x324xf32, #tpu.memory_space<vmem>>, vector<32x78xf32>
      %286 = arith.truncf %285 : vector<32x78xf32> to vector<32x78xbf16>
      %287 = tpu.concatenate %270, %272, %274, %276, %278, %280, %282, %284, %286 in 0 : vector<32x78xbf16>, vector<32x78xbf16>, vector<32x78xbf16>, vector<32x78xbf16>, vector<32x78xbf16>, vector<32x78xbf16>, vector<32x78xbf16>, vector<32x78xbf16>, vector<32x78xbf16> -> vector<288x78xbf16>
      %cst_206 = arith.constant dense<0.000000e+00> : vector<32x78xf32>
      %288 = tpu.matmul %268, %287, %cst_206 {dimension_numbers = #tpu.dot_dimension_numbers<[1], [0], [0], [1], [0, 0, 1, 1], [], []>} : vector<32x288xbf16>, vector<288x78xbf16>, vector<32x78xf32> -> vector<32x78xf32>
      %289 = arith.index_cast %arg38 : i32 to index
      %c0_207 = arith.constant 0 : index
      %c0_208 = arith.constant 0 : index
      %290 = vector.load %arg17[%289, %c0_207, %c0_208] : memref<8x32x1xf32, #tpu.memory_space<vmem>>, vector<1x32x1xf32>
      %291 = vector.shape_cast %290 : vector<1x32x1xf32> to vector<32x1xf32>
      %292 = vector.broadcast %291 : vector<32x1xf32> to vector<32x78xf32>
      %293 = arith.addf %288, %292 : vector<32x78xf32>
      %c0_209 = arith.constant 0 : index
      %c11_210 = arith.constant 11 : index
      %294 = vector.load %arg36[%c0_209, %c11_210] : memref<64x324xf32, #tpu.memory_space<vmem>>, vector<32x78xf32>
      %295 = arith.addf %293, %294 : vector<32x78xf32>
      %cst_211 = arith.constant 0.000000e+00 : f32
      %296 = vector.broadcast %cst_211 : f32 to vector<32x78xf32>
      %297 = arith.maximumf %295, %296 : vector<32x78xf32>
      %298 = vector.broadcast %1 : vector<1x78xf32> to vector<32x78xf32>
      %299 = arith.mulf %297, %298 : vector<32x78xf32>
      %c0_212 = arith.constant 0 : index
      %c11_213 = arith.constant 11 : index
      %300 = vector.load %arg36[%c0_212, %c11_213] : memref<64x324xf32, #tpu.memory_space<vmem>>, vector<32x78xf32>
      tpu.vector_store %arg36[%c0_212, %c11_213], %299 {strides = array<i32>} : memref<64x324xf32, #tpu.memory_space<vmem>>, vector<32x78xf32>,
    }
    %c8_i32_79 = arith.constant 8 : i32
    %c0_80 = arith.constant 0 : index
    %c0_81 = arith.constant 0 : index
    %146 = vector.load %arg34[%c0_80, %c0_81] : memref<78x22xbf16, #tpu.memory_space<vmem>>, vector<78x22xbf16>
    %c0_82 = arith.constant 0 : index
    %c0_83 = arith.constant 0 : index
    %147 = vector.load %arg18[%c0_82, %c0_83] : memref<64x288xbf16, #tpu.memory_space<vmem>>, vector<64x288xbf16>
    %c0_84 = arith.constant 0 : index
    %c0_85 = arith.constant 0 : index
    %148 = vector.load %arg19[%c0_84, %c0_85] : memref<64x1xf32, #tpu.memory_space<vmem>>, vector<64x1xf32>
    %c0_86 = arith.constant 0 : index
    %c0_87 = arith.constant 0 : index
    %149 = vector.load %arg20[%c0_86, %c0_87] : memref<64x576xbf16, #tpu.memory_space<vmem>>, vector<64x576xbf16>
    %c0_88 = arith.constant 0 : index
    %c0_89 = arith.constant 0 : index
    %150 = vector.load %arg21[%c0_88, %c0_89] : memref<64x1xf32, #tpu.memory_space<vmem>>, vector<64x1xf32>
    %c0_90 = arith.constant 0 : index
    %c0_91 = arith.constant 0 : index
    %151 = vector.load %arg22[%c0_90, %c0_91] : memref<64x32xbf16, #tpu.memory_space<vmem>>, vector<64x32xbf16>
    %c0_92 = arith.constant 0 : index
    %c0_93 = arith.constant 0 : index
    %152 = vector.load %arg23[%c0_92, %c0_93] : memref<64x1xf32, #tpu.memory_space<vmem>>, vector<64x1xf32>
    %c0_94 = arith.constant 0 : index
    %c0_95 = arith.constant 0 : index
    %153 = vector.load %arg36[%c0_94, %c0_95] : memref<64x324xf32, #tpu.memory_space<vmem>>, vector<32x78xf32>
    %154 = arith.truncf %153 : vector<32x78xf32> to vector<32x78xbf16>
    %c0_96 = arith.constant 0 : index
    %c1_97 = arith.constant 1 : index
    %155 = vector.load %arg36[%c0_96, %c1_97] : memref<64x324xf32, #tpu.memory_space<vmem>>, vector<32x78xf32>
    %156 = arith.truncf %155 : vector<32x78xf32> to vector<32x78xbf16>
    %c0_98 = arith.constant 0 : index
    %c2_99 = arith.constant 2 : index
    %157 = vector.load %arg36[%c0_98, %c2_99] : memref<64x324xf32, #tpu.memory_space<vmem>>, vector<32x78xf32>
    %158 = arith.truncf %157 : vector<32x78xf32> to vector<32x78xbf16>
    %c0_100 = arith.constant 0 : index
    %c10_101 = arith.constant 10 : index
    %159 = vector.load %arg36[%c0_100, %c10_101] : memref<64x324xf32, #tpu.memory_space<vmem>>, vector<32x78xf32>
    %160 = arith.truncf %159 : vector<32x78xf32> to vector<32x78xbf16>
    %c0_102 = arith.constant 0 : index
    %c11_103 = arith.constant 11 : index
    %161 = vector.load %arg36[%c0_102, %c11_103] : memref<64x324xf32, #tpu.memory_space<vmem>>, vector<32x78xf32>
    %162 = arith.truncf %161 : vector<32x78xf32> to vector<32x78xbf16>
    %c0_104 = arith.constant 0 : index
    %c12_105 = arith.constant 12 : index
    %163 = vector.load %arg36[%c0_104, %c12_105] : memref<64x324xf32, #tpu.memory_space<vmem>>, vector<32x78xf32>
    %164 = arith.truncf %163 : vector<32x78xf32> to vector<32x78xbf16>
    %c0_106 = arith.constant 0 : index
    %c20_107 = arith.constant 20 : index
    %165 = vector.load %arg36[%c0_106, %c20_107] : memref<64x324xf32, #tpu.memory_space<vmem>>, vector<32x78xf32>
    %166 = arith.truncf %165 : vector<32x78xf32> to vector<32x78xbf16>
    %c0_108 = arith.constant 0 : index
    %c21_109 = arith.constant 21 : index
    %167 = vector.load %arg36[%c0_108, %c21_109] : memref<64x324xf32, #tpu.memory_space<vmem>>, vector<32x78xf32>
    %168 = arith.truncf %167 : vector<32x78xf32> to vector<32x78xbf16>
    %c0_110 = arith.constant 0 : index
    %c22_111 = arith.constant 22 : index
    %169 = vector.load %arg36[%c0_110, %c22_111] : memref<64x324xf32, #tpu.memory_space<vmem>>, vector<32x78xf32>
    %170 = arith.truncf %169 : vector<32x78xf32> to vector<32x78xbf16>
    %171 = tpu.concatenate %154, %156, %158, %160, %162, %164, %166, %168, %170 in 0 : vector<32x78xbf16>, vector<32x78xbf16>, vector<32x78xbf16>, vector<32x78xbf16>, vector<32x78xbf16>, vector<32x78xbf16>, vector<32x78xbf16>, vector<32x78xbf16>, vector<32x78xbf16> -> vector<288x78xbf16>
    %cst_112 = arith.constant dense<0.000000e+00> : vector<64x78xf32>
    %172 = tpu.matmul %147, %171, %cst_112 {dimension_numbers = #tpu.dot_dimension_numbers<[1], [0], [0], [1], [0, 0, 1, 1], [], []>} : vector<64x288xbf16>, vector<288x78xbf16>, vector<64x78xf32> -> vector<64x78xf32>
    %173 = vector.broadcast %148 : vector<64x1xf32> to vector<64x78xf32>
    %174 = arith.addf %172, %173 : vector<64x78xf32>
    %cst_113 = arith.constant 0.000000e+00 : f32
    %175 = vector.broadcast %cst_113 : f32 to vector<64x78xf32>
    %176 = arith.maximumf %174, %175 : vector<64x78xf32>
    %177 = arith.truncf %176 : vector<64x78xf32> to vector<64x78xbf16>
    %cst_114 = arith.constant dense<0.000000e+00> : vector<64x22xf32>
    %178 = tpu.matmul %177, %146, %cst_114 {dimension_numbers = #tpu.dot_dimension_numbers<[1], [0], [0], [1], [0, 0, 1, 1], [], []>} : vector<64x78xbf16>, vector<78x22xbf16>, vector<64x22xf32> -> vector<64x22xf32>
    %c0_115 = arith.constant 0 : index
    %c11_116 = arith.constant 11 : index
    %179 = vector.load %arg36[%c0_115, %c11_116] : memref<64x324xf32, #tpu.memory_space<vmem>>, vector<32x78xf32>
    %180 = arith.truncf %179 : vector<32x78xf32> to vector<32x78xbf16>
    %cst_117 = arith.constant dense<0.000000e+00> : vector<32x22xf32>
    %181 = tpu.matmul %180, %146, %cst_117 {dimension_numbers = #tpu.dot_dimension_numbers<[1], [0], [0], [1], [0, 0, 1, 1], [], []>} : vector<32x78xbf16>, vector<78x22xbf16>, vector<32x22xf32> -> vector<32x22xf32>
    %182 = arith.truncf %181 : vector<32x22xf32> to vector<32x22xbf16>
    %cst_118 = arith.constant dense<0.000000e+00> : vector<64x22xf32>
    %183 = tpu.matmul %151, %182, %cst_118 {dimension_numbers = #tpu.dot_dimension_numbers<[1], [0], [0], [1], [0, 0, 1, 1], [], []>} : vector<64x32xbf16>, vector<32x22xbf16>, vector<64x22xf32> -> vector<64x22xf32>
    %184 = vector.broadcast %152 : vector<64x1xf32> to vector<64x22xf32>
    %185 = arith.addf %183, %184 : vector<64x22xf32>
    %cst_119 = arith.constant 0.000000e+00 : f32
    %186 = vector.broadcast %cst_119 : f32 to vector<64x324xf32>
    %c0_120 = arith.constant 0 : index
    %c0_121 = arith.constant 0 : index
    %187 = vector.load %arg37[%c0_120, %c0_121] : memref<64x324xf32, #tpu.memory_space<vmem>>, vector<64x324xf32>
    tpu.vector_store %arg37[%c0_120, %c0_121], %186 {strides = array<i32>} : memref<64x324xf32, #tpu.memory_space<vmem>>, vector<64x324xf32>,
    %c0_122 = arith.constant 0 : index
    %c7 = arith.constant 7 : index
    %188 = vector.load %arg37[%c0_122, %c7] : memref<64x324xf32, #tpu.memory_space<vmem>>, vector<64x22xf32>
    tpu.vector_store %arg37[%c0_122, %c7], %178 {strides = array<i32>} : memref<64x324xf32, #tpu.memory_space<vmem>>, vector<64x22xf32>,
    %c0_123 = arith.constant 0 : index
    %c0_124 = arith.constant 0 : index
    %189 = vector.load %arg37[%c0_123, %c0_124] : memref<64x324xf32, #tpu.memory_space<vmem>>, vector<64x22xf32>
    %190 = arith.truncf %189 : vector<64x22xf32> to vector<64x22xbf16>
    %c0_125 = arith.constant 0 : index
    %c1_126 = arith.constant 1 : index
    %191 = vector.load %arg37[%c0_125, %c1_126] : memref<64x324xf32, #tpu.memory_space<vmem>>, vector<64x22xf32>
    %192 = arith.truncf %191 : vector<64x22xf32> to vector<64x22xbf16>
    %c0_127 = arith.constant 0 : index
    %c2_128 = arith.constant 2 : index
    %193 = vector.load %arg37[%c0_127, %c2_128] : memref<64x324xf32, #tpu.memory_space<vmem>>, vector<64x22xf32>
    %194 = arith.truncf %193 : vector<64x22xf32> to vector<64x22xbf16>
    %c0_129 = arith.constant 0 : index
    %c6 = arith.constant 6 : index
    %195 = vector.load %arg37[%c0_129, %c6] : memref<64x324xf32, #tpu.memory_space<vmem>>, vector<64x22xf32>
    %196 = arith.truncf %195 : vector<64x22xf32> to vector<64x22xbf16>
    %c0_130 = arith.constant 0 : index
    %c7_131 = arith.constant 7 : index
    %197 = vector.load %arg37[%c0_130, %c7_131] : memref<64x324xf32, #tpu.memory_space<vmem>>, vector<64x22xf32>
    %198 = arith.truncf %197 : vector<64x22xf32> to vector<64x22xbf16>
    %c0_132 = arith.constant 0 : index
    %c8 = arith.constant 8 : index
    %199 = vector.load %arg37[%c0_132, %c8] : memref<64x324xf32, #tpu.memory_space<vmem>>, vector<64x22xf32>
    %200 = arith.truncf %199 : vector<64x22xf32> to vector<64x22xbf16>
    %c0_133 = arith.constant 0 : index
    %c12_134 = arith.constant 12 : index
    %201 = vector.load %arg37[%c0_133, %c12_134] : memref<64x324xf32, #tpu.memory_space<vmem>>, vector<64x22xf32>
    %202 = arith.truncf %201 : vector<64x22xf32> to vector<64x22xbf16>
    %c0_135 = arith.constant 0 : index
    %c13 = arith.constant 13 : index
    %203 = vector.load %arg37[%c0_135, %c13] : memref<64x324xf32, #tpu.memory_space<vmem>>, vector<64x22xf32>
    %204 = arith.truncf %203 : vector<64x22xf32> to vector<64x22xbf16>
    %c0_136 = arith.constant 0 : index
    %c14 = arith.constant 14 : index
    %205 = vector.load %arg37[%c0_136, %c14] : memref<64x324xf32, #tpu.memory_space<vmem>>, vector<64x22xf32>
    %206 = arith.truncf %205 : vector<64x22xf32> to vector<64x22xbf16>
    %207 = tpu.concatenate %190, %192, %194, %196, %198, %200, %202, %204, %206 in 0 : vector<64x22xbf16>, vector<64x22xbf16>, vector<64x22xbf16>, vector<64x22xbf16>, vector<64x22xbf16>, vector<64x22xbf16>, vector<64x22xbf16>, vector<64x22xbf16>, vector<64x22xbf16> -> vector<576x22xbf16>
    %cst_137 = arith.constant dense<0.000000e+00> : vector<64x22xf32>
    %208 = tpu.matmul %149, %207, %cst_137 {dimension_numbers = #tpu.dot_dimension_numbers<[1], [0], [0], [1], [0, 0, 1, 1], [], []>} : vector<64x576xbf16>, vector<576x22xbf16>, vector<64x22xf32> -> vector<64x22xf32>
    %209 = vector.broadcast %150 : vector<64x1xf32> to vector<64x22xf32>
    %210 = arith.addf %208, %209 : vector<64x22xf32>
    %211 = arith.addf %210, %185 : vector<64x22xf32>
    %cst_138 = arith.constant 0.000000e+00 : f32
    %212 = vector.broadcast %cst_138 : f32 to vector<64x22xf32>
    %213 = arith.maximumf %211, %212 : vector<64x22xf32>
    %214 = vector.broadcast %2 : vector<1x22xf32> to vector<64x22xf32>
    %215 = arith.mulf %213, %214 : vector<64x22xf32>
    %cst_139 = arith.constant 0.000000e+00 : f32
    %216 = vector.broadcast %cst_139 : f32 to vector<64x324xf32>
    %c0_140 = arith.constant 0 : index
    %c0_141 = arith.constant 0 : index
    %217 = vector.load %arg36[%c0_140, %c0_141] : memref<64x324xf32, #tpu.memory_space<vmem>>, vector<64x324xf32>
    tpu.vector_store %arg36[%c0_140, %c0_141], %216 {strides = array<i32>} : memref<64x324xf32, #tpu.memory_space<vmem>>, vector<64x324xf32>,
    %c0_142 = arith.constant 0 : index
    %c7_143 = arith.constant 7 : index
    %218 = vector.load %arg36[%c0_142, %c7_143] : memref<64x324xf32, #tpu.memory_space<vmem>>, vector<64x22xf32>
    tpu.vector_store %arg36[%c0_142, %c7_143], %215 {strides = array<i32>} : memref<64x324xf32, #tpu.memory_space<vmem>>, vector<64x22xf32>,
    %c0_i32_144 = arith.constant 0 : i32
    %c8_i32_145 = arith.constant 8 : i32
    %219 = arith.addi %c0_i32_144, %c8_i32_145 : i32
    %c1_i32_146 = arith.constant 1 : i32
    scf.for %arg38 = %c0_i32_144 to %219 step %c1_i32_146  : i32 {
      %233 = arith.index_cast %arg38 : i32 to index
      %c0_160 = arith.constant 0 : index
      %c0_161 = arith.constant 0 : index
      %234 = vector.load %arg24[%233, %c0_160, %c0_161] : memref<8x64x576xbf16, #tpu.memory_space<vmem>>, vector<1x64x576xbf16>
      %235 = vector.shape_cast %234 : vector<1x64x576xbf16> to vector<64x576xbf16>
      %c0_162 = arith.constant 0 : index
      %c0_163 = arith.constant 0 : index
      %236 = vector.load %arg36[%c0_162, %c0_163] : memref<64x324xf32, #tpu.memory_space<vmem>>, vector<64x22xf32>
      %237 = arith.truncf %236 : vector<64x22xf32> to vector<64x22xbf16>
      %c0_164 = arith.constant 0 : index
      %c1_165 = arith.constant 1 : index
      %238 = vector.load %arg36[%c0_164, %c1_165] : memref<64x324xf32, #tpu.memory_space<vmem>>, vector<64x22xf32>
      %239 = arith.truncf %238 : vector<64x22xf32> to vector<64x22xbf16>
      %c0_166 = arith.constant 0 : index
      %c2_167 = arith.constant 2 : index
      %240 = vector.load %arg36[%c0_166, %c2_167] : memref<64x324xf32, #tpu.memory_space<vmem>>, vector<64x22xf32>
      %241 = arith.truncf %240 : vector<64x22xf32> to vector<64x22xbf16>
      %c0_168 = arith.constant 0 : index
      %c6_169 = arith.constant 6 : index
      %242 = vector.load %arg36[%c0_168, %c6_169] : memref<64x324xf32, #tpu.memory_space<vmem>>, vector<64x22xf32>
      %243 = arith.truncf %242 : vector<64x22xf32> to vector<64x22xbf16>
      %c0_170 = arith.constant 0 : index
      %c7_171 = arith.constant 7 : index
      %244 = vector.load %arg36[%c0_170, %c7_171] : memref<64x324xf32, #tpu.memory_space<vmem>>, vector<64x22xf32>
      %245 = arith.truncf %244 : vector<64x22xf32> to vector<64x22xbf16>
      %c0_172 = arith.constant 0 : index
      %c8_173 = arith.constant 8 : index
      %246 = vector.load %arg36[%c0_172, %c8_173] : memref<64x324xf32, #tpu.memory_space<vmem>>, vector<64x22xf32>
      %247 = arith.truncf %246 : vector<64x22xf32> to vector<64x22xbf16>
      %c0_174 = arith.constant 0 : index
      %c12_175 = arith.constant 12 : index
      %248 = vector.load %arg36[%c0_174, %c12_175] : memref<64x324xf32, #tpu.memory_space<vmem>>, vector<64x22xf32>
      %249 = arith.truncf %248 : vector<64x22xf32> to vector<64x22xbf16>
      %c0_176 = arith.constant 0 : index
      %c13_177 = arith.constant 13 : index
      %250 = vector.load %arg36[%c0_176, %c13_177] : memref<64x324xf32, #tpu.memory_space<vmem>>, vector<64x22xf32>
      %251 = arith.truncf %250 : vector<64x22xf32> to vector<64x22xbf16>
      %c0_178 = arith.constant 0 : index
      %c14_179 = arith.constant 14 : index
      %252 = vector.load %arg36[%c0_178, %c14_179] : memref<64x324xf32, #tpu.memory_space<vmem>>, vector<64x22xf32>
      %253 = arith.truncf %252 : vector<64x22xf32> to vector<64x22xbf16>
      %254 = tpu.concatenate %237, %239, %241, %243, %245, %247, %249, %251, %253 in 0 : vector<64x22xbf16>, vector<64x22xbf16>, vector<64x22xbf16>, vector<64x22xbf16>, vector<64x22xbf16>, vector<64x22xbf16>, vector<64x22xbf16>, vector<64x22xbf16>, vector<64x22xbf16> -> vector<576x22xbf16>
      %cst_180 = arith.constant dense<0.000000e+00> : vector<64x22xf32>
      %255 = tpu.matmul %235, %254, %cst_180 {dimension_numbers = #tpu.dot_dimension_numbers<[1], [0], [0], [1], [0, 0, 1, 1], [], []>} : vector<64x576xbf16>, vector<576x22xbf16>, vector<64x22xf32> -> vector<64x22xf32>
      %256 = arith.index_cast %arg38 : i32 to index
      %c0_181 = arith.constant 0 : index
      %c0_182 = arith.constant 0 : index
      %257 = vector.load %arg25[%256, %c0_181, %c0_182] : memref<8x64x1xf32, #tpu.memory_space<vmem>>, vector<1x64x1xf32>
      %258 = vector.shape_cast %257 : vector<1x64x1xf32> to vector<64x1xf32>
      %259 = vector.broadcast %258 : vector<64x1xf32> to vector<64x22xf32>
      %260 = arith.addf %255, %259 : vector<64x22xf32>
      %cst_183 = arith.constant 0.000000e+00 : f32
      %261 = vector.broadcast %cst_183 : f32 to vector<64x22xf32>
      %262 = arith.maximumf %260, %261 : vector<64x22xf32>
      %263 = vector.broadcast %2 : vector<1x22xf32> to vector<64x22xf32>
      %264 = arith.mulf %262, %263 : vector<64x22xf32>
      %c0_184 = arith.constant 0 : index
      %c7_185 = arith.constant 7 : index
      %265 = vector.load %arg37[%c0_184, %c7_185] : memref<64x324xf32, #tpu.memory_space<vmem>>, vector<64x22xf32>
      tpu.vector_store %arg37[%c0_184, %c7_185], %264 {strides = array<i32>} : memref<64x324xf32, #tpu.memory_space<vmem>>, vector<64x22xf32>,
      %266 = arith.index_cast %arg38 : i32 to index
      %c0_186 = arith.constant 0 : index
      %c0_187 = arith.constant 0 : index
      %267 = vector.load %arg26[%266, %c0_186, %c0_187] : memref<8x64x576xbf16, #tpu.memory_space<vmem>>, vector<1x64x576xbf16>
      %268 = vector.shape_cast %267 : vector<1x64x576xbf16> to vector<64x576xbf16>
      %c0_188 = arith.constant 0 : index
      %c0_189 = arith.constant 0 : index
      %269 = vector.load %arg37[%c0_188, %c0_189] : memref<64x324xf32, #tpu.memory_space<vmem>>, vector<64x22xf32>
      %270 = arith.truncf %269 : vector<64x22xf32> to vector<64x22xbf16>
      %c0_190 = arith.constant 0 : index
      %c1_191 = arith.constant 1 : index
      %271 = vector.load %arg37[%c0_190, %c1_191] : memref<64x324xf32, #tpu.memory_space<vmem>>, vector<64x22xf32>
      %272 = arith.truncf %271 : vector<64x22xf32> to vector<64x22xbf16>
      %c0_192 = arith.constant 0 : index
      %c2_193 = arith.constant 2 : index
      %273 = vector.load %arg37[%c0_192, %c2_193] : memref<64x324xf32, #tpu.memory_space<vmem>>, vector<64x22xf32>
      %274 = arith.truncf %273 : vector<64x22xf32> to vector<64x22xbf16>
      %c0_194 = arith.constant 0 : index
      %c6_195 = arith.constant 6 : index
      %275 = vector.load %arg37[%c0_194, %c6_195] : memref<64x324xf32, #tpu.memory_space<vmem>>, vector<64x22xf32>
      %276 = arith.truncf %275 : vector<64x22xf32> to vector<64x22xbf16>
      %c0_196 = arith.constant 0 : index
      %c7_197 = arith.constant 7 : index
      %277 = vector.load %arg37[%c0_196, %c7_197] : memref<64x324xf32, #tpu.memory_space<vmem>>, vector<64x22xf32>
      %278 = arith.truncf %277 : vector<64x22xf32> to vector<64x22xbf16>
      %c0_198 = arith.constant 0 : index
      %c8_199 = arith.constant 8 : index
      %279 = vector.load %arg37[%c0_198, %c8_199] : memref<64x324xf32, #tpu.memory_space<vmem>>, vector<64x22xf32>
      %280 = arith.truncf %279 : vector<64x22xf32> to vector<64x22xbf16>
      %c0_200 = arith.constant 0 : index
      %c12_201 = arith.constant 12 : index
      %281 = vector.load %arg37[%c0_200, %c12_201] : memref<64x324xf32, #tpu.memory_space<vmem>>, vector<64x22xf32>
      %282 = arith.truncf %281 : vector<64x22xf32> to vector<64x22xbf16>
      %c0_202 = arith.constant 0 : index
      %c13_203 = arith.constant 13 : index
      %283 = vector.load %arg37[%c0_202, %c13_203] : memref<64x324xf32, #tpu.memory_space<vmem>>, vector<64x22xf32>
      %284 = arith.truncf %283 : vector<64x22xf32> to vector<64x22xbf16>
      %c0_204 = arith.constant 0 : index
      %c14_205 = arith.constant 14 : index
      %285 = vector.load %arg37[%c0_204, %c14_205] : memref<64x324xf32, #tpu.memory_space<vmem>>, vector<64x22xf32>
      %286 = arith.truncf %285 : vector<64x22xf32> to vector<64x22xbf16>
      %287 = tpu.concatenate %270, %272, %274, %276, %278, %280, %282, %284, %286 in 0 : vector<64x22xbf16>, vector<64x22xbf16>, vector<64x22xbf16>, vector<64x22xbf16>, vector<64x22xbf16>, vector<64x22xbf16>, vector<64x22xbf16>, vector<64x22xbf16>, vector<64x22xbf16> -> vector<576x22xbf16>
      %cst_206 = arith.constant dense<0.000000e+00> : vector<64x22xf32>
      %288 = tpu.matmul %268, %287, %cst_206 {dimension_numbers = #tpu.dot_dimension_numbers<[1], [0], [0], [1], [0, 0, 1, 1], [], []>} : vector<64x576xbf16>, vector<576x22xbf16>, vector<64x22xf32> -> vector<64x22xf32>
      %289 = arith.index_cast %arg38 : i32 to index
      %c0_207 = arith.constant 0 : index
      %c0_208 = arith.constant 0 : index
      %290 = vector.load %arg27[%289, %c0_207, %c0_208] : memref<8x64x1xf32, #tpu.memory_space<vmem>>, vector<1x64x1xf32>
      %291 = vector.shape_cast %290 : vector<1x64x1xf32> to vector<64x1xf32>
      %292 = vector.broadcast %291 : vector<64x1xf32> to vector<64x22xf32>
      %293 = arith.addf %288, %292 : vector<64x22xf32>
      %c0_209 = arith.constant 0 : index
      %c7_210 = arith.constant 7 : index
      %294 = vector.load %arg36[%c0_209, %c7_210] : memref<64x324xf32, #tpu.memory_space<vmem>>, vector<64x22xf32>
      %295 = arith.addf %293, %294 : vector<64x22xf32>
      %cst_211 = arith.constant 0.000000e+00 : f32
      %296 = vector.broadcast %cst_211 : f32 to vector<64x22xf32>
      %297 = arith.maximumf %295, %296 : vector<64x22xf32>
      %298 = vector.broadcast %2 : vector<1x22xf32> to vector<64x22xf32>
      %299 = arith.mulf %297, %298 : vector<64x22xf32>
      %c0_212 = arith.constant 0 : index
      %c7_213 = arith.constant 7 : index
      %300 = vector.load %arg36[%c0_212, %c7_213] : memref<64x324xf32, #tpu.memory_space<vmem>>, vector<64x22xf32>
      tpu.vector_store %arg36[%c0_212, %c7_213], %299 {strides = array<i32>} : memref<64x324xf32, #tpu.memory_space<vmem>>, vector<64x22xf32>,
    }
    %c8_i32_147 = arith.constant 8 : i32
    %c0_148 = arith.constant 0 : index
    %c0_149 = arith.constant 0 : index
    %220 = vector.load %arg36[%c0_148, %c0_149] : memref<64x324xf32, #tpu.memory_space<vmem>>, vector<64x36xf32>
    %cst_150 = arith.constant dense<0.000000e+00> : vector<64xf32>
    %221 = vector.multi_reduction <add>, %220, %cst_150 [1] : vector<64x36xf32> to vector<64xf32>
    %222 = vector.shape_cast %221 : vector<64xf32> to vector<64x1xf32>
    %cst_151 = arith.constant 1.600000e+01 : f32
    %223 = vector.broadcast %cst_151 : f32 to vector<64x1xf32>
    %224 = arith.divf %222, %223 : vector<64x1xf32>
    %c0_152 = arith.constant 0 : index
    %c0_153 = arith.constant 0 : index
    %225 = vector.load %arg28[%c0_152, %c0_153] : memref<64x1xf32, #tpu.memory_space<vmem>>, vector<64x1xf32>
    %226 = arith.mulf %225, %224 : vector<64x1xf32>
    %cst_154 = arith.constant dense<0.000000e+00> : vector<1xf32>
    %227 = vector.multi_reduction <add>, %226, %cst_154 [0] : vector<64x1xf32> to vector<1xf32>
    %228 = vector.shape_cast %227 : vector<1xf32> to vector<1x1xf32>
    %c0_155 = arith.constant 0 : index
    %c0_156 = arith.constant 0 : index
    %229 = vector.load %arg29[%c0_155, %c0_156] : memref<1x1xf32, #tpu.memory_space<vmem>>, vector<1x1xf32>
    %230 = arith.addf %228, %229 : vector<1x1xf32>
    %231 = vector.shape_cast %230 : vector<1x1xf32> to vector<1x1x1xf32>
    %c0_157 = arith.constant 0 : index
    %c0_158 = arith.constant 0 : index
    %c0_159 = arith.constant 0 : index
    %232 = vector.load %arg35[%c0_157, %c0_158, %c0_159] : memref<1x1x1xf32, #tpu.memory_space<vmem>>, vector<1x1x1xf32>
    tpu.vector_store %arg35[%c0_157, %c0_158, %c0_159], %231 {strides = array<i32>} : memref<1x1x1xf32, #tpu.memory_space<vmem>>, vector<1x1x1xf32>,
    return
  }
  func.func @transform_0(%arg0: i32) -> (i32, i32, i32) {
    %c0_i32 = arith.constant 0 : i32
    %c0_i32_0 = arith.constant 0 : i32
    %c0_i32_1 = arith.constant 0 : i32
    return %arg0, %c0_i32, %c0_i32_0 : i32, i32, i32
  }
  func.func @transform_1(%arg0: i32) -> (i32, i32) {
    %c0_i32 = arith.constant 0 : i32
    %c0_i32_0 = arith.constant 0 : i32
    %c0_i32_1 = arith.constant 0 : i32
    return %c0_i32, %c0_i32_0 : i32, i32
  }
  func.func @transform_2(%arg0: i32) -> (i32, i32) {
    %c0_i32 = arith.constant 0 : i32
    %c0_i32_0 = arith.constant 0 : i32
    %c0_i32_1 = arith.constant 0 : i32
    return %c0_i32, %c0_i32_0 : i32, i32
  }
  func.func @transform_3(%arg0: i32) -> (i32, i32, i32) {
    %c0_i32 = arith.constant 0 : i32
    %c0_i32_0 = arith.constant 0 : i32
    %c0_i32_1 = arith.constant 0 : i32
    %c0_i32_2 = arith.constant 0 : i32
    return %c0_i32, %c0_i32_0, %c0_i32_1 : i32, i32, i32
  }
  func.func @transform_4(%arg0: i32) -> (i32, i32, i32) {
    %c0_i32 = arith.constant 0 : i32
    %c0_i32_0 = arith.constant 0 : i32
    %c0_i32_1 = arith.constant 0 : i32
    %c0_i32_2 = arith.constant 0 : i32
    return %c0_i32, %c0_i32_0, %c0_i32_1 : i32, i32, i32
  }
  func.func @transform_5(%arg0: i32) -> (i32, i32, i32) {
    %c0_i32 = arith.constant 0 : i32
    %c0_i32_0 = arith.constant 0 : i32
    %c0_i32_1 = arith.constant 0 : i32
    %c0_i32_2 = arith.constant 0 : i32
    return %c0_i32, %c0_i32_0, %c0_i32_1 : i32, i32, i32
  }
  func.func @transform_6(%arg0: i32) -> (i32, i32, i32) {
    %c0_i32 = arith.constant 0 : i32
    %c0_i32_0 = arith.constant 0 : i32
    %c0_i32_1 = arith.constant 0 : i32
    %c0_i32_2 = arith.constant 0 : i32
    return %c0_i32, %c0_i32_0, %c0_i32_1 : i32, i32, i32
  }
  func.func @transform_7(%arg0: i32) -> (i32, i32) {
    %c0_i32 = arith.constant 0 : i32
    %c0_i32_0 = arith.constant 0 : i32
    %c0_i32_1 = arith.constant 0 : i32
    return %c0_i32, %c0_i32_0 : i32, i32
  }
  func.func @transform_8(%arg0: i32) -> (i32, i32) {
    %c0_i32 = arith.constant 0 : i32
    %c0_i32_0 = arith.constant 0 : i32
    %c0_i32_1 = arith.constant 0 : i32
    return %c0_i32, %c0_i32_0 : i32, i32
  }
  func.func @transform_9(%arg0: i32) -> (i32, i32) {
    %c0_i32 = arith.constant 0 : i32
    %c0_i32_0 = arith.constant 0 : i32
    %c0_i32_1 = arith.constant 0 : i32
    return %c0_i32, %c0_i32_0 : i32, i32
  }
  func.func @transform_10(%arg0: i32) -> (i32, i32) {
    %c0_i32 = arith.constant 0 : i32
    %c0_i32_0 = arith.constant 0 : i32
    %c0_i32_1 = arith.constant 0 : i32
    return %c0_i32, %c0_i32_0 : i32, i32
  }
  func.func @transform_11(%arg0: i32) -> (i32, i32) {
    %c0_i32 = arith.constant 0 : i32
    %c0_i32_0 = arith.constant 0 : i32
    %c0_i32_1 = arith.constant 0 : i32
    return %c0_i32, %c0_i32_0 : i32, i32
  }
  func.func @transform_12(%arg0: i32) -> (i32, i32) {
    %c0_i32 = arith.constant 0 : i32
    %c0_i32_0 = arith.constant 0 : i32
    %c0_i32_1 = arith.constant 0 : i32
    return %c0_i32, %c0_i32_0 : i32, i32
  }
  func.func @transform_13(%arg0: i32) -> (i32, i32, i32) {
    %c0_i32 = arith.constant 0 : i32
    %c0_i32_0 = arith.constant 0 : i32
    %c0_i32_1 = arith.constant 0 : i32
    %c0_i32_2 = arith.constant 0 : i32
    return %c0_i32, %c0_i32_0, %c0_i32_1 : i32, i32, i32
  }
  func.func @transform_14(%arg0: i32) -> (i32, i32, i32) {
    %c0_i32 = arith.constant 0 : i32
    %c0_i32_0 = arith.constant 0 : i32
    %c0_i32_1 = arith.constant 0 : i32
    %c0_i32_2 = arith.constant 0 : i32
    return %c0_i32, %c0_i32_0, %c0_i32_1 : i32, i32, i32
  }
  func.func @transform_15(%arg0: i32) -> (i32, i32, i32) {
    %c0_i32 = arith.constant 0 : i32
    %c0_i32_0 = arith.constant 0 : i32
    %c0_i32_1 = arith.constant 0 : i32
    %c0_i32_2 = arith.constant 0 : i32
    return %c0_i32, %c0_i32_0, %c0_i32_1 : i32, i32, i32
  }
  func.func @transform_16(%arg0: i32) -> (i32, i32, i32) {
    %c0_i32 = arith.constant 0 : i32
    %c0_i32_0 = arith.constant 0 : i32
    %c0_i32_1 = arith.constant 0 : i32
    %c0_i32_2 = arith.constant 0 : i32
    return %c0_i32, %c0_i32_0, %c0_i32_1 : i32, i32, i32
  }
  func.func @transform_17(%arg0: i32) -> (i32, i32) {
    %c0_i32 = arith.constant 0 : i32
    %c0_i32_0 = arith.constant 0 : i32
    %c0_i32_1 = arith.constant 0 : i32
    return %c0_i32, %c0_i32_0 : i32, i32
  }
  func.func @transform_18(%arg0: i32) -> (i32, i32) {
    %c0_i32 = arith.constant 0 : i32
    %c0_i32_0 = arith.constant 0 : i32
    %c0_i32_1 = arith.constant 0 : i32
    return %c0_i32, %c0_i32_0 : i32, i32
  }
  func.func @transform_19(%arg0: i32) -> (i32, i32) {
    %c0_i32 = arith.constant 0 : i32
    %c0_i32_0 = arith.constant 0 : i32
    %c0_i32_1 = arith.constant 0 : i32
    return %c0_i32, %c0_i32_0 : i32, i32
  }
  func.func @transform_20(%arg0: i32) -> (i32, i32) {
    %c0_i32 = arith.constant 0 : i32
    %c0_i32_0 = arith.constant 0 : i32
    %c0_i32_1 = arith.constant 0 : i32
    return %c0_i32, %c0_i32_0 : i32, i32
  }
  func.func @transform_21(%arg0: i32) -> (i32, i32) {
    %c0_i32 = arith.constant 0 : i32
    %c0_i32_0 = arith.constant 0 : i32
    %c0_i32_1 = arith.constant 0 : i32
    return %c0_i32, %c0_i32_0 : i32, i32
  }
  func.func @transform_22(%arg0: i32) -> (i32, i32) {
    %c0_i32 = arith.constant 0 : i32
    %c0_i32_0 = arith.constant 0 : i32
    %c0_i32_1 = arith.constant 0 : i32
    return %c0_i32, %c0_i32_0 : i32, i32
  }
  func.func @transform_23(%arg0: i32) -> (i32, i32, i32) {
    %c0_i32 = arith.constant 0 : i32
    %c0_i32_0 = arith.constant 0 : i32
    %c0_i32_1 = arith.constant 0 : i32
    %c0_i32_2 = arith.constant 0 : i32
    return %c0_i32, %c0_i32_0, %c0_i32_1 : i32, i32, i32
  }
  func.func @transform_24(%arg0: i32) -> (i32, i32, i32) {
    %c0_i32 = arith.constant 0 : i32
    %c0_i32_0 = arith.constant 0 : i32
    %c0_i32_1 = arith.constant 0 : i32
    %c0_i32_2 = arith.constant 0 : i32
    return %c0_i32, %c0_i32_0, %c0_i32_1 : i32, i32, i32
  }
  func.func @transform_25(%arg0: i32) -> (i32, i32, i32) {
    %c0_i32 = arith.constant 0 : i32
    %c0_i32_0 = arith.constant 0 : i32
    %c0_i32_1 = arith.constant 0 : i32
    %c0_i32_2 = arith.constant 0 : i32
    return %c0_i32, %c0_i32_0, %c0_i32_1 : i32, i32, i32
  }
  func.func @transform_26(%arg0: i32) -> (i32, i32, i32) {
    %c0_i32 = arith.constant 0 : i32
    %c0_i32_0 = arith.constant 0 : i32
    %c0_i32_1 = arith.constant 0 : i32
    %c0_i32_2 = arith.constant 0 : i32
    return %c0_i32, %c0_i32_0, %c0_i32_1 : i32, i32, i32
  }
  func.func @transform_27(%arg0: i32) -> (i32, i32) {
    %c0_i32 = arith.constant 0 : i32
    %c0_i32_0 = arith.constant 0 : i32
    %c0_i32_1 = arith.constant 0 : i32
    return %c0_i32, %c0_i32_0 : i32, i32
  }
  func.func @transform_28(%arg0: i32) -> (i32, i32) {
    %c0_i32 = arith.constant 0 : i32
    %c0_i32_0 = arith.constant 0 : i32
    %c0_i32_1 = arith.constant 0 : i32
    return %c0_i32, %c0_i32_0 : i32, i32
  }
  func.func @transform_29(%arg0: i32) -> (i32, i32) {
    %c0_i32 = arith.constant 0 : i32
    %c0_i32_0 = arith.constant 0 : i32
    %c0_i32_1 = arith.constant 0 : i32
    return %c0_i32, %c0_i32_0 : i32, i32
  }
  func.func @transform_30(%arg0: i32) -> (i32, i32) {
    %c0_i32 = arith.constant 0 : i32
    %c0_i32_0 = arith.constant 0 : i32
    %c0_i32_1 = arith.constant 0 : i32
    return %c0_i32, %c0_i32_0 : i32, i32
  }
  func.func @transform_31(%arg0: i32) -> (i32, i32) {
    %c0_i32 = arith.constant 0 : i32
    %c0_i32_0 = arith.constant 0 : i32
    %c0_i32_1 = arith.constant 0 : i32
    return %c0_i32, %c0_i32_0 : i32, i32
  }
  func.func @transform_32(%arg0: i32) -> (i32, i32) {
    %c0_i32 = arith.constant 0 : i32
    %c0_i32_0 = arith.constant 0 : i32
    %c0_i32_1 = arith.constant 0 : i32
    return %c0_i32, %c0_i32_0 : i32, i32
  }
  func.func @transform_33(%arg0: i32) -> (i32, i32) {
    %c0_i32 = arith.constant 0 : i32
    %c0_i32_0 = arith.constant 0 : i32
    %c0_i32_1 = arith.constant 0 : i32
    return %c0_i32, %c0_i32_0 : i32, i32
  }
  func.func @transform_34(%arg0: i32) -> (i32, i32, i32) {
    %c0_i32 = arith.constant 0 : i32
    %c0_i32_0 = arith.constant 0 : i32
    %c0_i32_1 = arith.constant 0 : i32
    return %arg0, %c0_i32, %c0_i32_0 : i32, i32, i32
  }
}

</mosaic_0001>

<bundles_post_ra>
// kernel: _lambda_.1
= control target key start
LH: loop header
LB: loop body
LE: loop exit
PB: predicated region body
PF: predicated region fallthrough
CT: control target
= control target key end

     0   :  { %s7671_s6 = smov 1   ;;  %s7672_s10 = smov 2   ;;  %s9344_s0 = inlined_call_operand.smem [shape: u32[35], index: -1, kind: input, shape index: {}] }
   0x1   :  { %s7775_s5 = sld [smem:[%s9344_s0]]   ;;  %s7673_s14 = smov 3  }
   0x2   :  { %s7780_s9 = sld [smem:[%s9344_s0 + %s7671_s6]]   ;;  %s7674_s18 = smov 4  }
   0x3   :  { %s7785_s13 = sld [smem:[%s9344_s0 + %s7672_s10]]   ;;  %s7675_s22 = smov 5  }
   0x4   :  { %s7790_s17 = sld [smem:[%s9344_s0 + %s7673_s14]]   ;;  %s7676_s26 = smov 6  }
   0x5   :  { %s7795_s21 = sld [smem:[%s9344_s0 + %s7674_s18]]   ;;  %s7677_s30 = smov 7  }
   0x6   :  { %s7800_s25 = sld [smem:[%s9344_s0 + %s7675_s22]]   ;;  %s7678_s4 = smov 8  }
   0x7   :  { %s7805_s29 = sld [smem:[%s9344_s0 + %s7676_s26]]   ;;  %s7679_s10 = smov 9  }
   0x8   :  { %s7810_s3 = sld [smem:[%s9344_s0 + %s7677_s30]]   ;;  %s7680_s15 = smov 10  }
   0x9   :  { %s7815_s8 = sld [smem:[%s9344_s0 + %s7678_s4]]   ;;  %s7681_s20 = smov 11  }
   0xa   :  { %s7820_s14 = sld [smem:[%s9344_s0 + %s7679_s10]]   ;;  %s7682_s26 = smov 12  }
   0xb   :  { %s7825_s19 = sld [smem:[%s9344_s0 + %s7680_s15]]   ;;  %s7683_s1 = smov 13  }
   0xc   :  { %s7830_s24 = sld [smem:[%s9344_s0 + %s7681_s20]]   ;;  %s7684_s7 = smov 14  }
   0xd   :  { %s7835_s30 = sld [smem:[%s9344_s0 + %s7682_s26]]   ;;  %s7685_s15 = smov 15  }
   0xe   :  { %9421 = sst [smem:[#allocation5_spill]] %s7810_s3  ;;  %s7686_s22 = smov 16  }
   0xf   :  { %s7840_s6 = sld [smem:[%s9344_s0 + %s7683_s1]]   ;;  %s7687_s28 = smov 17  }
  0x10   :  { %s7845_s12 = sld [smem:[%s9344_s0 + %s7684_s7]]   ;;  %s7688_s7 = smov 18  }
  0x11   :  { %9422 = sst [smem:[#allocation6_spill]] %s7825_s19  ;;  %s7699_s1 = smov 29  }
  0x12   :  { %s7850_s20 = sld [smem:[%s9344_s0 + %s7685_s15]]   ;;  %s7689_s15 = smov 19  }
  0x13   :  { %9423 = sst [smem:[#allocation7_spill]] %s7835_s30  ;;  %s7700_s10 = smov 30  }
  0x14   :  { %s7855_s27 = sld [smem:[%s9344_s0 + %s7686_s22]]   ;;  %s7690_s22 = smov 20  }
  0x15   :  { %9424 = sst [smem:[#allocation8_spill]] %s7840_s6  ;;  %s7701_s16 = smov 31  }
  0x16   :  { %9425 = sst [smem:[#allocation9_spill]] %s7845_s12  ;;  %s7702_s23 = smov 32  }
  0x17   :  { %s7860_s4 = sld [smem:[%s9344_s0 + %s7687_s28]]   ;;  %s7691_s28 = smov 21  }
  0x18   :  { %9426 = sst [smem:[#allocation10_spill]] %s7850_s20 }
  0x19   :  { %s7865_s12 = sld [smem:[%s9344_s0 + %s7688_s7]]   ;;  %s7692_s7 = smov 22  }
  0x1a   :  { %9427 = sst [smem:[#allocation11_spill]] %s7855_s27 }
  0x1b   :  { %s7870_s20 = sld [smem:[%s9344_s0 + %s7689_s15]]   ;;  %s7693_s15 = smov 23  }
  0x1c   :  { %s7875_s27 = sld [smem:[%s9344_s0 + %s7690_s22]]   ;;  %s7694_s22 = smov 24  }
  0x1d   :  { %9428 = sst [smem:[#allocation12_spill]] %s7860_s4 }
  0x1e   :  { %s7880_s4 = sld [smem:[%s9344_s0 + %s7691_s28]]   ;;  %s7695_s28 = smov 25  }
  0x1f   :  { %9429 = sst [smem:[#allocation13_spill]] %s7865_s12 }
  0x20   :  { %s7885_s12 = sld [smem:[%s9344_s0 + %s7692_s7]]   ;;  %s7696_s7 = smov 26  }
  0x21   :  { %9430 = sst [smem:[#allocation14_spill]] %s7870_s20 }
  0x22   :  { %9431 = sst [smem:[#allocation15_spill]] %s7875_s27 }
  0x23   :  { %s7890_s20 = sld [smem:[%s9344_s0 + %s7693_s15]]   ;;  %s7697_s15 = smov 27  }
  0x24   :  { %9432 = sst [smem:[#allocation16_spill]] %s7880_s4 }
  0x25   :  { %s7895_s27 = sld [smem:[%s9344_s0 + %s7694_s22]]   ;;  %s7698_s22 = smov 28  }
  0x26   :  { %9433 = sst [smem:[#allocation17_spill]] %s7885_s12 }
  0x27   :  { %s7900_s4 = sld [smem:[%s9344_s0 + %s7695_s28]]  }
  0x28   :  { %s7905_s12 = sld [smem:[%s9344_s0 + %s7696_s7]]  }
  0x29   :  { %9434 = sst [smem:[#allocation18_spill]] %s7890_s20 }
  0x2a   :  { %s7910_s20 = sld [smem:[%s9344_s0 + %s7697_s15]]  }
  0x2b   :  { %9435 = sst [smem:[#allocation19_spill]] %s7895_s27 }
  0x2c   :  { %s6424_s27 = sld [smem:[%s9344_s0 + %s7698_s22]]  }
  0x2d   :  { %9436 = sst [smem:[#allocation20_spill]] %s7900_s4 }
  0x2e   :  { %9437 = sst [smem:[#allocation21_spill]] %s7905_s12 }
  0x2f   :  { %s7918_s4 = sld [smem:[%s9344_s0 + %s7699_s1]]   ;;  %s7703_s1 = smov 33  }
  0x30   :  { %9438 = sst [smem:[#allocation22_spill]] %s7910_s20 }
  0x31   :  { %s7923_s12 = sld [smem:[%s9344_s0 + %s7700_s10]]   ;;  %s7704_s10 = smov 34  }
  0x32   :  { %s7928_s20 = sld [smem:[%s9344_s0 + %s7701_s16]]   ;;  %v74_v0 = vstv %s6424_s27  ;;  %s7945_s16 = smov 0  }
  0x33   :  { %s7933_s6 = sld [smem:[%s9344_s0 + %s7702_s23]]   ;;  %75 = vst [vmem:[#allocation4] sm:$0x1] %v74_v0 }
  0x34   :  { %s7938_s30 = sld [smem:[%s9344_s0 + %s7703_s1]]  }
  0x35   :  { %9439 = sst [smem:[#allocation23_spill]] %s7918_s4 }
  0x36   :  { %s7943_s19 = sld [smem:[%s9344_s0 + %s7704_s10]]  }
  0x37 LB: > { %s9440_s3 = sld [smem:[#allocation5_spill]]  ;;  %s6431_s15 = sadd.s32 4294967295, %s7657_s16   ;;  %s7657_s16 = sphi %s7945_s16, %s81_s16  }
  0x38   : > { %p6435_p0 = scmp.ge.s32.totalorder %s7657_s16, 1  ;;  %p948_p1 = scmp.lt.s32.totalorder %s7657_s16, 3 }
  0x3a   : > { %p949_p2 = pnand %p6435_p0, %p948_p1 }
  0x3b   : > { %v1043_v1 = vld [vmem:[%s7780_s9] sm:$0xff] (!%p949_p2)  ;;  %v7705_v2 = vmov (!%p949_p2), 1   ;;  %v7706_v3 = vmov (!%p949_p2), 2   ;;  %p1031_p3 = scmp.lt.s32.totalorder (!%p949_p2), %s6431_s15, 1  ;;  %v1044_v4 = vld [vmem:[%s7780_s9 + $0x8] sm:$0xff] (!%p949_p2)  ;;  %v7707_v5 = vmov (!%p949_p2), 3   ;;  %v1058_v14 = vlaneseq (!%p949_p2) }
  0x3c   : > { %952 = sbr.rel (%p949_p2) target bundleno = 6349 (0x18cd), region = 156  ;;  %7450 = vset.pattern.permute.xlu0 (!%p949_p2), %v7705_v2  ;;  %7451 = vset.pattern.permute.xlu1 (!%p949_p2), %v7706_v3  ;;  %v7708_v6 = vmov (!%p949_p2), 4   ;;  %v7709_v7 = vmov (!%p949_p2), 5   ;;  %v7710_v8 = vmov (!%p949_p2), 6   ;;  %v7711_v9 = vmov (!%p949_p2), 7   ;;  %v1046_v11 = vld [vmem:[%s7785_s13 + $0x8] sm:$0xff] (!%p949_p2) }
  0x3d   : > { %1080 = vperm.xlu0 (!%p949_p2), %7450, %v1043_v1   ;;  %1129 = vperm.xlu1 (!%p949_p2), %7451, %v1043_v1   ;;  %v7712_v10 = vmov (!%p949_p2), 0   ;;  %v7713_v12 = vmov (!%p949_p2), 8   ;;  %v1045_v13 = vld [vmem:[%s7785_s13] sm:$0xff] (!%p949_p2)  ;;  %v7964_v15 = vshrl.u32 (!%p949_p2), %v1058_v14, 7  ;;  %s9370_s23 = smov (!%p949_p2), 127   ;;  %s9367_s22 = smov (!%p949_p2), 126  }
  0x3e   : > { %s9365_s26 = smov (!%p949_p2), 110   ;;  %s9363_s1 = smov (!%p949_p2), 109   ;;  %vm1111_vm0 = vcmask (!%p949_p2), 1039360   ;;  %vm1160_vm1 = vcmask (!%p949_p2), 1031168   ;;  %vm1209_vm2 = vcmask (!%p949_p2), 900096   ;;  %vm1258_vm3 = vcmask (!%p949_p2), 891904  }
  0x3f   : > { %v1060_v16 = vsub.s32 (!%p949_p2), 0, %v7964_v15  ;;  %v1064_v17 = vsub.s32 (!%p949_p2), 1, %v7964_v15  ;;  %v1068_v19 = vsub.s32 (!%p949_p2), 2, %v7964_v15  ;;  %s9360_s28 = smov (!%p949_p2), 108   ;;  %s9358_s2 = smov (!%p949_p2), 92   ;;  %vm1307_vm4 = vcmask (!%p949_p2), 883712  }
  0x40   : > { %s9356_s10 = smov (!%p949_p2), 91   ;;  %s9354_s7 = smov (!%p949_p2), 90   ;;  %vm1356_vm5 = vcmask (!%p949_p2), 752640   ;;  %vm1405_vm6 = vcmask (!%p949_p2), 744448   ;;  %vm1454_vm7 = vcmask (!%p949_p2), 736256   ;;  %vm1517_vm8 = vcmask (!%p949_p2), 556032  }
  0x41   : > { %1084 = vperm.xlu0 (!%p949_p2), %7450, %v1044_v4   ;;  %1133 = vperm.xlu1 (!%p949_p2), %7451, %v1044_v4   ;;  %s9441_s4 = sld [smem:[#allocation23_spill]] (!%p949_p2)  ;;  %s7723_s11 = smov (!%p949_p2), 19   ;;  %vm1558_vm9 = vcmask (!%p949_p2), 154624   ;;  %vm1572_vm10 = vcmask (!%p949_p2), 400384   ;;  %vm1569_vm11 = vcmask (!%p949_p2), 1047704  }
  0x43   : > { %s9496_s15 = smov (!%p1031_p3, %s6431_s15), 1 }
  0x44   : > { %s7321_s27 = smul.u32 3, %s9496_s15 }
  0x45   : > { %7452 = vset.pattern.permute.xlu0 %v7707_v5  ;;  %7453 = vset.pattern.permute.xlu1 %v7707_v5 }
  0x46   : > { %1178 = vperm.xlu0 %7452, %v1043_v1   ;;  %1182 = vperm.xlu1 %7453, %v1044_v4   ;;  %s1034_s18 = scalar_lea.vmem %s7775_s5, %s7321_s27  ;;  %s8240_s27 = smov 0  }
  0x47   : > { %v1042_v18 = vld [vmem:[%s1034_s18] sm:$0x7] }
  0x48   : > { %v7972_v20 = vrot.slane %v1042_v18, %v1060_v16  ;;  %v7976_v21 = vrot.slane %v1042_v18, %v1064_v17  ;;  %v7980_v23 = vrot.slane %v1042_v18, %v1068_v19 }
  0x4a   : > { %7454 = vset.pattern.permute.xlu1 %v7708_v6  ;;  %7455 = vset.pattern.permute.xlu0 %v7708_v6 }
  0x4b   : > { %1227 = vperm.xlu1 %7454, %v1043_v1   ;;  %1231 = vperm.xlu0 %7455, %v1044_v4  }
  0x4f   : > { %7456 = vset.pattern.permute.xlu1 %v7709_v7  ;;  %7457 = vset.pattern.permute.xlu0 %v7710_v8 }
  0x50   : > { %1276 = vperm.xlu1 %7456, %v1043_v1   ;;  %1325 = vperm.xlu0 %7457, %v1043_v1  }
  0x54   : > { %1280 = vperm.xlu1 %7456, %v1044_v4   ;;  %7460 = vset.pattern.permute.xlu0 %v7711_v9 }
  0x55   : > { %1378 = vperm.xlu0 %7460, %v1044_v4  }
  0x58   : > { %7458 = vset.pattern.permute.xlu1 %v7710_v8 }
  0x59   : > { %1329 = vperm.xlu1 %7458, %v1044_v4   ;;  %7462 = vset.pattern.permute.xlu0 %v7712_v10 }
  0x5a   : > { %1049 = vperm.xlu0 %7462, %v1043_v1  }
  0x5d   : > { %7459 = vset.pattern.permute.xlu1 %v7711_v9 }
  0x5e   : > { %1374 = vperm.xlu1 %7459, %v1043_v1   ;;  %1478 = vperm.xlu0 %7462, %v1046_v11  }
  0x62   : > { %7461 = vset.pattern.permute.xlu1 %v7713_v12 }
  0x63   : > { %1423 = vperm.xlu1 %7461, %v1043_v1  }
  0x67   : > { %1427 = vperm.xlu1 %7461, %v1044_v4  }
  0x6b   : > { %7463 = vset.pattern.permute.xlu1 %v7712_v10 }
  0x6c   : > { %1054 = vperm.xlu1 %7463, %v1044_v4  }
  0x70   : > { %1473 = vperm.xlu1 %7463, %v1045_v13  }
  0xbc   : > { %v1081_v22 = vpop.permute.xlu0 %1080  ;;  %v1130_v26 = vpop.permute.xlu1 %1129 }
  0xbd   : > { %v1087_v24 = vmul.f32 %v1081_v22, %v7972_v20  ;;  %v1088_v25 = vmul.f32 %v1081_v22, %v7976_v21  ;;  %v1089_v28 = vmul.f32 %v1081_v22, %v7980_v23  ;;  %v1136_v33 = vmul.f32 %v1130_v26, %v7972_v20 }
  0xbe   : > { %v1137_v34 = vmul.f32 %v1130_v26, %v7976_v21  ;;  %v1138_v38 = vmul.f32 %v1130_v26, %v7980_v23 }
  0xbf   : > { %1101 = vrot.lane.b32.xlu0 %v1088_v25, %s9370_s23  ;;  %1099 = vrot.lane.b32.xlu1 %v1087_v24, %s9370_s23 }
  0xc0   : > { %v1085_v27 = vpop.permute.xlu0 %1084  ;;  %v1134_v30 = vpop.permute.xlu1 %1133 }
  0xc1   : > { %v1090_v29 = vmul.f32 %v1085_v27, %v7972_v20  ;;  %v1091_v31 = vmul.f32 %v1085_v27, %v7976_v21  ;;  %v1092_v32 = vmul.f32 %v1085_v27, %v7980_v23  ;;  %v1139_v39 = vmul.f32 %v1134_v30, %v7972_v20 }
  0xc2   : > { %v1140_v42 = vmul.f32 %v1134_v30, %v7976_v21  ;;  %v1141_v43 = vmul.f32 %v1134_v30, %v7980_v23 }
  0xc3   : > { %1105 = vrot.lane.b32.xlu0 %v1090_v29, %s9370_s23  ;;  %1103 = vrot.lane.b32.xlu1 %v1089_v28, %s9370_s23 }
  0xc5   : > { %v1183_v35 = vpop.permute.xlu1 %1182  ;;  %v1179_v36 = vpop.permute.xlu0 %1178 }
  0xc6   : > { %v1185_v45 = vmul.f32 %v1179_v36, %v7972_v20  ;;  %v1186_v46 = vmul.f32 %v1179_v36, %v7976_v21  ;;  %v1188_v49 = vmul.f32 %v1183_v35, %v7972_v20  ;;  %v1187_v50 = vmul.f32 %v1179_v36, %v7980_v23 }
  0xc7   : > { %1109 = vrot.lane.b32.xlu0 %v1092_v32, %s9370_s23  ;;  %1107 = vrot.lane.b32.xlu1 %v1091_v31, %s9370_s23  ;;  %v1189_v56 = vmul.f32 %v1183_v35, %v7976_v21  ;;  %v1190_v57 = vmul.f32 %v1183_v35, %v7980_v23 }
  0xca   : > { %v1228_v37 = vpop.permute.xlu1 %1227  ;;  %v1232_v40 = vpop.permute.xlu0 %1231 }
  0xcb   : > { %1150 = vrot.lane.b32.xlu0 %v1137_v34, %s9367_s22  ;;  %1148 = vrot.lane.b32.xlu1 %v1136_v33, %s9367_s22  ;;  %v1234_v59 = vmul.f32 %v1228_v37, %v7972_v20  ;;  %v1235_v60 = vmul.f32 %v1228_v37, %v7976_v21  ;;  %v1237_v62 = vmul.f32 %v1232_v40, %v7972_v20 }
  0xcc   : > { %v1236_v63 = vmul.f32 %v1228_v37, %v7980_v23  ;;  %v1238_v0 = vmul.f32 %v1232_v40, %v7976_v21  ;;  %v1239_v1 = vmul.f32 %v1232_v40, %v7980_v23 }
  0xcf   : > { %1154 = vrot.lane.b32.xlu0 %v1139_v39, %s9367_s22  ;;  %1152 = vrot.lane.b32.xlu1 %v1138_v38, %s9367_s22  ;;  %v1277_v41 = vpop.permute.xlu1 %1276  ;;  %v1326_v44 = vpop.permute.xlu0 %1325 }
  0xd0   : > { %v1283_v3 = vmul.f32 %v1277_v41, %v7972_v20  ;;  %v1284_v4 = vmul.f32 %v1277_v41, %v7976_v21  ;;  %v1285_v9 = vmul.f32 %v1277_v41, %v7980_v23  ;;  %v1332_v14 = vmul.f32 %v1326_v44, %v7972_v20 }
  0xd1   : > { %v1333_v18 = vmul.f32 %v1326_v44, %v7976_v21  ;;  %v1334_v24 = vmul.f32 %v1326_v44, %v7980_v23 }
  0xd3   : > { %1158 = vrot.lane.b32.xlu0 %v1141_v43, %s9367_s22  ;;  %1156 = vrot.lane.b32.xlu1 %v1140_v42, %s9367_s22  ;;  %v1281_v48 = vpop.permute.xlu1 %1280 }
  0xd4   : > { %v8008_v47 = vpop.permute.xlu0 %1378  ;;  %v1286_v11 = vmul.f32 %v1281_v48, %v7972_v20  ;;  %v1287_v12 = vmul.f32 %v1281_v48, %v7976_v21  ;;  %v1288_v13 = vmul.f32 %v1281_v48, %v7980_v23 }
  0xd5   : > { %v1384_v29 = vmul.f32 %v8008_v47, %v7972_v20  ;;  %v1385_v31 = vmul.f32 %v8008_v47, %v7976_v21  ;;  %v1386_v32 = vmul.f32 %v8008_v47, %v7980_v23 }
  0xd7   : > { %1199 = vrot.lane.b32.xlu0 %v1186_v46, %s9365_s26  ;;  %1197 = vrot.lane.b32.xlu1 %v1185_v45, %s9365_s26 }
  0xd8   : > { %v1330_v52 = vpop.permute.xlu1 %1329 }
  0xd9   : > { %v1050_v51 = vpop.permute.xlu0 %1049  ;;  %v1335_v22 = vmul.f32 %v1330_v52, %v7972_v20  ;;  %v1336_v25 = vmul.f32 %v1330_v52, %v7976_v21  ;;  %v1337_v26 = vmul.f32 %v1330_v52, %v7980_v23 }
  0xda   : > { %v8015_v53 = vmul.f32 %v7972_v20, %v1050_v51  ;;  %v8018_v54 = vmul.f32 %v7976_v21, %v1050_v51  ;;  %v8021_v55 = vmul.f32 %v7980_v23, %v1050_v51 }
  0xdb   : > { %1203 = vrot.lane.b32.xlu0 %v1188_v49, %s9365_s26  ;;  %1201 = vrot.lane.b32.xlu1 %v1187_v50, %s9365_s26 }
  0xdd   : > { %v1375_v58 = vpop.permute.xlu1 %1374  ;;  %v8101_v39 = vpop.permute.xlu0 %1478 }
  0xde   : > { %v1381_v27 = vmul.f32 %v1375_v58, %v7972_v20  ;;  %v1382_v28 = vmul.f32 %v1375_v58, %v7976_v21  ;;  %v1383_v30 = vmul.f32 %v1375_v58, %v7980_v23 }
  0xdf   : > { %1207 = vrot.lane.b32.xlu0 %v1190_v57, %s9365_s26  ;;  %1205 = vrot.lane.b32.xlu1 %v1189_v56, %s9365_s26 }
  0xe2   : > { %v1424_v61 = vpop.permute.xlu1 %1423 }
  0xe3   : > { %1248 = vrot.lane.b32.xlu0 %v1235_v60, %s9363_s1  ;;  %1246 = vrot.lane.b32.xlu1 %v1234_v59, %s9363_s1  ;;  %v1430_v33 = vmul.f32 %v1424_v61, %v7972_v20  ;;  %v1431_v34 = vmul.f32 %v1424_v61, %v7976_v21  ;;  %v1432_v35 = vmul.f32 %v1424_v61, %v7980_v23 }
  0xe6   : > { %v1428_v2 = vpop.permute.xlu1 %1427 }
  0xe7   : > { %1252 = vrot.lane.b32.xlu0 %v1237_v62, %s9363_s1  ;;  %1250 = vrot.lane.b32.xlu1 %v1236_v63, %s9363_s1  ;;  %v1433_v36 = vmul.f32 %v1428_v2, %v7972_v20  ;;  %v1434_v37 = vmul.f32 %v1428_v2, %v7976_v21  ;;  %v1435_v38 = vmul.f32 %v1428_v2, %v7980_v23 }
  0xeb   : > { %1256 = vrot.lane.b32.xlu0 %v1239_v1, %s9363_s1  ;;  %1254 = vrot.lane.b32.xlu1 %v1238_v0, %s9363_s1  ;;  %v1055_v5 = vpop.permute.xlu1 %1054 }
  0xec   : > { %v8044_v6 = vmul.f32 %v7972_v20, %v1055_v5  ;;  %v8047_v7 = vmul.f32 %v7976_v21, %v1055_v5  ;;  %v8050_v8 = vmul.f32 %v7980_v23, %v1055_v5 }
  0xef   : > { %1297 = vrot.lane.b32.xlu0 %v1284_v4, %s9360_s28  ;;  %1295 = vrot.lane.b32.xlu1 %v1283_v3, %s9360_s28  ;;  %v8103_v40 = vpop.permute.xlu1 %1473 }
  0xf3   : > { %1301 = vrot.lane.b32.xlu0 %v1286_v11, %s9360_s28  ;;  %1299 = vrot.lane.b32.xlu1 %v1285_v9, %s9360_s28 }
  0xf7   : > { %1305 = vrot.lane.b32.xlu0 %v1288_v13, %s9360_s28  ;;  %1303 = vrot.lane.b32.xlu1 %v1287_v12, %s9360_s28 }
  0xfb   : > { %1346 = vrot.lane.b32.xlu0 %v1333_v18, %s9358_s2  ;;  %1344 = vrot.lane.b32.xlu1 %v1332_v14, %s9358_s2 }
  0xff   : > { %1350 = vrot.lane.b32.xlu0 %v1335_v22, %s9358_s2  ;;  %1348 = vrot.lane.b32.xlu1 %v1334_v24, %s9358_s2 }
 0x103   : > { %1354 = vrot.lane.b32.xlu0 %v1337_v26, %s9358_s2  ;;  %1352 = vrot.lane.b32.xlu1 %v1336_v25, %s9358_s2 }
 0x107   : > { %1395 = vrot.lane.b32.xlu0 %v1382_v28, %s9356_s10  ;;  %1393 = vrot.lane.b32.xlu1 %v1381_v27, %s9356_s10 }
 0x10b   : > { %1399 = vrot.lane.b32.xlu0 %v1384_v29, %s9356_s10  ;;  %1397 = vrot.lane.b32.xlu1 %v1383_v30, %s9356_s10 }
 0x10f   : > { %1403 = vrot.lane.b32.xlu0 %v1386_v32, %s9356_s10  ;;  %1401 = vrot.lane.b32.xlu1 %v1385_v31, %s9356_s10 }
 0x113   : > { %1444 = vrot.lane.b32.xlu0 %v1431_v34, %s9354_s7  ;;  %1442 = vrot.lane.b32.xlu1 %v1430_v33, %s9354_s7 }
 0x117   : > { %1448 = vrot.lane.b32.xlu0 %v1433_v36, %s9354_s7  ;;  %1446 = vrot.lane.b32.xlu1 %v1432_v35, %s9354_s7 }
 0x11b   : > { %1452 = vrot.lane.b32.xlu0 %v1435_v38, %s9354_s7  ;;  %1450 = vrot.lane.b32.xlu1 %v1434_v37, %s9354_s7 }
 0x131   : > { %v1102_v41 = vpop.permute.xlu0 %1101  ;;  %v1100_v42 = vpop.permute.xlu1 %1099 }
 0x132   : > { %v1112_v20 = vsel %vm1111_vm0, %v1100_v42, %v1102_v41 }
 0x133   : > { %v1122_v43 = vadd.f32 %v1112_v20, %v8015_v53 }
 0x135   : > { %v1106_v44 = vpop.permute.xlu0 %1105  ;;  %v1104_v45 = vpop.permute.xlu1 %1103 }
 0x136   : > { %v1113_v21 = vsel %vm1111_vm0, %v1102_v41, %v1104_v45  ;;  %v1124_v23 = vadd.f32 %v1104_v45, %v8021_v55 }
 0x137   : > { %v1123_v46 = vadd.f32 %v1113_v21, %v8018_v54 }
 0x139   : > { %v1110_v47 = vpop.permute.xlu0 %1109  ;;  %v1108_v48 = vpop.permute.xlu1 %1107 }
 0x13a   : > { %v1127_v49 = vadd.f32 %v1110_v47, %v8050_v8  ;;  %v1114_v50 = vsel %vm1111_vm0, %v1106_v44, %v1108_v48  ;;  %v1115_v51 = vsel %vm1111_vm0, %v1108_v48, %v1110_v47 }
 0x13b   : > { %v1125_v52 = vadd.f32 %v1114_v50, %v8044_v6  ;;  %v1126_v53 = vadd.f32 %v1115_v51, %v8047_v7 }
 0x13d   : > { %v1151_v56 = vpop.permute.xlu0 %1150  ;;  %v1149_v57 = vpop.permute.xlu1 %1148 }
 0x13e   : > { %v1161_v58 = vsel %vm1160_vm1, %v1149_v57, %v1151_v56 }
 0x13f   : > { %v1171_v55 = vadd.f32 %v1161_v58, %v1122_v43 }
 0x141   : > { %v1155_v59 = vpop.permute.xlu0 %1154  ;;  %v1153_v54 = vpop.permute.xlu1 %1152 }
 0x142   : > { %v1162_v32 = vsel %vm1160_vm1, %v1151_v56, %v1153_v54  ;;  %v1173_v35 = vadd.f32 %v1153_v54, %v1124_v23 }
 0x143   : > { %v1172_v36 = vadd.f32 %v1162_v32, %v1123_v46 }
 0x145   : > { %v1159_v60 = vpop.permute.xlu0 %1158  ;;  %v1157_v61 = vpop.permute.xlu1 %1156 }
 0x146   : > { %v1163_v33 = vsel %vm1160_vm1, %v1155_v59, %v1157_v61  ;;  %v1164_v37 = vsel %vm1160_vm1, %v1157_v61, %v1159_v60  ;;  %v1176_v43 = vadd.f32 %v1159_v60, %v1127_v49 }
 0x147   : > { %v1174_v44 = vadd.f32 %v1163_v33, %v1125_v52  ;;  %v1175_v50 = vadd.f32 %v1164_v37, %v1126_v53 }
 0x149   : > { %v1200_v62 = vpop.permute.xlu0 %1199  ;;  %v1198_v63 = vpop.permute.xlu1 %1197 }
 0x14a   : > { %v1210_v34 = vsel %vm1209_vm2, %v1198_v63, %v1200_v62 }
 0x14b   : > { %v1220_v45 = vadd.f32 %v1210_v34, %v1171_v55 }
 0x14d   : > { %v1204_v0 = vpop.permute.xlu0 %1203  ;;  %v1202_v1 = vpop.permute.xlu1 %1201 }
 0x14e   : > { %v1211_v38 = vsel %vm1209_vm2, %v1200_v62, %v1202_v1  ;;  %v1222_v23 = vadd.f32 %v1202_v1, %v1173_v35 }
 0x14f   : > { %v1221_v51 = vadd.f32 %v1211_v38, %v1172_v36 }
 0x151   : > { %v1208_v2 = vpop.permute.xlu0 %1207  ;;  %v1206_v3 = vpop.permute.xlu1 %1205 }
 0x152   : > { %v1212_v21 = vsel %vm1209_vm2, %v1204_v0, %v1206_v3  ;;  %v1213_v47 = vsel %vm1209_vm2, %v1206_v3, %v1208_v2  ;;  %v1225_v57 = vadd.f32 %v1208_v2, %v1176_v43 }
 0x153   : > { %v1223_v58 = vadd.f32 %v1212_v21, %v1174_v44  ;;  %v1224_v54 = vadd.f32 %v1213_v47, %v1175_v50 }
 0x155   : > { %v1249_v4 = vpop.permute.xlu0 %1248  ;;  %v1247_v5 = vpop.permute.xlu1 %1246 }
 0x156   : > { %v1259_v41 = vsel %vm1258_vm3, %v1247_v5, %v1249_v4 }
 0x157   : > { %v1269_v56 = vadd.f32 %v1259_v41, %v1220_v45 }
 0x159   : > { %v1253_v6 = vpop.permute.xlu0 %1252  ;;  %v1251_v7 = vpop.permute.xlu1 %1250 }
 0x15a   : > { %v1260_v46 = vsel %vm1258_vm3, %v1249_v4, %v1251_v7  ;;  %v1271_v59 = vadd.f32 %v1251_v7, %v1222_v23  ;;  %v1039_v23 = vld [vmem:[%s9441_s4] sm:$0x7] }
 0x15b   : > { %v1270_v60 = vadd.f32 %v1260_v46, %v1221_v51 }
 0x15d   : > { %v1257_v8 = vpop.permute.xlu0 %1256  ;;  %v1255_v9 = vpop.permute.xlu1 %1254 }
 0x15e   : > { %v1261_v63 = vsel %vm1258_vm3, %v1253_v6, %v1255_v9  ;;  %v1262_v53 = vsel %vm1258_vm3, %v1255_v9, %v1257_v8  ;;  %v1274_v4 = vadd.f32 %v1257_v8, %v1225_v57 }
 0x161   : > { %v1298_v11 = vpop.permute.xlu0 %1297  ;;  %v1296_v12 = vpop.permute.xlu1 %1295 }
 0x162   : > { %v1308_v48 = vsel %vm1307_vm4, %v1296_v12, %v1298_v11 }
 0x163   : > { %v1318_v61 = vadd.f32 %v1308_v48, %v1269_v56 }
 0x165   : > { %v1302_v13 = vpop.permute.xlu0 %1301  ;;  %v1300_v14 = vpop.permute.xlu1 %1299 }
 0x166   : > { %v1309_v62 = vsel %vm1307_vm4, %v1298_v11, %v1300_v14  ;;  %v1320_v0 = vadd.f32 %v1300_v14, %v1271_v59 }
 0x167   : > { %v1319_v5 = vadd.f32 %v1309_v62, %v1270_v60  ;;  %v8217_v62 = vld [vmem:[%s7928_s20] ss:$0 sm:$0xff] }
 0x169   : > { %v8116_v18 = vpop.permute.xlu0 %1305  ;;  %v1304_v22 = vpop.permute.xlu1 %1303 }
 0x16a   : > { %v1310_v7 = vsel %vm1307_vm4, %v1302_v13, %v1304_v22  ;;  %v1311_v11 = vsel %vm1307_vm4, %v1304_v22, %v8116_v18  ;;  %v1272_v22 = vadd.f32 %v1261_v63, %v1223_v58  ;;  %v8209_v58 = vrot.slane %v1039_v23, %v1064_v17 }
 0x16b   : > { %v8222_v17 = vrot.slane %v1039_v23, %v1060_v16 }
 0x16d   : > { %v1347_v24 = vpop.permute.xlu0 %1346  ;;  %v1345_v25 = vpop.permute.xlu1 %1344 }
 0x16e   : > { %v1357_v49 = vsel %vm1356_vm5, %v1345_v25, %v1347_v24  ;;  %v7722_v25 = vmov 0.0  }
 0x16f   : > { %v1367_v2 = vadd.f32 %v1357_v49, %v1318_v61  ;;  %1518 = vst.msk [vmem:[#allocation2 + $0x10] sm:$0xff] %vm1517_vm8, %v7722_v25  ;;  %1522 = vst [vmem:[#allocation2 + $0x30] sm:$0xff] %v7722_v25  ;;  %v8214_v61 = vld [vmem:[%s7923_s12] ss:$0 sm:$0xff] }
 0x170   : > { %1525 = vst [vmem:[#allocation2 + $0x48] sm:$0xff] %v7722_v25  ;;  %1528 = vst [vmem:[#allocation2 + $0x60] sm:$0xff] %v7722_v25 }
 0x171   : > { %v8118_v26 = vpop.permute.xlu0 %1350  ;;  %v8120_v27 = vpop.permute.xlu1 %1348  ;;  %1531 = vst [vmem:[#allocation2 + $0x78] sm:$0xff] %v7722_v25  ;;  %1534 = vst [vmem:[#allocation2 + $0x90] sm:$0xff] %v7722_v25 }
 0x172   : > { %v1358_v3 = vsel %vm1356_vm5, %v1347_v24, %v8120_v27  ;;  %1537 = vst [vmem:[#allocation2 + $0xa8] sm:$0xff] %v7722_v25  ;;  %1577 = vst [vmem:[#allocation3] sm:$0xff] %v7722_v25  ;;  %v1369_v8 = vadd.f32 %v8120_v27, %v1320_v0  ;;  %v1273_v24 = vadd.f32 %v1262_v53, %v1224_v54 }
 0x173   : > { %1579 = vst.msk [vmem:[#allocation3 + $0x10] sm:$0xff] %vm1517_vm8, %v7722_v25  ;;  %1580 = vst [vmem:[#allocation3 + $0x18] sm:$0xff] %v7722_v25  ;;  %v1368_v32 = vadd.f32 %v1358_v3, %v1319_v5 }
 0x174   : > { %1582 = vst.msk [vmem:[#allocation3 + $0x28] sm:$0xff] %vm1517_vm8, %v7722_v25  ;;  %1583 = vst [vmem:[#allocation3 + $0x30] sm:$0xff] %v7722_v25  ;;  %v1322_v36 = vadd.f32 %v1311_v11, %v1273_v24 }
 0x175   : > { %v8122_v28 = vpop.permute.xlu0 %1354  ;;  %v8124_v29 = vpop.permute.xlu1 %1352  ;;  %1586 = vst [vmem:[#allocation3 + $0x48] sm:$0xff] %v7722_v25  ;;  %1589 = vst [vmem:[#allocation3 + $0x60] sm:$0xff] %v7722_v25 }
 0x176   : > { %1592 = vst [vmem:[#allocation3 + $0x78] sm:$0xff] %v7722_v25  ;;  %1595 = vst [vmem:[#allocation3 + $0x90] sm:$0xff] %v7722_v25  ;;  %v1359_v33 = vsel %vm1356_vm5, %v8118_v26, %v8124_v29  ;;  %v1360_v27 = vsel %vm1356_vm5, %v8124_v29, %v8122_v28 }
 0x177   : > { %1598 = vst [vmem:[#allocation3 + $0xa8] sm:$0xff] %v7722_v25  ;;  %1515 = vst [vmem:[#allocation2] sm:$0xff] %v7722_v25  ;;  %v1371_v21 = vadd.f32 %v1360_v27, %v1322_v36 }
 0x178   : > { %1519 = vst [vmem:[#allocation2 + $0x18] sm:$0xff] %v7722_v25  ;;  %1521 = vst.msk [vmem:[#allocation2 + $0x28] sm:$0xff] %vm1517_vm8, %v7722_v25 }
 0x179   : > { %v8126_v30 = vpop.permute.xlu0 %1395  ;;  %v1394_v31 = vpop.permute.xlu1 %1393 }
 0x17a   : > { %v1406_v1 = vsel %vm1405_vm6, %v1394_v31, %v8126_v30  ;;  %v1323_v31 = vadd.f32 %v8116_v18, %v1274_v4 }
 0x17b   : > { %v1416_v9 = vadd.f32 %v1406_v1, %v1367_v2 }
 0x17c   : > { %v1372_v37 = vadd.f32 %v8122_v28, %v1323_v31 }
 0x17d   : > { %v8134_v42 = vpop.permute.xlu0 %1399  ;;  %v8136_v20 = vpop.permute.xlu1 %1397 }
 0x17e   : > { %v1407_v13 = vsel %vm1405_vm6, %v8126_v30, %v8136_v20  ;;  %v1418_v34 = vadd.f32 %v8136_v20, %v1369_v8  ;;  %v1321_v30 = vadd.f32 %v1310_v7, %v1272_v22 }
 0x17f   : > { %v1417_v38 = vadd.f32 %v1407_v13, %v1368_v32 }
 0x180   : > { %v1370_v45 = vadd.f32 %v1359_v33, %v1321_v30 }
 0x181   : > { %v8143_v52 = vpop.permute.xlu0 %1403  ;;  %v1402_v55 = vpop.permute.xlu1 %1401 }
 0x182   : > { %v1408_v43 = vsel %vm1405_vm6, %v8134_v42, %v1402_v55  ;;  %v1409_v26 = vsel %vm1405_vm6, %v1402_v55, %v8143_v52  ;;  %v1421_v47 = vadd.f32 %v8143_v52, %v1372_v37  ;;  %v8204_v42 = vrot.slane %v1039_v23, %v1068_v19 }
 0x183   : > { %v1419_v48 = vadd.f32 %v1408_v43, %v1370_v45  ;;  %v1420_v50 = vadd.f32 %v1409_v26, %v1371_v21 }
 0x185   : > { %v1445_v12 = vpop.permute.xlu0 %1444  ;;  %v1443_v6 = vpop.permute.xlu1 %1442 }
 0x186   : > { %v1455_v14 = vsel %vm1454_vm7, %v1443_v6, %v1445_v12 }
 0x187   : > { %v1465_v35 = vadd.f32 %v1455_v14, %v1416_v9 }
 0x189   : > { %v1449_v41 = vpop.permute.xlu0 %1448  ;;  %v1447_v18 = vpop.permute.xlu1 %1446  ;;  %v1481_v28 = vadd.f32 %v8103_v40, %v1465_v35 }
 0x18a   : > { %v1456_v44 = vsel %vm1454_vm7, %v1445_v12, %v1447_v18  ;;  %v1467_v29 = vadd.f32 %v1447_v18, %v1418_v34 }
 0x18b   : > { %v1466_v20 = vadd.f32 %v1456_v44, %v1417_v38 }
 0x18c   : > { %v1483_v46 = vadd.f32 %v8103_v40, %v1467_v29 }
 0x18d   : > { %v1482_v51 = vadd.f32 %v8103_v40, %v1466_v20  ;;  %v1453_v56 = vpop.permute.xlu0 %1452  ;;  %v1451_v57 = vpop.permute.xlu1 %1450  ;;  %v1487_v40 = vmax.f32 %v1481_v28, 0.0 }
 0x18e   : > { %v1489_v59 = vmax.f32 %v1483_v46, 0.0  ;;  %v1470_v49 = vadd.f32 %v1453_v56, %v1421_v47  ;;  %v1457_v52 = vsel %vm1454_vm7, %v1449_v41, %v1451_v57  ;;  %v1458_v55 = vsel %vm1454_vm7, %v1451_v57, %v1453_v56 }
 0x18f   : > { %v1488_v54 = vmax.f32 %v1482_v51, 0.0  ;;  %v1468_v60 = vadd.f32 %v1457_v52, %v1419_v48  ;;  %v1469_v19 = vadd.f32 %v1458_v55, %v1420_v50  ;;  %v1509_v5 = vmul.f32 %v8222_v17, %v1487_v40 }
 0x190   : > { %v1511_v63 = vmul.f32 %v8204_v42, %v1489_v59  ;;  %v1486_v53 = vadd.f32 %v8101_v39, %v1470_v49 }
 0x191   : > { %v1484_v0 = vadd.f32 %v8101_v39, %v1468_v60  ;;  %v1485_v1 = vadd.f32 %v8101_v39, %v1469_v19  ;;  %v1510_v2 = vmul.f32 %v8209_v58, %v1488_v54 }
 0x192   : > { %1550 = vrot.lane.b32.xlu1 %v1511_v63, %s7723_s11  ;;  %v1492_v7 = vmax.f32 %v1486_v53, 0.0 }
 0x193   : > { %v1490_v3 = vmax.f32 %v1484_v0, 0.0  ;;  %1548 = vrot.lane.b32.xlu0 %v1510_v2, %s7723_s11  ;;  %v1491_v4 = vmax.f32 %v1485_v1, 0.0 }
 0x194   : > { %v1514_v11 = vmul.f32 %v8204_v42, %v1492_v7 }
 0x195   : > { %v1512_v15 = vmul.f32 %v8222_v17, %v1490_v3  ;;  %v1513_v16 = vmul.f32 %v8209_v58, %v1491_v4 }
 0x196   : > { %1546 = vrot.lane.b32.xlu1 %v1509_v5, %s7723_s11 }
 0x197   : > { %1552 = vrot.lane.b32.xlu0 %v1512_v15, %s7723_s11 }
 0x19a   : > { %1554 = vrot.lane.b32.xlu1 %v1513_v16, %s7723_s11 }
 0x19b   : > { %1556 = vrot.lane.b32.xlu0 %v1514_v11, %s7723_s11 }
 0x204   : > { %v1551_v39 = vpop.permute.xlu1 %1550 }
 0x205   : > { %v1549_v12 = vpop.permute.xlu0 %1548 }
 0x206   : > { %v1560_v6 = vsel %vm1558_vm9, %v1549_v12, %v1551_v39 }
 0x207   : > { %1573 = vst.msk [vmem:[#allocation2 + $0x10] sm:$0xff] %vm1572_vm10, %v1560_v6 }
 0x208   : > { %v1547_v8 = vpop.permute.xlu1 %1546 }
 0x209   : > { %v1559_v9 = vsel %vm1558_vm9, %v1547_v8, %v1549_v12  ;;  %1570 = vst.msk [vmem:[#allocation2] sm:$0xff] %vm1569_vm11, %v1547_v8  ;;  %v1553_v13 = vpop.permute.xlu0 %1552 }
 0x20a   : > { %1571 = vst [vmem:[#allocation2 + $0x8] sm:$0xff] %v1559_v9  ;;  %1574 = vst.msk [vmem:[#allocation2 + $0x18] sm:$0xff] %vm1569_vm11, %v1553_v13 }
 0x20c   : > { %v1555_v14 = vpop.permute.xlu1 %1554 }
 0x20d   : > { %v1561_v22 = vsel %vm1558_vm9, %v1553_v13, %v1555_v14  ;;  %v1557_v24 = vpop.permute.xlu0 %1556 }
 0x20e   : > { %1575 = vst [vmem:[#allocation2 + $0x20] sm:$0xff] %v1561_v22  ;;  %v1562_v31 = vsel %vm1558_vm9, %v1555_v14, %v1557_v24 }
 0x20f   : > { %1576 = vst.msk [vmem:[#allocation2 + $0x28] sm:$0xff] %vm1572_vm10, %v1562_v31 }
 0x210 LB: >> { %v8249_v27 = vld [vmem:[#allocation2] sm:$0xff]  ;;  %v8255_v30 = vld [vmem:[#allocation2 + $0x10] sm:$0xff]  ;;  %v7724_v37 = vmov 0   ;;  %s7725_s18 = smov 127   ;;  %s7726_s11 = smov 126   ;;  %vm1743_vm12 = vcmask 130048   ;;  %s7661_s27 = sphi %s8240_s27, %s1606_s27  }
 0x211   : >> { %v8245_v32 = vld [vmem:[#allocation2 + $0x8] sm:$0xff]  ;;  %v8253_v35 = vld [vmem:[#allocation2 + $0x18] sm:$0xff]  ;;  %1790 = vmatprep.subr.bf16.mxu1 %v7724_v37  ;;  %7464 = vset.pattern.permute.xlu0 %v7724_v37  ;;  %s7727_s0 = smov 110   ;;  %s7728_s7 = smov 109  }
 0x212   : >> { %v1618_v38 = vpack.c.bf16 %v8253_v35, %v8249_v27  ;;  %7465 = vset.pattern.permute.xlu1 %v7724_v37  ;;  %s7729_s10 = smov 108   ;;  %s7730_s2 = smov 92  }
 0x213   : >> { %s8284_s28 = sshll.u32 %s7661_s27, 4  ;;  %s7731_s26 = smov 91  }
 0x214   : >> { %1624 = vrot.lane.b32.xlu1 %v1618_v38, %s7725_s18  ;;  %s8288_s1 = scalar_lea.vmem %s7790_s17, %s8284_s28  ;;  %s7732_s22 = smov 90  }
 0x215   : >> { %v8247_v33 = vld [vmem:[#allocation2 + $0x20] sm:$0xff]  ;;  %s1721_s23 = scalar_lea.vmem %s7795_s21, %s8284_s28  ;;  %s1606_s27 = sadd.s32 1, %s7661_s27  }
 0x216   : >> { %v1619_v34 = vpack.c.bf16 %v8247_v33, %v8245_v32  ;;  %v8257_v36 = vld [vmem:[#allocation2 + $0x28] sm:$0xff]  ;;  %v1722_v43 = vld [vmem:[%s1721_s23] sm:$0xff]  ;;  %p1603_p4 = scmp.ge.s32.totalorder %s1606_s27, 9  }
 0x217   : >> { %v1620_v41 = vpack.c.bf16 %v8257_v36, %v8255_v30  ;;  %v7468_v18 = vld [vmem:[%s8288_s1 + $0x4] ss:$8 sps:$4 sm:$0xff]   ;;  %v7466_v8 = vld [vmem:[%s8288_s1] ss:$8 sps:$4 sm:$0xff]   ;;  %s8367_s1 = scalar_lea.vmem %s7800_s25, %s8284_s28  ;;  %2906 = vst [vmem:[#allocation3 + $0x30] sm:$0xff] (%p1603_p4), %v7722_v25  ;;  %2909 = vst [vmem:[#allocation3 + $0x48] sm:$0xff] (%p1603_p4), %v7722_v25 }
 0x218   : >> { %1626 = vrot.lane.b32.xlu0 %v1619_v34, %s7725_s18  ;;  %1747 = vmatprep.subr.bf16.mxu0 %v1619_v34  ;;  %v1723_v26 = vld [vmem:[%s1721_s23 + $0x8] sm:$0xff]  ;;  %s7733_s23 = smov 19   ;;  %2912 = vst [vmem:[#allocation3 + $0x60] sm:$0xff] (%p1603_p4), %v7722_v25  ;;  %2915 = vst [vmem:[#allocation3 + $0x78] sm:$0xff] (%p1603_p4), %v7722_v25  ;;  %s9448_s27 = smov (%p1603_p4), 91   ;;  %vm2627_vm13 = vcmask (%p1603_p4), 1046528  }
 0x219   : >> { %1791 = vmatpush1.bf16.msra.mxu1 %v1620_v41  ;;  %1748 = vmatpush1.bf16.msra.mxu0 %v1618_v38  ;;  %2918 = vst [vmem:[#allocation3 + $0x90] sm:$0xff] (%p1603_p4), %v7722_v25  ;;  %2921 = vst [vmem:[#allocation3 + $0xa8] sm:$0xff] (%p1603_p4), %v7722_v25  ;;  %vm2620_vm14 = vcmask (%p1603_p4), 244736   ;;  %vm7734_vm15 = vmmov (%p1603_p4), 0  }
 0x21a   : >> { %1792 = vmatprep.subr.bf16.mxu1 %v7724_v37  ;;  %1638 = vrot.lane.b32.xlu1 %v1619_v34, %s7726_s11  ;;  %3180 = vst [vmem:[#allocation2 + $0x30] sm:$0xff] (%p1603_p4), %v7722_v25  ;;  %3183 = vst [vmem:[#allocation2 + $0x48] sm:$0xff] (%p1603_p4), %v7722_v25 }
 0x21b   : >> { %6442 = vmatprep.mubr.msk.bf16.mxu1 %vm1743_vm12, %v7468_v18  ;;  %6441 = vmatprep.mubr.msk.bf16.mxu0 %vm1743_vm12, %v7468_v18  ;;  %3186 = vst [vmem:[#allocation2 + $0x60] sm:$0xff] (%p1603_p4), %v7722_v25  ;;  %3189 = vst [vmem:[#allocation2 + $0x78] sm:$0xff] (%p1603_p4), %v7722_v25 }
 0x21c   : >> { %1628 = vrot.lane.b32.xlu0 %v1620_v41, %s7725_s18  ;;  %3192 = vst [vmem:[#allocation2 + $0x90] sm:$0xff] (%p1603_p4), %v7722_v25  ;;  %3195 = vst [vmem:[#allocation2 + $0xa8] sm:$0xff] (%p1603_p4), %v7722_v25 }
 0x21e   : >> { %1636 = vrot.lane.b32.xlu1 %v1618_v38, %s7726_s11 }
 0x220   : >> { %1640 = vrot.lane.b32.xlu0 %v1620_v41, %s7726_s11 }
 0x222   : >> { %1652 = vrot.lane.b32.xlu1 %v1620_v41, %s7727_s0 }
 0x224   : >> { %1650 = vrot.lane.b32.xlu0 %v1619_v34, %s7727_s0 }
 0x226   : >> { %1662 = vrot.lane.b32.xlu1 %v1619_v34, %s7728_s7 }
 0x228   : >> { %1648 = vrot.lane.b32.xlu0 %v1618_v38, %s7727_s0 }
 0x22a   : >> { %1660 = vrot.lane.b32.xlu1 %v1618_v38, %s7728_s7 }
 0x22c   : >> { %1664 = vrot.lane.b32.xlu0 %v1620_v41, %s7728_s7 }
 0x22e   : >> { %1676 = vrot.lane.b32.xlu1 %v1620_v41, %s7729_s10 }
 0x230   : >> { %1674 = vrot.lane.b32.xlu0 %v1619_v34, %s7729_s10 }
 0x232   : >> { %1686 = vrot.lane.b32.xlu1 %v1619_v34, %s7730_s2 }
 0x234   : >> { %1672 = vrot.lane.b32.xlu0 %v1618_v38, %s7729_s10 }
 0x236   : >> { %1684 = vrot.lane.b32.xlu1 %v1618_v38, %s7730_s2 }
 0x238   : >> { %1688 = vrot.lane.b32.xlu0 %v1620_v41, %s7730_s2 }
 0x23a   : >> { %1700 = vrot.lane.b32.xlu1 %v1620_v41, %s7731_s26 }
 0x23c   : >> { %1698 = vrot.lane.b32.xlu0 %v1619_v34, %s7731_s26 }
 0x23e   : >> { %1710 = vrot.lane.b32.xlu1 %v1619_v34, %s7732_s22 }
 0x240   : >> { %1696 = vrot.lane.b32.xlu0 %v1618_v38, %s7731_s26 }
 0x242   : >> { %1708 = vrot.lane.b32.xlu1 %v1618_v38, %s7732_s22 }
 0x244   : >> { %1712 = vrot.lane.b32.xlu0 %v1620_v41, %s7732_s22 }
 0x246   : >> { %1731 = vperm.xlu1 %7465, %v1723_v26  }
 0x248   : >> { %1726 = vperm.xlu0 %7464, %v1722_v43  }
 0x286   : >> { %v1625_v29 = vpop.permute.xlu1 %1624 }
 0x28a   : >> { %v1627_v44 = vpop.permute.xlu0 %1626 }
 0x28b   : >> { %v1631_v23 = vsel %vm1111_vm0, %v1625_v29, %v1627_v44 }
 0x28c   : >> { %v1639_v21 = vpop.permute.xlu1 %1638 }
 0x28e   : >> { %v1629_v45 = vpop.permute.xlu0 %1628 }
 0x28f   : >> { %1793 = vmatpush1.bf16.msra.mxu1 %v1629_v45  ;;  %v1632_v20 = vsel %vm1111_vm0, %v1627_v44, %v1629_v45 }
 0x290   : >> { %1749 = vmatprep.subr.bf16.mxu0 %v1632_v20  ;;  %1794 = vmatprep.subr.bf16.mxu1 %v7724_v37  ;;  %v1637_v28 = vpop.permute.xlu1 %1636 }
 0x291   : >> { %1750 = vmatpush1.bf16.msra.mxu0 %v1631_v23  ;;  %v1643_v48 = vsel %vm1160_vm1, %v1637_v28, %v1639_v21 }
 0x292   : >> { %v1641_v47 = vpop.permute.xlu0 %1640 }
 0x293   : >> { %1795 = vmatpush1.bf16.msra.mxu1 %v1641_v47  ;;  %v1644_v46 = vsel %vm1160_vm1, %v1639_v21, %v1641_v47 }
 0x294   : >> { %1751 = vmatprep.subr.bf16.mxu0 %v1644_v46  ;;  %1796 = vmatprep.subr.bf16.mxu1 %v7724_v37  ;;  %v1653_v51 = vpop.permute.xlu1 %1652 }
 0x295   : >> { %1752 = vmatpush1.bf16.msra.mxu0 %v1643_v48 }
 0x296   : >> { %v1651_v50 = vpop.permute.xlu0 %1650 }
 0x297   : >> { %v1656_v56 = vsel %vm1209_vm2, %v1651_v50, %v1653_v51  ;;  %1797 = vmatpush1.bf16.msra.mxu1 %v1653_v51 }
 0x298   : >> { %1753 = vmatprep.subr.bf16.mxu0 %v1656_v56  ;;  %1798 = vmatprep.subr.bf16.mxu1 %v7724_v37  ;;  %v1663_v49 = vpop.permute.xlu1 %1662 }
 0x29a   : >> { %v1649_v57 = vpop.permute.xlu0 %1648 }
 0x29b   : >> { %v1655_v59 = vsel %vm1209_vm2, %v1649_v57, %v1651_v50 }
 0x29c   : >> { %1754 = vmatpush1.bf16.msra.mxu0 %v1655_v59  ;;  %v1661_v55 = vpop.permute.xlu1 %1660 }
 0x29d   : >> { %v1667_v60 = vsel %vm1258_vm3, %v1661_v55, %v1663_v49 }
 0x29e   : >> { %v1665_v52 = vpop.permute.xlu0 %1664 }
 0x29f   : >> { %1799 = vmatpush1.bf16.msra.mxu1 %v1665_v52  ;;  %v1668_v54 = vsel %vm1258_vm3, %v1663_v49, %v1665_v52 }
 0x2a0   : >> { %1755 = vmatprep.subr.bf16.mxu0 %v1668_v54  ;;  %1800 = vmatprep.subr.bf16.mxu1 %v7724_v37  ;;  %v1677_v40 = vpop.permute.xlu1 %1676 }
 0x2a1   : >> { %1756 = vmatpush1.bf16.msra.mxu0 %v1667_v60 }
 0x2a2   : >> { %v1675_v19 = vpop.permute.xlu0 %1674 }
 0x2a3   : >> { %v1680_v63 = vsel %vm1307_vm4, %v1675_v19, %v1677_v40  ;;  %1801 = vmatpush1.bf16.msra.mxu1 %v1677_v40 }
 0x2a4   : >> { %1757 = vmatprep.subr.bf16.mxu0 %v1680_v63  ;;  %1802 = vmatprep.subr.bf16.mxu1 %v7724_v37  ;;  %v1687_v1 = vpop.permute.xlu1 %1686 }
 0x2a6   : >> { %v1673_v53 = vpop.permute.xlu0 %1672 }
 0x2a7   : >> { %v1679_v0 = vsel %vm1307_vm4, %v1673_v53, %v1675_v19 }
 0x2a8   : >> { %1758 = vmatpush1.bf16.msra.mxu0 %v1679_v0  ;;  %v1685_v3 = vpop.permute.xlu1 %1684 }
 0x2a9   : >> { %v1691_v5 = vsel %vm1356_vm5, %v1685_v3, %v1687_v1 }
 0x2aa   : >> { %v1689_v2 = vpop.permute.xlu0 %1688 }
 0x2ab   : >> { %1803 = vmatpush1.bf16.msra.mxu1 %v1689_v2  ;;  %v1692_v4 = vsel %vm1356_vm5, %v1687_v1, %v1689_v2 }
 0x2ac   : >> { %1759 = vmatprep.subr.bf16.mxu0 %v1692_v4  ;;  %1804 = vmatprep.subr.bf16.mxu1 %v7724_v37  ;;  %v1701_v15 = vpop.permute.xlu1 %1700 }
 0x2ad   : >> { %1760 = vmatpush1.bf16.msra.mxu0 %v1691_v5 }
 0x2ae   : >> { %v1699_v7 = vpop.permute.xlu0 %1698 }
 0x2af   : >> { %v1704_v16 = vsel %vm1405_vm6, %v1699_v7, %v1701_v15  ;;  %1805 = vmatpush1.bf16.msra.mxu1 %v1701_v15 }
 0x2b0   : >> { %1761 = vmatprep.subr.bf16.mxu0 %v1704_v16  ;;  %1806 = vmatprep.subr.bf16.mxu1 %v7724_v37  ;;  %v1711_v12 = vpop.permute.xlu1 %1710 }
 0x2b2   : >> { %v1697_v11 = vpop.permute.xlu0 %1696 }
 0x2b3   : >> { %v1703_v39 = vsel %vm1405_vm6, %v1697_v11, %v1699_v7 }
 0x2b4   : >> { %1762 = vmatpush1.bf16.msra.mxu0 %v1703_v39  ;;  %v1709_v9 = vpop.permute.xlu1 %1708 }
 0x2b5   : >> { %v1715_v14 = vsel %vm1454_vm7, %v1709_v9, %v1711_v12 }
 0x2b6   : >> { %v1713_v6 = vpop.permute.xlu0 %1712 }
 0x2b7   : >> { %1807 = vmatpush1.bf16.msra.mxu1 %v1713_v6  ;;  %v1716_v13 = vsel %vm1454_vm7, %v1711_v12, %v1713_v6  ;;  %v7469_v6 = vld [vmem:[%s8367_s1 + $0x4] ss:$8 sps:$4 sm:$0xff]  }
 0x2b8   : >> { %1763 = vmatprep.subr.bf16.mxu0 %v1716_v13  ;;  %2049 = vmatprep.subr.bf16.mxu1 %v7724_v37 }
 0x2b9   : >> { %1764 = vmatpush1.bf16.msra.mxu0 %v1715_v14 }
 0x2ba   : >> { %1823 = vmatmul.mubr.bf16.vlgmr.msra.gmra.mrb[0].mxu1 %v7466_v8 }
 0x2bb   : >> { %6447 = vmatprep.mubr.msk.bf16.mxu1 %vm1743_vm12, %v7469_v6 }
 0x2bc   : >> { %1780 = vmatmul.mubr.bf16.vlgmr.msra.gmra.mrb[0].mxu0 %v7466_v8 }
 0x2bd   : >> { %6446 = vmatprep.mubr.msk.bf16.mxu0 %vm1743_vm12, %v7469_v6 }
 0x2c5   : >> { %v1732_v38 = vpop.permute.xlu1 %1731 }
 0x2c7   : >> { %v1727_v22 = vpop.permute.xlu0 %1726 }
 0x38d   : >> { %v1824_v24 = vpop.f32.mrb[0].mxu1 }
 0x38e   : >> { %v1825_v31 = vadd.f32 %v1824_v24, %v1727_v22  ;;  %v1826_v34 = vpop.f32.mrb[1].mxu1 }
 0x38f   : >> { %v1781_v41 = vpop.f32.mrb[0].mxu0  ;;  %v1827_v18 = vpop.f32.mrb[2].mxu1 }
 0x390   : >> { %v1833_v43 = vmax.f32 %v1825_v31, 0.0  ;;  %v1782_v26 = vadd.f32 %v1781_v41, %v1727_v22  ;;  %v1783_v44 = vpop.f32.mrb[1].mxu0  ;;  %v1829_v29 = vpop.f32.mrb[3].mxu1  ;;  %v1828_v50 = vadd.f32 %v1827_v18, %v1732_v38 }
 0x391   : >> { %v1784_v45 = vadd.f32 %v1783_v44, %v1727_v22  ;;  %v1785_v21 = vpop.f32.mrb[2].mxu0 }
 0x392   : >> { %v1839_v20 = vmul.f32 %v1833_v43, %v8204_v42  ;;  %v1831_v23 = vmax.f32 %v1782_v26, 0.0  ;;  %v1786_v47 = vadd.f32 %v1785_v21, %v1732_v38  ;;  %v1787_v28 = vpop.f32.mrb[3].mxu0  ;;  %v1836_v49 = vmax.f32 %v1828_v50, 0.0 }
 0x393   : >> { %v1832_v46 = vmax.f32 %v1784_v45, 0.0  ;;  %v1788_v48 = vadd.f32 %v1787_v28, %v1732_v38 }
 0x394   : >> { %1853 = vrot.lane.b32.xlu1 %v1839_v20, %s7733_s23  ;;  %v1834_v56 = vmax.f32 %v1786_v47, 0.0  ;;  %v1837_v57 = vmul.f32 %v1831_v23, %v8222_v17  ;;  %v1842_v54 = vmul.f32 %v1836_v49, %v8204_v42 }
 0x395   : >> { %v1838_v51 = vmul.f32 %v1832_v46, %v8209_v58  ;;  %v1835_v59 = vmax.f32 %v1788_v48, 0.0 }
 0x396   : >> { %v1840_v52 = vmul.f32 %v1834_v56, %v8222_v17 }
 0x397   : >> { %1851 = vrot.lane.b32.xlu0 %v1838_v51, %s7733_s23  ;;  %v1841_v55 = vmul.f32 %v1835_v59, %v8209_v58 }
 0x398   : >> { %1849 = vrot.lane.b32.xlu1 %v1837_v57, %s7733_s23 }
 0x39b   : >> { %1855 = vrot.lane.b32.xlu0 %v1840_v52, %s7733_s23 }
 0x39c   : >> { %1857 = vrot.lane.b32.xlu1 %v1841_v55, %s7733_s23 }
 0x39f   : >> { %1859 = vrot.lane.b32.xlu0 %v1842_v54, %s7733_s23 }
 0x406   : >> { %v1854_v60 = vpop.permute.xlu1 %1853 }
 0x409   : >> { %v1852_v19 = vpop.permute.xlu0 %1851 }
 0x40a   : >> { %v1862_v40 = vsel %vm1558_vm9, %v1852_v19, %v1854_v60  ;;  %v1850_v63 = vpop.permute.xlu1 %1849 }
 0x40b   : >> { %1873 = vst.msk [vmem:[#allocation3 + $0x10] sm:$0xff] %vm1572_vm10, %v1862_v40  ;;  %v1861_v53 = vsel %vm1558_vm9, %v1850_v63, %v1852_v19  ;;  %v7471_v40 = vld [vmem:[%s8367_s1] ss:$8 sps:$4 sm:$0xff]   ;;  %s9379_s1 = smov (%p1603_p4), 116  }
 0x40c   : >> { %1871 = vst.msk [vmem:[#allocation3] sm:$0xff] %vm1569_vm11, %v1850_v63 }
 0x40d   : >> { %v1856_v0 = vpop.permute.xlu0 %1855 }
 0x40e   : >> { %1874 = vst.msk [vmem:[#allocation3 + $0x18] sm:$0xff] %vm1569_vm11, %v1856_v0  ;;  %v1858_v1 = vpop.permute.xlu1 %1857 }
 0x40f   : >> { %v1863_v2 = vsel %vm1558_vm9, %v1856_v0, %v1858_v1 }
 0x410   : >> { %v1888_v3 = vpack.c.bf16 %v1863_v2, %v1861_v53 }
 0x411   : >> { %v1860_v4 = vpop.permute.xlu0 %1859 }
 0x412   : >> { %v1864_v5 = vsel %vm1558_vm9, %v1858_v1, %v1860_v4  ;;  %2006 = vmatprep.subr.bf16.mxu0 %v1888_v3  ;;  %v1883_v11 = vld [vmem:[#allocation3 + $0x10] sm:$0xff] }
 0x413   : >> { %1876 = vst.msk [vmem:[#allocation3 + $0x28] sm:$0xff] %vm1572_vm10, %v1864_v5  ;;  %v1881_v7 = vld [vmem:[#allocation3] sm:$0xff] }
 0x414   : > { %2900 = vst [vmem:[#allocation3] sm:$0xff] (%p1603_p4), %v7722_v25  ;;  %2902 = vst.msk [vmem:[#allocation3 + $0x10] sm:$0xff] (%p1603_p4), %vm1517_vm8, %v7722_v25 }
 0x415   : >> { %v1884_v15 = vld [vmem:[#allocation3 + $0x18] sm:$0xff] }
 0x416   : >> { %v1887_v16 = vpack.c.bf16 %v1884_v15, %v1881_v7  ;;  %2903 = vst [vmem:[#allocation3 + $0x18] sm:$0xff] (%p1603_p4), %v7722_v25 }
 0x418   : >> { %1904 = vrot.lane.b32.xlu0 %v1887_v16, %s7726_s11  ;;  %1893 = vrot.lane.b32.xlu1 %v1887_v16, %s7725_s18 }
 0x419   : >> { %2007 = vmatpush1.bf16.msra.mxu0 %v1887_v16 }
 0x41a   : >> { %v1886_v39 = vld [vmem:[#allocation3 + $0x28] sm:$0xff] }
 0x41b   : >> { %v1889_v12 = vpack.c.bf16 %v1886_v39, %v1883_v11  ;;  %2905 = vst.msk [vmem:[#allocation3 + $0x28] sm:$0xff] (%p1603_p4), %vm1517_vm8, %v7722_v25 }
 0x41c   : >> { %1926 = vrot.lane.b32.xlu0 %v1887_v16, %s7728_s7  ;;  %1915 = vrot.lane.b32.xlu1 %v1887_v16, %s7727_s0 }
 0x41d   : >> { %2050 = vmatpush1.bf16.msra.mxu1 %v1889_v12 }
 0x41e   : >> { %2051 = vmatprep.subr.bf16.mxu1 %v7724_v37 }
 0x420   : >> { %1948 = vrot.lane.b32.xlu0 %v1887_v16, %s7730_s2  ;;  %1937 = vrot.lane.b32.xlu1 %v1887_v16, %s7729_s10 }
 0x424   : >> { %1959 = vrot.lane.b32.xlu1 %v1887_v16, %s7731_s26  ;;  %1897 = vrot.lane.b32.xlu0 %v1889_v12, %s7725_s18 }
 0x428   : >> { %1906 = vrot.lane.b32.xlu0 %v1888_v3, %s7726_s11  ;;  %1895 = vrot.lane.b32.xlu1 %v1888_v3, %s7725_s18  ;;  %s9449_s18 = smov (%p1603_p4), 90  }
 0x42c   : >> { %1919 = vrot.lane.b32.xlu0 %v1889_v12, %s7727_s0  ;;  %1908 = vrot.lane.b32.xlu1 %v1889_v12, %s7726_s11  ;;  %s7735_s11 = smov (%p1603_p4), 11  }
 0x430   : >> { %1928 = vrot.lane.b32.xlu0 %v1888_v3, %s7728_s7  ;;  %1917 = vrot.lane.b32.xlu1 %v1888_v3, %s7727_s0  ;;  %s1981_s0 = scalar_lea.vmem %s7805_s29, %s8284_s28  ;;  %s9444_s28 = smov (%p1603_p4), 110  }
 0x431   : >> { %v1983_v8 = vld [vmem:[%s1981_s0 + $0x8] sm:$0xff]  ;;  %v1982_v9 = vld [vmem:[%s1981_s0] sm:$0xff]  ;;  %s9450_s0 = sld [smem:[#allocation6_spill]] (%p1603_p4) }
 0x434   : >> { %1941 = vrot.lane.b32.xlu0 %v1889_v12, %s7729_s10  ;;  %1930 = vrot.lane.b32.xlu1 %v1889_v12, %s7728_s7 }
 0x438   : >> { %1950 = vrot.lane.b32.xlu0 %v1888_v3, %s7730_s2  ;;  %1939 = vrot.lane.b32.xlu1 %v1888_v3, %s7729_s10  ;;  %s9446_s10 = smov (%p1603_p4), 108  }
 0x43c   : >> { %1963 = vrot.lane.b32.xlu0 %v1889_v12, %s7731_s26  ;;  %1952 = vrot.lane.b32.xlu1 %v1889_v12, %s7730_s2  ;;  %s9445_s2 = smov (%p1603_p4), 109  }
 0x440   : >> { %1972 = vrot.lane.b32.xlu0 %v1888_v3, %s7732_s22  ;;  %1961 = vrot.lane.b32.xlu1 %v1888_v3, %s7731_s26  ;;  %s9443_s26 = smov (%p1603_p4), 126  }
 0x444   : >> { %1970 = vrot.lane.b32.xlu0 %v1887_v16, %s7732_s22  ;;  %1974 = vrot.lane.b32.xlu1 %v1889_v12, %s7732_s22  ;;  %s9442_s22 = smov (%p1603_p4), 127  }
 0x448   : >> { %1991 = vperm.xlu0 %7464, %v1983_v8   ;;  %1986 = vperm.xlu1 %7465, %v1982_v9  }
 0x44c   : >> { %2104 = vrot.lane.b32.xlu0 %v8245_v32, %s7728_s7  ;;  %2102 = vrot.lane.b32.xlu1 %v8249_v27, %s7728_s7 }
 0x44d   : > { %7473 = vset.pattern.permute.xlu1 (%p1603_p4), %v7712_v10  ;;  %7472 = vset.pattern.permute.xlu0 (%p1603_p4), %v7712_v10 }
 0x450   : >> { %2108 = vrot.lane.b32.xlu0 %v8253_v35, %s7728_s7  ;;  %2106 = vrot.lane.b32.xlu1 %v8255_v30, %s7728_s7 }
 0x454   : >> { %2112 = vrot.lane.b32.xlu0 %v8257_v36, %s7728_s7  ;;  %2110 = vrot.lane.b32.xlu1 %v8247_v33, %s7728_s7  ;;  %s9447_s7 = smov (%p1603_p4), 92  }
 0x48a   : >> { %v1905_v13 = vpop.permute.xlu0 %1904  ;;  %v1894_v14 = vpop.permute.xlu1 %1893 }
 0x48e   : >> { %v1927_v22 = vpop.permute.xlu0 %1926  ;;  %v1916_v24 = vpop.permute.xlu1 %1915 }
 0x492   : >> { %v1949_v32 = vpop.permute.xlu0 %1948  ;;  %v1938_v31 = vpop.permute.xlu1 %1937 }
 0x496   : >> { %v1898_v34 = vpop.permute.xlu0 %1897  ;;  %v1960_v27 = vpop.permute.xlu1 %1959 }
 0x497   : >> { %2052 = vmatpush1.bf16.msra.mxu1 %v1898_v34 }
 0x498   : >> { %2053 = vmatprep.subr.bf16.mxu1 %v7724_v37 }
 0x49a   : >> { %v1907_v35 = vpop.permute.xlu0 %1906  ;;  %v1896_v38 = vpop.permute.xlu1 %1895 }
 0x49b   : >> { %v1899_v30 = vsel %vm1111_vm0, %v1894_v14, %v1896_v38  ;;  %v1900_v36 = vsel %vm1111_vm0, %v1896_v38, %v1898_v34  ;;  %v1910_v43 = vsel %vm1160_vm1, %v1905_v13, %v1907_v35 }
 0x49c   : >> { %2008 = vmatprep.subr.bf16.mxu0 %v1900_v36 }
 0x49d   : >> { %2009 = vmatpush1.bf16.msra.mxu0 %v1899_v30 }
 0x49e   : >> { %v1920_v33 = vpop.permute.xlu0 %1919  ;;  %v1909_v41 = vpop.permute.xlu1 %1908 }
 0x49f   : >> { %2054 = vmatpush1.bf16.msra.mxu1 %v1909_v41  ;;  %v1911_v18 = vsel %vm1160_vm1, %v1907_v35, %v1909_v41 }
 0x4a0   : >> { %2010 = vmatprep.subr.bf16.mxu0 %v1911_v18  ;;  %2055 = vmatprep.subr.bf16.mxu1 %v7724_v37 }
 0x4a1   : >> { %2011 = vmatpush1.bf16.msra.mxu0 %v1910_v43 }
 0x4a2   : >> { %v1929_v26 = vpop.permute.xlu0 %1928  ;;  %v1918_v44 = vpop.permute.xlu1 %1917 }
 0x4a3   : >> { %v1921_v29 = vsel %vm1209_vm2, %v1916_v24, %v1918_v44  ;;  %2056 = vmatpush1.bf16.msra.mxu1 %v1920_v33  ;;  %v1922_v45 = vsel %vm1209_vm2, %v1918_v44, %v1920_v33  ;;  %v1932_v47 = vsel %vm1258_vm3, %v1927_v22, %v1929_v26 }
 0x4a4   : >> { %2012 = vmatprep.subr.bf16.mxu0 %v1922_v45  ;;  %2057 = vmatprep.subr.bf16.mxu1 %v7724_v37 }
 0x4a5   : >> { %2013 = vmatpush1.bf16.msra.mxu0 %v1921_v29 }
 0x4a6   : >> { %v1942_v21 = vpop.permute.xlu0 %1941  ;;  %v1931_v20 = vpop.permute.xlu1 %1930 }
 0x4a7   : >> { %2058 = vmatpush1.bf16.msra.mxu1 %v1931_v20  ;;  %v1933_v23 = vsel %vm1258_vm3, %v1929_v26, %v1931_v20 }
 0x4a8   : >> { %2014 = vmatprep.subr.bf16.mxu0 %v1933_v23  ;;  %2059 = vmatprep.subr.bf16.mxu1 %v7724_v37 }
 0x4a9   : >> { %2015 = vmatpush1.bf16.msra.mxu0 %v1932_v47 }
 0x4aa   : >> { %v1951_v28 = vpop.permute.xlu0 %1950  ;;  %v1940_v46 = vpop.permute.xlu1 %1939 }
 0x4ab   : >> { %v1943_v48 = vsel %vm1307_vm4, %v1938_v31, %v1940_v46  ;;  %2060 = vmatpush1.bf16.msra.mxu1 %v1942_v21  ;;  %v1944_v50 = vsel %vm1307_vm4, %v1940_v46, %v1942_v21  ;;  %v1954_v59 = vsel %vm1356_vm5, %v1949_v32, %v1951_v28 }
 0x4ac   : >> { %2016 = vmatprep.subr.bf16.mxu0 %v1944_v50  ;;  %2061 = vmatprep.subr.bf16.mxu1 %v7724_v37 }
 0x4ad   : >> { %2017 = vmatpush1.bf16.msra.mxu0 %v1943_v48 }
 0x4ae   : >> { %v1964_v51 = vpop.permute.xlu0 %1963  ;;  %v1953_v56 = vpop.permute.xlu1 %1952 }
 0x4af   : >> { %2062 = vmatpush1.bf16.msra.mxu1 %v1953_v56  ;;  %v1955_v57 = vsel %vm1356_vm5, %v1951_v28, %v1953_v56 }
 0x4b0   : >> { %2018 = vmatprep.subr.bf16.mxu0 %v1955_v57  ;;  %2063 = vmatprep.subr.bf16.mxu1 %v7724_v37 }
 0x4b1   : >> { %2019 = vmatpush1.bf16.msra.mxu0 %v1954_v59 }
 0x4b2   : >> { %v1973_v49 = vpop.permute.xlu0 %1972  ;;  %v1962_v52 = vpop.permute.xlu1 %1961 }
 0x4b3   : >> { %v1965_v55 = vsel %vm1405_vm6, %v1960_v27, %v1962_v52  ;;  %2064 = vmatpush1.bf16.msra.mxu1 %v1964_v51  ;;  %v1966_v54 = vsel %vm1405_vm6, %v1962_v52, %v1964_v51 }
 0x4b4   : >> { %2020 = vmatprep.subr.bf16.mxu0 %v1966_v54  ;;  %2065 = vmatprep.subr.bf16.mxu1 %v7724_v37 }
 0x4b5   : >> { %2021 = vmatpush1.bf16.msra.mxu0 %v1965_v55 }
 0x4b6   : >> { %v1971_v60 = vpop.permute.xlu0 %1970  ;;  %v1975_v19 = vpop.permute.xlu1 %1974 }
 0x4b7   : >> { %v1976_v63 = vsel %vm1454_vm7, %v1971_v60, %v1973_v49  ;;  %2066 = vmatpush1.bf16.msra.mxu1 %v1975_v19  ;;  %v1977_v53 = vsel %vm1454_vm7, %v1973_v49, %v1975_v19 }
 0x4b8   : >> { %2022 = vmatprep.subr.bf16.mxu0 %v1977_v53  ;;  %2446 = vmatprep.subr.bf16.mxu1 (%p1603_p4), %v7712_v10 }
 0x4b9   : >> { %2023 = vmatpush1.bf16.msra.mxu0 %v1976_v63 }
 0x4ba   : >> { %2082 = vmatmul.mubr.bf16.vlgmr.msra.gmra.mrb[4].mxu1 %v7471_v40 }
 0x4bc   : >> { %2039 = vmatmul.mubr.bf16.vlgmr.msra.gmra.mrb[4].mxu0 %v7471_v40 }
 0x4c7   : >> { %v1987_v0 = vpop.permute.xlu1 %1986  ;;  %v1992_v1 = vpop.permute.xlu0 %1991 }
 0x4cb   : >> { %v2103_v2 = vpop.permute.xlu1 %2102  ;;  %v2105_v3 = vpop.permute.xlu0 %2104 }
 0x4cc   : >> { %v2114_v14 = vsel %vm1258_vm3, %v2103_v2, %v2105_v3 }
 0x4cf   : >> { %v2107_v4 = vpop.permute.xlu1 %2106  ;;  %v2109_v5 = vpop.permute.xlu0 %2108 }
 0x4d0   : >> { %v2115_v12 = vsel %vm1258_vm3, %v2105_v3, %v2107_v4  ;;  %v7476_v3 = vld [vmem:[%s9440_s3 + $0x4] ss:$8 sps:$4 sm:$0xff] (%p1603_p4)  }
 0x4d1   : > { %6454 = vmatprep.mubr.msk.bf16.mxu1 (%p1603_p4), %vm1743_vm12, %v7476_v3  ;;  %6452 = vmatprep.mubr.msk.bf16.mxu0 (%p1603_p4), %vm1743_vm12, %v7476_v3  ;;  %v7492_v3 = vld [vmem:[%s7933_s6 + $0x70] sm:$0xff] (%p1603_p4)  }
 0x4d3   : >> { %v2111_v16 = vpop.permute.xlu1 %2110  ;;  %v2113_v24 = vpop.permute.xlu0 %2112 }
 0x4d4   : >> { %v2116_v31 = vsel %vm1258_vm3, %v2109_v5, %v2111_v16  ;;  %v2117_v30 = vsel %vm1258_vm3, %v2111_v16, %v2113_v24  ;;  %v2216_v5 = vld [vmem:[%s7815_s8] sm:$0xff] (%p1603_p4) }
 0x58d   : >> { %v2083_v37 = vpop.f32.mrb[4].mxu1 }
 0x58e   : >> { %v2084_v7 = vadd.f32 %v2083_v37, %v1987_v0  ;;  %v2085_v15 = vpop.f32.mrb[5].mxu1  ;;  %v2218_v37 = vld [vmem:[%s7815_s8 + $0x10] sm:$0xff] (%p1603_p4) }
 0x58f   : >> { %v2040_v11 = vpop.f32.mrb[4].mxu0  ;;  %v2086_v39 = vpop.f32.mrb[6].mxu1 }
 0x590   : >> { %v2126_v6 = vadd.f32 %v2107_v4, %v2084_v7  ;;  %v2041_v8 = vadd.f32 %v2040_v11, %v1987_v0  ;;  %v2042_v9 = vpop.f32.mrb[5].mxu0  ;;  %v2088_v13 = vpop.f32.mrb[7].mxu1  ;;  %v2087_v36 = vadd.f32 %v2086_v39, %v1992_v1  ;;  %v2217_v4 = vld [vmem:[%s7815_s8 + $0x8] sm:$0xff] (%p1603_p4)  ;;  %v2219_v7 = vld [vmem:[%s7815_s8 + $0x18] sm:$0xff] (%p1603_p4) }
 0x591   : >> { %v2043_v22 = vadd.f32 %v2042_v9, %v1987_v0  ;;  %v2044_v32 = vpop.f32.mrb[6].mxu0 }
 0x592   : >> { %v2132_v34 = vmax.f32 %v2126_v6, 0.0  ;;  %v2124_v27 = vadd.f32 %v2114_v14, %v2041_v8  ;;  %v2045_v35 = vadd.f32 %v2044_v32, %v1992_v1  ;;  %v2046_v38 = vpop.f32.mrb[7].mxu0  ;;  %v2129_v21 = vadd.f32 %v2113_v24, %v2087_v36 }
 0x593   : >> { %v2125_v33 = vadd.f32 %v2115_v12, %v2043_v22  ;;  %v2047_v41 = vadd.f32 %v2046_v38, %v1992_v1 }
 0x594   : >> { %v2138_v18 = vmul.f32 %v2132_v34, %v8204_v42  ;;  %v2130_v43 = vmax.f32 %v2124_v27, 0.0  ;;  %v2127_v26 = vadd.f32 %v2116_v31, %v2045_v35  ;;  %v2135_v28 = vmax.f32 %v2129_v21, 0.0 }
 0x595   : >> { %v2131_v44 = vmax.f32 %v2125_v33, 0.0  ;;  %v2128_v29 = vadd.f32 %v2117_v30, %v2047_v41 }
 0x596   : >> { %2152 = vrot.lane.b32.xlu1 %v2138_v18, %s7733_s23  ;;  %v2133_v20 = vmax.f32 %v2127_v26, 0.0  ;;  %v2136_v23 = vmul.f32 %v2130_v43, %v8222_v17  ;;  %v2141_v50 = vmul.f32 %v2135_v28, %v8204_v42 }
 0x597   : >> { %v2137_v45 = vmul.f32 %v2131_v44, %v8209_v58  ;;  %v2134_v47 = vmax.f32 %v2128_v29, 0.0 }
 0x598   : >> { %v2139_v46 = vmul.f32 %v2133_v20, %v8222_v17 }
 0x599   : >> { %2150 = vrot.lane.b32.xlu0 %v2137_v45, %s7733_s23  ;;  %v2140_v48 = vmul.f32 %v2134_v47, %v8209_v58 }
 0x59a   : >> { %2148 = vrot.lane.b32.xlu1 %v2136_v23, %s7733_s23 }
 0x59d   : >> { %2154 = vrot.lane.b32.xlu0 %v2139_v46, %s7733_s23 }
 0x59e   : >> { %2156 = vrot.lane.b32.xlu1 %v2140_v48, %s7733_s23 }
 0x5a1   : >> { %2158 = vrot.lane.b32.xlu0 %v2141_v50, %s7733_s23  ;;  %s9381_s23 = smov (%p1603_p4), 117  }
 0x608   : >> { %v2153_v51 = vpop.permute.xlu1 %2152 }
 0x60b   : >> { %v2151_v56 = vpop.permute.xlu0 %2150 }
 0x60c   : >> { %v2161_v57 = vsel %vm1558_vm9, %v2151_v56, %v2153_v51  ;;  %v2149_v59 = vpop.permute.xlu1 %2148  ;;  %v7477_v51 = vld [vmem:[%s7933_s6 + $0x40] sm:$0xff] (%p1603_p4)  }
 0x60d   : >> { %2172 = vst.msk [vmem:[#allocation2 + $0x10] sm:$0xff] %vm1572_vm10, %v2161_v57  ;;  %v2160_v49 = vsel %vm1558_vm9, %v2149_v59, %v2151_v56  ;;  %v7474_v57 = vld [vmem:[%s9440_s3] ss:$8 sps:$4 sm:$0xff] (%p1603_p4)  }
 0x60e   : >> { %2170 = vst.msk [vmem:[#allocation2] sm:$0xff] %vm1569_vm11, %v2149_v59  ;;  %2171 = vst [vmem:[#allocation2 + $0x8] sm:$0xff] %v2160_v49 }
 0x60f   : >> { %v2155_v52 = vpop.permute.xlu0 %2154 }
 0x610   : >> { %2173 = vst.msk [vmem:[#allocation2 + $0x18] sm:$0xff] %vm1569_vm11, %v2155_v52  ;;  %v2157_v55 = vpop.permute.xlu1 %2156 }
 0x611   : >> { %v2162_v54 = vsel %vm1558_vm9, %v2155_v52, %v2157_v55  ;;  %v7478_v52 = vld [vmem:[%s7933_s6] sm:$0xff] (%p1603_p4)  }
 0x612   : >> { %2174 = vst [vmem:[#allocation2 + $0x20] sm:$0xff] %v2162_v54 }
 0x613   : >> { %v2159_v60 = vpop.permute.xlu0 %2158 }
 0x614   : >> { %v2163_v19 = vsel %vm1558_vm9, %v2157_v55, %v2159_v60  ;;  %1605 = sbr.rel (!%p1603_p4) target bundleno = 528 (0x210), region = 253  ;;  %v2242_v17 = vld [vmem:[#allocation2 + $0x10] sm:$0xff] (%p1603_p4)  ;;  %v7479_v60 = vld [vmem:[%s7933_s6 + $0x48] sm:$0xff] (%p1603_p4)  }
 0x615   : >> { %2175 = vst.msk [vmem:[#allocation2 + $0x28] sm:$0xff] %vm1572_vm10, %v2163_v19  ;;  %v2241_v40 = vld [vmem:[#allocation2 + $0x8] sm:$0xff] (%p1603_p4)  ;;  %v2240_v53 = vld [vmem:[#allocation2] sm:$0xff] (%p1603_p4)  ;;  %v7481_v55 = vld [vmem:[%s9440_s3 + $0x14] ss:$8 sps:$4 sm:$0xff] (%p1603_p4)  }
 0x616   : > { %3175 = vst [vmem:[#allocation2 + $0x8] sm:$0xff] (%p1603_p4), %v7722_v25  ;;  %3174 = vst [vmem:[#allocation2] sm:$0xff] (%p1603_p4), %v7722_v25  ;;  %v7480_v19 = vld [vmem:[%s7933_s6 + $0x8] sm:$0xff] (%p1603_p4)  }
 0x617   : > { %v2243_v58 = vld [vmem:[#allocation2 + $0x18] sm:$0xff] (%p1603_p4)  ;;  %3176 = vst.msk [vmem:[#allocation2 + $0x10] sm:$0xff] (%p1603_p4), %vm1517_vm8, %v7722_v25 }
 0x618   : > { %v2246_v1 = vpack.c.bf16 (%p1603_p4), %v2243_v58, %v2240_v53  ;;  %3177 = vst [vmem:[#allocation2 + $0x18] sm:$0xff] (%p1603_p4), %v7722_v25  ;;  %v7485_v53 = vld [vmem:[%s7933_s6 + $0x10] sm:$0xff] (%p1603_p4)   ;;  %v7487_v58 = vld [vmem:[%s7933_s6 + $0x18] sm:$0xff] (%p1603_p4)  }
 0x619   : > { %v2244_v63 = vld [vmem:[#allocation2 + $0x20] sm:$0xff] (%p1603_p4) }
 0x61a   : > { %v2247_v42 = vpack.c.bf16 (%p1603_p4), %v2244_v63, %v2241_v40  ;;  %3178 = vst [vmem:[#allocation2 + $0x20] sm:$0xff] (%p1603_p4), %v7722_v25  ;;  %2252 = vrot.lane.b32.xlu1 (%p1603_p4), %v2246_v1, %s9442_s22  ;;  %v7484_v40 = vld [vmem:[%s7933_s6 + $0x50] sm:$0xff] (%p1603_p4)  }
 0x61b   : > { %v7483_v63 = vld [vmem:[%s9440_s3 + $0x10] ss:$8 sps:$4 sm:$0xff]  }
 0x61c   : > { %v2245_v0 = vld [vmem:[#allocation2 + $0x28] sm:$0xff]  ;;  %2254 = vrot.lane.b32.xlu0 %v2247_v42, %s9442_s22  ;;  %2393 = vmatprep.subr.bf16.mxu0 %v2247_v42 }
 0x61d   : > { %v2248_v2 = vpack.c.bf16 %v2245_v0, %v2242_v17  ;;  %3179 = vst.msk [vmem:[#allocation2 + $0x28] sm:$0xff] %vm1517_vm8, %v7722_v25  ;;  %2394 = vmatpush1.bf16.msra.mxu0 %v2246_v1  ;;  %v7488_v17 = vld [vmem:[%s7933_s6 + $0x60] sm:$0xff]  }
 0x61e   : > { %2266 = vrot.lane.b32.xlu1 %v2247_v42, %s9443_s26  ;;  %v7489_v0 = vld [vmem:[%s7933_s6 + $0x20] sm:$0xff]  }
 0x61f   : > { %2447 = vmatpush1.bf16.msra.mxu1 %v2248_v2 }
 0x620   : > { %2448 = vmatprep.subr.bf16.mxu1 %v7712_v10  ;;  %2256 = vrot.lane.b32.xlu0 %v2248_v2, %s9442_s22 }
 0x622   : > { %2264 = vrot.lane.b32.xlu1 %v2246_v1, %s9443_s26 }
 0x624   : > { %2268 = vrot.lane.b32.xlu0 %v2248_v2, %s9443_s26 }
 0x626   : > { %2280 = vrot.lane.b32.xlu1 %v2248_v2, %s9444_s28 }
 0x628   : > { %2278 = vrot.lane.b32.xlu0 %v2247_v42, %s9444_s28 }
 0x62a   : > { %2290 = vrot.lane.b32.xlu1 %v2247_v42, %s9445_s2 }
 0x62c   : > { %2276 = vrot.lane.b32.xlu0 %v2246_v1, %s9444_s28  ;;  %s9377_s28 = smov 107  }
 0x62e   : > { %2288 = vrot.lane.b32.xlu1 %v2246_v1, %s9445_s2 }
 0x630   : > { %2292 = vrot.lane.b32.xlu0 %v2248_v2, %s9445_s2  ;;  %s9451_s2 = sld [smem:[#allocation7_spill]] }
 0x632   : > { %2304 = vrot.lane.b32.xlu1 %v2248_v2, %s9446_s10 }
 0x634   : > { %2302 = vrot.lane.b32.xlu0 %v2247_v42, %s9446_s10 }
 0x636   : > { %2314 = vrot.lane.b32.xlu1 %v2247_v42, %s9447_s7 }
 0x638   : > { %2300 = vrot.lane.b32.xlu0 %v2246_v1, %s9446_s10 }
 0x63a   : > { %2312 = vrot.lane.b32.xlu1 %v2246_v1, %s9447_s7 }
 0x63c   : > { %2316 = vrot.lane.b32.xlu0 %v2248_v2, %s9447_s7 }
 0x63e   : > { %2328 = vrot.lane.b32.xlu1 %v2248_v2, %s9448_s27 }
 0x640   : > { %2326 = vrot.lane.b32.xlu0 %v2247_v42, %s9448_s27 }
 0x642   : > { %2338 = vrot.lane.b32.xlu1 %v2247_v42, %s9449_s18  ;;  %v7486_v42 = vld [vmem:[%s7933_s6 + $0x58] sm:$0xff]  }
 0x644   : > { %2324 = vrot.lane.b32.xlu0 %v2246_v1, %s9448_s27 }
 0x646   : > { %2336 = vrot.lane.b32.xlu1 %v2246_v1, %s9449_s18  ;;  %v7490_v1 = vld [vmem:[%s7933_s6 + $0x68] sm:$0xff]  }
 0x648   : > { %2340 = vrot.lane.b32.xlu0 %v2248_v2, %s9449_s18  ;;  %v7491_v2 = vld [vmem:[%s7933_s6 + $0x28] sm:$0xff]  }
 0x64a   : > { %2355 = vperm.xlu1 %7473, %v2217_v4   ;;  %v7493_v4 = vld [vmem:[%s7933_s6 + $0x30] sm:$0xff]  }
 0x64c   : > { %2350 = vperm.xlu0 %7472, %v2216_v5   ;;  %v7494_v5 = vld [vmem:[%s7933_s6 + $0x78] sm:$0xff]  }
 0x64e   : > { %2360 = vperm.xlu1 %7473, %v2218_v37   ;;  %v7495_v37 = vld [vmem:[%s7933_s6 + $0x38] sm:$0xff]  }
 0x650   : > { %2365 = vperm.xlu0 %7472, %v2219_v7   ;;  %v8563_v7 = vld [vmem:[%s7933_s6 + $0x80] sm:$0xff]  }
 0x68c   : > { %v2253_v16 = vpop.permute.xlu1 %2252 }
 0x68e   : > { %v2255_v15 = vpop.permute.xlu0 %2254 }
 0x68f   : > { %v2259_v6 = vsel %vm1111_vm0, %v2253_v16, %v2255_v15 }
 0x690   : > { %v2267_v39 = vpop.permute.xlu1 %2266 }
 0x692   : > { %v2257_v11 = vpop.permute.xlu0 %2256 }
 0x693   : > { %2449 = vmatpush1.bf16.msra.mxu1 %v2257_v11  ;;  %v2260_v12 = vsel %vm1111_vm0, %v2255_v15, %v2257_v11  ;;  %vm2940_vm0 = vcmask 728152  }
 0x694   : > { %2395 = vmatprep.subr.bf16.mxu0 %v2260_v12  ;;  %2450 = vmatprep.subr.bf16.mxu1 %v7712_v10  ;;  %v2265_v9 = vpop.permute.xlu1 %2264 }
 0x695   : > { %2396 = vmatpush1.bf16.msra.mxu0 %v2259_v6  ;;  %v2271_v14 = vsel %vm1160_vm1, %v2265_v9, %v2267_v39 }
 0x696   : > { %v2269_v8 = vpop.permute.xlu0 %2268 }
 0x697   : > { %2451 = vmatpush1.bf16.msra.mxu1 %v2269_v8  ;;  %v2272_v13 = vsel %vm1160_vm1, %v2267_v39, %v2269_v8  ;;  %vm3051_vm1 = vcmask 261120  }
 0x698   : > { %2397 = vmatprep.subr.bf16.mxu0 %v2272_v13  ;;  %2452 = vmatprep.subr.bf16.mxu1 %v7712_v10  ;;  %v2281_v24 = vpop.permute.xlu1 %2280 }
 0x699   : > { %2398 = vmatpush1.bf16.msra.mxu0 %v2271_v14 }
 0x69a   : > { %v2279_v22 = vpop.permute.xlu0 %2278 }
 0x69b   : > { %v2284_v32 = vsel %vm1209_vm2, %v2279_v22, %v2281_v24  ;;  %2453 = vmatpush1.bf16.msra.mxu1 %v2281_v24 }
 0x69c   : > { %2399 = vmatprep.subr.bf16.mxu0 %v2284_v32  ;;  %2454 = vmatprep.subr.bf16.mxu1 %v7712_v10  ;;  %v2291_v27 = vpop.permute.xlu1 %2290 }
 0x69e   : > { %v2277_v31 = vpop.permute.xlu0 %2276 }
 0x69f   : > { %v2283_v34 = vsel %vm1209_vm2, %v2277_v31, %v2279_v22 }
 0x6a0   : > { %2400 = vmatpush1.bf16.msra.mxu0 %v2283_v34  ;;  %v2289_v38 = vpop.permute.xlu1 %2288 }
 0x6a1   : > { %v8523_v36 = vsel %vm1258_vm3, %v2289_v38, %v2291_v27 }
 0x6a2   : > { %v8515_v35 = vpop.permute.xlu0 %2292 }
 0x6a3   : > { %2455 = vmatpush1.bf16.msra.mxu1 %v8515_v35  ;;  %v8520_v30 = vsel %vm1258_vm3, %v2291_v27, %v8515_v35 }
 0x6a4   : > { %2401 = vmatprep.subr.bf16.mxu0 %v8520_v30  ;;  %2456 = vmatprep.subr.bf16.mxu1 %v7712_v10  ;;  %v2305_v41 = vpop.permute.xlu1 %2304 }
 0x6a5   : > { %2402 = vmatpush1.bf16.msra.mxu0 %v8523_v36 }
 0x6a6   : > { %v2303_v33 = vpop.permute.xlu0 %2302 }
 0x6a7   : > { %v2308_v18 = vsel %vm1307_vm4, %v2303_v33, %v2305_v41  ;;  %2457 = vmatpush1.bf16.msra.mxu1 %v2305_v41 }
 0x6a8   : > { %2403 = vmatprep.subr.bf16.mxu0 %v2308_v18  ;;  %2458 = vmatprep.subr.bf16.mxu1 %v7712_v10  ;;  %v2315_v44 = vpop.permute.xlu1 %2314 }
 0x6aa   : > { %v2301_v43 = vpop.permute.xlu0 %2300 }
 0x6ab   : > { %v2307_v26 = vsel %vm1307_vm4, %v2301_v43, %v2303_v33 }
 0x6ac   : > { %2404 = vmatpush1.bf16.msra.mxu0 %v2307_v26  ;;  %v2313_v45 = vpop.permute.xlu1 %2312 }
 0x6ad   : > { %v2319_v20 = vsel %vm1356_vm5, %v2313_v45, %v2315_v44 }
 0x6ae   : > { %v2317_v29 = vpop.permute.xlu0 %2316 }
 0x6af   : > { %2459 = vmatpush1.bf16.msra.mxu1 %v2317_v29  ;;  %v2320_v21 = vsel %vm1356_vm5, %v2315_v44, %v2317_v29 }
 0x6b0   : > { %2405 = vmatprep.subr.bf16.mxu0 %v2320_v21  ;;  %2460 = vmatprep.subr.bf16.mxu1 %v7712_v10  ;;  %v2329_v47 = vpop.permute.xlu1 %2328 }
 0x6b1   : > { %2406 = vmatpush1.bf16.msra.mxu0 %v2319_v20 }
 0x6b2   : > { %v2327_v23 = vpop.permute.xlu0 %2326 }
 0x6b3   : > { %v2332_v28 = vsel %vm1405_vm6, %v2327_v23, %v2329_v47  ;;  %2461 = vmatpush1.bf16.msra.mxu1 %v2329_v47 }
 0x6b4   : > { %2407 = vmatprep.subr.bf16.mxu0 %v2332_v28  ;;  %2462 = vmatprep.subr.bf16.mxu1 %v7712_v10  ;;  %v2339_v50 = vpop.permute.xlu1 %2338 }
 0x6b6   : > { %v2325_v46 = vpop.permute.xlu0 %2324 }
 0x6b7   : > { %v2331_v48 = vsel %vm1405_vm6, %v2325_v46, %v2327_v23 }
 0x6b8   : > { %2408 = vmatpush1.bf16.msra.mxu0 %v2331_v48  ;;  %v2337_v59 = vpop.permute.xlu1 %2336 }
 0x6b9   : > { %v2343_v54 = vsel %vm1454_vm7, %v2337_v59, %v2339_v50 }
 0x6ba   : > { %v2341_v56 = vpop.permute.xlu0 %2340 }
 0x6bb   : > { %2463 = vmatpush1.bf16.msra.mxu1 %v2341_v56  ;;  %v2344_v49 = vsel %vm1454_vm7, %v2339_v50, %v2341_v56  ;;  %v7497_v56 = vld [vmem:[%s7933_s6 + $0x88] sm:$0x7f]  }
 0x6bc   : > { %2409 = vmatprep.subr.bf16.mxu0 %v2344_v49  ;;  %6660 = vmatprep.subr.bf16.mxu1 %v7477_v51 }
 0x6bd   : > { %2410 = vmatpush1.bf16.msra.mxu0 %v2343_v54 }
 0x6be   : > { %2479 = vmatmul.mubr.bf16.vlgmr.msra.gmra.mrb[0].mxu1 %v7474_v57  ;;  %6628 = vmatprep.subr.bf16.mxu0 %v7477_v51 }
 0x6bf   : > { %6661 = vmatpush3.bf16.msra.mxu1 %v7478_v52  ;;  %6455 = vmatprep.mubr.msk.bf16.mxu1 %vm1743_vm12, %v7481_v55 }
 0x6c0   : > { %2426 = vmatmul.mubr.bf16.vlgmr.msra.gmra.mrb[0].mxu0 %v7474_v57  ;;  %6662 = vmatprep.subr.bf16.mxu1 %v7479_v60 }
 0x6c1   : > { %6453 = vmatprep.mubr.msk.bf16.mxu0 %vm1743_vm12, %v7481_v55  ;;  %6629 = vmatpush3.bf16.msra.mxu0 %v7478_v52 }
 0x6c2   : > { %6630 = vmatprep.subr.bf16.mxu0 %v7479_v60 }
 0x6c3   : > { %6663 = vmatpush3.bf16.msra.mxu1 %v7480_v19 }
 0x6c4   : > { %6664 = vmatprep.subr.bf16.mxu1 %v7484_v40 }
 0x6c5   : > { %6631 = vmatpush3.bf16.msra.mxu0 %v7480_v19 }
 0x6c6   : > { %2487 = vmatmul.mubr.bf16.gmra.mrb[4].mxu1 %v7483_v63  ;;  %6632 = vmatprep.subr.bf16.mxu0 %v7484_v40 }
 0x6c7   : > { %6665 = vmatpush3.bf16.msra.mxu1 %v7485_v53  ;;  %2764 = vmatprep.mubr.bf16.mxu1 %v8520_v30 }
 0x6c8   : > { %2436 = vmatmul.mubr.bf16.gmra.mrb[4].mxu0 %v7483_v63  ;;  %6666 = vmatprep.subr.bf16.mxu1 %v7486_v42 }
 0x6c9   : > { %6633 = vmatpush3.bf16.msra.mxu0 %v7485_v53  ;;  %v2356_v11 = vpop.permute.xlu1 %2355  ;;  %v2629_v53 = vsel %vm2627_vm13, %v7497_v56, 0 }
 0x6ca   : > { %6634 = vmatprep.subr.bf16.mxu0 %v7486_v42 }
 0x6cb   : > { %6667 = vmatpush3.bf16.msra.mxu1 %v7487_v58  ;;  %v2351_v15 = vpop.permute.xlu0 %2350 }
 0x6cc   : > { %6668 = vmatprep.subr.bf16.mxu1 %v7488_v17 }
 0x6cd   : > { %6635 = vmatpush3.bf16.msra.mxu0 %v7487_v58  ;;  %v2361_v43 = vpop.permute.xlu1 %2360 }
 0x6ce   : > { %6636 = vmatprep.subr.bf16.mxu0 %v7488_v17 }
 0x6cf   : > { %6669 = vmatpush3.bf16.msra.mxu1 %v7489_v0  ;;  %v2366_v45 = vpop.permute.xlu0 %2365 }
 0x6d0   : > { %6670 = vmatprep.subr.bf16.mxu1 %v7490_v1 }
 0x6d1   : > { %6637 = vmatpush3.bf16.msra.mxu0 %v7489_v0 }
 0x6d2   : > { %6638 = vmatprep.subr.bf16.mxu0 %v7490_v1 }
 0x6d3   : > { %6671 = vmatpush3.bf16.msra.mxu1 %v7491_v2 }
 0x6d4   : > { %6672 = vmatprep.subr.bf16.mxu1 %v7492_v3 }
 0x6d5   : > { %6639 = vmatpush3.bf16.msra.mxu0 %v7491_v2 }
 0x6d6   : > { %6640 = vmatprep.subr.bf16.mxu0 %v7492_v3 }
 0x6d7   : > { %6673 = vmatpush3.bf16.msra.mxu1 %v7493_v4 }
 0x6d8   : > { %6674 = vmatprep.subr.bf16.mxu1 %v7494_v5 }
 0x6d9   : > { %6641 = vmatpush3.bf16.msra.mxu0 %v7493_v4 }
 0x6da   : > { %6642 = vmatprep.subr.bf16.mxu0 %v7494_v5 }
 0x6db   : > { %6675 = vmatpush3.bf16.msra.mxu1 %v7495_v37 }
 0x6dd   : > { %6643 = vmatpush3.bf16.msra.mxu0 %v7495_v37 }
 0x6de   : > { %2765 = vmatmul.mubr.bf16.vlgmr.msra.gmra.mrb[8].mxu1 %v8523_v36  ;;  %7116 = vmatprep.subr.bf16.mxu0 %v8563_v7 }
 0x791   : > { %v2480_v16 = vpop.f32.mrb[0].mxu1 }
 0x792   : > { %v2481_v39 = vadd.f32 %v2480_v16, %v2351_v15  ;;  %v2482_v12 = vpop.f32.mrb[1].mxu1 }
 0x793   : > { %v2427_v6 = vpop.f32.mrb[0].mxu0  ;;  %v2483_v8 = vpop.f32.mrb[2].mxu1 }
 0x794   : > { %v2428_v9 = vadd.f32 %v2427_v6, %v2351_v15  ;;  %v2429_v13 = vpop.f32.mrb[1].mxu0  ;;  %v2497_v14 = vmax.f32 %v2481_v39, 0.0  ;;  %v2484_v22 = vadd.f32 %v2483_v8, %v2356_v11  ;;  %v2485_v24 = vpop.f32.mrb[3].mxu1 }
 0x795   : > { %v2430_v32 = vadd.f32 %v2429_v13, %v2351_v15  ;;  %v2431_v31 = vpop.f32.mrb[2].mxu0 }
 0x796   : > { %v2432_v34 = vadd.f32 %v2431_v31, %v2356_v11  ;;  %v2433_v27 = vpop.f32.mrb[3].mxu0  ;;  %v2500_v38 = vmax.f32 %v2484_v22, 0.0  ;;  %v2495_v36 = vmax.f32 %v2428_v9, 0.0 }
 0x797   : > { %v2434_v30 = vadd.f32 %v2433_v27, %v2356_v11  ;;  %v2496_v18 = vmax.f32 %v2430_v32, 0.0 }
 0x798   : > { %v2498_v33 = vmax.f32 %v2432_v34, 0.0  ;;  %v2509_v41 = vpack.c.bf16 %v2500_v38, %v2497_v14 }
 0x799   : > { %v2499_v26 = vmax.f32 %v2434_v30, 0.0  ;;  %v2488_v44 = vpop.f32.mrb[4].mxu1 }
 0x79a   : > { %v2507_v29 = vpack.c.bf16 %v2498_v33, %v2495_v36  ;;  %v2489_v21 = vadd.f32 %v2488_v44, %v2361_v43  ;;  %v2490_v20 = vpop.f32.mrb[5].mxu1 }
 0x79b   : > { %v2508_v23 = vpack.c.bf16 %v2499_v26, %v2496_v18  ;;  %v2437_v47 = vpop.f32.mrb[4].mxu0  ;;  %v2491_v28 = vpop.f32.mrb[6].mxu1 }
 0x79c   : > { %v2438_v46 = vadd.f32 %v2437_v47, %v2361_v43  ;;  %v2492_v48 = vadd.f32 %v2491_v28, %v2366_v45  ;;  %v2439_v50 = vpop.f32.mrb[5].mxu0  ;;  %v2493_v51 = vpop.f32.mrb[7].mxu1  ;;  %v2503_v49 = vmax.f32 %v2489_v21, 0.0 }
 0x79d   : > { %v2440_v57 = vadd.f32 %v2439_v50, %v2361_v43  ;;  %v2441_v59 = vpop.f32.mrb[6].mxu0  ;;  %2663 = vmatprep.mubr.bf16.mxu0 %v2508_v23  ;;  %v7498_v51 = vld [vmem:[%s7830_s24] sm:$0xff]  }
 0x79e   : > { %v2506_v52 = vmax.f32 %v2492_v48, 0.0  ;;  %v2442_v55 = vadd.f32 %v2441_v59, %v2366_v45  ;;  %v2443_v54 = vpop.f32.mrb[7].mxu0  ;;  %2664 = vmatmul.mubr.bf16.vlgmr.msra.gmra.mrb[8].mxu0 %v2507_v29  ;;  %v2501_v19 = vmax.f32 %v2438_v46, 0.0  ;;  %v7503_v59 = vld [vmem:[%s7820_s14 + $0x8] ss:$12 sps:$4 sm:$0xff]  }
 0x79f   : > { %v2444_v60 = vadd.f32 %v2443_v54, %v2366_v45  ;;  %7117 = vmatpush3.bf16.msra.mxu0 %v8563_v7  ;;  %v2502_v42 = vmax.f32 %v2440_v57, 0.0  ;;  %v7502_v57 = vld [vmem:[%s7820_s14 + $0x4] ss:$12 sps:$4 sm:$0xff]  }
 0x7a0   : > { %v2512_v40 = vpack.c.bf16 %v2506_v52, %v2503_v49  ;;  %v2504_v63 = vmax.f32 %v2442_v55, 0.0  ;;  %7318 = vmatprep.subr.msk.bf16.mxu0 %vm2627_vm13, %v7497_v56  ;;  %v7499_v56 = vld [vmem:[%s7830_s24 + $0x8] sm:$0xff]   ;;  %3090 = vmatprep.mubr.bf16.mxu1 %v7502_v57  ;;  %v2228_v49 = vld [vmem:[%s9450_s0] sm:$0xff]  ;;  %v2230_v52 = vld [vmem:[%s9450_s0 + $0x10] sm:$0xff] }
 0x7a1   : > { %v2505_v58 = vmax.f32 %v2444_v60, 0.0  ;;  %v2229_v55 = vld [vmem:[%s9450_s0 + $0x8] sm:$0xff]  ;;  %v2236_v54 = vld [vmem:[%s9451_s2] sm:$0xff]  ;;  %v2231_v60 = vld [vmem:[%s9450_s0 + $0x18] sm:$0xff] }
 0x7a2   : > { %v2510_v17 = vpack.c.bf16 %v2504_v63, %v2501_v19  ;;  %v2238_v19 = vld [vmem:[%s9451_s2 + $0x10] sm:$0xff]  ;;  %v2239_v63 = vld [vmem:[%s9451_s2 + $0x18] sm:$0xff] }
 0x7a3   : > { %v2511_v0 = vpack.c.bf16 %v2505_v58, %v2502_v42  ;;  %7119 = vmatpush3.bf16.msra.mxu0 %v2629_v53 }
 0x7a4   : > { %7124 = vmatprep.subr.bf16.mxu0 %v7722_v25 }
 0x7a5   : > { %2671 = vmatprep.mubr.bf16.mxu0 %v2511_v0 }
 0x7a6   : > { %2672 = vmatmul.mubr.bf16.gmra.mrb[12].mxu0 %v2510_v17 }
 0x7a7   : > { %7120 = vmatprep.mubr.msk.bf16.mxu0 %vm2620_vm14, %v2509_v41 }
 0x7ae   : > { %7121 = vmatmul.mubr.msk.bf16.vlgmr.msra.gmra.mrb[16].mxu0 %vm2620_vm14, %v2512_v40  ;;  %v2237_v40 = vld [vmem:[%s9451_s2 + $0x8] sm:$0xff] }
 0x7af   : > { %7125 = vmatpush3.bf16.msra.mxu0 %v8563_v7  ;;  %7128 = vmatprep.mubr.msk.bf16.mxu0 %vm7734_vm15, %v7722_v25 }
 0x7b0   : > { %7126 = vmatprep.subr.bf16.mxu0 %v7722_v25 }
 0x7b1   : > { %v6676_v1 = vpop.f32.mrb[8].mxu1 }
 0x7b2   : > { %v6677_v2 = vpop.f32.mrb[9].mxu1 }
 0x7b3   : > { %v6678_v3 = vadd.f32 %v6677_v2, %v6676_v1  ;;  %v6679_v4 = vpop.f32.mrb[10].mxu1  ;;  %7127 = vmatpush3.bf16.msra.mxu0 %v2629_v53 }
 0x7b4   : > { %v6680_v5 = vpop.f32.mrb[11].mxu1 }
 0x7b5   : > { %v6681_v37 = vadd.f32 %v6680_v5, %v6679_v4 }
 0x7b6   : > { %7129 = vmatmul.mubr.msk.bf16.vlgmr.msra.gmra.mrb[20].mxu0 %vm2620_vm14, %v8515_v35 }
 0x7b7   : > { %7134 = vmatprep.mubr.msk.bf16.mxu0 %vm1743_vm12, %v7498_v51 }
 0x871   : > { %v6644_v15 = vpop.f32.mrb[8].mxu0 }
 0x872   : > { %v6645_v16 = vpop.f32.mrb[9].mxu0 }
 0x873   : > { %v6646_v11 = vadd.f32 %v6645_v16, %v6644_v15  ;;  %v6647_v39 = vpop.f32.mrb[10].mxu0 }
 0x874   : > { %v6648_v7 = vpop.f32.mrb[11].mxu0 }
 0x875   : > { %v6649_v12 = vadd.f32 %v6648_v7, %v6647_v39  ;;  %v7500_v7 = vld [vmem:[%s7820_s14] ss:$12 sps:$4 sm:$0xff]  }
 0x879   : > { %v6650_v6 = vpop.f32.mrb[12].mxu0 }
 0x87a   : > { %v6651_v8 = vpop.f32.mrb[13].mxu0 }
 0x87b   : > { %v6652_v9 = vadd.f32 %v6651_v8, %v6650_v6  ;;  %v6653_v13 = vpop.f32.mrb[14].mxu0  ;;  %v7504_v8 = vld [vmem:[%s7820_s14 + $0x20] ss:$12 sps:$4 sm:$0xff]  }
 0x87c   : > { %v6654_v14 = vpop.f32.mrb[15].mxu0 }
 0x87d   : > { %v6655_v22 = vadd.f32 %v6654_v14, %v6653_v13 }
 0x881   : > { %v7122_v24 = vpop.f32.mrb[16].mxu0 }
 0x882   : > { %v2723_v32 = vadd.f32 %v7122_v24, %v6652_v9  ;;  %v2714_v31 = vpop.f32.mrb[17].mxu0  ;;  %v7507_v9 = vld [vmem:[%s7820_s14 + $0x18] ss:$12 sps:$4 sm:$0xff]  }
 0x883   : > { %v2715_v34 = vadd.f32 %v6646_v11, %v2714_v31  ;;  %v7123_v27 = vpop.f32.mrb[18].mxu0 }
 0x884   : > { %v2726_v38 = vadd.f32 %v7123_v27, %v6655_v22  ;;  %v2717_v30 = vpop.f32.mrb[19].mxu0 }
 0x885   : > { %v2718_v35 = vadd.f32 %v6649_v12, %v2717_v30  ;;  %2928 = vrot.lane.b32.xlu1 %v2715_v34, %s7735_s11  ;;  %v7505_v12 = vld [vmem:[%s7820_s14 + $0x1c] ss:$12 sps:$4 sm:$0xff]  }
 0x887   : > { %2930 = vrot.lane.b32.xlu0 %v2718_v35, %s7735_s11 }
 0x889   : > { %v2807_v36 = vpop.f32.mrb[20].mxu0  ;;  %2932 = vrot.lane.b32.xlu1 %v2723_v32, %s7735_s11 }
 0x88a   : > { %v2808_v33 = vadd.f32 %v6678_v3, %v2807_v36  ;;  %v7130_v41 = vpop.f32.mrb[21].mxu0 }
 0x88b   : > { %v2810_v18 = vpop.f32.mrb[22].mxu0  ;;  %2934 = vrot.lane.b32.xlu0 %v2726_v38, %s7735_s11 }
 0x88c   : > { %v2811_v43 = vadd.f32 %v6681_v37, %v2810_v18  ;;  %v7131_v26 = vpop.f32.mrb[23].mxu0 }
 0x88e   : > { %v2814_v44 = vpack.c.bf16 %v2811_v43, %v2808_v33 }
 0x890   : > { %7132 = vmatprep.subr.bf16.mxu0 %v2814_v44 }
 0x891   : > { %7133 = vmatpush3.bf16.msra.mxu0 %v2814_v44 }
 0x894   : > { %7135 = vmatmul.mubr.msk.bf16.vlgmr.msra.gmra.mrb[24].mxu0 %vm1743_vm12, %v7499_v56 }
 0x895   : > { %7142 = vmatprep.mubr.msk.bf16.mxu0 %vm3051_vm1, %v7503_v59 }
 0x8f7   : > { %v2929_v29 = vpop.permute.xlu1 %2928 }
 0x8f8   : > { %2941 = vst.msk [vmem:[#allocation3] sm:$0xff] %vm2940_vm0, %v2929_v29 }
 0x8f9   : > { %v2931_v45 = vpop.permute.xlu0 %2930 }
 0x8fa   : > { %2942 = vst.msk [vmem:[#allocation3 + $0x18] sm:$0xff] %vm2940_vm0, %v2931_v45 }
 0x8fb   : > { %v2933_v21 = vpop.permute.xlu1 %2932 }
 0x8fc   : > { %2943 = vst.msk [vmem:[#allocation3 + $0x30] sm:$0xff] %vm2940_vm0, %v2933_v21 }
 0x8fd   : > { %v2935_v20 = vpop.permute.xlu0 %2934 }
 0x8fe   : > { %2944 = vst.msk [vmem:[#allocation3 + $0x48] sm:$0xff] %vm2940_vm0, %v2935_v20 }
 0x8ff   : > { %v2945_v23 = vld [vmem:[#allocation3] sm:$0xff] }
 0x901   : > { %v2946_v47 = vld [vmem:[#allocation3 + $0x18] sm:$0xff] }
 0x902   : > { %v2949_v28 = vpack.c.bf16 %v2946_v47, %v2945_v23 }
 0x903   : > { %v2947_v46 = vld [vmem:[#allocation3 + $0x30] sm:$0xff] }
 0x904   : > { %2971 = vrot.lane.b32.xlu1 %v2949_v28, %s9381_s23 }
 0x905   : > { %v2948_v48 = vld [vmem:[#allocation3 + $0x48] sm:$0xff] }
 0x906   : > { %v2950_v50 = vpack.c.bf16 %v2948_v48, %v2947_v46 }
 0x908   : > { %2977 = vrot.lane.b32.xlu1 %v2949_v28, %s9379_s1  ;;  %2973 = vrot.lane.b32.xlu0 %v2950_v50, %s9381_s23 }
 0x90c   : > { %2979 = vrot.lane.b32.xlu1 %v2950_v50, %s9379_s1  ;;  %2953 = vrot.lane.b32.xlu0 %v2949_v28, %s9442_s22 }
 0x910   : > { %2983 = vrot.lane.b32.xlu1 %v2949_v28, %s9446_s10  ;;  %2955 = vrot.lane.b32.xlu0 %v2950_v50, %s9442_s22  ;;  %s9375_s22 = smov 118  }
 0x914   : > { %2985 = vrot.lane.b32.xlu1 %v2950_v50, %s9446_s10  ;;  %2959 = vrot.lane.b32.xlu0 %v2949_v28, %s9443_s26  ;;  %s9373_s10 = smov 106  }
 0x918   : > { %2989 = vrot.lane.b32.xlu1 %v2949_v28, %s9377_s28  ;;  %2961 = vrot.lane.b32.xlu0 %v2950_v50, %s9443_s26  ;;  %s8634_s26 = smov 0  }
 0x91c   : > { %2991 = vrot.lane.b32.xlu1 %v2950_v50, %s9377_s28  ;;  %2965 = vrot.lane.b32.xlu0 %v2949_v28, %s9375_s22 }
 0x920   : > { %2995 = vrot.lane.b32.xlu1 %v2949_v28, %s9373_s10  ;;  %2967 = vrot.lane.b32.xlu0 %v2950_v50, %s9375_s22 }
 0x924   : > { %3003 = vperm.xlu1 %7473, %v2228_v49   ;;  %2997 = vrot.lane.b32.xlu0 %v2950_v50, %s9373_s10 }
 0x928   : > { %3013 = vperm.xlu1 %7473, %v2230_v52   ;;  %3008 = vperm.xlu0 %7472, %v2229_v55  }
 0x92c   : > { %2817 = vperm.xlu1 %7473, %v2236_v54   ;;  %3018 = vperm.xlu0 %7472, %v2231_v60  }
 0x930   : > { %2827 = vperm.xlu1 %7473, %v2238_v19   ;;  %2822 = vperm.xlu0 %7472, %v2237_v40  }
 0x934   : > { %2832 = vperm.xlu0 %7472, %v2239_v63  }
 0x976   : > { %v2972_v53 = vpop.permute.xlu1 %2971 }
 0x977   : > { %6688 = vmatprep.subr.bf16.mxu1 %v2972_v53 }
 0x978   : > { %6689 = vmatpush3.bf16.msra.mxu1 %v2949_v28 }
 0x97a   : > { %v2974_v42 = vpop.permute.xlu0 %2973  ;;  %v2978_v58 = vpop.permute.xlu1 %2977 }
 0x97b   : > { %6690 = vmatprep.subr.bf16.mxu1 %v2974_v42 }
 0x97c   : > { %6691 = vmatpush3.bf16.msra.mxu1 %v2950_v50 }
 0x97d   : > { %6692 = vmatprep.subr.bf16.mxu1 %v2978_v58 }
 0x97e   : > { %v2954_v17 = vpop.permute.xlu0 %2953  ;;  %v2980_v0 = vpop.permute.xlu1 %2979 }
 0x980   : > { %6693 = vmatpush3.bf16.msra.mxu1 %v2954_v17 }
 0x981   : > { %6694 = vmatprep.subr.bf16.mxu1 %v2980_v0 }
 0x982   : > { %v2956_v1 = vpop.permute.xlu0 %2955  ;;  %v2984_v2 = vpop.permute.xlu1 %2983 }
 0x984   : > { %6695 = vmatpush3.bf16.msra.mxu1 %v2956_v1 }
 0x985   : > { %6696 = vmatprep.subr.bf16.mxu1 %v2984_v2 }
 0x986   : > { %v2960_v3 = vpop.permute.xlu0 %2959  ;;  %v2986_v4 = vpop.permute.xlu1 %2985 }
 0x988   : > { %6697 = vmatpush3.bf16.msra.mxu1 %v2960_v3 }
 0x989   : > { %6698 = vmatprep.subr.bf16.mxu1 %v2986_v4 }
 0x98a   : > { %v2962_v5 = vpop.permute.xlu0 %2961  ;;  %v2990_v37 = vpop.permute.xlu1 %2989 }
 0x98c   : > { %6699 = vmatpush3.bf16.msra.mxu1 %v2962_v5 }
 0x98d   : > { %6700 = vmatprep.subr.bf16.mxu1 %v2990_v37 }
 0x98e   : > { %v2966_v15 = vpop.permute.xlu0 %2965  ;;  %v2992_v16 = vpop.permute.xlu1 %2991 }
 0x990   : > { %6701 = vmatpush3.bf16.msra.mxu1 %v2966_v15 }
 0x991   : > { %6702 = vmatprep.subr.bf16.mxu1 %v2992_v16 }
 0x992   : > { %v2968_v11 = vpop.permute.xlu0 %2967  ;;  %v2996_v39 = vpop.permute.xlu1 %2995 }
 0x993   : > { %7138 = vmatprep.subr.bf16.mxu0 %v2996_v39 }
 0x994   : > { %6703 = vmatpush3.bf16.msra.mxu1 %v2968_v11  ;;  %7139 = vmatpush3.bf16.msra.mxu0 %v2996_v39 }
 0x996   : > { %v2998_v6 = vpop.permute.xlu0 %2997 }
 0x997   : > { %3091 = vmatmul.mubr.bf16.vlgmr.msra.gmra.mrb[12].mxu1 %v7500_v7  ;;  %7140 = vmatprep.subr.bf16.mxu0 %v2998_v6 }
 0x998   : > { %7141 = vmatpush3.bf16.msra.mxu0 %v2998_v6  ;;  %3098 = vmatprep.mubr.bf16.mxu1 %v7505_v12 }
 0x99b   : > { %7143 = vmatmul.mubr.msk.bf16.vlgmr.msra.gmra.mrb[24].mxu0 %vm3051_vm1, %v7504_v8 }
 0x99f   : > { %3099 = vmatmul.mubr.bf16.gmra.mrb[16].mxu1 %v7507_v9 }
 0x9a3   : > { %v3004_v13 = vpop.permute.xlu1 %3003 }
 0x9a7   : > { %v3009_v14 = vpop.permute.xlu0 %3008  ;;  %v3014_v22 = vpop.permute.xlu1 %3013 }
 0x9ab   : > { %v3019_v32 = vpop.permute.xlu0 %3018  ;;  %v2818_v33 = vpop.permute.xlu1 %2817 }
 0x9af   : > { %v2823_v44 = vpop.permute.xlu0 %2822  ;;  %v2828_v49 = vpop.permute.xlu1 %2827 }
 0x9b3   : > { %v2833_v60 = vpop.permute.xlu0 %2832 }
 0xa6a   : > { %v6704_v24 = vpop.f32.mrb[12].mxu1 }
 0xa6b   : > { %v6705_v31 = vpop.f32.mrb[13].mxu1 }
 0xa6c   : > { %v6706_v34 = vadd.f32 %v6705_v31, %v6704_v24  ;;  %v6707_v27 = vpop.f32.mrb[14].mxu1 }
 0xa6d   : > { %v6708_v38 = vpop.f32.mrb[15].mxu1 }
 0xa6e   : > { %v3093_v30 = vadd.f32 %v6706_v34, %v3004_v13  ;;  %v6709_v35 = vadd.f32 %v6708_v38, %v6707_v27  ;;  %v7144_v36 = vpop.f32.mrb[24].mxu0 }
 0xa6f   : > { %v3141_v41 = vpop.f32.mrb[25].mxu0 }
 0xa70   : > { %v3096_v18 = vadd.f32 %v6709_v35, %v3009_v14  ;;  %v7268_v43 = vadd.f32 %v3093_v30, %v2818_v33  ;;  %v7145_v26 = vpop.f32.mrb[26].mxu0 }
 0xa71   : > { %v3144_v29 = vpop.f32.mrb[27].mxu0 }
 0xa72   : > { %v7269_v45 = vadd.f32 %v7268_v43, %v3141_v41  ;;  %v7272_v21 = vadd.f32 %v3096_v18, %v2823_v44  ;;  %v6710_v20 = vpop.f32.mrb[16].mxu1 }
 0xa73   : > { %v6711_v23 = vpop.f32.mrb[17].mxu1 }
 0xa74   : > { %v3160_v47 = vmax.f32 %v7269_v45, 0.0  ;;  %v7273_v28 = vadd.f32 %v7272_v21, %v3144_v29  ;;  %v6712_v46 = vadd.f32 %v6711_v23, %v6710_v20  ;;  %v6713_v48 = vpop.f32.mrb[18].mxu1 }
 0xa75   : > { %v6714_v50 = vpop.f32.mrb[19].mxu1 }
 0xa76   : > { %v3170_v51 = vmul.f32 %v8214_v61, %v3160_v47  ;;  %v3161_v56 = vmax.f32 %v7273_v28, 0.0  ;;  %v3101_v57 = vadd.f32 %v6712_v46, %v3014_v22  ;;  %v6715_v59 = vadd.f32 %v6714_v50, %v6713_v48 }
 0xa78   : > { %v3171_v52 = vmul.f32 %v8214_v61, %v3161_v56  ;;  %v7266_v55 = vadd.f32 %v3101_v57, %v2828_v49  ;;  %v3104_v54 = vadd.f32 %v6715_v59, %v3019_v32  ;;  %3202 = vrot.lane.b32.xlu1 %v3170_v51, %s7735_s11 }
 0xa7a   : > { %v7270_v19 = vadd.f32 %v3104_v54, %v2833_v60  ;;  %3204 = vrot.lane.b32.xlu0 %v3171_v52, %s7735_s11  ;;  %v7267_v40 = vadd.f32 %v7266_v55, %v7144_v36 }
 0xa7c   : > { %v3162_v63 = vmax.f32 %v7267_v40, 0.0  ;;  %v7271_v53 = vadd.f32 %v7270_v19, %v7145_v26 }
 0xa7e   : > { %v3172_v42 = vmul.f32 %v8214_v61, %v3162_v63  ;;  %v3163_v58 = vmax.f32 %v7271_v53, 0.0 }
 0xa80   : > { %3206 = vrot.lane.b32.xlu1 %v3172_v42, %s7735_s11  ;;  %v3173_v17 = vmul.f32 %v8214_v61, %v3163_v58 }
 0xa82   : > { %3208 = vrot.lane.b32.xlu0 %v3173_v17, %s7735_s11 }
 0xaea   : > { %v3203_v0 = vpop.permute.xlu1 %3202 }
 0xaeb   : > { %3214 = vst.msk [vmem:[#allocation2] sm:$0xff] %vm2940_vm0, %v3203_v0 }
 0xaec   : > { %v3205_v1 = vpop.permute.xlu0 %3204 }
 0xaed   : > { %3215 = vst.msk [vmem:[#allocation2 + $0x18] sm:$0xff] %vm2940_vm0, %v3205_v1 }
 0xaf2   : > { %v3207_v2 = vpop.permute.xlu1 %3206 }
 0xaf3   : > { %3216 = vst.msk [vmem:[#allocation2 + $0x30] sm:$0xff] %vm2940_vm0, %v3207_v2 }
 0xaf4   : > { %v3209_v3 = vpop.permute.xlu0 %3208 }
 0xaf5   : > { %3217 = vst.msk [vmem:[#allocation2 + $0x48] sm:$0xff] %vm2940_vm0, %v3209_v3 }
 0xaf6 LB: >> { %v8639_v4 = vld [vmem:[#allocation2] sm:$0xff]  ;;  %v8641_v5 = vld [vmem:[#allocation2 + $0x18] sm:$0xff]  ;;  %s9452_s7 = sld [smem:[#allocation8_spill]]  ;;  %s7741_s27 = smov 117   ;;  %v7749_v12 = vmov 0   ;;  %s7665_s26 = sphi %s8634_s26, %s3223_s26  }
 0xaf7   : >> { %v3239_v15 = vpack.c.bf16 %v8641_v5, %v8639_v4  ;;  %s9385_s18 = smov 116   ;;  %s9383_s11 = smov 127   ;;  %7509 = vset.pattern.permute.xlu1 %v7749_v12  ;;  %7508 = vset.pattern.permute.xlu0 %v7749_v12 }
 0xaf8   : >> { %s7744_s10 = smov 108   ;;  %s9388_s22 = smov 126  }
 0xaf9   : >> { %3261 = vrot.lane.b32.xlu0 %v3239_v15, %s7741_s27  ;;  %3267 = vrot.lane.b32.xlu1 %v3239_v15, %s9385_s18  ;;  %s9387_s28 = smul.u32 48, %s7665_s26  ;;  %s9453_s23 = sld [smem:[#allocation9_spill]] }
 0xafa   : >> { %v8643_v37 = vld [vmem:[#allocation2 + $0x30] sm:$0xff]  ;;  %s9459_s0 = smov 126  }
 0xafc   : >> { %v8647_v16 = vld [vmem:[#allocation2 + $0x48] sm:$0xff]  ;;  %s8663_s1 = scalar_lea.vmem %s9452_s7, %s9387_s28  ;;  %s9396_s7 = sshll.u32 %s7665_s26, 5 }
 0xafd   : >> { %v3240_v11 = vpack.c.bf16 %v8647_v16, %v8643_v37  ;;  %3243 = vrot.lane.b32.xlu1 %v3239_v15, %s9383_s11  ;;  %v7512_v39 = vld [vmem:[%s8663_s1 + $0x4] ss:$12 sps:$4 sm:$0xff]   ;;  %v7513_v7 = vld [vmem:[%s8663_s1 + $0x8] ss:$12 sps:$4 sm:$0xff]   ;;  %s9394_s28 = smov 106  }
 0xafe   : >> { %3385 = vmatprep.mubr.bf16.mxu0 %v7512_v39  ;;  %7150 = vmatprep.mubr.msk.bf16.mxu1 %vm3051_vm1, %v7513_v7  ;;  %v7510_v44 = vld [vmem:[%s8663_s1] ss:$12 sps:$4 sm:$0xff]   ;;  %v7515_v29 = vld [vmem:[%s8663_s1 + $0x1c] ss:$12 sps:$4 sm:$0xff]   ;;  %v7517_v21 = vld [vmem:[%s8663_s1 + $0x18] ss:$12 sps:$4 sm:$0xff]  }
 0xaff   : >> { %3263 = vrot.lane.b32.xlu0 %v3240_v11, %s7741_s27  ;;  %v7514_v45 = vld [vmem:[%s8663_s1 + $0x20] ss:$12 sps:$4 sm:$0xff]   ;;  %s9454_s1 = sld [smem:[#allocation10_spill]] }
 0xb01   : >> { %3245 = vrot.lane.b32.xlu1 %v3240_v11, %s9383_s11  ;;  %s7746_s11 = smov 107  }
 0xb03   : >> { %3269 = vrot.lane.b32.xlu0 %v3240_v11, %s9385_s18  ;;  %s9392_s18 = smov 118  }
 0xb05   : >> { %3249 = vrot.lane.b32.xlu1 %v3239_v15, %s9388_s22 }
 0xb07   : >> { %3273 = vrot.lane.b32.xlu0 %v3239_v15, %s7744_s10 }
 0xb09   : >> { %3251 = vrot.lane.b32.xlu1 %v3240_v11, %s9388_s22  ;;  %s3292_s22 = scalar_lea.vmem %s9453_s23, %s9396_s7  ;;  %s9390_s23 = smov 11  }
 0xb0a   : >> { %v3294_v6 = vld [vmem:[%s3292_s22 + $0x8] sm:$0xff]  ;;  %v3293_v8 = vld [vmem:[%s3292_s22] sm:$0xff]  ;;  %v3295_v9 = vld [vmem:[%s3292_s22 + $0x10] sm:$0xff] }
 0xb0b   : >> { %3275 = vrot.lane.b32.xlu0 %v3240_v11, %s7744_s10  ;;  %v3296_v13 = vld [vmem:[%s3292_s22 + $0x18] sm:$0xff]  ;;  %s9455_s22 = smov 116  }
 0xb0d   : >> { %3255 = vrot.lane.b32.xlu1 %v3239_v15, %s9392_s18 }
 0xb0f   : >> { %3279 = vrot.lane.b32.xlu0 %v3239_v15, %s7746_s11 }
 0xb11   : >> { %3257 = vrot.lane.b32.xlu1 %v3240_v11, %s9392_s18  ;;  %s9457_s18 = smov 127  }
 0xb13   : >> { %3281 = vrot.lane.b32.xlu0 %v3240_v11, %s7746_s11 }
 0xb15   : >> { %3287 = vrot.lane.b32.xlu1 %v3240_v11, %s9394_s28 }
 0xb17   : >> { %3285 = vrot.lane.b32.xlu0 %v3239_v15, %s9394_s28  ;;  %s9458_s28 = smul.u32 48, %s7665_s26 }
 0xb19   : >> { %3304 = vperm.xlu1 %7509, %v3294_v6   ;;  %s8708_s7 = scalar_lea.vmem %s9454_s1, %s9458_s28  ;;  %s9462_s28 = smov 118  }
 0xb1b   : >> { %3299 = vperm.xlu0 %7508, %v3293_v8  }
 0xb1d   : >> { %3309 = vperm.xlu1 %7509, %v3295_v9  }
 0xb1f   : >> { %3314 = vperm.xlu0 %7508, %v3296_v13  }
 0xb6b   : >> { %v3262_v14 = vpop.permute.xlu0 %3261  ;;  %v3268_v22 = vpop.permute.xlu1 %3267 }
 0xb6c   : >> { %6720 = vmatprep.subr.bf16.mxu0 %v3262_v14 }
 0xb6d   : >> { %6721 = vmatpush3.bf16.msra.mxu0 %v3239_v15 }
 0xb6f   : >> { %v3244_v32 = vpop.permute.xlu1 %3243 }
 0xb71   : >> { %v3264_v24 = vpop.permute.xlu0 %3263 }
 0xb72   : >> { %6722 = vmatprep.subr.bf16.mxu0 %v3264_v24 }
 0xb73   : >> { %6723 = vmatpush3.bf16.msra.mxu0 %v3240_v11  ;;  %v3246_v34 = vpop.permute.xlu1 %3245 }
 0xb74   : >> { %6724 = vmatprep.subr.bf16.mxu0 %v3268_v22 }
 0xb75   : >> { %v3270_v31 = vpop.permute.xlu0 %3269 }
 0xb77   : >> { %6725 = vmatpush3.bf16.msra.mxu0 %v3244_v32  ;;  %v3250_v38 = vpop.permute.xlu1 %3249 }
 0xb78   : >> { %6726 = vmatprep.subr.bf16.mxu0 %v3270_v31 }
 0xb79   : >> { %v3274_v27 = vpop.permute.xlu0 %3273 }
 0xb7b   : >> { %6727 = vmatpush3.bf16.msra.mxu0 %v3246_v34  ;;  %v3252_v35 = vpop.permute.xlu1 %3251 }
 0xb7c   : >> { %6728 = vmatprep.subr.bf16.mxu0 %v3274_v27 }
 0xb7d   : >> { %v3276_v30 = vpop.permute.xlu0 %3275 }
 0xb7f   : >> { %6729 = vmatpush3.bf16.msra.mxu0 %v3250_v38  ;;  %v3256_v33 = vpop.permute.xlu1 %3255 }
 0xb80   : >> { %6730 = vmatprep.subr.bf16.mxu0 %v3276_v30 }
 0xb81   : >> { %v3280_v36 = vpop.permute.xlu0 %3279 }
 0xb83   : >> { %6731 = vmatpush3.bf16.msra.mxu0 %v3252_v35  ;;  %v3258_v18 = vpop.permute.xlu1 %3257 }
 0xb84   : >> { %6732 = vmatprep.subr.bf16.mxu0 %v3280_v36  ;;  %v7520_v36 = vld [vmem:[%s8708_s7 + $0x4] ss:$12 sps:$4 sm:$0xff]  }
 0xb85   : >> { %v3282_v41 = vpop.permute.xlu0 %3281 }
 0xb87   : >> { %6733 = vmatpush3.bf16.msra.mxu0 %v3256_v33  ;;  %v3288_v26 = vpop.permute.xlu1 %3287  ;;  %v7521_v33 = vld [vmem:[%s8708_s7 + $0x8] ss:$12 sps:$4 sm:$0xff]  }
 0xb88   : >> { %6734 = vmatprep.subr.bf16.mxu0 %v3282_v41 }
 0xb89   : >> { %v3286_v43 = vpop.permute.xlu0 %3285 }
 0xb8a   : >> { %7146 = vmatprep.subr.bf16.mxu1 %v3286_v43 }
 0xb8b   : >> { %6735 = vmatpush3.bf16.msra.mxu0 %v3258_v18  ;;  %7147 = vmatpush3.bf16.msra.mxu1 %v3286_v43 }
 0xb8c   : >> { %7148 = vmatprep.subr.bf16.mxu1 %v3288_v26 }
 0xb8e   : >> { %3386 = vmatmul.mubr.bf16.vlgmr.msra.gmra.mrb[0].mxu0 %v7510_v44 }
 0xb8f   : >> { %7149 = vmatpush3.bf16.msra.mxu1 %v3288_v26  ;;  %3393 = vmatprep.mubr.bf16.mxu0 %v7515_v29 }
 0xb92   : >> { %7151 = vmatmul.mubr.msk.bf16.vlgmr.msra.gmra.mrb[0].mxu1 %vm3051_vm1, %v7514_v45 }
 0xb93   : >> { %3638 = vmatprep.mubr.bf16.mxu1 %v7520_v36 }
 0xb96   : >> { %3394 = vmatmul.mubr.bf16.gmra.mrb[4].mxu0 %v7517_v21 }
 0xb97   : >> { %7158 = vmatprep.mubr.msk.bf16.mxu0 %vm3051_vm1, %v7521_v33 }
 0xb98   : >> { %v3305_v48 = vpop.permute.xlu1 %3304 }
 0xb9a   : >> { %v3300_v23 = vpop.permute.xlu0 %3299 }
 0xb9c   : >> { %v3310_v0 = vpop.permute.xlu1 %3309 }
 0xb9e   : >> { %v3315_v11 = vpop.permute.xlu0 %3314 }
 0xc61   : >> { %v6736_v20 = vpop.f32.mrb[0].mxu0 }
 0xc62   : >> { %v6737_v47 = vpop.f32.mrb[1].mxu0 }
 0xc63   : >> { %v6738_v28 = vadd.f32 %v6737_v47, %v6736_v20  ;;  %v6739_v46 = vpop.f32.mrb[2].mxu0 }
 0xc64   : >> { %v6740_v50 = vpop.f32.mrb[3].mxu0 }
 0xc65   : >> { %v6741_v51 = vadd.f32 %v6740_v50, %v6739_v46  ;;  %v7152_v56 = vpop.f32.mrb[0].mxu1  ;;  %v3388_v57 = vadd.f32 %v6738_v28, %v3300_v23 }
 0xc66   : >> { %v3436_v59 = vpop.f32.mrb[1].mxu1 }
 0xc67   : >> { %v3437_v49 = vadd.f32 %v3436_v59, %v3388_v57  ;;  %v7153_v52 = vpop.f32.mrb[2].mxu1  ;;  %v3391_v55 = vadd.f32 %v6741_v51, %v3305_v48  ;;  %v7518_v51 = vld [vmem:[%s8708_s7] ss:$12 sps:$4 sm:$0xff]  }
 0xc68   : >> { %v3439_v54 = vpop.f32.mrb[3].mxu1  ;;  %v7522_v59 = vld [vmem:[%s8708_s7 + $0x20] ss:$12 sps:$4 sm:$0xff]  }
 0xc69   : >> { %v3451_v60 = vmax.f32 %v3437_v49, 0.0  ;;  %v3440_v19 = vadd.f32 %v3439_v54, %v3391_v55  ;;  %v6742_v40 = vpop.f32.mrb[4].mxu0  ;;  %v7525_v49 = vld [vmem:[%s8708_s7 + $0x18] ss:$12 sps:$4 sm:$0xff]  }
 0xc6a   : >> { %v6743_v63 = vpop.f32.mrb[5].mxu0 }
 0xc6b   : >> { %v3455_v53 = vmul.f32 %v8214_v61, %v3451_v60  ;;  %v3452_v42 = vmax.f32 %v3440_v19, 0.0  ;;  %v6744_v58 = vadd.f32 %v6743_v63, %v6742_v40  ;;  %v6745_v17 = vpop.f32.mrb[6].mxu0 }
 0xc6c   : >> { %v6746_v1 = vpop.f32.mrb[7].mxu0 }
 0xc6d   : >> { %v3456_v2 = vmul.f32 %v8214_v61, %v3452_v42  ;;  %v3396_v3 = vadd.f32 %v6744_v58, %v3310_v0  ;;  %v6747_v15 = vadd.f32 %v6746_v1, %v6745_v17  ;;  %3463 = vrot.lane.b32.xlu1 %v3455_v53, %s9390_s23 }
 0xc6f   : >> { %v3445_v39 = vadd.f32 %v7152_v56, %v3396_v3  ;;  %v3399_v7 = vadd.f32 %v6747_v15, %v3315_v11  ;;  %3465 = vrot.lane.b32.xlu0 %v3456_v2, %s9390_s23  ;;  %v7523_v56 = vld [vmem:[%s8708_s7 + $0x1c] ss:$12 sps:$4 sm:$0xff]  }
 0xc71   : >> { %v3448_v12 = vadd.f32 %v7153_v52, %v3399_v7  ;;  %v3453_v6 = vmax.f32 %v3445_v39, 0.0 }
 0xc73   : >> { %v3457_v8 = vmul.f32 %v8214_v61, %v3453_v6  ;;  %v3454_v9 = vmax.f32 %v3448_v12, 0.0 }
 0xc75   : >> { %3467 = vrot.lane.b32.xlu1 %v3457_v8, %s9390_s23  ;;  %v3458_v13 = vmul.f32 %v8214_v61, %v3454_v9 }
 0xc77   : >> { %3469 = vrot.lane.b32.xlu0 %v3458_v13, %s9390_s23  ;;  %s9456_s23 = sld [smem:[#allocation11_spill]] }
 0xcdf   : >> { %v3464_v14 = vpop.permute.xlu1 %3463 }
 0xce0   : >> { %3475 = vst.msk [vmem:[#allocation3] sm:$0xff] %vm2940_vm0, %v3464_v14 }
 0xce1   : >> { %v3466_v22 = vpop.permute.xlu0 %3465 }
 0xce2   : >> { %3476 = vst.msk [vmem:[#allocation3 + $0x18] sm:$0xff] %vm2940_vm0, %v3466_v22 }
 0xce7   : >> { %v3468_v24 = vpop.permute.xlu1 %3467  ;;  %v3489_v32 = vld [vmem:[#allocation3] sm:$0xff] }
 0xce8   : >> { %3477 = vst.msk [vmem:[#allocation3 + $0x30] sm:$0xff] %vm2940_vm0, %v3468_v24 }
 0xce9   : >> { %v3490_v31 = vld [vmem:[#allocation3 + $0x18] sm:$0xff]  ;;  %v3470_v34 = vpop.permute.xlu0 %3469 }
 0xcea   : >> { %v3493_v27 = vpack.c.bf16 %v3490_v31, %v3489_v32  ;;  %3478 = vst.msk [vmem:[#allocation3 + $0x48] sm:$0xff] %vm2940_vm0, %v3470_v34 }
 0xcec   : >> { %3515 = vrot.lane.b32.xlu1 %v3493_v27, %s7741_s27 }
 0xcef   : >> { %v3491_v38 = vld [vmem:[#allocation3 + $0x30] sm:$0xff] }
 0xcf0   : >> { %3521 = vrot.lane.b32.xlu1 %v3493_v27, %s9455_s22 }
 0xcf1   : >> { %v3492_v30 = vld [vmem:[#allocation3 + $0x48] sm:$0xff] }
 0xcf2   : >> { %v3494_v35 = vpack.c.bf16 %v3492_v30, %v3491_v38 }
 0xcf4   : >> { %3523 = vrot.lane.b32.xlu1 %v3494_v35, %s9455_s22  ;;  %3517 = vrot.lane.b32.xlu0 %v3494_v35, %s7741_s27  ;;  %s9460_s22 = sshll.u32 %s7665_s26, 5  ;;  %s3223_s26 = sadd.s32 1, %s7665_s26  }
 0xcf5   : >> { %p3220_p5 = scmp.ge.s32.totalorder %s3223_s26, 8  }
 0xcf6   : > { %4452 = vst [vmem:[#allocation3] sm:$0xff] (%p3220_p5), %v7722_v25  ;;  %4455 = vst [vmem:[#allocation3 + $0x18] sm:$0xff] (%p3220_p5), %v7722_v25  ;;  %s9464_s26 = sld [smem:[#allocation12_spill]] (%p3220_p5)  ;;  %s9467_s7 = smov (%p3220_p5), 127   ;;  %vm4177_vm2 = vcmask (%p3220_p5), 637952   ;;  %vm4508_vm3 = vcmask (%p3220_p5), 236600  }
 0xcf7   : > { %4458 = vst [vmem:[#allocation3 + $0x30] sm:$0xff] (%p3220_p5), %v7722_v25  ;;  %4461 = vst [vmem:[#allocation3 + $0x48] sm:$0xff] (%p3220_p5), %v7722_v25  ;;  %s9469_s1 = smov (%p3220_p5), 108   ;;  %vm4769_vm4 = vcmask (%p3220_p5), 523264  }
 0xcf8   : >> { %3527 = vrot.lane.b32.xlu1 %v3493_v27, %s7744_s10  ;;  %3497 = vrot.lane.b32.xlu0 %v3493_v27, %s9457_s18  ;;  %4464 = vst [vmem:[#allocation3 + $0x60] sm:$0xff] (%p3220_p5), %v7722_v25  ;;  %4467 = vst [vmem:[#allocation3 + $0x78] sm:$0xff] (%p3220_p5), %v7722_v25 }
 0xcf9   : > { %4470 = vst [vmem:[#allocation3 + $0x90] sm:$0xff] (%p3220_p5), %v7722_v25  ;;  %4473 = vst [vmem:[#allocation3 + $0xa8] sm:$0xff] (%p3220_p5), %v7722_v25 }
 0xcfa   : > { %4454 = vst.msk [vmem:[#allocation3 + $0x10] sm:$0xff] (%p3220_p5), %vm1517_vm8, %v7722_v25  ;;  %4457 = vst.msk [vmem:[#allocation3 + $0x28] sm:$0xff] (%p3220_p5), %vm1517_vm8, %v7722_v25 }
 0xcfb   : > { %5019 = vst [vmem:[#allocation2 + $0x60] sm:$0xff] (%p3220_p5), %v7722_v25  ;;  %5022 = vst [vmem:[#allocation2 + $0x78] sm:$0xff] (%p3220_p5), %v7722_v25 }
 0xcfc   : >> { %3529 = vrot.lane.b32.xlu1 %v3494_v35, %s7744_s10  ;;  %3499 = vrot.lane.b32.xlu0 %v3494_v35, %s9457_s18  ;;  %s3545_s10 = scalar_lea.vmem %s9456_s23, %s9460_s22  ;;  %s9461_s18 = smov 106   ;;  %5025 = vst [vmem:[#allocation2 + $0x90] sm:$0xff] (%p3220_p5), %v7722_v25  ;;  %5028 = vst [vmem:[#allocation2 + $0xa8] sm:$0xff] (%p3220_p5), %v7722_v25 }
 0xcfd   : >> { %v3546_v41 = vld [vmem:[%s3545_s10] sm:$0xff]  ;;  %v3548_v18 = vld [vmem:[%s3545_s10 + $0x10] sm:$0xff]  ;;  %v3547_v43 = vld [vmem:[%s3545_s10 + $0x8] sm:$0xff]  ;;  %5008 = vst [vmem:[#allocation2 + $0x8] sm:$0xff] (%p3220_p5), %v7722_v25  ;;  %s9468_s23 = sld [smem:[#allocation13_spill]] (%p3220_p5)  ;;  %s9470_s22 = smov (%p3220_p5), 126  }
 0xcfe   : >> { %v3549_v26 = vld [vmem:[%s3545_s10 + $0x18] sm:$0xff]  ;;  %5009 = vst.msk [vmem:[#allocation2 + $0x10] sm:$0xff] (%p3220_p5), %vm1517_vm8, %v7722_v25  ;;  %5011 = vst [vmem:[#allocation2 + $0x20] sm:$0xff] (%p3220_p5), %v7722_v25  ;;  %s9471_s10 = smov (%p3220_p5), 107  }
 0xcff   : > { %5012 = vst.msk [vmem:[#allocation2 + $0x28] sm:$0xff] (%p3220_p5), %vm1517_vm8, %v7722_v25 }
 0xd00   : >> { %3533 = vrot.lane.b32.xlu1 %v3493_v27, %s7746_s11  ;;  %3503 = vrot.lane.b32.xlu0 %v3493_v27, %s9459_s0 }
 0xd04   : >> { %3535 = vrot.lane.b32.xlu1 %v3494_v35, %s7746_s11  ;;  %3505 = vrot.lane.b32.xlu0 %v3494_v35, %s9459_s0  ;;  %s9463_s0 = smov 11   ;;  %s9466_s11 = smov (%p3220_p5), 116  }
 0xd08   : >> { %3539 = vrot.lane.b32.xlu1 %v3493_v27, %s9461_s18  ;;  %3509 = vrot.lane.b32.xlu0 %v3493_v27, %s9462_s28 }
 0xd0c   : >> { %3552 = vperm.xlu1 %7509, %v3546_v41   ;;  %3511 = vrot.lane.b32.xlu0 %v3494_v35, %s9462_s28  ;;  %s9473_s28 = smov (%p3220_p5), 106  }
 0xd10   : >> { %3562 = vperm.xlu1 %7509, %v3548_v18   ;;  %3541 = vrot.lane.b32.xlu0 %v3494_v35, %s9461_s18  ;;  %s9472_s18 = smov (%p3220_p5), 118  }
 0xd14   : >> { %3557 = vperm.xlu0 %7508, %v3547_v43   ;;  %3712 = vrot.lane.b32.xlu1 %v8639_v4, %s7741_s27 }
 0xd15   : > { %7527 = vset.pattern.permute.xlu1 (%p3220_p5), %v7712_v10 }
 0xd18   : >> { %3567 = vperm.xlu0 %7508, %v3549_v26   ;;  %3716 = vrot.lane.b32.xlu1 %v8643_v37, %s7741_s27 }
 0xd1c   : >> { %3714 = vrot.lane.b32.xlu0 %v8641_v5, %s7741_s27 }
 0xd1d   : > { %7526 = vset.pattern.permute.xlu0 (%p3220_p5), %v7712_v10 }
 0xd20   : >> { %3718 = vrot.lane.b32.xlu0 %v8647_v16, %s7741_s27  ;;  %s9465_s27 = smov (%p3220_p5), 117  }
 0xd5e   : >> { %v3516_v44 = vpop.permute.xlu1 %3515 }
 0xd5f   : >> { %6752 = vmatprep.subr.bf16.mxu1 %v3516_v44 }
 0xd60   : >> { %6753 = vmatpush3.bf16.msra.mxu1 %v3493_v27 }
 0xd62   : >> { %v3522_v29 = vpop.permute.xlu1 %3521 }
 0xd66   : >> { %v3518_v45 = vpop.permute.xlu0 %3517  ;;  %v3524_v21 = vpop.permute.xlu1 %3523 }
 0xd67   : >> { %6754 = vmatprep.subr.bf16.mxu1 %v3518_v45 }
 0xd68   : >> { %6755 = vmatpush3.bf16.msra.mxu1 %v3494_v35 }
 0xd69   : >> { %6756 = vmatprep.subr.bf16.mxu1 %v3522_v29 }
 0xd6a   : >> { %v3498_v4 = vpop.permute.xlu0 %3497  ;;  %v3528_v20 = vpop.permute.xlu1 %3527 }
 0xd6c   : >> { %6757 = vmatpush3.bf16.msra.mxu1 %v3498_v4 }
 0xd6d   : >> { %6758 = vmatprep.subr.bf16.mxu1 %v3524_v21 }
 0xd6e   : >> { %v3500_v37 = vpop.permute.xlu0 %3499  ;;  %v3530_v23 = vpop.permute.xlu1 %3529 }
 0xd70   : >> { %6759 = vmatpush3.bf16.msra.mxu1 %v3500_v37 }
 0xd71   : >> { %6760 = vmatprep.subr.bf16.mxu1 %v3528_v20 }
 0xd72   : >> { %v3504_v5 = vpop.permute.xlu0 %3503  ;;  %v3534_v16 = vpop.permute.xlu1 %3533 }
 0xd74   : >> { %6761 = vmatpush3.bf16.msra.mxu1 %v3504_v5 }
 0xd75   : >> { %6762 = vmatprep.subr.bf16.mxu1 %v3530_v23 }
 0xd76   : >> { %v3506_v47 = vpop.permute.xlu0 %3505  ;;  %v3536_v28 = vpop.permute.xlu1 %3535 }
 0xd78   : >> { %6763 = vmatpush3.bf16.msra.mxu1 %v3506_v47 }
 0xd79   : >> { %6764 = vmatprep.subr.bf16.mxu1 %v3534_v16 }
 0xd7a   : >> { %v3510_v46 = vpop.permute.xlu0 %3509  ;;  %v3540_v48 = vpop.permute.xlu1 %3539 }
 0xd7b   : >> { %7154 = vmatprep.subr.bf16.mxu0 %v3540_v48 }
 0xd7c   : >> { %6765 = vmatpush3.bf16.msra.mxu1 %v3510_v46  ;;  %7155 = vmatpush3.bf16.msra.mxu0 %v3540_v48  ;;  %v7531_v46 = vld [vmem:[%s9464_s26 + $0x8] ss:$12 sps:$4 sm:$0xff] (%p3220_p5)   ;;  %v3782_v48 = vld [vmem:[%s9468_s23] sm:$0xff] (%p3220_p5) }
 0xd7d   : >> { %6766 = vmatprep.subr.bf16.mxu1 %v3536_v28 }
 0xd7e   : >> { %v3512_v50 = vpop.permute.xlu0 %3511 }
 0xd80   : >> { %6767 = vmatpush3.bf16.msra.mxu1 %v3512_v50  ;;  %v3783_v50 = vld [vmem:[%s9468_s23 + $0x8] sm:$0xff] (%p3220_p5) }
 0xd82   : >> { %v3542_v57 = vpop.permute.xlu0 %3541 }
 0xd83   : >> { %3639 = vmatmul.mubr.bf16.vlgmr.msra.gmra.mrb[4].mxu1 %v7518_v51  ;;  %7156 = vmatprep.subr.bf16.mxu0 %v3542_v57  ;;  %v3784_v51 = vld [vmem:[%s9468_s23 + $0x10] sm:$0xff] (%p3220_p5) }
 0xd84   : >> { %7157 = vmatpush3.bf16.msra.mxu0 %v3542_v57  ;;  %3646 = vmatprep.mubr.bf16.mxu1 %v7523_v56  ;;  %v3785_v56 = vld [vmem:[%s9468_s23 + $0x18] sm:$0xff] (%p3220_p5)  ;;  %v3786_v57 = vld [vmem:[%s9468_s23 + $0x20] sm:$0xff] (%p3220_p5) }
 0xd87   : >> { %7159 = vmatmul.mubr.msk.bf16.vlgmr.msra.gmra.mrb[8].mxu0 %vm3051_vm1, %v7522_v59  ;;  %v3787_v59 = vld [vmem:[%s9468_s23 + $0x28] sm:$0xff] (%p3220_p5) }
 0xd8b   : >> { %3647 = vmatmul.mubr.bf16.gmra.mrb[8].mxu1 %v7525_v49  ;;  %v3553_v52 = vpop.permute.xlu1 %3552  ;;  %v3788_v49 = vld [vmem:[%s9468_s23 + $0x30] sm:$0xff] (%p3220_p5) }
 0xd8c   : > { %7166 = vmatprep.mubr.msk.bf16.mxu1 (%p3220_p5), %vm3051_vm1, %v7531_v46 }
 0xd8f   : >> { %v3563_v60 = vpop.permute.xlu1 %3562 }
 0xd93   : >> { %v3558_v55 = vpop.permute.xlu0 %3557  ;;  %v3713_v2 = vpop.permute.xlu1 %3712 }
 0xd97   : >> { %v3568_v53 = vpop.permute.xlu0 %3567  ;;  %v3717_v30 = vpop.permute.xlu1 %3716 }
 0xd9b   : >> { %v3715_v7 = vpop.permute.xlu0 %3714 }
 0xd9f   : >> { %v3719_v41 = vpop.permute.xlu0 %3718 }
 0xe56   : >> { %v6768_v54 = vpop.f32.mrb[4].mxu1 }
 0xe57   : >> { %v6769_v19 = vpop.f32.mrb[5].mxu1 }
 0xe58   : >> { %v6770_v40 = vadd.f32 %v6769_v19, %v6768_v54  ;;  %v6771_v63 = vpop.f32.mrb[6].mxu1 }
 0xe59   : >> { %v6772_v42 = vpop.f32.mrb[7].mxu1 }
 0xe5a   : >> { %v6773_v58 = vadd.f32 %v6772_v42, %v6771_v63  ;;  %v7160_v17 = vpop.f32.mrb[8].mxu0  ;;  %v3641_v0 = vadd.f32 %v6770_v40, %v3553_v52  ;;  %v3789_v52 = vld [vmem:[%s9468_s23 + $0x38] sm:$0xff] (%p3220_p5) }
 0xe5b   : >> { %v3689_v1 = vpop.f32.mrb[9].mxu0 }
 0xe5c   : >> { %v3690_v3 = vadd.f32 %v3689_v1, %v3641_v0  ;;  %v7161_v15 = vpop.f32.mrb[10].mxu0  ;;  %v3644_v11 = vadd.f32 %v6773_v58, %v3558_v55 }
 0xe5d   : >> { %v3692_v39 = vpop.f32.mrb[11].mxu0 }
 0xe5e   : >> { %v3693_v12 = vadd.f32 %v3692_v39, %v3644_v11  ;;  %v3724_v6 = vadd.f32 %v3713_v2, %v3690_v3  ;;  %v6774_v8 = vpop.f32.mrb[8].mxu1  ;;  %v7528_v39 = vld [vmem:[%s9464_s26] ss:$12 sps:$4 sm:$0xff] (%p3220_p5)  }
 0xe5f   : >> { %v6775_v9 = vpop.f32.mrb[9].mxu1 }
 0xe60   : >> { %v3728_v13 = vmax.f32 %v3724_v6, 0.0  ;;  %v3725_v14 = vadd.f32 %v3715_v7, %v3693_v12  ;;  %v6776_v22 = vadd.f32 %v6775_v9, %v6774_v8  ;;  %v6777_v24 = vpop.f32.mrb[10].mxu1  ;;  %v7533_v7 = vld [vmem:[%s9464_s26 + $0x1c] ss:$12 sps:$4 sm:$0xff] (%p3220_p5)   ;;  %v7532_v12 = vld [vmem:[%s9464_s26 + $0x20] ss:$12 sps:$4 sm:$0xff] (%p3220_p5)  }
 0xe61   : >> { %v6778_v32 = vpop.f32.mrb[11].mxu1  ;;  %v7539_v6 = vld [vmem:[%s9464_s26 + $0x38] ss:$12 sps:$4 sm:$0xff] (%p3220_p5)   ;;  %v7536_v9 = vld [vmem:[%s9464_s26 + $0x34] ss:$12 sps:$4 sm:$0xff] (%p3220_p5)  }
 0xe62   : >> { %v3732_v31 = vmul.f32 %v8214_v61, %v3728_v13  ;;  %v3729_v34 = vmax.f32 %v3725_v14, 0.0  ;;  %v3649_v27 = vadd.f32 %v6776_v22, %v3563_v60  ;;  %v6779_v38 = vadd.f32 %v6778_v32, %v6777_v24  ;;  %v7535_v8 = vld [vmem:[%s9464_s26 + $0x18] ss:$12 sps:$4 sm:$0xff] (%p3220_p5)   ;;  %v7540_v13 = vld [vmem:[%s9464_s26 + $0x50] ss:$12 sps:$4 sm:$0xff] (%p3220_p5)  }
 0xe63   : > { %v7538_v14 = vld [vmem:[%s9464_s26 + $0x30] ss:$12 sps:$4 sm:$0xff] (%p3220_p5)   ;;  %v7541_v22 = vld [vmem:[%s9464_s26 + $0x4c] ss:$12 sps:$4 sm:$0xff] (%p3220_p5)   ;;  %v7543_v24 = vld [vmem:[%s9464_s26 + $0x48] ss:$12 sps:$4 sm:$0xff] (%p3220_p5)  }
 0xe64   : >> { %v3733_v35 = vmul.f32 %v8214_v61, %v3729_v34  ;;  %v3652_v36 = vadd.f32 %v6779_v38, %v3568_v53  ;;  %3740 = vrot.lane.b32.xlu1 %v3732_v31, %s9463_s0  ;;  %v3698_v33 = vadd.f32 %v7160_v17, %v3649_v27  ;;  %v8827_v32 = vld [vmem:[%s7938_s30] sm:$0xff] (%p3220_p5)   ;;  %v8832_v31 = vld [vmem:[%s7938_s30 + $0x8] sm:$0xff] (%p3220_p5)   ;;  %v8837_v34 = vld [vmem:[%s7938_s30 + $0x10] sm:$0xff] (%p3220_p5)  }
 0xe65   : > { %v8842_v27 = vld [vmem:[%s7938_s30 + $0x18] sm:$0xff] (%p3220_p5)   ;;  %v8847_v38 = vld [vmem:[%s7938_s30 + $0x20] sm:$0x7f] (%p3220_p5)  }
 0xe66   : >> { %v3726_v18 = vadd.f32 %v3717_v30, %v3698_v33  ;;  %3742 = vrot.lane.b32.xlu0 %v3733_v35, %s9463_s0  ;;  %v3701_v43 = vadd.f32 %v7161_v15, %v3652_v36  ;;  %v8853_v30 = vsel (%p3220_p5), %vm2627_vm13, %v8847_v38, 0 }
 0xe68   : >> { %v3730_v26 = vmax.f32 %v3726_v18, 0.0  ;;  %v3727_v44 = vadd.f32 %v3719_v41, %v3701_v43 }
 0xe6a   : >> { %v3734_v29 = vmul.f32 %v8214_v61, %v3730_v26  ;;  %v3731_v45 = vmax.f32 %v3727_v44, 0.0 }
 0xe6c   : >> { %v3735_v21 = vmul.f32 %v8214_v61, %v3731_v45  ;;  %3744 = vrot.lane.b32.xlu1 %v3734_v29, %s9463_s0 }
 0xe6e   : >> { %3746 = vrot.lane.b32.xlu0 %v3735_v21, %s9463_s0  ;;  %s7751_s0 = smov (%p3220_p5), 7  }
 0xed6   : >> { %v3741_v4 = vpop.permute.xlu1 %3740 }
 0xed7   : >> { %3752 = vst.msk [vmem:[#allocation2] sm:$0xff] %vm2940_vm0, %v3741_v4 }
 0xed8   : >> { %v3743_v20 = vpop.permute.xlu0 %3742 }
 0xed9   : >> { %3753 = vst.msk [vmem:[#allocation2 + $0x18] sm:$0xff] %vm2940_vm0, %v3743_v20 }
 0xede   : >> { %v3745_v37 = vpop.permute.xlu1 %3744  ;;  %3222 = sbr.rel (!%p3220_p5) target bundleno = 2806 (0xaf6), region = 264  ;;  %v3838_v5 = vld [vmem:[#allocation2] sm:$0xff] (%p3220_p5) }
 0xedf   : >> { %3754 = vst.msk [vmem:[#allocation2 + $0x30] sm:$0xff] %vm2940_vm0, %v3745_v37  ;;  %5007 = vst [vmem:[#allocation2] sm:$0xff] (%p3220_p5), %v7722_v25 }
 0xee0   : >> { %v3747_v23 = vpop.permute.xlu0 %3746  ;;  %v3839_v16 = vld [vmem:[#allocation2 + $0x18] sm:$0xff] (%p3220_p5) }
 0xee1   : >> { %3755 = vst.msk [vmem:[#allocation2 + $0x48] sm:$0xff] %vm2940_vm0, %v3747_v23  ;;  %v3842_v10 = vpack.c.bf16 (%p3220_p5), %v3839_v16, %v3838_v5  ;;  %5010 = vst [vmem:[#allocation2 + $0x18] sm:$0xff] (%p3220_p5), %v7722_v25 }
 0xee3   : > { %3864 = vrot.lane.b32.xlu0 (%p3220_p5), %v3842_v10, %s9465_s27  ;;  %3870 = vrot.lane.b32.xlu1 (%p3220_p5), %v3842_v10, %s9466_s11 }
 0xee6   : > { %v3840_v47 = vld [vmem:[#allocation2 + $0x30] sm:$0xff] }
 0xee7   : > { %5013 = vst [vmem:[#allocation2 + $0x30] sm:$0xff] %v7722_v25  ;;  %3846 = vrot.lane.b32.xlu1 %v3842_v10, %s9467_s7 }
 0xee8   : > { %v3841_v61 = vld [vmem:[#allocation2 + $0x48] sm:$0xff] }
 0xee9   : > { %5016 = vst [vmem:[#allocation2 + $0x48] sm:$0xff] %v7722_v25  ;;  %v3843_v28 = vpack.c.bf16 %v3841_v61, %v3840_v47  ;;  %v7530_v25 = vld [vmem:[%s9464_s26 + $0x4] ss:$12 sps:$4 sm:$0xff]  }
 0xeea   : > { %4038 = vmatprep.mubr.bf16.mxu0 %v7530_v25 }
 0xeeb   : > { %3866 = vrot.lane.b32.xlu0 %v3843_v28, %s9465_s27  ;;  %3848 = vrot.lane.b32.xlu1 %v3843_v28, %s9467_s7  ;;  %s9474_s27 = sld [smem:[#allocation16_spill]] }
 0xeef   : > { %3872 = vrot.lane.b32.xlu0 %v3843_v28, %s9466_s11  ;;  %3852 = vrot.lane.b32.xlu1 %v3842_v10, %s9470_s22 }
 0xef3   : > { %3876 = vrot.lane.b32.xlu0 %v3842_v10, %s9469_s1  ;;  %3854 = vrot.lane.b32.xlu1 %v3843_v28, %s9470_s22 }
 0xef7   : > { %3878 = vrot.lane.b32.xlu0 %v3843_v28, %s9469_s1  ;;  %3858 = vrot.lane.b32.xlu1 %v3842_v10, %s9472_s18  ;;  %s7752_s1 = smov 122  }
 0xefb   : > { %3882 = vrot.lane.b32.xlu0 %v3842_v10, %s9471_s10  ;;  %3860 = vrot.lane.b32.xlu1 %v3843_v28, %s9472_s18  ;;  %s7753_s18 = smov 121  }
 0xeff   : > { %3884 = vrot.lane.b32.xlu0 %v3843_v28, %s9471_s10  ;;  %3890 = vrot.lane.b32.xlu1 %v3843_v28, %s9473_s28  ;;  %s9475_s10 = sld [smem:[#allocation14_spill]] }
 0xf03   : > { %3888 = vrot.lane.b32.xlu0 %v3842_v10, %s9473_s28  ;;  %3901 = vperm.xlu1 %7527, %v3783_v50   ;;  %s9476_s28 = sld [smem:[#allocation15_spill]] }
 0xf07   : > { %3896 = vperm.xlu0 %7526, %v3782_v48   ;;  %3906 = vperm.xlu1 %7527, %v3784_v51  }
 0xf0b   : > { %3911 = vperm.xlu0 %7526, %v3785_v56   ;;  %3916 = vperm.xlu1 %7527, %v3786_v57  }
 0xf0f   : > { %3921 = vperm.xlu0 %7526, %v3787_v59   ;;  %3926 = vperm.xlu1 %7527, %v3788_v49  }
 0xf13   : > { %3931 = vperm.xlu0 %7526, %v3789_v52  }
 0xf55   : > { %v8807_v55 = vpop.permute.xlu0 %3864  ;;  %v3871_v54 = vpop.permute.xlu1 %3870 }
 0xf56   : > { %6784 = vmatprep.subr.bf16.mxu0 %v8807_v55 }
 0xf57   : > { %6785 = vmatpush3.bf16.msra.mxu0 %v3842_v10 }
 0xf59   : > { %v3847_v19 = vpop.permute.xlu1 %3846 }
 0xf5d   : > { %v8810_v60 = vpop.permute.xlu0 %3866  ;;  %v3849_v63 = vpop.permute.xlu1 %3848 }
 0xf5e   : > { %6786 = vmatprep.subr.bf16.mxu0 %v8810_v60 }
 0xf5f   : > { %6787 = vmatpush3.bf16.msra.mxu0 %v3843_v28 }
 0xf60   : > { %6788 = vmatprep.subr.bf16.mxu0 %v3871_v54 }
 0xf61   : > { %v3873_v40 = vpop.permute.xlu0 %3872  ;;  %v3853_v42 = vpop.permute.xlu1 %3852 }
 0xf63   : > { %6789 = vmatpush3.bf16.msra.mxu0 %v3847_v19 }
 0xf64   : > { %6790 = vmatprep.subr.bf16.mxu0 %v3873_v40 }
 0xf65   : > { %v3877_v53 = vpop.permute.xlu0 %3876  ;;  %v3855_v17 = vpop.permute.xlu1 %3854 }
 0xf67   : > { %6791 = vmatpush3.bf16.msra.mxu0 %v3849_v63 }
 0xf68   : > { %6792 = vmatprep.subr.bf16.mxu0 %v3877_v53 }
 0xf69   : > { %v3879_v58 = vpop.permute.xlu0 %3878  ;;  %v3859_v1 = vpop.permute.xlu1 %3858 }
 0xf6b   : > { %6793 = vmatpush3.bf16.msra.mxu0 %v3853_v42 }
 0xf6c   : > { %6794 = vmatprep.subr.bf16.mxu0 %v3879_v58 }
 0xf6d   : > { %v3883_v0 = vpop.permute.xlu0 %3882  ;;  %v3861_v3 = vpop.permute.xlu1 %3860 }
 0xf6f   : > { %6795 = vmatpush3.bf16.msra.mxu0 %v3855_v17 }
 0xf70   : > { %6796 = vmatprep.subr.bf16.mxu0 %v3883_v0 }
 0xf71   : > { %v3885_v2 = vpop.permute.xlu0 %3884  ;;  %v3891_v11 = vpop.permute.xlu1 %3890 }
 0xf73   : > { %6797 = vmatpush3.bf16.msra.mxu0 %v3859_v1 }
 0xf74   : > { %6798 = vmatprep.subr.bf16.mxu0 %v3885_v2 }
 0xf75   : > { %v3889_v15 = vpop.permute.xlu0 %3888 }
 0xf76   : > { %7162 = vmatprep.subr.bf16.mxu1 %v3889_v15 }
 0xf77   : > { %6799 = vmatpush3.bf16.msra.mxu0 %v3861_v3  ;;  %7163 = vmatpush3.bf16.msra.mxu1 %v3889_v15 }
 0xf78   : > { %7164 = vmatprep.subr.bf16.mxu1 %v3891_v11 }
 0xf7a   : > { %4039 = vmatmul.mubr.bf16.vlgmr.msra.gmra.mrb[0].mxu0 %v7528_v39 }
 0xf7b   : > { %7165 = vmatpush3.bf16.msra.mxu1 %v3891_v11  ;;  %4046 = vmatprep.mubr.bf16.mxu0 %v7533_v7 }
 0xf7c   : > { %7174 = vmatprep.subr.bf16.mxu1 %v8827_v32 }
 0xf7e   : > { %7167 = vmatmul.mubr.msk.bf16.vlgmr.msra.gmra.mrb[0].mxu1 %vm3051_vm1, %v7532_v12 }
 0xf7f   : > { %7170 = vmatprep.mubr.msk.bf16.mxu1 %vm3051_vm1, %v7539_v6  ;;  %7175 = vmatpush3.bf16.msra.mxu1 %v8827_v32 }
 0xf80   : > { %7176 = vmatprep.subr.bf16.mxu1 %v8832_v31 }
 0xf82   : > { %4047 = vmatmul.mubr.bf16.gmra.mrb[4].mxu0 %v7535_v8  ;;  %v3902_v26 = vpop.permute.xlu1 %3901 }
 0xf83   : > { %4054 = vmatprep.mubr.bf16.mxu0 %v7536_v9  ;;  %7177 = vmatpush3.bf16.msra.mxu1 %v8832_v31 }
 0xf84   : > { %7178 = vmatprep.subr.bf16.mxu1 %v8837_v34 }
 0xf86   : > { %7171 = vmatmul.mubr.msk.bf16.gmra.mrb[4].mxu1 %vm3051_vm1, %v7540_v13  ;;  %v3897_v33 = vpop.permute.xlu0 %3896  ;;  %v3907_v46 = vpop.permute.xlu1 %3906 }
 0xf87   : > { %7179 = vmatpush3.bf16.msra.mxu1 %v8837_v34 }
 0xf88   : > { %7180 = vmatprep.subr.bf16.mxu1 %v8842_v27 }
 0xf8a   : > { %4055 = vmatmul.mubr.bf16.gmra.mrb[8].mxu0 %v7538_v14  ;;  %v3912_v59 = vpop.permute.xlu0 %3911  ;;  %v3917_v2 = vpop.permute.xlu1 %3916 }
 0xf8b   : > { %4062 = vmatprep.mubr.bf16.mxu0 %v7541_v22  ;;  %7181 = vmatpush3.bf16.msra.mxu1 %v8842_v27 }
 0xf8c   : > { %7319 = vmatprep.subr.msk.bf16.mxu1 %vm2627_vm13, %v8847_v38 }
 0xf8e   : > { %v3922_v7 = vpop.permute.xlu0 %3921 }
 0xf8f   : > { %7183 = vmatpush3.bf16.msra.mxu1 %v8853_v30 }
 0xf90   : > { %7192 = vmatprep.subr.bf16.mxu1 %v8827_v32 }
 0xf92   : > { %4063 = vmatmul.mubr.bf16.gmra.mrb[12].mxu0 %v7543_v24 }
0x104d   : > { %v6800_v35 = vpop.f32.mrb[0].mxu0 }
0x104e   : > { %v6801_v36 = vpop.f32.mrb[1].mxu0 }
0x104f   : > { %v6802_v41 = vadd.f32 %v6801_v36, %v6800_v35  ;;  %v6803_v18 = vpop.f32.mrb[2].mxu0  ;;  %v3927_v36 = vpop.permute.xlu1 %3926 }
0x1050   : > { %v6804_v43 = vpop.f32.mrb[3].mxu0 }
0x1051   : > { %v4041_v44 = vadd.f32 %v6802_v41, %v3897_v33  ;;  %v6805_v29 = vadd.f32 %v6804_v43, %v6803_v18  ;;  %v7168_v45 = vpop.f32.mrb[0].mxu1 }
0x1052   : > { %v4105_v21 = vpop.f32.mrb[1].mxu1 }
0x1053   : > { %v4044_v4 = vadd.f32 %v6805_v29, %v3902_v26  ;;  %v4106_v20 = vadd.f32 %v4105_v21, %v4041_v44  ;;  %v7169_v37 = vpop.f32.mrb[2].mxu1  ;;  %v3932_v26 = vpop.permute.xlu0 %3931 }
0x1054   : > { %v4108_v23 = vpop.f32.mrb[3].mxu1 }
0x1055   : > { %v4109_v5 = vadd.f32 %v4108_v23, %v4044_v4  ;;  %v6806_v16 = vpop.f32.mrb[4].mxu0  ;;  %v4136_v10 = vmax.f32 %v4106_v20, 0.0 }
0x1056   : > { %v6807_v47 = vpop.f32.mrb[5].mxu0 }
0x1057   : > { %v4137_v61 = vmax.f32 %v4109_v5, 0.0  ;;  %v6808_v28 = vadd.f32 %v6807_v47, %v6806_v16  ;;  %v6809_v25 = vpop.f32.mrb[6].mxu0 }
0x1058   : > { %v6810_v48 = vpop.f32.mrb[7].mxu0 }
0x1059   : > { %v4144_v50 = vpack.c.bf16 %v4137_v61, %v4136_v10  ;;  %v4049_v51 = vadd.f32 %v6808_v28, %v3907_v46  ;;  %v6811_v56 = vadd.f32 %v6810_v48, %v6809_v25  ;;  %v7172_v57 = vpop.f32.mrb[4].mxu1 }
0x105a   : > { %v4121_v49 = vpop.f32.mrb[5].mxu1 }
0x105b   : > { %v4114_v52 = vadd.f32 %v7168_v45, %v4049_v51  ;;  %v4052_v54 = vadd.f32 %v6811_v56, %v3912_v59  ;;  %7184 = vmatprep.mubr.msk.bf16.mxu1 %vm4177_vm2, %v4144_v50  ;;  %v7173_v19 = vpop.f32.mrb[6].mxu1 }
0x105c   : > { %v4124_v40 = vpop.f32.mrb[7].mxu1 }
0x105d   : > { %v4117_v63 = vadd.f32 %v7169_v37, %v4052_v54  ;;  %v6812_v53 = vpop.f32.mrb[8].mxu0  ;;  %v4138_v58 = vmax.f32 %v4114_v52, 0.0 }
0x105e   : > { %v6813_v42 = vpop.f32.mrb[9].mxu0 }
0x105f   : > { %v4139_v17 = vmax.f32 %v4117_v63, 0.0  ;;  %v6814_v0 = vadd.f32 %v6813_v42, %v6812_v53  ;;  %v6815_v1 = vpop.f32.mrb[10].mxu0  ;;  %v7550_v42 = vld [vmem:[%s9474_s27 + $0x8] sm:$0xff]  }
0x1060   : > { %v6816_v3 = vpop.f32.mrb[11].mxu0 }
0x1061   : > { %v4145_v15 = vpack.c.bf16 %v4139_v17, %v4138_v58  ;;  %v6817_v11 = vadd.f32 %v6816_v3, %v6815_v1  ;;  %v4057_v39 = vadd.f32 %v6814_v0, %v3917_v2  ;;  %v7553_v2 = vld [vmem:[%s9475_s10 + $0x4] ss:$20 sps:$4 sm:$0xff]   ;;  %v7557_v3 = vld [vmem:[%s9474_s27 + $0x10] sm:$0xff]  }
0x1062   : > { %4814 = vmatprep.mubr.bf16.mxu0 %v7553_v2  ;;  %v7574_v2 = vld [vmem:[%s9475_s10 + $0x34] ss:$20 sps:$4 sm:$0xff]  }
0x1063   : > { %v4122_v12 = vadd.f32 %v4121_v49, %v4057_v39  ;;  %7185 = vmatmul.mubr.msk.bf16.vlgmr.msra.gmra.mrb[8].mxu1 %vm4177_vm2, %v4145_v15  ;;  %v4060_v6 = vadd.f32 %v6817_v11, %v3922_v7  ;;  %v7561_v15 = vld [vmem:[%s9474_s27 + $0x18] sm:$0xff]   ;;  %v3814_v39 = vld [vmem:[%s9476_s28] sm:$0xff]  ;;  %v3816_v7 = vld [vmem:[%s9476_s28 + $0x10] sm:$0xff] }
0x1064   : > { %7193 = vmatpush3.bf16.msra.mxu1 %v8827_v32  ;;  %v7566_v11 = vld [vmem:[%s9475_s10 + $0x5c] ss:$20 sps:$4 sm:$0xff]  }
0x1065   : > { %v4125_v8 = vadd.f32 %v4124_v40, %v4060_v6  ;;  %v6818_v9 = vpop.f32.mrb[12].mxu0  ;;  %7194 = vmatprep.subr.bf16.mxu1 %v8832_v31  ;;  %v4140_v14 = vmax.f32 %v4122_v12, 0.0  ;;  %v7549_v40 = vld [vmem:[%s9474_s27] sm:$0xff]   ;;  %v3815_v12 = vld [vmem:[%s9476_s28 + $0x8] sm:$0xff] }
0x1066   : > { %v6819_v13 = vpop.f32.mrb[13].mxu0  ;;  %v3818_v6 = vld [vmem:[%s9476_s28 + $0x20] sm:$0xff] }
0x1067   : > { %v4141_v22 = vmax.f32 %v4125_v8, 0.0  ;;  %v6820_v24 = vadd.f32 %v6819_v13, %v6818_v9  ;;  %v6821_v35 = vpop.f32.mrb[14].mxu0  ;;  %v3817_v8 = vld [vmem:[%s9476_s28 + $0x18] sm:$0xff]  ;;  %v3820_v9 = vld [vmem:[%s9476_s28 + $0x30] sm:$0xff]  ;;  %v3819_v13 = vld [vmem:[%s9476_s28 + $0x28] sm:$0xff] }
0x1068   : > { %v6822_v33 = vpop.f32.mrb[15].mxu0  ;;  %7195 = vmatpush3.bf16.msra.mxu1 %v8832_v31 }
0x1069   : > { %v4146_v41 = vpack.c.bf16 %v4141_v22, %v4140_v14  ;;  %v4065_v18 = vadd.f32 %v6820_v24, %v3927_v36  ;;  %v6823_v43 = vadd.f32 %v6822_v33, %v6821_v35  ;;  %7196 = vmatprep.subr.bf16.mxu1 %v8837_v34  ;;  %v3821_v22 = vld [vmem:[%s9476_s28 + $0x38] sm:$0xff] }
0x106b   : > { %v4130_v32 = vadd.f32 %v7172_v57, %v4065_v18  ;;  %v4068_v44 = vadd.f32 %v6823_v43, %v3932_v26  ;;  %7188 = vmatprep.mubr.msk.bf16.mxu1 %vm4177_vm2, %v4146_v41 }
0x106c   : > { %7197 = vmatpush3.bf16.msra.mxu1 %v8837_v34 }
0x106d   : > { %v4133_v29 = vadd.f32 %v7173_v19, %v4068_v44  ;;  %7198 = vmatprep.subr.bf16.mxu1 %v8842_v27  ;;  %v4142_v45 = vmax.f32 %v4130_v32, 0.0 }
0x106f   : > { %v4143_v21 = vmax.f32 %v4133_v29, 0.0 }
0x1070   : > { %7199 = vmatpush3.bf16.msra.mxu1 %v8842_v27 }
0x1071   : > { %v4147_v31 = vpack.c.bf16 %v4143_v21, %v4142_v45  ;;  %7320 = vmatprep.subr.msk.bf16.mxu1 %vm2627_vm13, %v8847_v38 }
0x1073   : > { %7189 = vmatmul.mubr.msk.bf16.gmra.mrb[12].mxu1 %vm4177_vm2, %v4147_v31 }
0x1074   : > { %7202 = vmatprep.mubr.msk.bf16.mxu1 %vm4177_vm2, %v8807_v55  ;;  %7201 = vmatpush3.bf16.msra.mxu1 %v8853_v30 }
0x107b   : > { %7203 = vmatmul.mubr.msk.bf16.vlgmr.msra.gmra.mrb[16].mxu1 %vm4177_vm2, %v8810_v60 }
0x107c   : > { %7210 = vmatprep.mubr.msk.bf16.mxu1 %vm3051_vm1, %v7549_v40  ;;  %v7564_v40 = vld [vmem:[%s9475_s10 + $0x58] ss:$20 sps:$4 sm:$0xff]  }
0x1136   : > { %v7186_v34 = vpop.f32.mrb[8].mxu1 }
0x1137   : > { %v4227_v4 = vpop.f32.mrb[9].mxu1 }
0x1138   : > { %4484 = vrot.lane.b32.xlu1 %v4227_v4, %s7751_s0  ;;  %v7187_v27 = vpop.f32.mrb[10].mxu1 }
0x1139   : > { %v4230_v20 = vpop.f32.mrb[11].mxu1 }
0x113a   : > { %4486 = vrot.lane.b32.xlu0 %v4230_v20, %s7751_s0 }
0x113c   : > { %4488 = vrot.lane.b32.xlu1 %v7186_v34, %s7751_s0 }
0x113e   : > { %4490 = vrot.lane.b32.xlu0 %v7187_v27, %s7751_s0 }
0x1146   : > { %v7190_v38 = vpop.f32.mrb[12].mxu1 }
0x1147   : > { %v4243_v55 = vpop.f32.mrb[13].mxu1 }
0x1148   : > { %4492 = vrot.lane.b32.xlu1 %v4243_v55, %s7751_s0  ;;  %v7191_v30 = vpop.f32.mrb[14].mxu1 }
0x1149   : > { %v4246_v37 = vpop.f32.mrb[15].mxu1 }
0x114a   : > { %4494 = vrot.lane.b32.xlu0 %v4246_v37, %s7751_s0 }
0x114c   : > { %4496 = vrot.lane.b32.xlu1 %v7190_v38, %s7751_s0 }
0x114e   : > { %4498 = vrot.lane.b32.xlu0 %v7191_v30, %s7751_s0  ;;  %v7204_v60 = vpop.f32.mrb[16].mxu1 }
0x114f   : > { %v4298_v23 = vpop.f32.mrb[17].mxu1 }
0x1150   : > { %v7205_v5 = vpop.f32.mrb[18].mxu1 }
0x1151   : > { %v4314_v16 = vpack.c.bf16 %v7205_v5, %v7204_v60  ;;  %v4301_v47 = vpop.f32.mrb[19].mxu1  ;;  %v7551_v5 = vld [vmem:[%s9475_s10] ss:$20 sps:$4 sm:$0xff]  }
0x1152   : > { %v4313_v10 = vpack.c.bf16 %v4301_v47, %v4298_v23 }
0x1154   : > { %7206 = vmatprep.subr.bf16.mxu1 %v4313_v10 }
0x1155   : > { %7207 = vmatpush3.bf16.msra.mxu1 %v4313_v10 }
0x1156   : > { %7208 = vmatprep.subr.bf16.mxu1 %v4314_v16 }
0x1159   : > { %7209 = vmatpush3.bf16.msra.mxu1 %v4314_v16  ;;  %v7554_v16 = vld [vmem:[%s9475_s10 + $0x2c] ss:$20 sps:$4 sm:$0xff]  }
0x115c   : > { %7211 = vmatmul.mubr.msk.bf16.vlgmr.msra.gmra.mrb[20].mxu1 %vm3051_vm1, %v7550_v42  ;;  %v7571_v42 = vld [vmem:[%s9475_s10 + $0x84] ss:$20 sps:$4 sm:$0xff]  }
0x115d   : > { %7214 = vmatprep.mubr.msk.bf16.mxu1 %vm3051_vm1, %v7557_v3  ;;  %v7576_v3 = vld [vmem:[%s9475_s10 + $0x10] ss:$20 sps:$4 sm:$0xff]  }
0x1164   : > { %7215 = vmatmul.mubr.msk.bf16.gmra.mrb[24].mxu1 %vm3051_vm1, %v7561_v15 }
0x1165   : > { %4895 = vmatprep.mubr.bf16.mxu1 %v7566_v11  ;;  %v7577_v11 = vld [vmem:[%s9475_s10 + $0x30] ss:$20 sps:$4 sm:$0xff]  }
0x11aa   : > { %v4485_v61 = vpop.permute.xlu1 %4484 }
0x11ab   : > { %4509 = vst.msk [vmem:[#allocation3] sm:$0xff] %vm4508_vm3, %v4485_v61 }
0x11ac   : > { %v4487_v28 = vpop.permute.xlu0 %4486 }
0x11ad   : > { %4510 = vst.msk [vmem:[#allocation3 + $0x18] sm:$0xff] %vm4508_vm3, %v4487_v28 }
0x11ae   : > { %v4489_v25 = vpop.permute.xlu1 %4488 }
0x11af   : > { %4511 = vst.msk [vmem:[#allocation3 + $0x30] sm:$0xff] %vm4508_vm3, %v4489_v25  ;;  %v7556_v25 = vld [vmem:[%s9475_s10 + $0x28] ss:$20 sps:$4 sm:$0xff]  }
0x11b0   : > { %v4491_v46 = vpop.permute.xlu0 %4490 }
0x11b1   : > { %4512 = vst.msk [vmem:[#allocation3 + $0x48] sm:$0xff] %vm4508_vm3, %v4491_v46  ;;  %v7558_v46 = vld [vmem:[%s9475_s10 + $0x54] ss:$20 sps:$4 sm:$0xff]  }
0x11b2   : > { %v4517_v48 = vld [vmem:[#allocation3] sm:$0xff] }
0x11b4   : > { %v4518_v50 = vld [vmem:[#allocation3 + $0x18] sm:$0xff] }
0x11b5   : > { %v8887_v51 = vpack.c.bf16 %v4518_v50, %v4517_v48 }
0x11b6   : > { %v4519_v56 = vld [vmem:[#allocation3 + $0x30] sm:$0xff] }
0x11b7   : > { %4545 = vrot.lane.b32.xlu1 %v8887_v51, %s9470_s22 }
0x11b8   : > { %v4520_v57 = vld [vmem:[#allocation3 + $0x48] sm:$0xff] }
0x11b9   : > { %v8891_v59 = vpack.c.bf16 %v4520_v57, %v4519_v56  ;;  %v7560_v57 = vld [vmem:[%s9475_s10 + $0x50] ss:$20 sps:$4 sm:$0xff]  }
0x11ba   : > { %v4493_v49 = vpop.permute.xlu1 %4492 }
0x11bb   : > { %4513 = vst.msk [vmem:[#allocation3 + $0x60] sm:$0xff] %vm4508_vm3, %v4493_v49  ;;  %4557 = vrot.lane.b32.xlu1 %v8887_v51, %s7752_s1  ;;  %4547 = vrot.lane.b32.xlu0 %v8891_v59, %s9470_s22 }
0x11bc   : > { %v4495_v52 = vpop.permute.xlu0 %4494 }
0x11bd   : > { %4514 = vst.msk [vmem:[#allocation3 + $0x78] sm:$0xff] %vm4508_vm3, %v4495_v52 }
0x11be   : > { %v4497_v54 = vpop.permute.xlu1 %4496 }
0x11bf   : > { %4515 = vst.msk [vmem:[#allocation3 + $0x90] sm:$0xff] %vm4508_vm3, %v4497_v54  ;;  %4533 = vrot.lane.b32.xlu0 %v8887_v51, %s9467_s7 }
0x11c0   : > { %v4499_v19 = vpop.permute.xlu0 %4498 }
0x11c1   : > { %4516 = vst.msk [vmem:[#allocation3 + $0xa8] sm:$0xff] %vm4508_vm3, %v4499_v19 }
0x11c2   : > { %v4521_v63 = vld [vmem:[#allocation3 + $0x60] sm:$0xff] }
0x11c4   : > { %v4522_v53 = vld [vmem:[#allocation3 + $0x78] sm:$0xff] }
0x11c5   : > { %v8905_v58 = vpack.c.bf16 %v4522_v53, %v4521_v63  ;;  %v7567_v63 = vld [vmem:[%s9475_s10 + $0x78] ss:$20 sps:$4 sm:$0xff]  }
0x11c6   : > { %v4523_v17 = vld [vmem:[#allocation3 + $0x90] sm:$0xff]  ;;  %v7570_v53 = vld [vmem:[%s9475_s10 + $0xc] ss:$20 sps:$4 sm:$0xff]  }
0x11c7   : > { %4549 = vrot.lane.b32.xlu1 %v8905_v58, %s9470_s22 }
0x11c8   : > { %v4524_v0 = vld [vmem:[#allocation3 + $0xa8] sm:$0xff] }
0x11c9   : > { %v8911_v1 = vpack.c.bf16 %v4524_v0, %v4523_v17  ;;  %v7568_v17 = vld [vmem:[%s9475_s10 + $0x8] ss:$20 sps:$4 sm:$0xff]   ;;  %v7573_v0 = vld [vmem:[%s9475_s10 + $0x80] ss:$20 sps:$4 sm:$0xff]  }
0x11cb   : > { %4559 = vrot.lane.b32.xlu1 %v8891_v59, %s7752_s1  ;;  %4551 = vrot.lane.b32.xlu0 %v8911_v1, %s9470_s22  ;;  %s7754_s22 = smov 115  }
0x11cf   : > { %4593 = vrot.lane.b32.xlu1 %v8887_v51, %s9466_s11  ;;  %4535 = vrot.lane.b32.xlu0 %v8891_v59, %s9467_s7 }
0x11d3   : > { %4595 = vrot.lane.b32.xlu1 %v8891_v59, %s9466_s11  ;;  %4569 = vrot.lane.b32.xlu0 %v8887_v51, %s7753_s18 }
0x11d7   : > { %4561 = vrot.lane.b32.xlu1 %v8905_v58, %s7752_s1  ;;  %4571 = vrot.lane.b32.xlu0 %v8891_v59, %s7753_s18 }
0x11db   : > { %4563 = vrot.lane.b32.xlu1 %v8911_v1, %s7752_s1  ;;  %4537 = vrot.lane.b32.xlu0 %v8905_v58, %s9467_s7  ;;  %s9477_s1 = sld [smem:[#allocation17_spill]] }
0x11df   : > { %4597 = vrot.lane.b32.xlu1 %v8905_v58, %s9466_s11  ;;  %4539 = vrot.lane.b32.xlu0 %v8911_v1, %s9467_s7  ;;  %s7755_s7 = smov 120  }
0x11e1   : > { %v3830_v14 = vld [vmem:[%s9477_s1] sm:$0xff]  ;;  %v3832_v24 = vld [vmem:[%s9477_s1 + $0x10] sm:$0xff]  ;;  %v3831_v35 = vld [vmem:[%s9477_s1 + $0x8] sm:$0xff] }
0x11e2   : > { %v3834_v36 = vld [vmem:[%s9477_s1 + $0x20] sm:$0xff]  ;;  %v3833_v33 = vld [vmem:[%s9477_s1 + $0x18] sm:$0xff]  ;;  %v3836_v41 = vld [vmem:[%s9477_s1 + $0x30] sm:$0xff] }
0x11e3   : > { %4599 = vrot.lane.b32.xlu1 %v8911_v1, %s9466_s11  ;;  %4573 = vrot.lane.b32.xlu0 %v8905_v58, %s7753_s18  ;;  %s7756_s11 = smov 114   ;;  %v3835_v18 = vld [vmem:[%s9477_s1 + $0x28] sm:$0xff]  ;;  %v3837_v43 = vld [vmem:[%s9477_s1 + $0x38] sm:$0xff] }
0x11e7   : > { %4605 = vrot.lane.b32.xlu1 %v8887_v51, %s7754_s22  ;;  %4575 = vrot.lane.b32.xlu0 %v8911_v1, %s7753_s18 }
0x11eb   : > { %4607 = vrot.lane.b32.xlu1 %v8891_v59, %s7754_s22  ;;  %4581 = vrot.lane.b32.xlu0 %v8887_v51, %s7755_s7 }
0x11ef   : > { %4609 = vrot.lane.b32.xlu1 %v8905_v58, %s7754_s22  ;;  %4583 = vrot.lane.b32.xlu0 %v8891_v59, %s7755_s7 }
0x11f3   : > { %4611 = vrot.lane.b32.xlu1 %v8911_v1, %s7754_s22  ;;  %4585 = vrot.lane.b32.xlu0 %v8905_v58, %s7755_s7 }
0x11f7   : > { %4617 = vrot.lane.b32.xlu1 %v8887_v51, %s7756_s11  ;;  %4587 = vrot.lane.b32.xlu0 %v8911_v1, %s7755_s7 }
0x11fb   : > { %4621 = vrot.lane.b32.xlu1 %v8905_v58, %s7756_s11  ;;  %4619 = vrot.lane.b32.xlu0 %v8891_v59, %s7756_s11 }
0x11ff   : > { %4631 = vperm.xlu1 %7527, %v3814_v39   ;;  %4623 = vrot.lane.b32.xlu0 %v8911_v1, %s7756_s11  ;;  %v7578_v39 = vld [vmem:[%s9475_s10 + $0x38] ss:$20 sps:$4 sm:$0xff]  }
0x1203   : > { %4641 = vperm.xlu1 %7527, %v3816_v7   ;;  %4636 = vperm.xlu0 %7526, %v3815_v12   ;;  %v7579_v7 = vld [vmem:[%s9475_s10 + $0x60] ss:$20 sps:$4 sm:$0xff]   ;;  %v7580_v12 = vld [vmem:[%s9475_s10 + $0x88] ss:$20 sps:$4 sm:$0xff]  }
0x1207   : > { %4651 = vperm.xlu1 %7527, %v3818_v6   ;;  %4646 = vperm.xlu0 %7526, %v3817_v8  }
0x120b   : > { %4661 = vperm.xlu1 %7527, %v3820_v9   ;;  %4656 = vperm.xlu0 %7526, %v3819_v13  }
0x120f   : > { %4317 = vperm.xlu1 %7527, %v3830_v14   ;;  %4666 = vperm.xlu0 %7526, %v3821_v22  }
0x1213   : > { %4327 = vperm.xlu1 %7527, %v3832_v24   ;;  %4322 = vperm.xlu0 %7526, %v3831_v35  }
0x1217   : > { %4337 = vperm.xlu1 %7527, %v3834_v36   ;;  %4332 = vperm.xlu0 %7526, %v3833_v33  }
0x121b   : > { %4347 = vperm.xlu1 %7527, %v3836_v41   ;;  %4342 = vperm.xlu0 %7526, %v3835_v18  }
0x121f   : > { %4352 = vperm.xlu0 %7526, %v3837_v43  }
0x1229   : > { %v4546_v26 = vpop.permute.xlu1 %4545 }
0x122a   : > { %6852 = vmatprep.subr.bf16.mxu0 %v4546_v26 }
0x122b   : > { %6853 = vmatpush3.bf16.msra.mxu0 %v8887_v51 }
0x122d   : > { %v4548_v32 = vpop.permute.xlu0 %4547  ;;  %v4558_v44 = vpop.permute.xlu1 %4557 }
0x122e   : > { %6854 = vmatprep.subr.bf16.mxu0 %v4548_v32 }
0x122f   : > { %6855 = vmatpush3.bf16.msra.mxu0 %v8891_v59  ;;  %v7562_v59 = vld [vmem:[%s9475_s10 + $0x7c] ss:$20 sps:$4 sm:$0xff]  }
0x1231   : > { %v4534_v29 = vpop.permute.xlu0 %4533 }
0x1239   : > { %v4550_v45 = vpop.permute.xlu1 %4549 }
0x123a   : > { %6856 = vmatprep.subr.bf16.mxu0 %v4550_v45 }
0x123b   : > { %6857 = vmatpush3.bf16.msra.mxu0 %v8905_v58 }
0x123d   : > { %v4560_v21 = vpop.permute.xlu1 %4559  ;;  %v4552_v31 = vpop.permute.xlu0 %4551 }
0x123e   : > { %6858 = vmatprep.subr.bf16.mxu0 %v4552_v31 }
0x123f   : > { %6859 = vmatpush3.bf16.msra.mxu0 %v8911_v1 }
0x1240   : > { %6860 = vmatprep.subr.bf16.mxu0 %v4558_v44 }
0x1241   : > { %v4594_v34 = vpop.permute.xlu1 %4593  ;;  %v4536_v4 = vpop.permute.xlu0 %4535 }
0x1242   : > { %7278 = vmatprep.subr.bf16.mxu1 %v4594_v34 }
0x1243   : > { %6861 = vmatpush3.bf16.msra.mxu0 %v4534_v29 }
0x1244   : > { %6862 = vmatprep.subr.bf16.mxu0 %v4560_v21 }
0x1245   : > { %v4596_v27 = vpop.permute.xlu1 %4595  ;;  %v4570_v20 = vpop.permute.xlu0 %4569 }
0x1246   : > { %7286 = vmatpush3.bf16.msra.mxu1 %v4570_v20 }
0x1247   : > { %6863 = vmatpush3.bf16.msra.mxu0 %v4536_v4  ;;  %7279 = vmatprep.subr.bf16.mxu1 %v4596_v27 }
0x1249   : > { %v4562_v38 = vpop.permute.xlu1 %4561  ;;  %v4572_v55 = vpop.permute.xlu0 %4571 }
0x124a   : > { %6864 = vmatprep.subr.bf16.mxu0 %v4562_v38  ;;  %7287 = vmatpush3.bf16.msra.mxu1 %v4572_v55 }
0x124d   : > { %v4564_v30 = vpop.permute.xlu1 %4563  ;;  %v4538_v37 = vpop.permute.xlu0 %4537 }
0x124e   : > { %6865 = vmatpush3.bf16.msra.mxu0 %v4538_v37 }
0x124f   : > { %6866 = vmatprep.subr.bf16.mxu0 %v4564_v30 }
0x1251   : > { %v4598_v60 = vpop.permute.xlu1 %4597  ;;  %v4540_v23 = vpop.permute.xlu0 %4539 }
0x1252   : > { %6867 = vmatpush3.bf16.msra.mxu0 %v4540_v23  ;;  %7280 = vmatprep.subr.bf16.mxu1 %v4598_v60 }
0x1253   : > { %6892 = vmatprep.subr.bf16.mxu0 %v4594_v34 }
0x1255   : > { %v4600_v47 = vpop.permute.xlu1 %4599  ;;  %4815 = vmatmul.mubr.bf16.vlgmr.msra.gmra.mrb[16].mxu0 %v7551_v5  ;;  %v4574_v10 = vpop.permute.xlu0 %4573 }
0x1256   : > { %6893 = vmatpush3.bf16.msra.mxu0 %v4570_v20  ;;  %7288 = vmatpush3.bf16.msra.mxu1 %v4574_v10 }
0x1257   : > { %6894 = vmatprep.subr.bf16.mxu0 %v4596_v27  ;;  %7281 = vmatprep.subr.bf16.mxu1 %v4600_v47 }
0x1258   : > { %4822 = vmatprep.mubr.bf16.mxu0 %v7554_v16 }
0x1259   : > { %v4606_v61 = vpop.permute.xlu1 %4605  ;;  %v4576_v28 = vpop.permute.xlu0 %4575 }
0x125a   : > { %6895 = vmatpush3.bf16.msra.mxu0 %v4572_v55  ;;  %7289 = vmatpush3.bf16.msra.mxu1 %v4576_v28 }
0x125b   : > { %6896 = vmatprep.subr.bf16.mxu0 %v4598_v60  ;;  %7282 = vmatprep.subr.bf16.mxu1 %v4606_v61 }
0x125d   : > { %v4608_v48 = vpop.permute.xlu1 %4607  ;;  %4823 = vmatmul.mubr.bf16.gmra.mrb[20].mxu0 %v7556_v25  ;;  %v4582_v50 = vpop.permute.xlu0 %4581 }
0x125e   : > { %6897 = vmatpush3.bf16.msra.mxu0 %v4574_v10  ;;  %7290 = vmatpush3.bf16.msra.mxu1 %v4582_v50 }
0x125f   : > { %6898 = vmatprep.subr.bf16.mxu0 %v4600_v47  ;;  %7283 = vmatprep.subr.bf16.mxu1 %v4608_v48 }
0x1260   : > { %4830 = vmatprep.mubr.bf16.mxu0 %v7558_v46 }
0x1261   : > { %v4610_v51 = vpop.permute.xlu1 %4609  ;;  %v4584_v56 = vpop.permute.xlu0 %4583 }
0x1262   : > { %6899 = vmatpush3.bf16.msra.mxu0 %v4576_v28  ;;  %7291 = vmatpush3.bf16.msra.mxu1 %v4584_v56 }
0x1263   : > { %6900 = vmatprep.subr.bf16.mxu0 %v4606_v61  ;;  %7284 = vmatprep.subr.bf16.mxu1 %v4610_v51 }
0x1265   : > { %v4612_v49 = vpop.permute.xlu1 %4611  ;;  %4831 = vmatmul.mubr.bf16.gmra.mrb[24].mxu0 %v7560_v57  ;;  %v4586_v52 = vpop.permute.xlu0 %4585 }
0x1266   : > { %6901 = vmatpush3.bf16.msra.mxu0 %v4582_v50  ;;  %7292 = vmatpush3.bf16.msra.mxu1 %v4586_v52 }
0x1267   : > { %6902 = vmatprep.subr.bf16.mxu0 %v4608_v48  ;;  %7285 = vmatprep.subr.bf16.mxu1 %v4612_v49 }
0x1268   : > { %4838 = vmatprep.mubr.bf16.mxu0 %v7562_v59 }
0x1269   : > { %v4618_v54 = vpop.permute.xlu1 %4617  ;;  %v4588_v19 = vpop.permute.xlu0 %4587 }
0x126a   : > { %6903 = vmatpush3.bf16.msra.mxu0 %v4584_v56  ;;  %7293 = vmatpush3.bf16.msra.mxu1 %v4588_v19 }
0x126b   : > { %6904 = vmatprep.subr.bf16.mxu0 %v4610_v51  ;;  %7218 = vmatprep.subr.bf16.mxu1 %v4618_v54 }
0x126d   : > { %4839 = vmatmul.mubr.bf16.gmra.mrb[28].mxu0 %v7567_v63  ;;  %v4620_v58 = vpop.permute.xlu0 %4619  ;;  %4896 = vmatmul.mubr.bf16.vlgmr.msra.gmra.mrb[28].mxu1 %v7564_v40  ;;  %v4622_v1 = vpop.permute.xlu1 %4621 }
0x126e   : > { %6905 = vmatpush3.bf16.msra.mxu0 %v4586_v52  ;;  %7219 = vmatpush3.bf16.msra.mxu1 %v4618_v54 }
0x126f   : > { %6906 = vmatprep.subr.bf16.mxu0 %v4612_v49  ;;  %7220 = vmatprep.subr.bf16.mxu1 %v4620_v58 }
0x1270   : > { %4879 = vmatprep.mubr.bf16.mxu0 %v7570_v53  ;;  %4903 = vmatprep.mubr.bf16.mxu1 %v7571_v42 }
0x1271   : > { %v4624_v15 = vpop.permute.xlu0 %4623 }
0x1272   : > { %6907 = vmatpush3.bf16.msra.mxu0 %v4588_v19  ;;  %7221 = vmatpush3.bf16.msra.mxu1 %v4620_v58 }
0x1273   : > { %7222 = vmatprep.subr.bf16.mxu1 %v4622_v1 }
0x1275   : > { %4880 = vmatmul.mubr.bf16.vlgmr.msra.gmra.mrb[32].mxu0 %v7568_v17  ;;  %4904 = vmatmul.mubr.bf16.gmra.mrb[32].mxu1 %v7573_v0 }
0x1276   : > { %7223 = vmatpush3.bf16.msra.mxu1 %v4622_v1  ;;  %4887 = vmatprep.mubr.bf16.mxu0 %v7574_v2 }
0x1277   : > { %7224 = vmatprep.subr.bf16.mxu1 %v4624_v15  ;;  %7226 = vmatprep.mubr.msk.bf16.mxu1 %vm4769_vm4, %v7576_v3 }
0x127a   : > { %7225 = vmatpush3.bf16.msra.mxu1 %v4624_v15 }
0x127d   : > { %4888 = vmatmul.mubr.bf16.gmra.mrb[36].mxu0 %v7577_v11  ;;  %7227 = vmatmul.mubr.msk.bf16.vlgmr.msra.gmra.mrb[20].mxu1 %vm4769_vm4, %v7578_v39 }
0x127e   : > { %7230 = vmatprep.mubr.msk.bf16.mxu1 %vm4769_vm4, %v7579_v7  ;;  %v4632_v6 = vpop.permute.xlu1 %4631 }
0x1282   : > { %v4637_v8 = vpop.permute.xlu0 %4636  ;;  %v8999_v35 = vpop.permute.xlu1 %4641 }
0x1285   : > { %7231 = vmatmul.mubr.msk.bf16.gmra.mrb[24].mxu1 %vm4769_vm4, %v7580_v12 }
0x1286   : > { %v9001_v33 = vpop.permute.xlu0 %4646  ;;  %v4652_v43 = vpop.permute.xlu1 %4651 }
0x128a   : > { %v4657_v44 = vpop.permute.xlu0 %4656  ;;  %v4662_v21 = vpop.permute.xlu1 %4661 }
0x128e   : > { %v4667_v34 = vpop.permute.xlu0 %4666  ;;  %v4318_v30 = vpop.permute.xlu1 %4317 }
0x1292   : > { %v4323_v37 = vpop.permute.xlu0 %4322  ;;  %v4328_v49 = vpop.permute.xlu1 %4327 }
0x1296   : > { %v4333_v52 = vpop.permute.xlu0 %4332 }
0x1328   : > { %v6868_v9 = vpop.f32.mrb[16].mxu0 }
0x1329   : > { %v6869_v13 = vpop.f32.mrb[17].mxu0 }
0x132a   : > { %v6870_v14 = vadd.f32 %v6869_v13, %v6868_v9  ;;  %v6871_v22 = vpop.f32.mrb[18].mxu0 }
0x132b   : > { %v6872_v24 = vpop.f32.mrb[19].mxu0 }
0x132c   : > { %v6873_v36 = vadd.f32 %v6872_v24, %v6871_v22  ;;  %v4817_v53 = vadd.f32 %v6870_v14, %v4632_v6  ;;  %v4338_v24 = vpop.permute.xlu1 %4337 }
0x132e   : > { %v4820_v2 = vadd.f32 %v6873_v36, %v4637_v8 }
0x1330   : > { %v6874_v41 = vpop.f32.mrb[20].mxu0 }
0x1331   : > { %v6875_v18 = vpop.f32.mrb[21].mxu0 }
0x1332   : > { %v6876_v26 = vadd.f32 %v6875_v18, %v6874_v41  ;;  %v6877_v32 = vpop.f32.mrb[22].mxu0  ;;  %v4343_v41 = vpop.permute.xlu0 %4342 }
0x1333   : > { %v6878_v29 = vpop.f32.mrb[23].mxu0 }
0x1334   : > { %v9003_v45 = vadd.f32 %v6878_v29, %v6877_v32 }
0x1338   : > { %v6880_v31 = vpop.f32.mrb[24].mxu0 }
0x1339   : > { %v6881_v4 = vpop.f32.mrb[25].mxu0 }
0x133a   : > { %v6882_v27 = vadd.f32 %v6881_v4, %v6880_v31  ;;  %v6883_v20 = vpop.f32.mrb[26].mxu0 }
0x133b   : > { %v6884_v38 = vpop.f32.mrb[27].mxu0 }
0x133c   : > { %v6885_v55 = vadd.f32 %v6884_v38, %v6883_v20  ;;  %v4833_v47 = vadd.f32 %v6882_v27, %v4652_v43  ;;  %v4828_v27 = vadd.f32 %v9003_v45, %v9001_v33 }
0x133e   : > { %v4836_v50 = vadd.f32 %v6885_v55, %v4657_v44  ;;  %v4825_v44 = vadd.f32 %v6876_v26, %v8999_v35 }
0x1340   : > { %v6886_v60 = vpop.f32.mrb[28].mxu0  ;;  %v6920_v23 = vpop.f32.mrb[28].mxu1 }
0x1341   : > { %v6887_v5 = vpop.f32.mrb[29].mxu0  ;;  %v6921_v16 = vpop.f32.mrb[29].mxu1 }
0x1342   : > { %v6888_v10 = vadd.f32 %v6887_v5, %v6886_v60  ;;  %v6922_v61 = vadd.f32 %v6921_v16, %v6920_v23  ;;  %v6889_v28 = vpop.f32.mrb[30].mxu0  ;;  %v6923_v25 = vpop.f32.mrb[30].mxu1 }
0x1343   : > { %v6890_v46 = vpop.f32.mrb[31].mxu0  ;;  %v6924_v48 = vpop.f32.mrb[31].mxu1 }
0x1344   : > { %v4898_v51 = vadd.f32 %v6922_v61, %v4833_v47  ;;  %v6891_v56 = vadd.f32 %v6890_v46, %v6889_v28  ;;  %v6925_v57 = vadd.f32 %v6924_v48, %v6923_v25  ;;  %v4841_v42 = vadd.f32 %v6888_v10, %v4662_v21  ;;  %v4348_v60 = vpop.permute.xlu1 %4347  ;;  %v4353_v16 = vpop.permute.xlu0 %4352 }
0x1346   : > { %v4901_v59 = vadd.f32 %v6925_v57, %v4836_v50  ;;  %v4844_v3 = vadd.f32 %v6891_v56, %v4667_v34  ;;  %v7304_v26 = vadd.f32 %v4898_v51, %v4338_v24 }
0x1348   : > { %v6908_v54 = vpop.f32.mrb[32].mxu0  ;;  %v6926_v19 = vpop.f32.mrb[32].mxu1  ;;  %v7308_v48 = vadd.f32 %v4901_v59, %v4343_v41 }
0x1349   : > { %v6909_v40 = vpop.f32.mrb[33].mxu0  ;;  %v6927_v63 = vpop.f32.mrb[33].mxu1 }
0x134a   : > { %v6910_v58 = vadd.f32 %v6909_v40, %v6908_v54  ;;  %v6928_v17 = vadd.f32 %v6927_v63, %v6926_v19  ;;  %v6911_v0 = vpop.f32.mrb[34].mxu0  ;;  %v6929_v1 = vpop.f32.mrb[34].mxu1 }
0x134b   : > { %v6912_v15 = vpop.f32.mrb[35].mxu0  ;;  %v6930_v11 = vpop.f32.mrb[35].mxu1 }
0x134c   : > { %v4882_v39 = vadd.f32 %v6910_v58, %v4817_v53  ;;  %v4906_v7 = vadd.f32 %v6928_v17, %v4841_v42  ;;  %v6913_v12 = vadd.f32 %v6912_v15, %v6911_v0  ;;  %v6931_v9 = vadd.f32 %v6930_v11, %v6929_v1 }
0x134e   : > { %v4885_v13 = vadd.f32 %v6913_v12, %v4820_v2  ;;  %v4909_v22 = vadd.f32 %v6931_v9, %v4844_v3  ;;  %v7296_v6 = vadd.f32 %v4882_v39, %v4318_v30  ;;  %v7302_v5 = vadd.f32 %v4906_v7, %v4348_v60 }
0x1350   : > { %v6914_v18 = vpop.f32.mrb[36].mxu0  ;;  %v7228_v43 = vpop.f32.mrb[20].mxu1  ;;  %v7300_v31 = vadd.f32 %v4885_v13, %v4323_v37  ;;  %v7306_v37 = vadd.f32 %v4909_v22, %v4353_v16 }
0x1351   : > { %v6915_v14 = vpop.f32.mrb[37].mxu0  ;;  %v4946_v32 = vpop.f32.mrb[21].mxu1 }
0x1352   : > { %v6916_v29 = vadd.f32 %v6915_v14, %v6914_v18  ;;  %v7297_v8 = vadd.f32 %v7296_v6, %v4946_v32  ;;  %v6917_v36 = vpop.f32.mrb[38].mxu0  ;;  %v7229_v21 = vpop.f32.mrb[22].mxu1 }
0x1353   : > { %v6918_v34 = vpop.f32.mrb[39].mxu0  ;;  %v4949_v4 = vpop.f32.mrb[23].mxu1 }
0x1354   : > { %v4890_v20 = vadd.f32 %v6916_v29, %v4825_v44  ;;  %v6919_v38 = vadd.f32 %v6918_v34, %v6917_v36  ;;  %v7301_v55 = vadd.f32 %v7300_v31, %v4949_v4  ;;  %v4985_v54 = vmax.f32 %v7297_v8, 0.0 }
0x1356   : > { %v7294_v23 = vadd.f32 %v4890_v20, %v4328_v49  ;;  %v4893_v30 = vadd.f32 %v6919_v38, %v4828_v27  ;;  %v4986_v40 = vmax.f32 %v7301_v55, 0.0  ;;  %v4999_v51 = vmul.f32 %v8217_v62, %v4985_v54 }
0x1358   : > { %v7298_v47 = vadd.f32 %v4893_v30, %v4333_v52  ;;  %v7232_v35 = vpop.f32.mrb[24].mxu1  ;;  %v7295_v10 = vadd.f32 %v7294_v23, %v7228_v43  ;;  %v5000_v59 = vmul.f32 %v8217_v62, %v4986_v40 }
0x1359   : > { %v7303_v61 = vadd.f32 %v7302_v5, %v7232_v35  ;;  %v4962_v28 = vpop.f32.mrb[25].mxu1 }
0x135a   : > { %v7305_v25 = vadd.f32 %v7304_v26, %v4962_v28  ;;  %v7233_v46 = vpop.f32.mrb[26].mxu1  ;;  %v7299_v50 = vadd.f32 %v7298_v47, %v7229_v21  ;;  %v4987_v63 = vmax.f32 %v7295_v10, 0.0 }
0x135b   : > { %v7307_v33 = vadd.f32 %v7306_v37, %v7233_v46  ;;  %v4965_v45 = vpop.f32.mrb[27].mxu1  ;;  %v4991_v42 = vmax.f32 %v7303_v61, 0.0 }
0x135c   : > { %v4989_v56 = vmax.f32 %v7305_v25, 0.0  ;;  %v7309_v57 = vadd.f32 %v7308_v48, %v4965_v45  ;;  %v4988_v53 = vmax.f32 %v7299_v50, 0.0  ;;  %v5001_v58 = vmul.f32 %v8217_v62, %v4987_v63 }
0x135d   : > { %v4992_v17 = vmax.f32 %v7307_v33, 0.0  ;;  %v5005_v1 = vmul.f32 %v8217_v62, %v4991_v42 }
0x135e   : > { %v5003_v49 = vmul.f32 %v8217_v62, %v4989_v56  ;;  %v4990_v19 = vmax.f32 %v7309_v57, 0.0  ;;  %v5002_v0 = vmul.f32 %v8217_v62, %v4988_v53 }
0x135f   : > { %v5006_v2 = vmul.f32 %v8217_v62, %v4992_v17 }
0x1360   : > { %v5004_v52 = vmul.f32 %v8217_v62, %v4990_v19  ;;  %5047 = vrot.lane.b32.xlu1 %v5003_v49, %s7751_s0 }
0x1362   : > { %5049 = vrot.lane.b32.xlu0 %v5004_v52, %s7751_s0 }
0x1364   : > { %5039 = vrot.lane.b32.xlu1 %v4999_v51, %s7751_s0 }
0x1366   : > { %5041 = vrot.lane.b32.xlu0 %v5000_v59, %s7751_s0 }
0x1368   : > { %5043 = vrot.lane.b32.xlu1 %v5001_v58, %s7751_s0 }
0x136a   : > { %5045 = vrot.lane.b32.xlu0 %v5002_v0, %s7751_s0 }
0x136c   : > { %5051 = vrot.lane.b32.xlu1 %v5005_v1, %s7751_s0 }
0x136e   : > { %5053 = vrot.lane.b32.xlu0 %v5006_v2, %s7751_s0  ;;  %s9032_s0 = smov 0  }
0x13d2   : > { %v5048_v3 = vpop.permute.xlu1 %5047 }
0x13d3   : > { %5067 = vst.msk [vmem:[#allocation2 + $0x60] sm:$0xff] %vm4508_vm3, %v5048_v3 }
0x13d4   : > { %v5050_v15 = vpop.permute.xlu0 %5049 }
0x13d5   : > { %5068 = vst.msk [vmem:[#allocation2 + $0x78] sm:$0xff] %vm4508_vm3, %v5050_v15 }
0x13d6   : > { %v5040_v11 = vpop.permute.xlu1 %5039 }
0x13d7   : > { %5063 = vst.msk [vmem:[#allocation2] sm:$0xff] %vm4508_vm3, %v5040_v11 }
0x13d8   : > { %v5042_v39 = vpop.permute.xlu0 %5041 }
0x13d9   : > { %5064 = vst.msk [vmem:[#allocation2 + $0x18] sm:$0xff] %vm4508_vm3, %v5042_v39 }
0x13da   : > { %v5044_v7 = vpop.permute.xlu1 %5043 }
0x13db   : > { %5065 = vst.msk [vmem:[#allocation2 + $0x30] sm:$0xff] %vm4508_vm3, %v5044_v7 }
0x13dc   : > { %v5046_v12 = vpop.permute.xlu0 %5045 }
0x13dd   : > { %5066 = vst.msk [vmem:[#allocation2 + $0x48] sm:$0xff] %vm4508_vm3, %v5046_v12 }
0x13de   : > { %v5052_v9 = vpop.permute.xlu1 %5051 }
0x13df   : > { %5069 = vst.msk [vmem:[#allocation2 + $0x90] sm:$0xff] %vm4508_vm3, %v5052_v9 }
0x13e0   : > { %v5054_v13 = vpop.permute.xlu0 %5053 }
0x13e1   : > { %5070 = vst.msk [vmem:[#allocation2 + $0xa8] sm:$0xff] %vm4508_vm3, %v5054_v13 }
0x13e2 LB: >> { %v5104_v22 = vld [vmem:[#allocation2] sm:$0xff]  ;;  %v5105_v24 = vld [vmem:[#allocation2 + $0x18] sm:$0xff]  ;;  %v5106_v6 = vld [vmem:[#allocation2 + $0x30] sm:$0xff]  ;;  %s9400_s18 = smov 126   ;;  %s9478_s22 = sld [smem:[#allocation18_spill]]  ;;  %v7765_v34 = vmov 0   ;;  %s7669_s0 = sphi %s9032_s0, %s5076_s0  }
0x13e3   : >> { %v5108_v41 = vld [vmem:[#allocation2 + $0x60] sm:$0xff]  ;;  %v9037_v18 = vpack.c.bf16 %v5105_v24, %v5104_v22  ;;  %v5109_v43 = vld [vmem:[#allocation2 + $0x78] sm:$0xff]  ;;  %s9419_s7 = smov 122   ;;  %s9404_s11 = smov 116   ;;  %7582 = vset.pattern.permute.xlu1 %v7765_v34  ;;  %7581 = vset.pattern.permute.xlu0 %v7765_v34 }
0x13e4   : >> { %v5107_v14 = vld [vmem:[#allocation2 + $0x48] sm:$0xff]  ;;  %v9039_v32 = vpack.c.bf16 %v5109_v43, %v5108_v41  ;;  %s9406_s1 = smov 127   ;;  %s9408_s2 = smov 121  }
0x13e5   : >> { %5132 = vrot.lane.b32.xlu0 %v9037_v18, %s9400_s18  ;;  %v9043_v8 = vpack.c.bf16 %v5107_v14, %v5106_v6  ;;  %s9486_s4 = smov 122  }
0x13e6   : >> { %v5110_v44 = vld [vmem:[#allocation2 + $0x90] sm:$0xff]  ;;  %5136 = vrot.lane.b32.xlu1 %v9039_v32, %s9400_s18 }
0x13e8   : >> { %v5111_v29 = vld [vmem:[#allocation2 + $0xa8] sm:$0xff] }
0x13e9   : >> { %v9047_v36 = vpack.c.bf16 %v5111_v29, %v5110_v44  ;;  %5134 = vrot.lane.b32.xlu0 %v9043_v8, %s9400_s18 }
0x13eb   : >> { %5138 = vrot.lane.b32.xlu1 %v9047_v36, %s9400_s18  ;;  %s9403_s18 = smul.u32 160, %s7669_s0 }
0x13ed   : >> { %5144 = vrot.lane.b32.xlu0 %v9037_v18, %s9419_s7  ;;  %s9073_s3 = scalar_lea.vmem %s9478_s22, %s9403_s18  ;;  %s9410_s22 = smov 115  }
0x13ee   : >> { %v7585_v21 = vld [vmem:[%s9073_s3 + $0x4] ss:$20 sps:$4 sm:$0xff]   ;;  %v7593_v31 = vld [vmem:[%s9073_s3 + $0xc] ss:$20 sps:$4 sm:$0xff]   ;;  %s9417_s18 = smov 120  }
0x13ef   : >> { %5180 = vrot.lane.b32.xlu1 %v9037_v18, %s9404_s11  ;;  %5410 = vmatprep.mubr.bf16.mxu0 %v7585_v21  ;;  %v7583_v19 = vld [vmem:[%s9073_s3] ss:$20 sps:$4 sm:$0xff]   ;;  %v7588_v53 = vld [vmem:[%s9073_s3 + $0x28] ss:$20 sps:$4 sm:$0xff]   ;;  %v7594_v2 = vld [vmem:[%s9073_s3 + $0x50] ss:$20 sps:$4 sm:$0xff]  }
0x13f0   : >> { %5475 = vmatprep.mubr.bf16.mxu1 %v7593_v31  ;;  %v7586_v52 = vld [vmem:[%s9073_s3 + $0x2c] ss:$20 sps:$4 sm:$0xff]   ;;  %v7589_v58 = vld [vmem:[%s9073_s3 + $0x54] ss:$20 sps:$4 sm:$0xff]   ;;  %v7595_v11 = vld [vmem:[%s9073_s3 + $0x7c] ss:$20 sps:$4 sm:$0xff]  }
0x13f1   : >> { %5120 = vrot.lane.b32.xlu0 %v9037_v18, %s9406_s1  ;;  %v7591_v15 = vld [vmem:[%s9073_s3 + $0x8] ss:$20 sps:$4 sm:$0xff]   ;;  %v7599_v13 = vld [vmem:[%s9073_s3 + $0x78] ss:$20 sps:$4 sm:$0xff]   ;;  %v7600_v22 = vld [vmem:[%s9073_s3 + $0x30] ss:$20 sps:$4 sm:$0xff]  }
0x13f2   : >> { %v7597_v39 = vld [vmem:[%s9073_s3 + $0x34] ss:$20 sps:$4 sm:$0xff]   ;;  %v7603_v24 = vld [vmem:[%s9073_s3 + $0x10] ss:$20 sps:$4 sm:$0xff]   ;;  %v7604_v43 = vld [vmem:[%s9073_s3 + $0x58] ss:$20 sps:$4 sm:$0xff]  }
0x13f3   : >> { %5156 = vrot.lane.b32.xlu1 %v9037_v18, %s9408_s2  ;;  %v7601_v41 = vld [vmem:[%s9073_s3 + $0x5c] ss:$20 sps:$4 sm:$0xff]   ;;  %v7605_v6 = vld [vmem:[%s9073_s3 + $0x38] ss:$20 sps:$4 sm:$0xff]   ;;  %v7609_v44 = vld [vmem:[%s9073_s3 + $0x80] ss:$20 sps:$4 sm:$0xff]  }
0x13f4   : >> { %v7606_v14 = vld [vmem:[%s9073_s3 + $0x84] ss:$20 sps:$4 sm:$0xff]   ;;  %v7610_v29 = vld [vmem:[%s9073_s3 + $0x88] ss:$20 sps:$4 sm:$0xff]  }
0x13f5   : >> { %5146 = vrot.lane.b32.xlu0 %v9043_v8, %s9419_s7 }
0x13f7   : >> { %5182 = vrot.lane.b32.xlu1 %v9043_v8, %s9404_s11 }
0x13f9   : >> { %5122 = vrot.lane.b32.xlu0 %v9043_v8, %s9406_s1 }
0x13fb   : >> { %5158 = vrot.lane.b32.xlu1 %v9043_v8, %s9408_s2 }
0x13fd   : >> { %5148 = vrot.lane.b32.xlu0 %v9039_v32, %s9419_s7 }
0x13ff   : >> { %5184 = vrot.lane.b32.xlu1 %v9039_v32, %s9404_s11 }
0x1401   : >> { %5124 = vrot.lane.b32.xlu0 %v9039_v32, %s9406_s1 }
0x1403   : >> { %5160 = vrot.lane.b32.xlu1 %v9039_v32, %s9408_s2 }
0x1405   : >> { %5150 = vrot.lane.b32.xlu0 %v9047_v36, %s9419_s7 }
0x1407   : >> { %5186 = vrot.lane.b32.xlu1 %v9047_v36, %s9404_s11  ;;  %s9479_s11 = sld [smem:[#allocation19_spill]] }
0x1409   : >> { %5126 = vrot.lane.b32.xlu0 %v9047_v36, %s9406_s1  ;;  %s9415_s1 = smov 114  }
0x140b   : >> { %5162 = vrot.lane.b32.xlu1 %v9047_v36, %s9408_s2  ;;  %s9414_s2 = sshll.u32 %s7669_s0, 6 }
0x140d   : >> { %5192 = vrot.lane.b32.xlu0 %v9037_v18, %s9410_s22 }
0x140f   : >> { %5168 = vrot.lane.b32.xlu1 %v9037_v18, %s9417_s18 }
0x1411   : >> { %5194 = vrot.lane.b32.xlu0 %v9043_v8, %s9410_s22 }
0x1413   : >> { %5170 = vrot.lane.b32.xlu1 %v9043_v8, %s9417_s18 }
0x1415   : >> { %5196 = vrot.lane.b32.xlu0 %v9039_v32, %s9410_s22 }
0x1417   : >> { %5172 = vrot.lane.b32.xlu1 %v9039_v32, %s9417_s18 }
0x1419   : >> { %5198 = vrot.lane.b32.xlu0 %v9047_v36, %s9410_s22  ;;  %s5217_s22 = scalar_lea.vmem %s9479_s11, %s9414_s2  ;;  %s9480_s11 = smov 126  }
0x141a   : >> { %v5219_v4 = vld [vmem:[%s5217_s22 + $0x8] sm:$0xff]  ;;  %v5218_v27 = vld [vmem:[%s5217_s22] sm:$0xff]  ;;  %v5220_v20 = vld [vmem:[%s5217_s22 + $0x10] sm:$0xff]  ;;  %s9483_s2 = sld [smem:[#allocation20_spill]] }
0x141b   : >> { %5174 = vrot.lane.b32.xlu1 %v9047_v36, %s9417_s18  ;;  %v5221_v38 = vld [vmem:[%s5217_s22 + $0x18] sm:$0xff]  ;;  %v5222_v55 = vld [vmem:[%s5217_s22 + $0x20] sm:$0xff]  ;;  %v5223_v60 = vld [vmem:[%s5217_s22 + $0x28] sm:$0xff]  ;;  %s9485_s18 = smul.u32 160, %s7669_s0 }
0x141c   : >> { %v5224_v23 = vld [vmem:[%s5217_s22 + $0x30] sm:$0xff]  ;;  %v5225_v30 = vld [vmem:[%s5217_s22 + $0x38] sm:$0xff]  ;;  %s9481_s22 = smov 116  }
0x141d   : >> { %5204 = vrot.lane.b32.xlu0 %v9037_v18, %s9415_s1 }
0x141f   : >> { %5206 = vrot.lane.b32.xlu1 %v9043_v8, %s9415_s1 }
0x1421   : >> { %5208 = vrot.lane.b32.xlu0 %v9039_v32, %s9415_s1 }
0x1423   : >> { %5210 = vrot.lane.b32.xlu1 %v9047_v36, %s9415_s1  ;;  %s9484_s1 = smov 127  }
0x1425   : >> { %5228 = vperm.xlu0 %7581, %v5218_v27  }
0x1427   : >> { %5233 = vperm.xlu1 %7582, %v5219_v4  }
0x1429   : >> { %5243 = vperm.xlu0 %7581, %v5221_v38  }
0x142b   : >> { %5238 = vperm.xlu1 %7582, %v5220_v20  }
0x142d   : >> { %5253 = vperm.xlu0 %7581, %v5223_v60  }
0x142f   : >> { %5248 = vperm.xlu1 %7582, %v5222_v55  }
0x1431   : >> { %5263 = vperm.xlu0 %7581, %v5225_v30  }
0x1433   : >> { %5258 = vperm.xlu1 %7582, %v5224_v23  }
0x1457   : >> { %v5133_v5 = vpop.permute.xlu0 %5132 }
0x1458   : >> { %v5137_v16 = vpop.permute.xlu1 %5136  ;;  %6940 = vmatprep.subr.bf16.mxu0 %v5133_v5 }
0x1459   : >> { %6941 = vmatpush3.bf16.msra.mxu0 %v9037_v18 }
0x145b   : >> { %v5135_v47 = vpop.permute.xlu0 %5134 }
0x145c   : >> { %6942 = vmatprep.subr.bf16.mxu0 %v5135_v47 }
0x145d   : >> { %v5139_v35 = vpop.permute.xlu1 %5138  ;;  %6943 = vmatpush3.bf16.msra.mxu0 %v9043_v8 }
0x145e   : >> { %6944 = vmatprep.subr.bf16.mxu0 %v5137_v16 }
0x145f   : >> { %v5145_v26 = vpop.permute.xlu0 %5144 }
0x1461   : >> { %v5181_v10 = vpop.permute.xlu1 %5180  ;;  %6945 = vmatpush3.bf16.msra.mxu0 %v9039_v32  ;;  %v7608_v32 = vld [vmem:[%s9073_s3 + $0x60] ss:$20 sps:$4 sm:$0xff]   ;;  %s9412_s3 = smov 7  }
0x1462   : >> { %6980 = vmatprep.subr.bf16.mxu1 %v5181_v10  ;;  %6946 = vmatprep.subr.bf16.mxu0 %v5139_v35 }
0x1463   : >> { %v5121_v61 = vpop.permute.xlu0 %5120 }
0x1465   : >> { %v5157_v28 = vpop.permute.xlu1 %5156  ;;  %6947 = vmatpush3.bf16.msra.mxu0 %v9047_v36 }
0x1466   : >> { %6981 = vmatpush3.bf16.msra.mxu1 %v5157_v28  ;;  %6948 = vmatprep.subr.bf16.mxu0 %v5145_v26 }
0x1467   : >> { %v5147_v37 = vpop.permute.xlu0 %5146 }
0x1469   : >> { %v5183_v25 = vpop.permute.xlu1 %5182  ;;  %6949 = vmatpush3.bf16.msra.mxu0 %v5121_v61 }
0x146a   : >> { %6982 = vmatprep.subr.bf16.mxu1 %v5183_v25  ;;  %6950 = vmatprep.subr.bf16.mxu0 %v5147_v37 }
0x146b   : >> { %v5123_v46 = vpop.permute.xlu0 %5122 }
0x146d   : >> { %v5159_v48 = vpop.permute.xlu1 %5158  ;;  %6951 = vmatpush3.bf16.msra.mxu0 %v5123_v46 }
0x146e   : >> { %6983 = vmatpush3.bf16.msra.mxu1 %v5159_v48 }
0x146f   : >> { %v5149_v50 = vpop.permute.xlu0 %5148 }
0x1470   : >> { %6952 = vmatprep.subr.bf16.mxu0 %v5149_v50 }
0x1471   : >> { %v5185_v33 = vpop.permute.xlu1 %5184 }
0x1472   : >> { %6984 = vmatprep.subr.bf16.mxu1 %v5185_v33 }
0x1473   : >> { %v5125_v45 = vpop.permute.xlu0 %5124 }
0x1474   : >> { %6953 = vmatpush3.bf16.msra.mxu0 %v5125_v45 }
0x1475   : >> { %v5161_v56 = vpop.permute.xlu1 %5160 }
0x1476   : >> { %6985 = vmatpush3.bf16.msra.mxu1 %v5161_v56 }
0x1477   : >> { %v5151_v57 = vpop.permute.xlu0 %5150 }
0x1478   : >> { %6954 = vmatprep.subr.bf16.mxu0 %v5151_v57 }
0x1479   : >> { %v5187_v54 = vpop.permute.xlu1 %5186 }
0x147a   : >> { %6986 = vmatprep.subr.bf16.mxu1 %v5187_v54 }
0x147b   : >> { %v5127_v49 = vpop.permute.xlu0 %5126 }
0x147c   : >> { %6955 = vmatpush3.bf16.msra.mxu0 %v5127_v49 }
0x147d   : >> { %v5163_v40 = vpop.permute.xlu1 %5162 }
0x147e   : >> { %6987 = vmatpush3.bf16.msra.mxu1 %v5163_v40 }
0x147f   : >> { %v5193_v51 = vpop.permute.xlu0 %5192  ;;  %5411 = vmatmul.mubr.bf16.vlgmr.msra.gmra.mrb[0].mxu0 %v7583_v19 }
0x1480   : >> { %6988 = vmatprep.subr.bf16.mxu1 %v5193_v51  ;;  %5418 = vmatprep.mubr.bf16.mxu0 %v7586_v52 }
0x1481   : >> { %v5169_v63 = vpop.permute.xlu1 %5168 }
0x1482   : >> { %6989 = vmatpush3.bf16.msra.mxu1 %v5169_v63 }
0x1483   : >> { %v5195_v59 = vpop.permute.xlu0 %5194 }
0x1484   : >> { %6990 = vmatprep.subr.bf16.mxu1 %v5195_v59 }
0x1485   : >> { %v5171_v42 = vpop.permute.xlu1 %5170 }
0x1486   : >> { %6991 = vmatpush3.bf16.msra.mxu1 %v5171_v42 }
0x1487   : >> { %v5197_v17 = vpop.permute.xlu0 %5196  ;;  %5419 = vmatmul.mubr.bf16.gmra.mrb[4].mxu0 %v7588_v53 }
0x1488   : >> { %6992 = vmatprep.subr.bf16.mxu1 %v5197_v17  ;;  %5426 = vmatprep.mubr.bf16.mxu0 %v7589_v58 }
0x1489   : >> { %v5173_v0 = vpop.permute.xlu1 %5172 }
0x148a   : >> { %6993 = vmatpush3.bf16.msra.mxu1 %v5173_v0 }
0x148b   : >> { %v5199_v1 = vpop.permute.xlu0 %5198 }
0x148c   : >> { %6994 = vmatprep.subr.bf16.mxu1 %v5199_v1 }
0x148d   : >> { %v5175_v3 = vpop.permute.xlu1 %5174 }
0x148e   : >> { %6995 = vmatpush3.bf16.msra.mxu1 %v5175_v3 }
0x148f   : >> { %v5205_v7 = vpop.permute.xlu0 %5204  ;;  %5427 = vmatmul.mubr.bf16.gmra.mrb[8].mxu0 %v7594_v2 }
0x1490   : >> { %7234 = vmatprep.subr.bf16.mxu0 %v5205_v7  ;;  %5434 = vmatprep.mubr.bf16.mxu0 %v7595_v11 }
0x1491   : >> { %5476 = vmatmul.mubr.bf16.vlgmr.msra.gmra.mrb[0].mxu1 %v7591_v15  ;;  %v5207_v12 = vpop.permute.xlu1 %5206  ;;  %7235 = vmatpush3.bf16.msra.mxu0 %v5205_v7 }
0x1492   : >> { %7236 = vmatprep.subr.bf16.mxu0 %v5207_v12  ;;  %5483 = vmatprep.mubr.bf16.mxu1 %v7597_v39 }
0x1493   : >> { %v5209_v9 = vpop.permute.xlu0 %5208 }
0x1495   : >> { %7237 = vmatpush3.bf16.msra.mxu0 %v5207_v12  ;;  %v5211_v18 = vpop.permute.xlu1 %5210 }
0x1496   : >> { %7238 = vmatprep.subr.bf16.mxu0 %v5209_v9 }
0x1497   : >> { %5435 = vmatmul.mubr.bf16.gmra.mrb[12].mxu0 %v7599_v13 }
0x1498   : >> { %7242 = vmatprep.mubr.msk.bf16.mxu0 %vm4769_vm4, %v7603_v24 }
0x1499   : >> { %5484 = vmatmul.mubr.bf16.gmra.mrb[4].mxu1 %v7600_v22  ;;  %7239 = vmatpush3.bf16.msra.mxu0 %v5209_v9 }
0x149a   : >> { %5491 = vmatprep.mubr.bf16.mxu1 %v7601_v41  ;;  %7240 = vmatprep.subr.bf16.mxu0 %v5211_v18 }
0x149d   : >> { %7241 = vmatpush3.bf16.msra.mxu0 %v5211_v18 }
0x14a0   : >> { %7243 = vmatmul.mubr.msk.bf16.vlgmr.msra.gmra.mrb[16].mxu0 %vm4769_vm4, %v7605_v6 }
0x14a1   : >> { %5492 = vmatmul.mubr.bf16.gmra.mrb[8].mxu1 %v7604_v43  ;;  %7246 = vmatprep.mubr.msk.bf16.mxu0 %vm4769_vm4, %v7608_v32 }
0x14a2   : >> { %5499 = vmatprep.mubr.bf16.mxu1 %v7606_v14 }
0x14a4   : >> { %v5229_v30 = vpop.permute.xlu0 %5228 }
0x14a6   : >> { %v5234_v5 = vpop.permute.xlu1 %5233 }
0x14a8   : >> { %7247 = vmatmul.mubr.msk.bf16.gmra.mrb[20].mxu0 %vm4769_vm4, %v7610_v29  ;;  %v5244_v49 = vpop.permute.xlu0 %5243 }
0x14a9   : >> { %5500 = vmatmul.mubr.bf16.gmra.mrb[12].mxu1 %v7609_v44 }
0x14aa   : >> { %v5239_v57 = vpop.permute.xlu1 %5238 }
0x14ac   : >> { %v5254_v7 = vpop.permute.xlu0 %5253 }
0x14ae   : >> { %v5249_v39 = vpop.permute.xlu1 %5248 }
0x1552   : >> { %v6956_v8 = vpop.f32.mrb[0].mxu0 }
0x1553   : >> { %v6957_v36 = vpop.f32.mrb[1].mxu0 }
0x1554   : >> { %v6958_v21 = vadd.f32 %v6957_v36, %v6956_v8  ;;  %v6959_v31 = vpop.f32.mrb[2].mxu0 }
0x1555   : >> { %v6960_v34 = vpop.f32.mrb[3].mxu0 }
0x1556   : >> { %v6961_v4 = vadd.f32 %v6960_v34, %v6959_v31  ;;  %v5413_v28 = vadd.f32 %v6958_v21, %v5229_v30 }
0x1558   : >> { %v5416_v33 = vadd.f32 %v6961_v4, %v5234_v5 }
0x155a   : >> { %v6962_v27 = vpop.f32.mrb[4].mxu0 }
0x155b   : >> { %v6963_v20 = vpop.f32.mrb[5].mxu0 }
0x155c   : >> { %v6964_v38 = vadd.f32 %v6963_v20, %v6962_v27  ;;  %v6965_v55 = vpop.f32.mrb[6].mxu0 }
0x155d   : >> { %v6966_v60 = vpop.f32.mrb[7].mxu0 }
0x155e   : >> { %v6967_v23 = vadd.f32 %v6966_v60, %v6965_v55  ;;  %v5421_v53 = vadd.f32 %v6964_v38, %v5239_v57  ;;  %v5259_v55 = vpop.permute.xlu1 %5258  ;;  %v5264_v60 = vpop.permute.xlu0 %5263 }
0x1560   : >> { %v5424_v2 = vadd.f32 %v6967_v23, %v5244_v49 }
0x1562   : >> { %v6968_v16 = vpop.f32.mrb[8].mxu0 }
0x1563   : >> { %v6969_v35 = vpop.f32.mrb[9].mxu0 }
0x1564   : >> { %v6996_v47 = vpop.f32.mrb[0].mxu1  ;;  %v6970_v10 = vadd.f32 %v6969_v35, %v6968_v16  ;;  %v6971_v61 = vpop.f32.mrb[10].mxu0 }
0x1565   : >> { %v6997_v26 = vpop.f32.mrb[1].mxu1  ;;  %v6972_v46 = vpop.f32.mrb[11].mxu0 }
0x1566   : >> { %v6998_v37 = vadd.f32 %v6997_v26, %v6996_v47  ;;  %v6999_v25 = vpop.f32.mrb[2].mxu1  ;;  %v6973_v50 = vadd.f32 %v6972_v46, %v6971_v61  ;;  %v5429_v41 = vadd.f32 %v6970_v10, %v5249_v39 }
0x1567   : >> { %v7000_v48 = vpop.f32.mrb[3].mxu1 }
0x1568   : >> { %v7001_v45 = vadd.f32 %v7000_v48, %v6999_v25  ;;  %v5478_v56 = vadd.f32 %v6998_v37, %v5413_v28  ;;  %v5432_v32 = vadd.f32 %v6973_v50, %v5254_v7 }
0x156a   : >> { %v5481_v54 = vadd.f32 %v7001_v45, %v5416_v33  ;;  %v6974_v19 = vpop.f32.mrb[12].mxu0 }
0x156b   : >> { %v6975_v52 = vpop.f32.mrb[13].mxu0 }
0x156c   : >> { %v7002_v40 = vpop.f32.mrb[4].mxu1  ;;  %v6976_v63 = vadd.f32 %v6975_v52, %v6974_v19  ;;  %v6977_v59 = vpop.f32.mrb[14].mxu0 }
0x156d   : >> { %v7003_v51 = vpop.f32.mrb[5].mxu1  ;;  %v6978_v17 = vpop.f32.mrb[15].mxu0 }
0x156e   : >> { %v7004_v42 = vadd.f32 %v7003_v51, %v7002_v40  ;;  %v7005_v58 = vpop.f32.mrb[6].mxu1  ;;  %v6979_v1 = vadd.f32 %v6978_v17, %v6977_v59  ;;  %v5437_v26 = vadd.f32 %v6976_v63, %v5259_v55  ;;  %v6124_v55 = vld [vmem:[#allocation2 + $0x18] sm:$0xff] }
0x156f   : >> { %v7006_v0 = vpop.f32.mrb[7].mxu1 }
0x1570   : >> { %v7007_v3 = vadd.f32 %v7006_v0, %v7005_v58  ;;  %v5486_v15 = vadd.f32 %v7004_v42, %v5421_v53  ;;  %v5440_v46 = vadd.f32 %v6979_v1, %v5264_v60  ;;  %v6125_v60 = vld [vmem:[#allocation2 + $0x30] sm:$0xff] }
0x1572   : >> { %v5489_v11 = vadd.f32 %v7007_v3, %v5424_v2 }
0x1573   : >> { %v7244_v9 = vpop.f32.mrb[16].mxu0 }
0x1574   : >> { %v7008_v12 = vpop.f32.mrb[8].mxu1  ;;  %v5551_v13 = vadd.f32 %v7244_v9, %v5486_v15  ;;  %v5542_v24 = vpop.f32.mrb[17].mxu0 }
0x1575   : >> { %v7009_v22 = vpop.f32.mrb[9].mxu1  ;;  %v5543_v43 = vadd.f32 %v5542_v24, %v5478_v56  ;;  %v7245_v14 = vpop.f32.mrb[18].mxu0 }
0x1576   : >> { %v7010_v18 = vadd.f32 %v7009_v22, %v7008_v12  ;;  %v7011_v6 = vpop.f32.mrb[10].mxu1  ;;  %v5554_v44 = vadd.f32 %v7245_v14, %v5489_v11  ;;  %v5545_v8 = vpop.f32.mrb[19].mxu0  ;;  %v5575_v4 = vmax.f32 %v5551_v13, 0.0 }
0x1577   : >> { %v7012_v29 = vpop.f32.mrb[11].mxu1  ;;  %v5573_v36 = vmax.f32 %v5543_v43, 0.0  ;;  %v5546_v31 = vadd.f32 %v5545_v8, %v5481_v54 }
0x1578   : >> { %v7013_v21 = vadd.f32 %v7012_v29, %v7011_v6  ;;  %v5494_v34 = vadd.f32 %v7010_v18, %v5429_v41  ;;  %v5576_v23 = vmax.f32 %v5554_v44, 0.0  ;;  %v5583_v10 = vmul.f32 %v8217_v62, %v5575_v4 }
0x1579   : >> { %v5581_v27 = vmul.f32 %v8217_v62, %v5573_v36  ;;  %v5574_v20 = vmax.f32 %v5546_v31, 0.0 }
0x157a   : >> { %v5497_v38 = vadd.f32 %v7013_v21, %v5432_v32  ;;  %v5584_v48 = vmul.f32 %v8217_v62, %v5576_v23  ;;  %v6126_v23 = vld [vmem:[#allocation2 + $0x48] sm:$0xff] }
0x157b   : >> { %v5582_v30 = vmul.f32 %v8217_v62, %v5574_v20  ;;  %v7248_v16 = vpop.f32.mrb[20].mxu0  ;;  %5597 = vrot.lane.b32.xlu1 %v5581_v27, %s9412_s3 }
0x157c   : >> { %v7014_v5 = vpop.f32.mrb[12].mxu1  ;;  %v5558_v35 = vpop.f32.mrb[21].mxu0 }
0x157d   : >> { %v7015_v47 = vpop.f32.mrb[13].mxu1  ;;  %v5559_v28 = vadd.f32 %v5558_v35, %v5494_v34  ;;  %v7249_v25 = vpop.f32.mrb[22].mxu0  ;;  %5599 = vrot.lane.b32.xlu0 %v5582_v30, %s9412_s3  ;;  %v6127_v30 = vld [vmem:[#allocation2 + $0x60] sm:$0xff] }
0x157e   : >> { %v7016_v61 = vadd.f32 %v7015_v47, %v7014_v5  ;;  %v7017_v37 = vpop.f32.mrb[14].mxu1  ;;  %v5561_v33 = vpop.f32.mrb[23].mxu0  ;;  %v6128_v5 = vld [vmem:[#allocation2 + $0x78] sm:$0xff]  ;;  %v6130_v47 = vld [vmem:[#allocation2 + $0xa8] sm:$0xff] }
0x157f   : >> { %v7018_v50 = vpop.f32.mrb[15].mxu1  ;;  %v5577_v56 = vmax.f32 %v5559_v28, 0.0  ;;  %v5562_v54 = vadd.f32 %v5561_v33, %v5497_v38  ;;  %5601 = vrot.lane.b32.xlu1 %v5583_v10, %s9412_s3  ;;  %v6123_v38 = vld [vmem:[#allocation2] sm:$0xff] }
0x1580   : >> { %v5502_v45 = vadd.f32 %v7016_v61, %v5437_v26  ;;  %v7019_v57 = vadd.f32 %v7018_v50, %v7017_v37 }
0x1581   : >> { %v5585_v19 = vmul.f32 %v8217_v62, %v5577_v56  ;;  %v5578_v52 = vmax.f32 %v5562_v54, 0.0  ;;  %5603 = vrot.lane.b32.xlu0 %v5584_v48, %s9412_s3 }
0x1582   : >> { %v5567_v49 = vadd.f32 %v7248_v16, %v5502_v45  ;;  %v5505_v40 = vadd.f32 %v7019_v57, %v5440_v46  ;;  %v6129_v16 = vld [vmem:[#allocation2 + $0x90] sm:$0xff] }
0x1583   : >> { %v5586_v63 = vmul.f32 %v8217_v62, %v5578_v52  ;;  %5605 = vrot.lane.b32.xlu1 %v5585_v19, %s9412_s3 }
0x1584   : >> { %v5570_v51 = vadd.f32 %v7249_v25, %v5505_v40  ;;  %v5579_v59 = vmax.f32 %v5567_v49, 0.0 }
0x1585   : >> { %5607 = vrot.lane.b32.xlu0 %v5586_v63, %s9412_s3 }
0x1586   : >> { %v5587_v53 = vmul.f32 %v8217_v62, %v5579_v59  ;;  %v5580_v42 = vmax.f32 %v5570_v51, 0.0 }
0x1588   : >> { %5609 = vrot.lane.b32.xlu1 %v5587_v53, %s9412_s3  ;;  %v5588_v58 = vmul.f32 %v8217_v62, %v5580_v42 }
0x158a   : >> { %5611 = vrot.lane.b32.xlu0 %v5588_v58, %s9412_s3  ;;  %s9482_s3 = smov 121  }
0x15ed   : >> { %v5598_v17 = vpop.permute.xlu1 %5597 }
0x15ee   : >> { %5621 = vst.msk [vmem:[#allocation3] sm:$0xff] %vm4508_vm3, %v5598_v17 }
0x15ef   : >> { %v5600_v0 = vpop.permute.xlu0 %5599 }
0x15f0   : >> { %5622 = vst.msk [vmem:[#allocation3 + $0x18] sm:$0xff] %vm4508_vm3, %v5600_v0 }
0x15f1   : >> { %v5602_v1 = vpop.permute.xlu1 %5601 }
0x15f2   : >> { %5623 = vst.msk [vmem:[#allocation3 + $0x30] sm:$0xff] %vm4508_vm3, %v5602_v1 }
0x15f3   : >> { %v5604_v2 = vpop.permute.xlu0 %5603 }
0x15f4   : >> { %5624 = vst.msk [vmem:[#allocation3 + $0x48] sm:$0xff] %vm4508_vm3, %v5604_v2 }
0x15f5   : >> { %v5606_v3 = vpop.permute.xlu1 %5605  ;;  %v5655_v22 = vld [vmem:[#allocation3] sm:$0xff] }
0x15f6   : >> { %5625 = vst.msk [vmem:[#allocation3 + $0x60] sm:$0xff] %vm4508_vm3, %v5606_v3 }
0x15f7   : >> { %v5608_v15 = vpop.permute.xlu0 %5607  ;;  %v5656_v13 = vld [vmem:[#allocation3 + $0x18] sm:$0xff] }
0x15f8   : >> { %5626 = vst.msk [vmem:[#allocation3 + $0x78] sm:$0xff] %vm4508_vm3, %v5608_v15  ;;  %v9177_v24 = vpack.c.bf16 %v5656_v13, %v5655_v22 }
0x15f9   : >> { %v5657_v39 = vld [vmem:[#allocation3 + $0x30] sm:$0xff] }
0x15fa   : >> { %v5610_v11 = vpop.permute.xlu1 %5609 }
0x15fb   : >> { %5627 = vst.msk [vmem:[#allocation3 + $0x90] sm:$0xff] %vm4508_vm3, %v5610_v11  ;;  %v5658_v7 = vld [vmem:[#allocation3 + $0x48] sm:$0xff] }
0x15fc   : >> { %v5612_v12 = vpop.permute.xlu0 %5611  ;;  %v9170_v9 = vpack.c.bf16 %v5658_v7, %v5657_v39 }
0x15fd   : >> { %5628 = vst.msk [vmem:[#allocation3 + $0xa8] sm:$0xff] %vm4508_vm3, %v5612_v12  ;;  %v5659_v14 = vld [vmem:[#allocation3 + $0x60] sm:$0xff] }
0x15fe   : >> { %5697 = vrot.lane.b32.xlu1 %v9170_v9, %s9419_s7  ;;  %5685 = vrot.lane.b32.xlu0 %v9170_v9, %s9480_s11 }
0x15ff   : >> { %v5660_v6 = vld [vmem:[#allocation3 + $0x78] sm:$0xff] }
0x1600   : >> { %v9197_v32 = vpack.c.bf16 %v5660_v6, %v5659_v14 }
0x1602   : >> { %5683 = vrot.lane.b32.xlu1 %v9177_v24, %s9480_s11  ;;  %5733 = vrot.lane.b32.xlu0 %v9170_v9, %s9481_s22  ;;  %v5661_v18 = vld [vmem:[#allocation3 + $0x90] sm:$0xff] }
0x1604   : >> { %v5662_v41 = vld [vmem:[#allocation3 + $0xa8] sm:$0xff] }
0x1605   : >> { %v9191_v43 = vpack.c.bf16 %v5662_v41, %v5661_v18 }
0x1606   : >> { %5731 = vrot.lane.b32.xlu1 %v9177_v24, %s9481_s22  ;;  %5709 = vrot.lane.b32.xlu0 %v9170_v9, %s9482_s3 }
0x160a   : >> { %5695 = vrot.lane.b32.xlu1 %v9177_v24, %s9419_s7  ;;  %5707 = vrot.lane.b32.xlu0 %v9177_v24, %s9482_s3  ;;  %s9210_s7 = scalar_lea.vmem %s9483_s2, %s9485_s18  ;;  %s9488_s2 = smov 115  }
0x160b   : >> { %v7613_v44 = vld [vmem:[%s9210_s7 + $0x4] ss:$20 sps:$4 sm:$0xff]   ;;  %s9489_s18 = smov 120   ;;  %v7619_v29 = vld [vmem:[%s9210_s7 + $0xc] ss:$20 sps:$4 sm:$0xff]  }
0x160c   : >> { %5960 = vmatprep.mubr.bf16.mxu1 %v7613_v44  ;;  %6025 = vmatprep.mubr.bf16.mxu0 %v7619_v29  ;;  %v7611_v53 = vld [vmem:[%s9210_s7] ss:$20 sps:$4 sm:$0xff]   ;;  %v7616_v2 = vld [vmem:[%s9210_s7 + $0x28] ss:$20 sps:$4 sm:$0xff]   ;;  %v7632_v14 = vld [vmem:[%s9210_s7 + $0x10] ss:$20 sps:$4 sm:$0xff]  }
0x160d   : >> { %v7614_v42 = vld [vmem:[%s9210_s7 + $0x2c] ss:$20 sps:$4 sm:$0xff]   ;;  %v7620_v3 = vld [vmem:[%s9210_s7 + $0x54] ss:$20 sps:$4 sm:$0xff]   ;;  %v7626_v22 = vld [vmem:[%s9210_s7 + $0x7c] ss:$20 sps:$4 sm:$0xff]  }
0x160e   : >> { %5671 = vrot.lane.b32.xlu1 %v9177_v24, %s9484_s1  ;;  %5689 = vrot.lane.b32.xlu0 %v9191_v43, %s9480_s11  ;;  %v7617_v39 = vld [vmem:[%s9210_s7 + $0x8] ss:$20 sps:$4 sm:$0xff]   ;;  %v7634_v44 = vld [vmem:[%s9210_s7 + $0x84] ss:$20 sps:$4 sm:$0xff]  }
0x160f   : >> { %v7623_v7 = vld [vmem:[%s9210_s7 + $0x34] ss:$20 sps:$4 sm:$0xff]   ;;  %v7629_v18 = vld [vmem:[%s9210_s7 + $0x5c] ss:$20 sps:$4 sm:$0xff]   ;;  %v7633_v29 = vld [vmem:[%s9210_s7 + $0x38] ss:$20 sps:$4 sm:$0xff]  }
0x1612   : >> { %5687 = vrot.lane.b32.xlu1 %v9197_v32, %s9480_s11  ;;  %5737 = vrot.lane.b32.xlu0 %v9191_v43, %s9481_s22  ;;  %s9487_s11 = sld [smem:[#allocation21_spill]] }
0x1616   : >> { %5673 = vrot.lane.b32.xlu1 %v9170_v9, %s9484_s1  ;;  %5713 = vrot.lane.b32.xlu0 %v9191_v43, %s9482_s3 }
0x161a   : >> { %5701 = vrot.lane.b32.xlu1 %v9191_v43, %s9486_s4  ;;  %5735 = vrot.lane.b32.xlu0 %v9197_v32, %s9481_s22 }
0x161e   : >> { %5699 = vrot.lane.b32.xlu1 %v9197_v32, %s9486_s4  ;;  %5711 = vrot.lane.b32.xlu0 %v9197_v32, %s9482_s3  ;;  %s9490_s4 = smov 114  }
0x1622   : >> { %5675 = vrot.lane.b32.xlu1 %v9197_v32, %s9484_s1  ;;  %5743 = vrot.lane.b32.xlu0 %v9177_v24, %s9488_s2 }
0x1626   : >> { %5677 = vrot.lane.b32.xlu1 %v9191_v43, %s9484_s1  ;;  %5719 = vrot.lane.b32.xlu0 %v9177_v24, %s9489_s18  ;;  %s9491_s1 = sshll.u32 %s7669_s0, 6  ;;  %s5076_s0 = sadd.s32 1, %s7669_s0  }
0x1627   : >> { %s5767_s22 = scalar_lea.vmem %s9487_s11, %s9491_s1  ;;  %p5073_p6 = scmp.ge.s32.totalorder %s5076_s0, 8  }
0x1628   : >> { %v5768_v8 = vld [vmem:[%s5767_s22] sm:$0xff]  ;;  %v5769_v36 = vld [vmem:[%s5767_s22 + $0x8] sm:$0xff]  ;;  %v5770_v21 = vld [vmem:[%s5767_s22 + $0x10] sm:$0xff]  ;;  %vm6235_vm5 = vcmask (%p5073_p6), 293888   ;;  %vm6285_vm6 = vcmask (%p5073_p6), 7168   ;;  %vm6309_vm7 = vcmask (%p5073_p6), 0   ;;  %s9494_s0 = scalar_lea.vmem (%p5073_p6), %s7943_s19, %s9496_s15 }
0x1629   : >> { %v5771_v31 = vld [vmem:[%s5767_s22 + $0x18] sm:$0xff]  ;;  %v5772_v34 = vld [vmem:[%s5767_s22 + $0x20] sm:$0xff]  ;;  %v5773_v4 = vld [vmem:[%s5767_s22 + $0x28] sm:$0xff] }
0x162a   : >> { %5745 = vrot.lane.b32.xlu1 %v9170_v9, %s9488_s2  ;;  %5721 = vrot.lane.b32.xlu0 %v9170_v9, %s9489_s18  ;;  %v5774_v27 = vld [vmem:[%s5767_s22 + $0x30] sm:$0xff]  ;;  %v5775_v20 = vld [vmem:[%s5767_s22 + $0x38] sm:$0xff] }
0x162e   : >> { %5747 = vrot.lane.b32.xlu1 %v9197_v32, %s9488_s2  ;;  %5723 = vrot.lane.b32.xlu0 %v9197_v32, %s9489_s18 }
0x1632   : >> { %5749 = vrot.lane.b32.xlu1 %v9191_v43, %s9488_s2  ;;  %5725 = vrot.lane.b32.xlu0 %v9191_v43, %s9489_s18 }
0x1636   : >> { %5755 = vrot.lane.b32.xlu1 %v9177_v24, %s9490_s4  ;;  %5757 = vrot.lane.b32.xlu0 %v9170_v9, %s9490_s4 }
0x163a   : >> { %5759 = vrot.lane.b32.xlu1 %v9197_v32, %s9490_s4  ;;  %5761 = vrot.lane.b32.xlu0 %v9191_v43, %s9490_s4 }
0x163e   : >> { %5778 = vperm.xlu1 %7582, %v5768_v8   ;;  %5783 = vperm.xlu0 %7581, %v5769_v36   ;;  %v7637_v8 = vld [vmem:[%s9210_s7 + $0x60] ss:$20 sps:$4 sm:$0xff]  }
0x163f   : >> { %v7636_v36 = vld [vmem:[%s9210_s7 + $0x80] ss:$20 sps:$4 sm:$0xff]  }
0x1642   : >> { %5788 = vperm.xlu1 %7582, %v5770_v21   ;;  %5793 = vperm.xlu0 %7581, %v5771_v31   ;;  %v7638_v21 = vld [vmem:[%s9210_s7 + $0x88] ss:$20 sps:$4 sm:$0xff]  }
0x1646   : >> { %5798 = vperm.xlu1 %7582, %v5772_v34   ;;  %5803 = vperm.xlu0 %7581, %v5773_v4  }
0x164a   : >> { %5808 = vperm.xlu1 %7582, %v5774_v27   ;;  %5813 = vperm.xlu0 %7581, %v5775_v20  }
0x164e   : >> { %6139 = vrot.lane.b32.xlu1 %v6123_v38, %s9482_s3  ;;  %6141 = vrot.lane.b32.xlu0 %v6124_v55, %s9482_s3 }
0x1652   : >> { %6143 = vrot.lane.b32.xlu1 %v6125_v60, %s9482_s3  ;;  %6145 = vrot.lane.b32.xlu0 %v6126_v23, %s9482_s3 }
0x1656   : >> { %6147 = vrot.lane.b32.xlu1 %v6127_v30, %s9482_s3  ;;  %6149 = vrot.lane.b32.xlu0 %v6128_v5, %s9482_s3 }
0x165a   : >> { %6151 = vrot.lane.b32.xlu1 %v6129_v16, %s9482_s3  ;;  %6153 = vrot.lane.b32.xlu0 %v6130_v47, %s9482_s3  ;;  %s9493_s3 = sld [smem:[#allocation22_spill]] (%p5073_p6) }
0x1670   : >> { %v5686_v35 = vpop.permute.xlu0 %5685  ;;  %v5698_v26 = vpop.permute.xlu1 %5697 }
0x1674   : >> { %v5734_v10 = vpop.permute.xlu0 %5733  ;;  %v5684_v61 = vpop.permute.xlu1 %5683 }
0x1675   : >> { %7028 = vmatprep.subr.bf16.mxu1 %v5684_v61 }
0x1676   : >> { %7029 = vmatpush3.bf16.msra.mxu1 %v9177_v24  ;;  %v7625_v24 = vld [vmem:[%s9210_s7 + $0x30] ss:$20 sps:$4 sm:$0xff]  }
0x1677   : >> { %7030 = vmatprep.subr.bf16.mxu1 %v5686_v35 }
0x1678   : >> { %v5710_v28 = vpop.permute.xlu0 %5709  ;;  %v5732_v37 = vpop.permute.xlu1 %5731 }
0x1679   : >> { %7068 = vmatprep.subr.bf16.mxu0 %v5732_v37 }
0x167a   : >> { %7031 = vmatpush3.bf16.msra.mxu1 %v9170_v9  ;;  %v7622_v9 = vld [vmem:[%s9210_s7 + $0x50] ss:$20 sps:$4 sm:$0xff]  }
0x167c   : >> { %v5708_v25 = vpop.permute.xlu0 %5707  ;;  %v5696_v46 = vpop.permute.xlu1 %5695 }
0x167d   : >> { %7069 = vmatpush3.bf16.msra.mxu0 %v5708_v25 }
0x167e   : >> { %7070 = vmatprep.subr.bf16.mxu0 %v5734_v10 }
0x1680   : >> { %v5690_v48 = vpop.permute.xlu0 %5689  ;;  %v5672_v50 = vpop.permute.xlu1 %5671 }
0x1681   : >> { %7071 = vmatpush3.bf16.msra.mxu0 %v5710_v28 }
0x1684   : >> { %v5738_v33 = vpop.permute.xlu0 %5737  ;;  %v5688_v45 = vpop.permute.xlu1 %5687 }
0x1685   : >> { %7032 = vmatprep.subr.bf16.mxu1 %v5688_v45 }
0x1686   : >> { %7033 = vmatpush3.bf16.msra.mxu1 %v9197_v32  ;;  %v7631_v32 = vld [vmem:[%s9210_s7 + $0x58] ss:$20 sps:$4 sm:$0xff]  }
0x1687   : >> { %7034 = vmatprep.subr.bf16.mxu1 %v5690_v48 }
0x1688   : >> { %v5714_v56 = vpop.permute.xlu0 %5713  ;;  %v5674_v57 = vpop.permute.xlu1 %5673 }
0x168a   : >> { %7035 = vmatpush3.bf16.msra.mxu1 %v9191_v43  ;;  %v7628_v43 = vld [vmem:[%s9210_s7 + $0x78] ss:$20 sps:$4 sm:$0xff]   ;;  %s9492_s7 = smov 7  }
0x168b   : >> { %7036 = vmatprep.subr.bf16.mxu1 %v5696_v46 }
0x168c   : >> { %v5736_v54 = vpop.permute.xlu0 %5735  ;;  %v5702_v49 = vpop.permute.xlu1 %5701 }
0x168d   : >> { %7072 = vmatprep.subr.bf16.mxu0 %v5736_v54 }
0x168e   : >> { %7037 = vmatpush3.bf16.msra.mxu1 %v5672_v50 }
0x168f   : >> { %7038 = vmatprep.subr.bf16.mxu1 %v5698_v26 }
0x1690   : >> { %v5712_v19 = vpop.permute.xlu0 %5711  ;;  %v5700_v40 = vpop.permute.xlu1 %5699 }
0x1691   : >> { %7073 = vmatpush3.bf16.msra.mxu0 %v5712_v19 }
0x1692   : >> { %7039 = vmatpush3.bf16.msra.mxu1 %v5674_v57  ;;  %7074 = vmatprep.subr.bf16.mxu0 %v5738_v33 }
0x1693   : >> { %7040 = vmatprep.subr.bf16.mxu1 %v5700_v40 }
0x1694   : >> { %v5744_v52 = vpop.permute.xlu0 %5743  ;;  %v5676_v51 = vpop.permute.xlu1 %5675 }
0x1695   : >> { %7075 = vmatpush3.bf16.msra.mxu0 %v5714_v56 }
0x1696   : >> { %7041 = vmatpush3.bf16.msra.mxu1 %v5676_v51  ;;  %7076 = vmatprep.subr.bf16.mxu0 %v5744_v52 }
0x1697   : >> { %7042 = vmatprep.subr.bf16.mxu1 %v5702_v49 }
0x1698   : >> { %v5720_v63 = vpop.permute.xlu0 %5719  ;;  %v5678_v59 = vpop.permute.xlu1 %5677 }
0x1699   : >> { %7077 = vmatpush3.bf16.msra.mxu0 %v5720_v63 }
0x169a   : >> { %7043 = vmatpush3.bf16.msra.mxu1 %v5678_v59 }
0x169c   : >> { %v5722_v58 = vpop.permute.xlu0 %5721  ;;  %v5746_v17 = vpop.permute.xlu1 %5745 }
0x169d   : >> { %5961 = vmatmul.mubr.bf16.vlgmr.msra.gmra.mrb[16].mxu1 %v7611_v53  ;;  %7078 = vmatprep.subr.bf16.mxu0 %v5746_v17 }
0x169e   : >> { %7079 = vmatpush3.bf16.msra.mxu0 %v5722_v58  ;;  %5968 = vmatprep.mubr.bf16.mxu1 %v7614_v42 }
0x16a0   : >> { %v5724_v0 = vpop.permute.xlu0 %5723  ;;  %v5748_v1 = vpop.permute.xlu1 %5747 }
0x16a1   : >> { %7080 = vmatprep.subr.bf16.mxu0 %v5748_v1 }
0x16a2   : >> { %7081 = vmatpush3.bf16.msra.mxu0 %v5724_v0 }
0x16a4   : >> { %v5726_v15 = vpop.permute.xlu0 %5725  ;;  %v5750_v11 = vpop.permute.xlu1 %5749 }
0x16a5   : >> { %5969 = vmatmul.mubr.bf16.gmra.mrb[20].mxu1 %v7616_v2  ;;  %7082 = vmatprep.subr.bf16.mxu0 %v5750_v11 }
0x16a6   : >> { %7083 = vmatpush3.bf16.msra.mxu0 %v5726_v15  ;;  %5976 = vmatprep.mubr.bf16.mxu1 %v7620_v3 }
0x16a8   : >> { %v5756_v12 = vpop.permute.xlu1 %5755  ;;  %v5758_v13 = vpop.permute.xlu0 %5757 }
0x16a9   : >> { %6026 = vmatmul.mubr.bf16.vlgmr.msra.gmra.mrb[24].mxu0 %v7617_v39  ;;  %7250 = vmatprep.subr.bf16.mxu1 %v5756_v12 }
0x16aa   : >> { %7251 = vmatpush3.bf16.msra.mxu1 %v5756_v12  ;;  %6033 = vmatprep.mubr.bf16.mxu0 %v7623_v7 }
0x16ab   : >> { %7252 = vmatprep.subr.bf16.mxu1 %v5758_v13 }
0x16ac   : >> { %v5760_v41 = vpop.permute.xlu1 %5759  ;;  %v5762_v6 = vpop.permute.xlu0 %5761 }
0x16ad   : >> { %5977 = vmatmul.mubr.bf16.gmra.mrb[24].mxu1 %v7622_v9 }
0x16ae   : >> { %7253 = vmatpush3.bf16.msra.mxu1 %v5758_v13  ;;  %5984 = vmatprep.mubr.bf16.mxu1 %v7626_v22 }
0x16af   : >> { %7254 = vmatprep.subr.bf16.mxu1 %v5760_v41 }
0x16b1   : >> { %6034 = vmatmul.mubr.bf16.gmra.mrb[28].mxu0 %v7625_v24 }
0x16b2   : >> { %7255 = vmatpush3.bf16.msra.mxu1 %v5760_v41  ;;  %6041 = vmatprep.mubr.bf16.mxu0 %v7629_v18 }
0x16b3   : >> { %7256 = vmatprep.subr.bf16.mxu1 %v5762_v6 }
0x16b5   : >> { %5985 = vmatmul.mubr.bf16.gmra.mrb[28].mxu1 %v7628_v43 }
0x16b6   : >> { %7257 = vmatpush3.bf16.msra.mxu1 %v5762_v6  ;;  %7258 = vmatprep.mubr.msk.bf16.mxu1 %vm4769_vm4, %v7632_v14 }
0x16b9   : >> { %6042 = vmatmul.mubr.bf16.gmra.mrb[32].mxu0 %v7631_v32 }
0x16ba   : >> { %6049 = vmatprep.mubr.bf16.mxu0 %v7634_v44 }
0x16bd   : >> { %7259 = vmatmul.mubr.msk.bf16.vlgmr.msra.gmra.mrb[32].mxu1 %vm4769_vm4, %v7633_v29  ;;  %v5779_v34 = vpop.permute.xlu1 %5778  ;;  %v5784_v38 = vpop.permute.xlu0 %5783 }
0x16be   : >> { %7262 = vmatprep.mubr.msk.bf16.mxu1 %vm4769_vm4, %v7637_v8 }
0x16c1   : >> { %6050 = vmatmul.mubr.bf16.gmra.mrb[36].mxu0 %v7636_v36  ;;  %v5789_v23 = vpop.permute.xlu1 %5788  ;;  %v5794_v5 = vpop.permute.xlu0 %5793 }
0x16c5   : >> { %7263 = vmatmul.mubr.msk.bf16.gmra.mrb[36].mxu1 %vm4769_vm4, %v7638_v21  ;;  %v5799_v28 = vpop.permute.xlu1 %5798  ;;  %v5804_v50 = vpop.permute.xlu0 %5803 }
0x16c9   : >> { %v5809_v51 = vpop.permute.xlu1 %5808  ;;  %v5814_v42 = vpop.permute.xlu0 %5813 }
0x16cd   : >> { %v6140_v3 = vpop.permute.xlu1 %6139  ;;  %v6142_v9 = vpop.permute.xlu0 %6141 }
0x16d1   : >> { %v6144_v14 = vpop.permute.xlu1 %6143  ;;  %v6146_v36 = vpop.permute.xlu0 %6145 }
0x1770   : >> { %v7044_v31 = vpop.f32.mrb[16].mxu1 }
0x1771   : >> { %v7045_v4 = vpop.f32.mrb[17].mxu1 }
0x1772   : >> { %v7046_v27 = vadd.f32 %v7045_v4, %v7044_v31  ;;  %v7047_v20 = vpop.f32.mrb[18].mxu1 }
0x1773   : >> { %v7048_v55 = vpop.f32.mrb[19].mxu1 }
0x1774   : >> { %v7049_v60 = vadd.f32 %v7048_v55, %v7047_v20  ;;  %v5963_v25 = vadd.f32 %v7046_v27, %v5779_v34 }
0x1776   : >> { %v5966_v45 = vadd.f32 %v7049_v60, %v5784_v38 }
0x1778   : >> { %v7050_v30 = vpop.f32.mrb[20].mxu1 }
0x1779   : >> { %v7051_v16 = vpop.f32.mrb[21].mxu1 }
0x177a   : >> { %v7052_v47 = vadd.f32 %v7051_v16, %v7050_v30  ;;  %v7053_v35 = vpop.f32.mrb[22].mxu1  ;;  %v6148_v16 = vpop.permute.xlu1 %6147 }
0x177b   : >> { %v7054_v26 = vpop.f32.mrb[23].mxu1 }
0x177c   : >> { %v7055_v10 = vadd.f32 %v7054_v26, %v7053_v35  ;;  %v7084_v61 = vpop.f32.mrb[24].mxu0  ;;  %v5971_v17 = vadd.f32 %v7052_v47, %v5789_v23 }
0x177d   : >> { %v7085_v37 = vpop.f32.mrb[25].mxu0 }
0x177e   : >> { %v7086_v46 = vadd.f32 %v7085_v37, %v7084_v61  ;;  %v7087_v48 = vpop.f32.mrb[26].mxu0  ;;  %v5974_v15 = vadd.f32 %v7055_v10, %v5794_v5  ;;  %v6150_v37 = vpop.permute.xlu0 %6149 }
0x177f   : >> { %v7088_v33 = vpop.f32.mrb[27].mxu0 }
0x1780   : >> { %v7089_v56 = vadd.f32 %v7088_v33, %v7087_v48  ;;  %v7056_v57 = vpop.f32.mrb[24].mxu1  ;;  %v6028_v54 = vadd.f32 %v7086_v46, %v5963_v25 }
0x1781   : >> { %v7057_v49 = vpop.f32.mrb[25].mxu1 }
0x1782   : >> { %v7058_v19 = vadd.f32 %v7057_v49, %v7056_v57  ;;  %v7059_v40 = vpop.f32.mrb[26].mxu1  ;;  %v6031_v52 = vadd.f32 %v7089_v56, %v5966_v45 }
0x1783   : >> { %v7060_v63 = vpop.f32.mrb[27].mxu1 }
0x1784   : >> { %v7061_v59 = vadd.f32 %v7060_v63, %v7059_v40  ;;  %v7090_v53 = vpop.f32.mrb[28].mxu0  ;;  %v5979_v32 = vadd.f32 %v7058_v19, %v5799_v28 }
0x1785   : >> { %v7091_v58 = vpop.f32.mrb[29].mxu0 }
0x1786   : >> { %v7092_v0 = vadd.f32 %v7091_v58, %v7090_v53  ;;  %v7093_v1 = vpop.f32.mrb[30].mxu0  ;;  %v5982_v21 = vadd.f32 %v7061_v59, %v5804_v50  ;;  %v6152_v53 = vpop.permute.xlu1 %6151 }
0x1787   : >> { %v7094_v2 = vpop.f32.mrb[31].mxu0 }
0x1788   : >> { %v7095_v11 = vadd.f32 %v7094_v2, %v7093_v1  ;;  %v7062_v39 = vpop.f32.mrb[28].mxu1  ;;  %v6036_v7 = vadd.f32 %v7092_v0, %v5971_v17 }
0x1789   : >> { %v7063_v12 = vpop.f32.mrb[29].mxu1 }
0x178a   : >> { %v7064_v13 = vadd.f32 %v7063_v12, %v7062_v39  ;;  %v7065_v22 = vpop.f32.mrb[30].mxu1  ;;  %v6039_v24 = vadd.f32 %v7095_v11, %v5974_v15 }
0x178b   : >> { %v7066_v41 = vpop.f32.mrb[31].mxu1 }
0x178c   : >> { %v7067_v18 = vadd.f32 %v7066_v41, %v7065_v22  ;;  %v7096_v43 = vpop.f32.mrb[32].mxu0  ;;  %v5987_v25 = vadd.f32 %v7064_v13, %v5809_v51 }
0x178d   : >> { %v7097_v6 = vpop.f32.mrb[33].mxu0 }
0x178e   : >> { %v7098_v44 = vadd.f32 %v7097_v6, %v7096_v43  ;;  %v7099_v29 = vpop.f32.mrb[34].mxu0 }
0x178f   : >> { %v7100_v8 = vpop.f32.mrb[35].mxu0 }
0x1790   : >> { %v7101_v31 = vadd.f32 %v7100_v8, %v7099_v29  ;;  %v7260_v34 = vpop.f32.mrb[32].mxu1  ;;  %v6044_v4 = vadd.f32 %v7098_v44, %v5979_v32 }
0x1791   : >> { %v6101_v27 = vadd.f32 %v7260_v34, %v6036_v7  ;;  %v6092_v20 = vpop.f32.mrb[33].mxu1 }
0x1792   : >> { %v6093_v38 = vadd.f32 %v6092_v20, %v6028_v54  ;;  %v7261_v55 = vpop.f32.mrb[34].mxu1  ;;  %v6047_v60 = vadd.f32 %v7101_v31, %v5982_v21  ;;  %v5990_v54 = vadd.f32 %v7067_v18, %v5814_v42  ;;  %v6154_v42 = vpop.permute.xlu0 %6153 }
0x1793   : >> { %v6104_v23 = vadd.f32 %v7261_v55, %v6039_v24  ;;  %v6165_v30 = vadd.f32 %v6144_v14, %v6101_v27  ;;  %v6095_v5 = vpop.f32.mrb[35].mxu1 }
0x1794   : >> { %v6163_v47 = vadd.f32 %v6140_v3, %v6093_v38  ;;  %v6096_v35 = vadd.f32 %v6095_v5, %v6031_v52  ;;  %v7102_v26 = vpop.f32.mrb[36].mxu0 }
0x1795   : >> { %v6173_v10 = vmax.f32 %v6165_v30, 0.0  ;;  %v6166_v61 = vadd.f32 %v6146_v36, %v6104_v23  ;;  %v7103_v28 = vpop.f32.mrb[37].mxu0 }
0x1796   : >> { %v6164_v46 = vadd.f32 %v6142_v9, %v6096_v35  ;;  %v7104_v48 = vadd.f32 %v7103_v28, %v7102_v26  ;;  %v7105_v50 = vpop.f32.mrb[38].mxu0  ;;  %v6171_v33 = vmax.f32 %v6163_v47, 0.0 }
0x1797   : >> { %v6181_v45 = vmul.f32 %v8217_v62, %v6173_v10  ;;  %v6174_v56 = vmax.f32 %v6166_v61, 0.0  ;;  %v7106_v57 = vpop.f32.mrb[39].mxu0 }
0x1798   : >> { %v7107_v49 = vadd.f32 %v7106_v57, %v7105_v50  ;;  %v6052_v19 = vadd.f32 %v7104_v48, %v5987_v25  ;;  %v7264_v40 = vpop.f32.mrb[36].mxu1  ;;  %v6172_v63 = vmax.f32 %v6164_v46, 0.0  ;;  %v6179_v1 = vmul.f32 %v8217_v62, %v6171_v33  ;;  %v6269_v46 = vld [vmem:[%s9493_s3] sm:$0xff] (%p5073_p6)  ;;  %v6271_v50 = vld [vmem:[%s9493_s3 + $0x10] sm:$0xff] (%p5073_p6)  ;;  %v6270_v33 = vld [vmem:[%s9493_s3 + $0x8] sm:$0xff] (%p5073_p6) }
0x1799   : >> { %v6182_v52 = vmul.f32 %v8217_v62, %v6174_v56  ;;  %v6108_v59 = vpop.f32.mrb[37].mxu1  ;;  %6199 = vrot.lane.b32.xlu1 %v6181_v45, %s9492_s7  ;;  %v6272_v56 = vld [vmem:[%s9493_s3 + $0x18] sm:$0xff] (%p5073_p6) }
0x179a   : >> { %v6117_v51 = vadd.f32 %v7264_v40, %v6052_v19  ;;  %v6109_v58 = vadd.f32 %v6108_v59, %v6044_v4  ;;  %v6055_v17 = vadd.f32 %v7107_v49, %v5990_v54  ;;  %v7265_v0 = vpop.f32.mrb[38].mxu1  ;;  %v6180_v7 = vmul.f32 %v8217_v62, %v6172_v63  ;;  %v6273_v59 = vld [vmem:[%s9493_s3 + $0x20] sm:$0xff] (%p5073_p6) }
0x179b   : >> { %6201 = vrot.lane.b32.xlu0 %v6182_v52, %s9492_s7  ;;  %v6111_v2 = vpop.f32.mrb[39].mxu1 }
0x179c   : >> { %v6167_v3 = vadd.f32 %v6148_v16, %v6109_v58  ;;  %v6120_v15 = vadd.f32 %v7265_v0, %v6055_v17  ;;  %v6112_v11 = vadd.f32 %v6111_v2, %v6047_v60  ;;  %v6169_v39 = vadd.f32 %v6152_v53, %v6117_v51  ;;  %v6274_v51 = vld [vmem:[%s9493_s3 + $0x28] sm:$0xff] (%p5073_p6) }
0x179d   : >> { %6195 = vrot.lane.b32.xlu1 %v6179_v1, %s9492_s7 }
0x179e   : >> { %v6175_v12 = vmax.f32 %v6167_v3, 0.0  ;;  %v6168_v9 = vadd.f32 %v6150_v37, %v6112_v11  ;;  %v6170_v13 = vadd.f32 %v6154_v42, %v6120_v15  ;;  %v6177_v41 = vmax.f32 %v6169_v39, 0.0 }
0x179f   : >> { %6197 = vrot.lane.b32.xlu0 %v6180_v7, %s9492_s7 }
0x17a0   : >> { %v6183_v22 = vmul.f32 %v8217_v62, %v6175_v12  ;;  %v6176_v24 = vmax.f32 %v6168_v9, 0.0  ;;  %v6178_v43 = vmax.f32 %v6170_v13, 0.0  ;;  %v6185_v6 = vmul.f32 %v8217_v62, %v6177_v41  ;;  %v6275_v12 = vld [vmem:[%s9493_s3 + $0x30] sm:$0xff] (%p5073_p6)  ;;  %v6276_v13 = vld [vmem:[%s9493_s3 + $0x38] sm:$0xff] (%p5073_p6) }
0x17a2   : >> { %v6184_v18 = vmul.f32 %v8217_v62, %v6176_v24  ;;  %6203 = vrot.lane.b32.xlu1 %v6183_v22, %s9492_s7  ;;  %v6186_v14 = vmul.f32 %v8217_v62, %v6178_v43 }
0x17a4   : >> { %6205 = vrot.lane.b32.xlu0 %v6184_v18, %s9492_s7 }
0x17a6   : >> { %6207 = vrot.lane.b32.xlu1 %v6185_v6, %s9492_s7 }
0x17a8   : >> { %6209 = vrot.lane.b32.xlu0 %v6186_v14, %s9492_s7 }
0x180b   : >> { %v6200_v32 = vpop.permute.xlu1 %6199 }
0x180c   : >> { %6221 = vst.msk [vmem:[#allocation2 + $0x30] sm:$0xff] %vm4508_vm3, %v6200_v32 }
0x180d   : >> { %v6202_v44 = vpop.permute.xlu0 %6201 }
0x180e   : >> { %6222 = vst.msk [vmem:[#allocation2 + $0x48] sm:$0xff] %vm4508_vm3, %v6202_v44 }
0x180f   : >> { %v6196_v29 = vpop.permute.xlu1 %6195 }
0x1810   : >> { %6219 = vst.msk [vmem:[#allocation2] sm:$0xff] %vm4508_vm3, %v6196_v29 }
0x1811   : >> { %v6198_v8 = vpop.permute.xlu0 %6197 }
0x1812   : >> { %6220 = vst.msk [vmem:[#allocation2 + $0x18] sm:$0xff] %vm4508_vm3, %v6198_v8 }
0x1813   : > { %v6229_v27 = vld [vmem:[#allocation2 + $0x30] sm:$0xff] (%p5073_p6) }
0x1814   : >> { %v6204_v36 = vpop.permute.xlu1 %6203  ;;  %v6242_v55 = vsel (%p5073_p6), %vm6235_vm5, %v6229_v27, 0.0 }
0x1815   : >> { %6223 = vst.msk [vmem:[#allocation2 + $0x60] sm:$0xff] %vm4508_vm3, %v6204_v36  ;;  %v6230_v60 = vld [vmem:[#allocation2 + $0x48] sm:$0xff] (%p5073_p6)  ;;  %6243 = vadd.xlane.f32.xlu1 (%p5073_p6), %v6242_v55  ;;  %v6307_v55 = vld [vmem:[#allocation4] sm:$0x1] (%p5073_p6) }
0x1816   : >> { %v6206_v21 = vpop.permute.xlu0 %6205  ;;  %v6245_v30 = vsel (%p5073_p6), %vm6235_vm5, %v6230_v60, 0.0 }
0x1817   : >> { %6224 = vst.msk [vmem:[#allocation2 + $0x78] sm:$0xff] %vm4508_vm3, %v6206_v21  ;;  %v6227_v4 = vld [vmem:[#allocation2] sm:$0xff] (%p5073_p6) }
0x1818   : >> { %v6208_v31 = vpop.permute.xlu1 %6207  ;;  %v6236_v38 = vsel (%p5073_p6), %vm6235_vm5, %v6227_v4, 0.0 }
0x1819   : >> { %6225 = vst.msk [vmem:[#allocation2 + $0x90] sm:$0xff] %vm4508_vm3, %v6208_v31  ;;  %5075 = sbr.rel (!%p5073_p6) target bundleno = 5090 (0x13e2), region = 275  ;;  %v6228_v20 = vld [vmem:[#allocation2 + $0x18] sm:$0xff] (%p5073_p6)  ;;  %6237 = vadd.xlane.f32.xlu0 (%p5073_p6), %v6236_v38  ;;  %6246 = vadd.xlane.f32.xlu1 (%p5073_p6), %v6245_v30 }
0x181a   : >> { %v6210_v34 = vpop.permute.xlu0 %6209  ;;  %v6239_v23 = vsel (%p5073_p6), %vm6235_vm5, %v6228_v20, 0.0 }
0x181b   : >> { %6226 = vst.msk [vmem:[#allocation2 + $0xa8] sm:$0xff] %vm4508_vm3, %v6210_v34 }
0x181c   : > { %v6231_v5 = vld [vmem:[#allocation2 + $0x60] sm:$0xff] (%p5073_p6) }
0x181d   : > { %6240 = vadd.xlane.f32.xlu0 (%p5073_p6), %v6239_v23  ;;  %v6248_v62 = vsel (%p5073_p6), %vm6235_vm5, %v6231_v5, 0.0 }
0x181e   : > { %v6232_v16 = vld [vmem:[#allocation2 + $0x78] sm:$0xff] (%p5073_p6) }
0x181f   : > { %v6251_v47 = vsel (%p5073_p6), %vm6235_vm5, %v6232_v16, 0.0 }
0x1820   : > { %v6233_v35 = vld [vmem:[#allocation2 + $0x90] sm:$0xff]  ;;  %6252 = vadd.xlane.f32.xlu1 %v6251_v47 }
0x1821   : > { %6249 = vadd.xlane.f32.xlu0 %v6248_v62  ;;  %v6254_v10 = vsel %vm6235_vm5, %v6233_v35, 0.0 }
0x1822   : > { %v6234_v26 = vld [vmem:[#allocation2 + $0xa8] sm:$0xff] }
0x1823   : > { %v6257_v61 = vsel %vm6235_vm5, %v6234_v26, 0.0 }
0x1824   : > { %6258 = vadd.xlane.f32.xlu1 %v6257_v61 }
0x1825   : > { %6255 = vadd.xlane.f32.xlu0 %v6254_v10 }
0x18a2   : > { %v6244_v37 = vpop.xlane.xlu1 %6243 }
0x18a3   : > { %v6263_v48 = vmul.f32 0.0625, %v6244_v37 }
0x18a5   : > { %v6279_v40 = vmul.f32 %v6271_v50, %v6263_v48 }
0x18a6   : > { %v6238_v28 = vpop.xlane.xlu0 %6237  ;;  %v6247_v57 = vpop.xlane.xlu1 %6246 }
0x18a7   : > { %v6261_v25 = vmul.f32 0.0625, %v6238_v28  ;;  %v6264_v19 = vmul.f32 0.0625, %v6247_v57  ;;  %v6289_v3 = vsel %vm6285_vm6, %v6279_v40, 0.0 }
0x18a9   : > { %v6277_v54 = vmul.f32 %v6269_v46, %v6261_v25  ;;  %v6280_v52 = vmul.f32 %v6272_v56, %v6264_v19 }
0x18aa   : > { %v6241_v45 = vpop.xlane.xlu0 %6240 }
0x18ab   : > { %v6262_v49 = vmul.f32 0.0625, %v6241_v45  ;;  %v6286_v17 = vsel %vm6285_vm6, %v6277_v54, 0.0  ;;  %v6291_v15 = vsel %vm6285_vm6, %v6280_v52, 0.0 }
0x18ad   : > { %v6278_v63 = vmul.f32 %v6270_v33, %v6262_v49  ;;  %v6253_v58 = vpop.xlane.xlu1 %6252 }
0x18ae   : > { %v6250_v53 = vpop.xlane.xlu0 %6249  ;;  %v6266_v2 = vmul.f32 0.0625, %v6253_v58 }
0x18af   : > { %v6287_v0 = vsel %vm6285_vm6, %v6278_v63, 0.0  ;;  %v6265_v1 = vmul.f32 0.0625, %v6250_v53 }
0x18b0   : > { %v6288_v42 = vadd.f32 %v6287_v0, %v6286_v17  ;;  %v6282_v39 = vmul.f32 %v6274_v51, %v6266_v2 }
0x18b1   : > { %v6281_v11 = vmul.f32 %v6273_v59, %v6265_v1  ;;  %v6259_v22 = vpop.xlane.xlu1 %6258 }
0x18b2   : > { %v6290_v7 = vadd.f32 %v6289_v3, %v6288_v42  ;;  %v6256_v9 = vpop.xlane.xlu0 %6255  ;;  %v6268_v18 = vmul.f32 0.0625, %v6259_v22  ;;  %v6295_v6 = vsel %vm6285_vm6, %v6282_v39, 0.0 }
0x18b3   : > { %v6293_v24 = vsel %vm6285_vm6, %v6281_v11, 0.0  ;;  %v6267_v41 = vmul.f32 0.0625, %v6256_v9 }
0x18b4   : > { %v6292_v43 = vadd.f32 %v6291_v15, %v6290_v7  ;;  %v6284_v32 = vmul.f32 %v6276_v13, %v6268_v18 }
0x18b5   : > { %v6283_v14 = vmul.f32 %v6275_v12, %v6267_v41 }
0x18b6   : > { %v6294_v44 = vadd.f32 %v6293_v24, %v6292_v43  ;;  %v6299_v36 = vsel %vm6285_vm6, %v6284_v32, 0.0 }
0x18b7   : > { %v6297_v29 = vsel %vm6285_vm6, %v6283_v14, 0.0 }
0x18b8   : > { %v6296_v8 = vadd.f32 %v6295_v6, %v6294_v44 }
0x18ba   : > { %v6298_v21 = vadd.f32 %v6297_v29, %v6296_v8 }
0x18bc   : > { %v6300_v31 = vadd.f32 %v6299_v36, %v6298_v21 }
0x18be   : > { %v6301_v34 = vrot.slane %v6300_v31, 4 }
0x18c0   : > { %v6302_v4 = vadd.f32 %v6301_v34, %v6300_v31 }
0x18c2   : > { %v6303_v27 = vrot.slane %v6302_v4, 2 }
0x18c4   : > { %v6304_v20 = vadd.f32 %v6303_v27, %v6302_v4 }
0x18c6   : > { %v6305_v38 = vrot.slane %v6304_v20, 1 }
0x18c8   : > { %v6306_v60 = vadd.f32 %v6305_v38, %v6304_v20 }
0x18ca   : > { %v6308_v23 = vadd.f32 %v6307_v55, %v6306_v60 }
0x18cc   : > { %6310 = vst.msk [vmem:[%s9494_s0] sm:$0x1] %vm6309_vm7, %v6308_v23 }
0x18cd PF: > { %s81_s16 = sadd.s32 1, %s7657_s16  }
0x18ce   : > { %p78_p7 = scmp.ge.s32.totalorder %s81_s16, 4  }
0x18d0   :  { %80 = sbr.rel (!%p78_p7) target bundleno = 55 (0x37), region = 286 }

</bundles_post_ra>
